<compile_context>
chip_gen: v7x
topology: tpu7x:2x2x1
jax: 0.10.0
libtpu: 0.0.40
codegen_flags: <defaults>
</compile_context>

<pallas_src>
import jax
import jax.numpy as jnp
from jax import lax
from jax.experimental import pallas as pl
from jax.experimental.pallas import tpu as pltpu

# ---- problem sizes (fixed by the module: fc1 expects 16*50*50 => 100x100 input) ----
B = 2
H = W = 100
CIN = 3
COUT = 16
KH = KW = 3
KTAPS = KH * KW * CIN            # 27 im2col rows (dy, dx, c)
HP, WP = H // 2, W // 2          # 50, 50 pooled spatial dims
PP = HP * WP                     # 2500 pooled pixels per channel
PP_PAD = 2560                    # pooled pixels padded to a lane-dense multiple of 128
FC_IN = COUT * PP                # 40000 (PyTorch flatten length)
K_PAD = COUT * PP_PAD            # 40960 padded FC reduction length
FC_OUT = 131

# FC tiling: K tile of 10240 == 4 conv channels per grid step.
FC_TK = 10240
CPK = FC_TK // PP_PAD            # channels handled per k step (4)


def _fc_split_for_device():
    """2 only on chips with 2 TensorCores (v7x) where the leading 'parallel' axis lets
    each core stream half the FC weight; 1 on v5e/v6e (split would be pure overhead).
    Correct either way -- this only affects performance."""
    try:
        kind = jax.devices()[0].device_kind.lower()
    except Exception:
        return 1
    return 2 if ("v7" in kind or "7x" in kind) else 1


FC_SPLIT = _fc_split_for_device()
FC_NK = K_PAD // (FC_SPLIT * FC_TK)   # k steps per split: 4 (split=1) or 2 (split=2)


# ----------------------------- fused Pallas kernel ----------------------------------
def fused_conv_fc_kernel(p_ref, cw_ref, cb_ref, w_ref, sc_ref, fb_ref, o_ref, act_ref):
    # p_ref : (B, 27, 4*2560) bf16  im2col patches, lane index = quadrant*2560 + pixel
    # cw_ref: (16, 27) bf16 conv weight        cb_ref: (16, 1) f32 conv bias
    # w_ref : (131, FC_TK) int8 fc-weight block (row = class, col = channel*2560 + pixel)
    # sc_ref: (1, 131) f32 per-class int8 dequant scale   fb_ref: (1, 131) f32 fc bias
    # o_ref : (1, B, 131) f32 resident accumulator for this split
    # act_ref: (16, B, 2560) bf16 pooled activations, persist across the k axis
    s = pl.program_id(0)
    k = pl.program_id(1)

    # --- k == 0: conv + bias + ReLU + 2x2 maxpool into VMEM scratch; zero the acc ----
    @pl.when(k == 0)
    def _():
        o_ref[...] = jnp.zeros_like(o_ref)
        cw = cw_ref[...]
        cb = cb_ref[...]
        for b in range(B):                                    # static, B == 2
            # one MXU matmul over all 4 pool quadrants at once (quadrant-major lanes)
            m = jnp.dot(cw, p_ref[b], preferred_element_type=jnp.float32)  # (16,10240)
            m = jnp.maximum(
                jnp.maximum(m[:, 0:PP_PAD],              m[:, PP_PAD:2 * PP_PAD]),
                jnp.maximum(m[:, 2 * PP_PAD:3 * PP_PAD], m[:, 3 * PP_PAD:4 * PP_PAD]))
            # max_q relu(conv_q + b) == relu(max_q conv_q + b)  (shared bias, relu monotone)
            act_ref[:, b, :] = jnp.maximum(m + cb, 0.0).astype(act_ref.dtype)

    # --- FC partial sums for the CPK channels owned by this (split, k) step ----------
    base = (s * FC_NK + k) * CPK
    acc = jnp.zeros((B, FC_OUT), jnp.float32)
    for c in range(CPK):                                      # static, CPK == 4
        xc = act_ref[base + c]                                # (B, 2560) bf16
        wc = w_ref[:, c * PP_PAD:(c + 1) * PP_PAD].astype(jnp.bfloat16)   # (131, 2560)
        acc += lax.dot_general(xc, wc, (((1,), (1,)), ((), ())),
                               preferred_element_type=jnp.float32)
    o_ref[0] += acc

    # --- last k: dequantize (per-class int8 scale) and add the bias exactly once -----
    @pl.when(k == FC_NK - 1)
    def _():
        bias = jnp.where(s == 0, fb_ref[...], 0.0)            # bias only on split 0
        o_ref[0] = o_ref[0] * sc_ref[...] + bias


# ----------------------------- one-time parameter prep -------------------------------
def prepare_params(params):
    """Hoisted out of the per-call forward (run once, outside jit): conv weight to
    (16, 27) bf16; fc weight re-indexed to the padded channels-first flatten, stored
    transposed as (131, 40960) and quantized to int8 with a per-class scale."""
    conv_w = params["conv_w"]            # (16, 3, 3, 3)  (O, I, KH, KW)
    conv_b = params["conv_b"]            # (16,)
    fc_w = params["fc_w"]                # (40000, 131)  rows ordered c*2500 + pixel
    fc_b = params["fc_b"]                # (131,)

    # conv weight as (O, tap) with tap order (dy, dx, c) -- matches patch construction.
    w_t = jnp.transpose(conv_w, (0, 2, 3, 1)).reshape(COUT, KTAPS).astype(jnp.bfloat16)

    # fc weight: pixel axis zero-padded 2500 -> 2560 per channel, then transposed to
    # (class, k) so the HBM layout is lane-dense in K (no 131->256 lane-pad waste).
    wf = fc_w.reshape(COUT, PP, FC_OUT)
    wf = jnp.pad(wf, ((0, 0), (0, PP_PAD - PP), (0, 0)))      # (16, 2560, 131)
    wt = wf.reshape(K_PAD, FC_OUT).T                          # (131, 40960) f32

    # per-class symmetric int8 quantization; pad rows stay exactly zero.
    scale = jnp.maximum(jnp.max(jnp.abs(wt), axis=1, keepdims=True) / 127.0, 1e-30)
    wq = jnp.clip(jnp.round(wt / scale), -127.0, 127.0).astype(jnp.int8)

    return {
        "conv_wt": w_t,                                       # (16, 27) bf16
        "conv_b": conv_b.reshape(COUT, 1).astype(jnp.float32),
        "fc_wq": wq,                                          # (131, 40960) int8
        "fc_scale": scale.reshape(1, FC_OUT).astype(jnp.float32),
        "fc_b": fc_b.reshape(1, FC_OUT).astype(jnp.float32),
    }


# ----------------------------- forward pass -----------------------------------------
def fruit_classifier_forward(x_nchw, p):
    # --- im2col + pool-quadrant regroup, emitted directly in bf16 and lane-padded ----
    # TODO(synk): this strided patch/quadrant gather stays in XLA -- building it inside
    # the kernel would need cross-lane gathers with no clean Pallas TPU equivalent.
    xp = jnp.pad(x_nchw, ((0, 0), (0, 0), (1, 1), (1, 1)))    # (B, 3, 102, 102)
    quads = []
    for py in range(2):                 # pool tap rows
        for px in range(2):             # pool tap cols
            taps = []
            for dy in range(KH):
                for dx in range(KW):
                    win = xp[:, :, py + dy:py + dy + H:2, px + dx:px + dx + W:2]
                    taps.append(win.reshape(B, CIN, PP))      # (B, 3, 2500)
            q = jnp.concatenate(taps, axis=1)                 # (B, 27, 2500)
            quads.append(jnp.pad(q, ((0, 0), (0, 0), (0, PP_PAD - PP))))
    # lane index = quadrant*2560 + pooled pixel; pad pixels are zero (their fc rows are 0)
    patches = jnp.concatenate(quads, axis=2).astype(jnp.bfloat16)   # (B, 27, 10240)

    partial = pl.pallas_call(
        fused_conv_fc_kernel,
        out_shape=jax.ShapeDtypeStruct((FC_SPLIT, B, FC_OUT), jnp.float32),
        grid=(FC_SPLIT, FC_NK),
        in_specs=[
            pl.BlockSpec((B, KTAPS, 4 * PP_PAD), lambda s, k: (0, 0, 0)),   # resident
            pl.BlockSpec((COUT, KTAPS),          lambda s, k: (0, 0)),      # resident
            pl.BlockSpec((COUT, 1),              lambda s, k: (0, 0)),      # resident
            pl.BlockSpec((FC_OUT, FC_TK),        lambda s, k: (0, s * FC_NK + k)),
            pl.BlockSpec((1, FC_OUT),            lambda s, k: (0, 0)),      # resident
            pl.BlockSpec((1, FC_OUT),            lambda s, k: (0, 0)),      # resident
        ],
        out_specs=pl.BlockSpec((1, B, FC_OUT), lambda s, k: (s, 0, 0)),
        scratch_shapes=[pltpu.VMEM((COUT, B, PP_PAD), jnp.bfloat16)],
        compiler_params=pltpu.CompilerParams(
            dimension_semantics=("parallel", "arbitrary"),
            vmem_limit_bytes=32 * 1024 * 1024),
    )(patches, p["conv_wt"], p["conv_b"], p["fc_wq"], p["fc_scale"], p["fc_b"])

    # Scale + bias already applied in-kernel; this is a squeeze (split=1) or tiny add.
    return jnp.sum(partial, axis=0)


# ----------------------------- pure-JAX reference -----------------------------------
def reference_forward(x_nchw, params):
    conv = lax.conv_general_dilated(
        x_nchw, params["conv_w"], (1, 1), ((1, 1), (1, 1)),
        dimension_numbers=("NCHW", "OIHW", "NCHW"),
        precision=lax.Precision.HIGHEST)
    conv = jnp.maximum(conv + params["conv_b"][None, :, None, None], 0.0)
    pooled = lax.reduce_window(conv, -jnp.inf, lax.max,
                               (1, 1, 2, 2), (1, 1, 2, 2), "VALID")
    flat = pooled.reshape(B, FC_IN)
    return jnp.dot(flat, params["fc_w"], precision=lax.Precision.HIGHEST) + params["fc_b"]


# ----------------------------------- main --------------------------------------------
if __name__ == "__main__":
    key = jax.random.PRNGKey(0)
    k1, k2, k3, k4, k5 = jax.random.split(key, 5)

    bound_c = 1.0 / (CIN * KH * KW) ** 0.5
    bound_f = 1.0 / FC_IN ** 0.5
    params = {
        "conv_w": jax.random.uniform(k1, (COUT, CIN, KH, KW), jnp.float32, -bound_c, bound_c),
        "conv_b": jax.random.uniform(k2, (COUT,), jnp.float32, -bound_c, bound_c),
        "fc_w": jax.random.uniform(k3, (FC_IN, FC_OUT), jnp.float32, -bound_f, bound_f),
        "fc_b": jax.random.uniform(k4, (FC_OUT,), jnp.float32, -bound_f, bound_f),
    }
    x = jax.random.normal(k5, (B, CIN, H, W), jnp.float32)

    prepped = prepare_params(params)              # one-time prep, outside jit
    fwd = jax.jit(fruit_classifier_forward)

    out = fwd(x, prepped)
    out = jax.block_until_ready(out)

    assert out.shape == (B, FC_OUT), out.shape
    assert bool(jnp.all(jnp.isfinite(out)))

    ref = reference_forward(x, params)
    scale = float(jnp.max(jnp.abs(ref))) + 1e-6
    max_rel = float(jnp.max(jnp.abs(out - ref))) / scale
    assert max_rel < 5e-2, f"mismatch vs reference: rel err {max_rel}"

    print("KERNEL_OK")
</pallas_src>

<mosaic_0001>
module attributes {stable_mosaic.version = 11 : i64} {
  func.func @fused_conv_fc_kernel(%arg0: i32, %arg1: i32, %arg2: memref<2x27x10240xbf16, #tpu.memory_space<vmem>>, %arg3: memref<16x27xbf16, #tpu.memory_space<vmem>>, %arg4: memref<16x1xf32, #tpu.memory_space<vmem>>, %arg5: memref<131x10240xi8, #tpu.memory_space<vmem>>, %arg6: memref<1x131xf32, #tpu.memory_space<vmem>>, %arg7: memref<1x131xf32, #tpu.memory_space<vmem>>, %arg8: memref<1x2x131xf32, #tpu.memory_space<vmem>>, %arg9: memref<16x2x2560xbf16, #tpu.memory_space<vmem>>) attributes {dimension_semantics = [#tpu.dimension_semantics<parallel>, #tpu.dimension_semantics<arbitrary>], iteration_bounds = array<i64: 1, 4>, scalar_prefetch = 0 : i64, scratch_operands = 1 : i64, tpu.core_type = #tpu.core_type<tc>, window_params = [{pipeline_mode = #tpu.pipeline_mode<synchronous>, transform_indices = @transform_0, window_bounds = array<i64: 2, 27, 10240>}, {pipeline_mode = #tpu.pipeline_mode<synchronous>, transform_indices = @transform_1, window_bounds = array<i64: 16, 27>}, {pipeline_mode = #tpu.pipeline_mode<synchronous>, transform_indices = @transform_2, window_bounds = array<i64: 16, 1>}, {transform_indices = @transform_3, window_bounds = array<i64: 131, 10240>}, {pipeline_mode = #tpu.pipeline_mode<synchronous>, transform_indices = @transform_4, window_bounds = array<i64: 1, 131>}, {pipeline_mode = #tpu.pipeline_mode<synchronous>, transform_indices = @transform_5, window_bounds = array<i64: 1, 131>}, {transform_indices = @transform_6, window_bounds = array<i64: 1, 2, 131>}]} {
    %c0_i32 = arith.constant 0 : i32
    %0 = arith.cmpi eq, %arg1, %c0_i32 : i32
    %1 = arith.extui %0 : i1 to i32
    %c0_i32_0 = arith.constant 0 : i32
    %2 = arith.cmpi ne, %1, %c0_i32_0 : i32
    scf.if %2 {
      %cst_27 = arith.constant 0.000000e+00 : f32
      %48 = vector.broadcast %cst_27 : f32 to vector<1x2x131xf32>
      %c0_28 = arith.constant 0 : index
      %c0_29 = arith.constant 0 : index
      %c0_30 = arith.constant 0 : index
      %49 = vector.load %arg8[%c0_28, %c0_29, %c0_30] : memref<1x2x131xf32, #tpu.memory_space<vmem>>, vector<1x2x131xf32>
      tpu.vector_store %arg8[%c0_28, %c0_29, %c0_30], %48 {strides = array<i32>} : memref<1x2x131xf32, #tpu.memory_space<vmem>>, vector<1x2x131xf32>,
      %c0_31 = arith.constant 0 : index
      %c0_32 = arith.constant 0 : index
      %50 = vector.load %arg3[%c0_31, %c0_32] : memref<16x27xbf16, #tpu.memory_space<vmem>>, vector<16x27xbf16>
      %c0_33 = arith.constant 0 : index
      %c0_34 = arith.constant 0 : index
      %51 = vector.load %arg4[%c0_33, %c0_34] : memref<16x1xf32, #tpu.memory_space<vmem>>, vector<16x1xf32>
      %c0_35 = arith.constant 0 : index
      %c0_36 = arith.constant 0 : index
      %c0_37 = arith.constant 0 : index
      %52 = vector.load %arg2[%c0_35, %c0_36, %c0_37] : memref<2x27x10240xbf16, #tpu.memory_space<vmem>>, vector<1x27x10240xbf16>
      %53 = vector.shape_cast %52 : vector<1x27x10240xbf16> to vector<27x10240xbf16>
      %cst_38 = arith.constant dense<0.000000e+00> : vector<16x10240xf32>
      %54 = tpu.matmul %50, %53, %cst_38 {dimension_numbers = #tpu.dot_dimension_numbers<[1], [0], [0], [1], [0, 0, 1, 1], [], []>} : vector<16x27xbf16>, vector<27x10240xbf16>, vector<16x10240xf32> -> vector<16x10240xf32>
      %55 = vector.extract_strided_slice %54 {offsets = [0, 0], sizes = [16, 2560], strides = [1, 1]} : vector<16x10240xf32> to vector<16x2560xf32>
      %56 = vector.extract_strided_slice %54 {offsets = [0, 2560], sizes = [16, 2560], strides = [1, 1]} : vector<16x10240xf32> to vector<16x2560xf32>
      %57 = arith.maximumf %55, %56 : vector<16x2560xf32>
      %58 = vector.extract_strided_slice %54 {offsets = [0, 5120], sizes = [16, 2560], strides = [1, 1]} : vector<16x10240xf32> to vector<16x2560xf32>
      %59 = vector.extract_strided_slice %54 {offsets = [0, 7680], sizes = [16, 2560], strides = [1, 1]} : vector<16x10240xf32> to vector<16x2560xf32>
      %60 = arith.maximumf %58, %59 : vector<16x2560xf32>
      %61 = arith.maximumf %57, %60 : vector<16x2560xf32>
      %62 = vector.broadcast %51 : vector<16x1xf32> to vector<16x2560xf32>
      %63 = arith.addf %61, %62 : vector<16x2560xf32>
      %cst_39 = arith.constant 0.000000e+00 : f32
      %64 = vector.broadcast %cst_39 : f32 to vector<16x2560xf32>
      %65 = arith.maximumf %63, %64 : vector<16x2560xf32>
      %66 = arith.truncf %65 : vector<16x2560xf32> to vector<16x2560xbf16>
      %c0_40 = arith.constant 0 : index
      %c0_41 = arith.constant 0 : index
      %c0_42 = arith.constant 0 : index
      %67 = vector.load %arg9[%c0_40, %c0_41, %c0_42] : memref<16x2x2560xbf16, #tpu.memory_space<vmem>>, vector<16x1x2560xbf16>
      %68 = vector.shape_cast %67 : vector<16x1x2560xbf16> to vector<16x2560xbf16>
      %69 = vector.shape_cast %66 : vector<16x2560xbf16> to vector<16x1x2560xbf16>
      tpu.vector_store %arg9[%c0_40, %c0_41, %c0_42], %69 {strides = array<i32>} : memref<16x2x2560xbf16, #tpu.memory_space<vmem>>, vector<16x1x2560xbf16>,
      %c1 = arith.constant 1 : index
      %c0_43 = arith.constant 0 : index
      %c0_44 = arith.constant 0 : index
      %70 = vector.load %arg2[%c1, %c0_43, %c0_44] : memref<2x27x10240xbf16, #tpu.memory_space<vmem>>, vector<1x27x10240xbf16>
      %71 = vector.shape_cast %70 : vector<1x27x10240xbf16> to vector<27x10240xbf16>
      %cst_45 = arith.constant dense<0.000000e+00> : vector<16x10240xf32>
      %72 = tpu.matmul %50, %71, %cst_45 {dimension_numbers = #tpu.dot_dimension_numbers<[1], [0], [0], [1], [0, 0, 1, 1], [], []>} : vector<16x27xbf16>, vector<27x10240xbf16>, vector<16x10240xf32> -> vector<16x10240xf32>
      %73 = vector.extract_strided_slice %72 {offsets = [0, 0], sizes = [16, 2560], strides = [1, 1]} : vector<16x10240xf32> to vector<16x2560xf32>
      %74 = vector.extract_strided_slice %72 {offsets = [0, 2560], sizes = [16, 2560], strides = [1, 1]} : vector<16x10240xf32> to vector<16x2560xf32>
      %75 = arith.maximumf %73, %74 : vector<16x2560xf32>
      %76 = vector.extract_strided_slice %72 {offsets = [0, 5120], sizes = [16, 2560], strides = [1, 1]} : vector<16x10240xf32> to vector<16x2560xf32>
      %77 = vector.extract_strided_slice %72 {offsets = [0, 7680], sizes = [16, 2560], strides = [1, 1]} : vector<16x10240xf32> to vector<16x2560xf32>
      %78 = arith.maximumf %76, %77 : vector<16x2560xf32>
      %79 = arith.maximumf %75, %78 : vector<16x2560xf32>
      %80 = vector.broadcast %51 : vector<16x1xf32> to vector<16x2560xf32>
      %81 = arith.addf %79, %80 : vector<16x2560xf32>
      %cst_46 = arith.constant 0.000000e+00 : f32
      %82 = vector.broadcast %cst_46 : f32 to vector<16x2560xf32>
      %83 = arith.maximumf %81, %82 : vector<16x2560xf32>
      %84 = arith.truncf %83 : vector<16x2560xf32> to vector<16x2560xbf16>
      %c0_47 = arith.constant 0 : index
      %c1_48 = arith.constant 1 : index
      %c0_49 = arith.constant 0 : index
      %85 = vector.load %arg9[%c0_47, %c1_48, %c0_49] : memref<16x2x2560xbf16, #tpu.memory_space<vmem>>, vector<16x1x2560xbf16>
      %86 = vector.shape_cast %85 : vector<16x1x2560xbf16> to vector<16x2560xbf16>
      %87 = vector.shape_cast %84 : vector<16x2560xbf16> to vector<16x1x2560xbf16>
      tpu.vector_store %arg9[%c0_47, %c1_48, %c0_49], %87 {strides = array<i32>} : memref<16x2x2560xbf16, #tpu.memory_space<vmem>>, vector<16x1x2560xbf16>,
    } else {
    }
    %c4_i32 = arith.constant 4 : i32
    %3 = arith.muli %arg0, %c4_i32 : i32
    %4 = arith.addi %3, %arg1 : i32
    %c4_i32_1 = arith.constant 4 : i32
    %5 = arith.muli %4, %c4_i32_1 : i32
    %cst = arith.constant 0.000000e+00 : f32
    %6 = vector.broadcast %cst : f32 to vector<2x131xf32>
    %c0_i32_2 = arith.constant 0 : i32
    %7 = arith.addi %5, %c0_i32_2 : i32
    %8 = arith.index_cast %7 : i32 to index
    %c0 = arith.constant 0 : index
    %c0_3 = arith.constant 0 : index
    %9 = vector.load %arg9[%8, %c0, %c0_3] : memref<16x2x2560xbf16, #tpu.memory_space<vmem>>, vector<1x2x2560xbf16>
    %10 = vector.shape_cast %9 : vector<1x2x2560xbf16> to vector<2x2560xbf16>
    %c0_4 = arith.constant 0 : index
    %c0_5 = arith.constant 0 : index
    %11 = vector.load %arg5[%c0_4, %c0_5] : memref<131x10240xi8, #tpu.memory_space<vmem>>, vector<131x2560xi8>
    %12 = arith.sitofp %11 : vector<131x2560xi8> to vector<131x2560xbf16>
    %cst_6 = arith.constant dense<0.000000e+00> : vector<2x131xf32>
    %13 = tpu.matmul %10, %12, %cst_6 {dimension_numbers = #tpu.dot_dimension_numbers<[1], [1], [0], [0], [0, 0, 1, 0], [], []>} : vector<2x2560xbf16>, vector<131x2560xbf16>, vector<2x131xf32> -> vector<2x131xf32>
    %14 = arith.addf %6, %13 : vector<2x131xf32>
    %c1_i32 = arith.constant 1 : i32
    %15 = arith.addi %5, %c1_i32 : i32
    %16 = arith.index_cast %15 : i32 to index
    %c0_7 = arith.constant 0 : index
    %c0_8 = arith.constant 0 : index
    %17 = vector.load %arg9[%16, %c0_7, %c0_8] : memref<16x2x2560xbf16, #tpu.memory_space<vmem>>, vector<1x2x2560xbf16>
    %18 = vector.shape_cast %17 : vector<1x2x2560xbf16> to vector<2x2560xbf16>
    %c0_9 = arith.constant 0 : index
    %c2560 = arith.constant 2560 : index
    %19 = vector.load %arg5[%c0_9, %c2560] : memref<131x10240xi8, #tpu.memory_space<vmem>>, vector<131x2560xi8>
    %20 = arith.sitofp %19 : vector<131x2560xi8> to vector<131x2560xbf16>
    %cst_10 = arith.constant dense<0.000000e+00> : vector<2x131xf32>
    %21 = tpu.matmul %18, %20, %cst_10 {dimension_numbers = #tpu.dot_dimension_numbers<[1], [1], [0], [0], [0, 0, 1, 0], [], []>} : vector<2x2560xbf16>, vector<131x2560xbf16>, vector<2x131xf32> -> vector<2x131xf32>
    %22 = arith.addf %14, %21 : vector<2x131xf32>
    %c2_i32 = arith.constant 2 : i32
    %23 = arith.addi %5, %c2_i32 : i32
    %24 = arith.index_cast %23 : i32 to index
    %c0_11 = arith.constant 0 : index
    %c0_12 = arith.constant 0 : index
    %25 = vector.load %arg9[%24, %c0_11, %c0_12] : memref<16x2x2560xbf16, #tpu.memory_space<vmem>>, vector<1x2x2560xbf16>
    %26 = vector.shape_cast %25 : vector<1x2x2560xbf16> to vector<2x2560xbf16>
    %c0_13 = arith.constant 0 : index
    %c5120 = arith.constant 5120 : index
    %27 = vector.load %arg5[%c0_13, %c5120] : memref<131x10240xi8, #tpu.memory_space<vmem>>, vector<131x2560xi8>
    %28 = arith.sitofp %27 : vector<131x2560xi8> to vector<131x2560xbf16>
    %cst_14 = arith.constant dense<0.000000e+00> : vector<2x131xf32>
    %29 = tpu.matmul %26, %28, %cst_14 {dimension_numbers = #tpu.dot_dimension_numbers<[1], [1], [0], [0], [0, 0, 1, 0], [], []>} : vector<2x2560xbf16>, vector<131x2560xbf16>, vector<2x131xf32> -> vector<2x131xf32>
    %30 = arith.addf %22, %29 : vector<2x131xf32>
    %c3_i32 = arith.constant 3 : i32
    %31 = arith.addi %5, %c3_i32 : i32
    %32 = arith.index_cast %31 : i32 to index
    %c0_15 = arith.constant 0 : index
    %c0_16 = arith.constant 0 : index
    %33 = vector.load %arg9[%32, %c0_15, %c0_16] : memref<16x2x2560xbf16, #tpu.memory_space<vmem>>, vector<1x2x2560xbf16>
    %34 = vector.shape_cast %33 : vector<1x2x2560xbf16> to vector<2x2560xbf16>
    %c0_17 = arith.constant 0 : index
    %c7680 = arith.constant 7680 : index
    %35 = vector.load %arg5[%c0_17, %c7680] : memref<131x10240xi8, #tpu.memory_space<vmem>>, vector<131x2560xi8>
    %36 = arith.sitofp %35 : vector<131x2560xi8> to vector<131x2560xbf16>
    %cst_18 = arith.constant dense<0.000000e+00> : vector<2x131xf32>
    %37 = tpu.matmul %34, %36, %cst_18 {dimension_numbers = #tpu.dot_dimension_numbers<[1], [1], [0], [0], [0, 0, 1, 0], [], []>} : vector<2x2560xbf16>, vector<131x2560xbf16>, vector<2x131xf32> -> vector<2x131xf32>
    %38 = arith.addf %30, %37 : vector<2x131xf32>
    %c0_19 = arith.constant 0 : index
    %c0_20 = arith.constant 0 : index
    %c0_21 = arith.constant 0 : index
    %39 = vector.load %arg8[%c0_19, %c0_20, %c0_21] : memref<1x2x131xf32, #tpu.memory_space<vmem>>, vector<1x2x131xf32>
    %40 = vector.shape_cast %39 : vector<1x2x131xf32> to vector<2x131xf32>
    %41 = arith.addf %40, %38 : vector<2x131xf32>
    %c0_22 = arith.constant 0 : index
    %c0_23 = arith.constant 0 : index
    %c0_24 = arith.constant 0 : index
    %42 = vector.load %arg8[%c0_22, %c0_23, %c0_24] : memref<1x2x131xf32, #tpu.memory_space<vmem>>, vector<1x2x131xf32>
    %43 = vector.shape_cast %42 : vector<1x2x131xf32> to vector<2x131xf32>
    %44 = vector.shape_cast %41 : vector<2x131xf32> to vector<1x2x131xf32>
    tpu.vector_store %arg8[%c0_22, %c0_23, %c0_24], %44 {strides = array<i32>} : memref<1x2x131xf32, #tpu.memory_space<vmem>>, vector<1x2x131xf32>,
    %c3_i32_25 = arith.constant 3 : i32
    %45 = arith.cmpi eq, %arg1, %c3_i32_25 : i32
    %46 = arith.extui %45 : i1 to i32
    %c0_i32_26 = arith.constant 0 : i32
    %47 = arith.cmpi ne, %46, %c0_i32_26 : i32
    scf.if %47 {
      %c0_i32_27 = arith.constant 0 : i32
      %48 = arith.cmpi eq, %arg0, %c0_i32_27 : i32
      %c0_28 = arith.constant 0 : index
      %c0_29 = arith.constant 0 : index
      %49 = vector.load %arg7[%c0_28, %c0_29] : memref<1x131xf32, #tpu.memory_space<vmem>>, vector<1x131xf32>
      %cst_30 = arith.constant 0.000000e+00 : f32
      %50 = vector.broadcast %cst_30 : f32 to vector<1x131xf32>
      %51 = arith.select %48, %49, %50 : vector<1x131xf32>
      %c0_31 = arith.constant 0 : index
      %c0_32 = arith.constant 0 : index
      %c0_33 = arith.constant 0 : index
      %52 = vector.load %arg8[%c0_31, %c0_32, %c0_33] : memref<1x2x131xf32, #tpu.memory_space<vmem>>, vector<1x2x131xf32>
      %53 = vector.shape_cast %52 : vector<1x2x131xf32> to vector<2x131xf32>
      %c0_34 = arith.constant 0 : index
      %c0_35 = arith.constant 0 : index
      %54 = vector.load %arg6[%c0_34, %c0_35] : memref<1x131xf32, #tpu.memory_space<vmem>>, vector<1x131xf32>
      %55 = vector.broadcast %54 : vector<1x131xf32> to vector<2x131xf32>
      %56 = arith.mulf %53, %55 : vector<2x131xf32>
      %57 = vector.broadcast %51 : vector<1x131xf32> to vector<2x131xf32>
      %58 = arith.addf %56, %57 : vector<2x131xf32>
      %c0_36 = arith.constant 0 : index
      %c0_37 = arith.constant 0 : index
      %c0_38 = arith.constant 0 : index
      %59 = vector.load %arg8[%c0_36, %c0_37, %c0_38] : memref<1x2x131xf32, #tpu.memory_space<vmem>>, vector<1x2x131xf32>
      %60 = vector.shape_cast %59 : vector<1x2x131xf32> to vector<2x131xf32>
      %61 = vector.shape_cast %58 : vector<2x131xf32> to vector<1x2x131xf32>
      tpu.vector_store %arg8[%c0_36, %c0_37, %c0_38], %61 {strides = array<i32>} : memref<1x2x131xf32, #tpu.memory_space<vmem>>, vector<1x2x131xf32>,
    } else {
    }
    return
  }
  func.func @transform_0(%arg0: i32, %arg1: i32) -> (i32, i32, i32) {
    %c0_i32 = arith.constant 0 : i32
    %c0_i32_0 = arith.constant 0 : i32
    %c0_i32_1 = arith.constant 0 : i32
    %c0_i32_2 = arith.constant 0 : i32
    return %c0_i32, %c0_i32_0, %c0_i32_1 : i32, i32, i32
  }
  func.func @transform_1(%arg0: i32, %arg1: i32) -> (i32, i32) {
    %c0_i32 = arith.constant 0 : i32
    %c0_i32_0 = arith.constant 0 : i32
    %c0_i32_1 = arith.constant 0 : i32
    return %c0_i32, %c0_i32_0 : i32, i32
  }
  func.func @transform_2(%arg0: i32, %arg1: i32) -> (i32, i32) {
    %c0_i32 = arith.constant 0 : i32
    %c0_i32_0 = arith.constant 0 : i32
    %c0_i32_1 = arith.constant 0 : i32
    return %c0_i32, %c0_i32_0 : i32, i32
  }
  func.func @transform_3(%arg0: i32, %arg1: i32) -> (i32, i32) {
    %c4_i32 = arith.constant 4 : i32
    %0 = arith.muli %arg0, %c4_i32 : i32
    %1 = arith.addi %0, %arg1 : i32
    %c0_i32 = arith.constant 0 : i32
    %c0_i32_0 = arith.constant 0 : i32
    return %c0_i32, %1 : i32, i32
  }
  func.func @transform_4(%arg0: i32, %arg1: i32) -> (i32, i32) {
    %c0_i32 = arith.constant 0 : i32
    %c0_i32_0 = arith.constant 0 : i32
    %c0_i32_1 = arith.constant 0 : i32
    return %c0_i32, %c0_i32_0 : i32, i32
  }
  func.func @transform_5(%arg0: i32, %arg1: i32) -> (i32, i32) {
    %c0_i32 = arith.constant 0 : i32
    %c0_i32_0 = arith.constant 0 : i32
    %c0_i32_1 = arith.constant 0 : i32
    return %c0_i32, %c0_i32_0 : i32, i32
  }
  func.func @transform_6(%arg0: i32, %arg1: i32) -> (i32, i32, i32) {
    %c0_i32 = arith.constant 0 : i32
    %c0_i32_0 = arith.constant 0 : i32
    %c0_i32_1 = arith.constant 0 : i32
    return %arg0, %c0_i32, %c0_i32_0 : i32, i32, i32
  }
}

</mosaic_0001>

<bundles_post_ra>
// kernel: fruit_classifier_forward.1
= control target key start
LH: loop header
LB: loop body
LE: loop exit
PB: predicated region body
PF: predicated region fallthrough
CT: control target
= control target key end

     0   :  { %11 = vsyncpa [#allocation5], 0  ;;  %s17112_s21 = smov 0   ;;  %s17114_s22 = smov 0   ;;  %s23322_s0 = inlined_call_operand.vmem [shape: bf16[2,27,10240], index: 0, kind: input, shape index: {}]   ;;  %s23323_s1 = inlined_call_operand.vmem [shape: bf16[16,27], index: 1, kind: input, shape index: {}]   ;;  %s23324_s2 = inlined_call_operand.vmem [shape: f32[16,1], index: 2, kind: input, shape index: {}]   ;;  %s23325_s3 = inlined_call_operand.vmem [shape: s8[131,40960], index: 3, kind: input, shape index: {}]   ;;  %s23326_s4 = inlined_call_operand.vmem [shape: f32[1,131], index: 4, kind: input, shape index: {}]   ;;  %s23327_s5 = inlined_call_operand.vmem [shape: f32[1,131], index: 5, kind: input, shape index: {}]   ;;  %s23328_s6 = inlined_call_operand.hbm [shape: f32[1,2,131], index: 6, kind: output, shape index: {}]  }
   0x1   :  { %s17116_s23 = smov 0   ;;  %s17118_s24 = smov 0  }
   0x2   :  { %s17120_s25 = smov 0  }
   0x3 LB: > { %s15377_s26 = sadd.s32 4294967295, %s17068_s25   ;;  %s26_s27 = sadd.s32 1, %s17064_s24  ;;  %s17068_s25 = sphi %s17120_s25, %s17_s25   ;;  %s17064_s24 = sphi %s17118_s24, %s23916_s24   ;;  %s17060_s23 = sphi %s17116_s23, %s23915_s23   ;;  %s17056_s22 = sphi %s17114_s22, %s23914_s22   ;;  %s17052_s21 = sphi %s17112_s21, %s23913_s21  }
   0x4   : > { %p27_p0 = scmp.ge.s32.totalorder %s26_s27, 4  ;;  %p110_p1 = scmp.ne.s32.totalorder %s17056_s22, %s17052_s21 }
   0x5   : > { %p111_p2 = scmp.eq.s32.totalorder %s17068_s25, 0  ;;  %s103_s29 = sadd.s32 1, %s17056_s22 }
   0x6   : > { %s23918_s27 = smov (%p27_p0, %s26_s27), 0  ;;  %p15379_p5 = scmp.ge.s32.totalorder %s17068_s25, 4 }
   0x7   : > { %p112_p3 = por %p111_p2, %p110_p1  ;;  %s100_s28 = ssub.s32 %s17064_s24, %s23918_s27 }
   0x8   : > { %p101_p4 = scmp.eq.s32.totalorder %s100_s28, 0  ;;  %219 = sbr.rel (%p15379_p5) target bundleno = 190 (0xbe), region = 36 }
   0xa   : > { %s17148_s30 = scalar_select %p101_p4, %s17056_s22, %s103_s29  }
   0xf   : > { %222 = sbr.rel (!%p112_p3) target bundleno = 190 (0xbe), region = 40  ;;  %s224_s7 = sand.u32 (%p112_p3), 1, %s17056_s22  }
  0x10   : > { %s16778_s8 = smul.u32 (%p112_p3), 160, %s17064_s24 }
  0x11   : > { %s16933_s9 = smul.u32 (%p112_p3), 2720, %s224_s7 }
  0x12   : > { %s17156_s12 = scalar_lea.vmem (%p112_p3), %s23325_s3, %s16778_s8 }
  0x13   : > { %v244_v0 = vld [vmem:[%s17156_s12] sm:$0xff] (%p112_p3)  ;;  %v246_v1 = vld [vmem:[%s17156_s12 + $0x8] sm:$0xff] (%p112_p3)  ;;  %v248_v2 = vld [vmem:[%s17156_s12 + $0x10] sm:$0xff] (%p112_p3)  ;;  %s17161_s13 = scalar_lea.vmem (%p112_p3), [#allocation3], %s16933_s9 }
  0x14   : > { %245 = vst [vmem:[%s17161_s13] sm:$0xff] (%p112_p3), %v244_v0  ;;  %247 = vst [vmem:[%s17161_s13 + $0x8] sm:$0xff] (%p112_p3), %v246_v1  ;;  %v250_v3 = vld [vmem:[%s17156_s12 + $0x18] sm:$0xff] (%p112_p3)  ;;  %v252_v4 = vld [vmem:[%s17156_s12 + $0x20] sm:$0xff] (%p112_p3) }
  0x15   : > { %249 = vst [vmem:[%s17161_s13 + $0x10] sm:$0xff] (%p112_p3), %v248_v2  ;;  %v254_v5 = vld [vmem:[%s17156_s12 + $0x28] sm:$0xff] (%p112_p3)  ;;  %251 = vst [vmem:[%s17161_s13 + $0x18] sm:$0xff] (%p112_p3), %v250_v3  ;;  %v256_v6 = vld [vmem:[%s17156_s12 + $0x30] sm:$0xff] (%p112_p3) }
  0x16   : > { %253 = vst [vmem:[%s17161_s13 + $0x20] sm:$0xff] %v252_v4  ;;  %255 = vst [vmem:[%s17161_s13 + $0x28] sm:$0xff] %v254_v5  ;;  %v258_v7 = vld [vmem:[%s17156_s12 + $0x38] sm:$0xff]  ;;  %v260_v8 = vld [vmem:[%s17156_s12 + $0x40] sm:$0xff] }
  0x17   : > { %257 = vst [vmem:[%s17161_s13 + $0x30] sm:$0xff] %v256_v6  ;;  %259 = vst [vmem:[%s17161_s13 + $0x38] sm:$0xff] %v258_v7  ;;  %v262_v9 = vld [vmem:[%s17156_s12 + $0x48] sm:$0xff]  ;;  %v264_v10 = vld [vmem:[%s17156_s12 + $0x50] sm:$0xff] }
  0x18   : > { %261 = vst [vmem:[%s17161_s13 + $0x40] sm:$0xff] %v260_v8  ;;  %v266_v11 = vld [vmem:[%s17156_s12 + $0x58] sm:$0xff]  ;;  %263 = vst [vmem:[%s17161_s13 + $0x48] sm:$0xff] %v262_v9  ;;  %v268_v12 = vld [vmem:[%s17156_s12 + $0x60] sm:$0xff] }
  0x19   : > { %265 = vst [vmem:[%s17161_s13 + $0x50] sm:$0xff] %v264_v10  ;;  %267 = vst [vmem:[%s17161_s13 + $0x58] sm:$0xff] %v266_v11  ;;  %v270_v13 = vld [vmem:[%s17156_s12 + $0x68] sm:$0xff]  ;;  %v272_v14 = vld [vmem:[%s17156_s12 + $0x70] sm:$0xff] }
  0x1a   : > { %269 = vst [vmem:[%s17161_s13 + $0x60] sm:$0xff] %v268_v12  ;;  %271 = vst [vmem:[%s17161_s13 + $0x68] sm:$0xff] %v270_v13  ;;  %v274_v15 = vld [vmem:[%s17156_s12 + $0x78] sm:$0xff]  ;;  %v276_v16 = vld [vmem:[%s17156_s12 + $0x80] sm:$0xff] }
  0x1b   : > { %273 = vst [vmem:[%s17161_s13 + $0x70] sm:$0xff] %v272_v14  ;;  %v278_v17 = vld [vmem:[%s17156_s12 + $0x88] sm:$0xff]  ;;  %275 = vst [vmem:[%s17161_s13 + $0x78] sm:$0xff] %v274_v15  ;;  %v280_v18 = vld [vmem:[%s17156_s12 + $0x90] sm:$0xff] }
  0x1c   : > { %277 = vst [vmem:[%s17161_s13 + $0x80] sm:$0xff] %v276_v16  ;;  %279 = vst [vmem:[%s17161_s13 + $0x88] sm:$0xff] %v278_v17  ;;  %v282_v19 = vld [vmem:[%s17156_s12 + $0x98] sm:$0xff]  ;;  %v284_v20 = vld [vmem:[%s17156_s12 + $0x280] sm:$0xff] }
  0x1d   : > { %281 = vst [vmem:[%s17161_s13 + $0x90] sm:$0xff] %v280_v18  ;;  %283 = vst [vmem:[%s17161_s13 + $0x98] sm:$0xff] %v282_v19  ;;  %v286_v21 = vld [vmem:[%s17156_s12 + $0x288] sm:$0xff]  ;;  %v288_v22 = vld [vmem:[%s17156_s12 + $0x290] sm:$0xff] }
  0x1e   : > { %285 = vst [vmem:[%s17161_s13 + $0xa0] sm:$0xff] %v284_v20  ;;  %v290_v23 = vld [vmem:[%s17156_s12 + $0x298] sm:$0xff]  ;;  %287 = vst [vmem:[%s17161_s13 + $0xa8] sm:$0xff] %v286_v21  ;;  %v292_v24 = vld [vmem:[%s17156_s12 + $0x2a0] sm:$0xff] }
  0x1f   : > { %289 = vst [vmem:[%s17161_s13 + $0xb0] sm:$0xff] %v288_v22  ;;  %291 = vst [vmem:[%s17161_s13 + $0xb8] sm:$0xff] %v290_v23  ;;  %v294_v25 = vld [vmem:[%s17156_s12 + $0x2a8] sm:$0xff]  ;;  %v296_v26 = vld [vmem:[%s17156_s12 + $0x2b0] sm:$0xff] }
  0x20   : > { %293 = vst [vmem:[%s17161_s13 + $0xc0] sm:$0xff] %v292_v24  ;;  %295 = vst [vmem:[%s17161_s13 + $0xc8] sm:$0xff] %v294_v25  ;;  %v298_v27 = vld [vmem:[%s17156_s12 + $0x2b8] sm:$0xff]  ;;  %v300_v28 = vld [vmem:[%s17156_s12 + $0x2c0] sm:$0xff] }
  0x21   : > { %297 = vst [vmem:[%s17161_s13 + $0xd0] sm:$0xff] %v296_v26  ;;  %v302_v29 = vld [vmem:[%s17156_s12 + $0x2c8] sm:$0xff]  ;;  %299 = vst [vmem:[%s17161_s13 + $0xd8] sm:$0xff] %v298_v27  ;;  %v304_v30 = vld [vmem:[%s17156_s12 + $0x2d0] sm:$0xff] }
  0x22   : > { %301 = vst [vmem:[%s17161_s13 + $0xe0] sm:$0xff] %v300_v28  ;;  %303 = vst [vmem:[%s17161_s13 + $0xe8] sm:$0xff] %v302_v29  ;;  %v306_v31 = vld [vmem:[%s17156_s12 + $0x2d8] sm:$0xff]  ;;  %v308_v32 = vld [vmem:[%s17156_s12 + $0x2e0] sm:$0xff] }
  0x23   : > { %305 = vst [vmem:[%s17161_s13 + $0xf0] sm:$0xff] %v304_v30  ;;  %307 = vst [vmem:[%s17161_s13 + $0xf8] sm:$0xff] %v306_v31  ;;  %v310_v33 = vld [vmem:[%s17156_s12 + $0x2e8] sm:$0xff]  ;;  %v312_v34 = vld [vmem:[%s17156_s12 + $0x2f0] sm:$0xff] }
  0x24   : > { %309 = vst [vmem:[%s17161_s13 + $0x100] sm:$0xff] %v308_v32  ;;  %v314_v35 = vld [vmem:[%s17156_s12 + $0x2f8] sm:$0xff]  ;;  %311 = vst [vmem:[%s17161_s13 + $0x108] sm:$0xff] %v310_v33  ;;  %v316_v36 = vld [vmem:[%s17156_s12 + $0x300] sm:$0xff] }
  0x25   : > { %313 = vst [vmem:[%s17161_s13 + $0x110] sm:$0xff] %v312_v34  ;;  %315 = vst [vmem:[%s17161_s13 + $0x118] sm:$0xff] %v314_v35  ;;  %v318_v37 = vld [vmem:[%s17156_s12 + $0x308] sm:$0xff]  ;;  %v320_v38 = vld [vmem:[%s17156_s12 + $0x310] sm:$0xff] }
  0x26   : > { %317 = vst [vmem:[%s17161_s13 + $0x120] sm:$0xff] %v316_v36  ;;  %319 = vst [vmem:[%s17161_s13 + $0x128] sm:$0xff] %v318_v37  ;;  %v322_v39 = vld [vmem:[%s17156_s12 + $0x318] sm:$0xff]  ;;  %v324_v40 = vld [vmem:[%s17156_s12 + $0x500] sm:$0xff] }
  0x27   : > { %321 = vst [vmem:[%s17161_s13 + $0x130] sm:$0xff] %v320_v38  ;;  %v326_v41 = vld [vmem:[%s17156_s12 + $0x508] sm:$0xff]  ;;  %323 = vst [vmem:[%s17161_s13 + $0x138] sm:$0xff] %v322_v39  ;;  %v328_v42 = vld [vmem:[%s17156_s12 + $0x510] sm:$0xff] }
  0x28   : > { %325 = vst [vmem:[%s17161_s13 + $0x140] sm:$0xff] %v324_v40  ;;  %327 = vst [vmem:[%s17161_s13 + $0x148] sm:$0xff] %v326_v41  ;;  %v330_v43 = vld [vmem:[%s17156_s12 + $0x518] sm:$0xff]  ;;  %v332_v44 = vld [vmem:[%s17156_s12 + $0x520] sm:$0xff] }
  0x29   : > { %329 = vst [vmem:[%s17161_s13 + $0x150] sm:$0xff] %v328_v42  ;;  %331 = vst [vmem:[%s17161_s13 + $0x158] sm:$0xff] %v330_v43  ;;  %v334_v45 = vld [vmem:[%s17156_s12 + $0x528] sm:$0xff]  ;;  %v336_v46 = vld [vmem:[%s17156_s12 + $0x530] sm:$0xff] }
  0x2a   : > { %333 = vst [vmem:[%s17161_s13 + $0x160] sm:$0xff] %v332_v44  ;;  %v338_v47 = vld [vmem:[%s17156_s12 + $0x538] sm:$0xff]  ;;  %335 = vst [vmem:[%s17161_s13 + $0x168] sm:$0xff] %v334_v45  ;;  %v340_v48 = vld [vmem:[%s17156_s12 + $0x540] sm:$0xff] }
  0x2b   : > { %337 = vst [vmem:[%s17161_s13 + $0x170] sm:$0xff] %v336_v46  ;;  %339 = vst [vmem:[%s17161_s13 + $0x178] sm:$0xff] %v338_v47  ;;  %v342_v49 = vld [vmem:[%s17156_s12 + $0x548] sm:$0xff]  ;;  %v344_v50 = vld [vmem:[%s17156_s12 + $0x550] sm:$0xff] }
  0x2c   : > { %341 = vst [vmem:[%s17161_s13 + $0x180] sm:$0xff] %v340_v48  ;;  %343 = vst [vmem:[%s17161_s13 + $0x188] sm:$0xff] %v342_v49  ;;  %v346_v51 = vld [vmem:[%s17156_s12 + $0x558] sm:$0xff]  ;;  %v348_v52 = vld [vmem:[%s17156_s12 + $0x560] sm:$0xff] }
  0x2d   : > { %345 = vst [vmem:[%s17161_s13 + $0x190] sm:$0xff] %v344_v50  ;;  %v350_v53 = vld [vmem:[%s17156_s12 + $0x568] sm:$0xff]  ;;  %347 = vst [vmem:[%s17161_s13 + $0x198] sm:$0xff] %v346_v51  ;;  %v352_v54 = vld [vmem:[%s17156_s12 + $0x570] sm:$0xff] }
  0x2e   : > { %349 = vst [vmem:[%s17161_s13 + $0x1a0] sm:$0xff] %v348_v52  ;;  %351 = vst [vmem:[%s17161_s13 + $0x1a8] sm:$0xff] %v350_v53  ;;  %v354_v55 = vld [vmem:[%s17156_s12 + $0x578] sm:$0xff]  ;;  %v356_v56 = vld [vmem:[%s17156_s12 + $0x580] sm:$0xff] }
  0x2f   : > { %353 = vst [vmem:[%s17161_s13 + $0x1b0] sm:$0xff] %v352_v54  ;;  %355 = vst [vmem:[%s17161_s13 + $0x1b8] sm:$0xff] %v354_v55  ;;  %v358_v57 = vld [vmem:[%s17156_s12 + $0x588] sm:$0xff]  ;;  %v360_v58 = vld [vmem:[%s17156_s12 + $0x590] sm:$0xff] }
  0x30   : > { %357 = vst [vmem:[%s17161_s13 + $0x1c0] sm:$0xff] %v356_v56  ;;  %v362_v59 = vld [vmem:[%s17156_s12 + $0x598] sm:$0xff]  ;;  %359 = vst [vmem:[%s17161_s13 + $0x1c8] sm:$0xff] %v358_v57  ;;  %v364_v60 = vld [vmem:[%s17156_s12 + $0x780] sm:$0xff] }
  0x31   : > { %361 = vst [vmem:[%s17161_s13 + $0x1d0] sm:$0xff] %v360_v58  ;;  %363 = vst [vmem:[%s17161_s13 + $0x1d8] sm:$0xff] %v362_v59  ;;  %v366_v61 = vld [vmem:[%s17156_s12 + $0x788] sm:$0xff]  ;;  %v368_v62 = vld [vmem:[%s17156_s12 + $0x790] sm:$0xff] }
  0x32   : > { %365 = vst [vmem:[%s17161_s13 + $0x1e0] sm:$0xff] %v364_v60  ;;  %367 = vst [vmem:[%s17161_s13 + $0x1e8] sm:$0xff] %v366_v61  ;;  %v370_v63 = vld [vmem:[%s17156_s12 + $0x798] sm:$0xff]  ;;  %v372_v0 = vld [vmem:[%s17156_s12 + $0x7a0] sm:$0xff] }
  0x33   : > { %369 = vst [vmem:[%s17161_s13 + $0x1f0] sm:$0xff] %v368_v62  ;;  %v374_v1 = vld [vmem:[%s17156_s12 + $0x7a8] sm:$0xff]  ;;  %371 = vst [vmem:[%s17161_s13 + $0x1f8] sm:$0xff] %v370_v63  ;;  %v376_v2 = vld [vmem:[%s17156_s12 + $0x7b0] sm:$0xff] }
  0x34   : > { %373 = vst [vmem:[%s17161_s13 + $0x200] sm:$0xff] %v372_v0  ;;  %375 = vst [vmem:[%s17161_s13 + $0x208] sm:$0xff] %v374_v1  ;;  %v378_v3 = vld [vmem:[%s17156_s12 + $0x7b8] sm:$0xff]  ;;  %v380_v4 = vld [vmem:[%s17156_s12 + $0x7c0] sm:$0xff] }
  0x35   : > { %377 = vst [vmem:[%s17161_s13 + $0x210] sm:$0xff] %v376_v2  ;;  %379 = vst [vmem:[%s17161_s13 + $0x218] sm:$0xff] %v378_v3  ;;  %v382_v5 = vld [vmem:[%s17156_s12 + $0x7c8] sm:$0xff]  ;;  %v384_v6 = vld [vmem:[%s17156_s12 + $0x7d0] sm:$0xff] }
  0x36   : > { %381 = vst [vmem:[%s17161_s13 + $0x220] sm:$0xff] %v380_v4  ;;  %v386_v7 = vld [vmem:[%s17156_s12 + $0x7d8] sm:$0xff]  ;;  %383 = vst [vmem:[%s17161_s13 + $0x228] sm:$0xff] %v382_v5  ;;  %v388_v8 = vld [vmem:[%s17156_s12 + $0x7e0] sm:$0xff] }
  0x37   : > { %385 = vst [vmem:[%s17161_s13 + $0x230] sm:$0xff] %v384_v6  ;;  %387 = vst [vmem:[%s17161_s13 + $0x238] sm:$0xff] %v386_v7  ;;  %v390_v9 = vld [vmem:[%s17156_s12 + $0x7e8] sm:$0xff]  ;;  %v392_v10 = vld [vmem:[%s17156_s12 + $0x7f0] sm:$0xff] }
  0x38   : > { %389 = vst [vmem:[%s17161_s13 + $0x240] sm:$0xff] %v388_v8  ;;  %391 = vst [vmem:[%s17161_s13 + $0x248] sm:$0xff] %v390_v9  ;;  %v394_v11 = vld [vmem:[%s17156_s12 + $0x7f8] sm:$0xff]  ;;  %v396_v12 = vld [vmem:[%s17156_s12 + $0x800] sm:$0xff] }
  0x39   : > { %393 = vst [vmem:[%s17161_s13 + $0x250] sm:$0xff] %v392_v10  ;;  %v398_v13 = vld [vmem:[%s17156_s12 + $0x808] sm:$0xff]  ;;  %395 = vst [vmem:[%s17161_s13 + $0x258] sm:$0xff] %v394_v11  ;;  %v400_v14 = vld [vmem:[%s17156_s12 + $0x810] sm:$0xff] }
  0x3a   : > { %397 = vst [vmem:[%s17161_s13 + $0x260] sm:$0xff] %v396_v12  ;;  %399 = vst [vmem:[%s17161_s13 + $0x268] sm:$0xff] %v398_v13  ;;  %v402_v15 = vld [vmem:[%s17156_s12 + $0x818] sm:$0xff]  ;;  %v404_v16 = vld [vmem:[%s17156_s12 + $0xa00] sm:$0xff] }
  0x3b   : > { %401 = vst [vmem:[%s17161_s13 + $0x270] sm:$0xff] %v400_v14  ;;  %403 = vst [vmem:[%s17161_s13 + $0x278] sm:$0xff] %v402_v15  ;;  %v406_v17 = vld [vmem:[%s17156_s12 + $0xa08] sm:$0xff]  ;;  %v408_v18 = vld [vmem:[%s17156_s12 + $0xa10] sm:$0xff] }
  0x3c   : > { %405 = vst [vmem:[%s17161_s13 + $0x280] sm:$0xff] %v404_v16  ;;  %v410_v19 = vld [vmem:[%s17156_s12 + $0xa18] sm:$0xff]  ;;  %407 = vst [vmem:[%s17161_s13 + $0x288] sm:$0xff] %v406_v17  ;;  %v412_v20 = vld [vmem:[%s17156_s12 + $0xa20] sm:$0xff] }
  0x3d   : > { %409 = vst [vmem:[%s17161_s13 + $0x290] sm:$0xff] %v408_v18  ;;  %411 = vst [vmem:[%s17161_s13 + $0x298] sm:$0xff] %v410_v19  ;;  %v414_v21 = vld [vmem:[%s17156_s12 + $0xa28] sm:$0xff]  ;;  %v416_v22 = vld [vmem:[%s17156_s12 + $0xa30] sm:$0xff] }
  0x3e   : > { %413 = vst [vmem:[%s17161_s13 + $0x2a0] sm:$0xff] %v412_v20  ;;  %415 = vst [vmem:[%s17161_s13 + $0x2a8] sm:$0xff] %v414_v21  ;;  %v418_v23 = vld [vmem:[%s17156_s12 + $0xa38] sm:$0xff]  ;;  %v420_v24 = vld [vmem:[%s17156_s12 + $0xa40] sm:$0xff] }
  0x3f   : > { %417 = vst [vmem:[%s17161_s13 + $0x2b0] sm:$0xff] %v416_v22  ;;  %v422_v25 = vld [vmem:[%s17156_s12 + $0xa48] sm:$0xff]  ;;  %419 = vst [vmem:[%s17161_s13 + $0x2b8] sm:$0xff] %v418_v23  ;;  %v424_v26 = vld [vmem:[%s17156_s12 + $0xa50] sm:$0xff] }
  0x40   : > { %421 = vst [vmem:[%s17161_s13 + $0x2c0] sm:$0xff] %v420_v24  ;;  %423 = vst [vmem:[%s17161_s13 + $0x2c8] sm:$0xff] %v422_v25  ;;  %v426_v27 = vld [vmem:[%s17156_s12 + $0xa58] sm:$0xff]  ;;  %v428_v28 = vld [vmem:[%s17156_s12 + $0xa60] sm:$0xff] }
  0x41   : > { %425 = vst [vmem:[%s17161_s13 + $0x2d0] sm:$0xff] %v424_v26  ;;  %427 = vst [vmem:[%s17161_s13 + $0x2d8] sm:$0xff] %v426_v27  ;;  %v430_v29 = vld [vmem:[%s17156_s12 + $0xa68] sm:$0xff]  ;;  %v432_v30 = vld [vmem:[%s17156_s12 + $0xa70] sm:$0xff] }
  0x42   : > { %429 = vst [vmem:[%s17161_s13 + $0x2e0] sm:$0xff] %v428_v28  ;;  %v434_v31 = vld [vmem:[%s17156_s12 + $0xa78] sm:$0xff]  ;;  %431 = vst [vmem:[%s17161_s13 + $0x2e8] sm:$0xff] %v430_v29  ;;  %v436_v32 = vld [vmem:[%s17156_s12 + $0xa80] sm:$0xff] }
  0x43   : > { %433 = vst [vmem:[%s17161_s13 + $0x2f0] sm:$0xff] %v432_v30  ;;  %435 = vst [vmem:[%s17161_s13 + $0x2f8] sm:$0xff] %v434_v31  ;;  %v438_v33 = vld [vmem:[%s17156_s12 + $0xa88] sm:$0xff]  ;;  %v440_v34 = vld [vmem:[%s17156_s12 + $0xa90] sm:$0xff] }
  0x44   : > { %437 = vst [vmem:[%s17161_s13 + $0x300] sm:$0xff] %v436_v32  ;;  %439 = vst [vmem:[%s17161_s13 + $0x308] sm:$0xff] %v438_v33  ;;  %v442_v35 = vld [vmem:[%s17156_s12 + $0xa98] sm:$0xff]  ;;  %v444_v36 = vld [vmem:[%s17156_s12 + $0xc80] sm:$0xff] }
  0x45   : > { %441 = vst [vmem:[%s17161_s13 + $0x310] sm:$0xff] %v440_v34  ;;  %v446_v37 = vld [vmem:[%s17156_s12 + $0xc88] sm:$0xff]  ;;  %443 = vst [vmem:[%s17161_s13 + $0x318] sm:$0xff] %v442_v35  ;;  %v448_v38 = vld [vmem:[%s17156_s12 + $0xc90] sm:$0xff] }
  0x46   : > { %445 = vst [vmem:[%s17161_s13 + $0x320] sm:$0xff] %v444_v36  ;;  %447 = vst [vmem:[%s17161_s13 + $0x328] sm:$0xff] %v446_v37  ;;  %v450_v39 = vld [vmem:[%s17156_s12 + $0xc98] sm:$0xff]  ;;  %v452_v40 = vld [vmem:[%s17156_s12 + $0xca0] sm:$0xff] }
  0x47   : > { %449 = vst [vmem:[%s17161_s13 + $0x330] sm:$0xff] %v448_v38  ;;  %451 = vst [vmem:[%s17161_s13 + $0x338] sm:$0xff] %v450_v39  ;;  %v454_v41 = vld [vmem:[%s17156_s12 + $0xca8] sm:$0xff]  ;;  %v456_v42 = vld [vmem:[%s17156_s12 + $0xcb0] sm:$0xff] }
  0x48   : > { %453 = vst [vmem:[%s17161_s13 + $0x340] sm:$0xff] %v452_v40  ;;  %v458_v43 = vld [vmem:[%s17156_s12 + $0xcb8] sm:$0xff]  ;;  %455 = vst [vmem:[%s17161_s13 + $0x348] sm:$0xff] %v454_v41  ;;  %v460_v44 = vld [vmem:[%s17156_s12 + $0xcc0] sm:$0xff] }
  0x49   : > { %457 = vst [vmem:[%s17161_s13 + $0x350] sm:$0xff] %v456_v42  ;;  %459 = vst [vmem:[%s17161_s13 + $0x358] sm:$0xff] %v458_v43  ;;  %v462_v45 = vld [vmem:[%s17156_s12 + $0xcc8] sm:$0xff]  ;;  %v464_v46 = vld [vmem:[%s17156_s12 + $0xcd0] sm:$0xff] }
  0x4a   : > { %461 = vst [vmem:[%s17161_s13 + $0x360] sm:$0xff] %v460_v44  ;;  %463 = vst [vmem:[%s17161_s13 + $0x368] sm:$0xff] %v462_v45  ;;  %v466_v47 = vld [vmem:[%s17156_s12 + $0xcd8] sm:$0xff]  ;;  %v468_v48 = vld [vmem:[%s17156_s12 + $0xce0] sm:$0xff] }
  0x4b   : > { %465 = vst [vmem:[%s17161_s13 + $0x370] sm:$0xff] %v464_v46  ;;  %v470_v49 = vld [vmem:[%s17156_s12 + $0xce8] sm:$0xff]  ;;  %467 = vst [vmem:[%s17161_s13 + $0x378] sm:$0xff] %v466_v47  ;;  %v472_v50 = vld [vmem:[%s17156_s12 + $0xcf0] sm:$0xff] }
  0x4c   : > { %469 = vst [vmem:[%s17161_s13 + $0x380] sm:$0xff] %v468_v48  ;;  %471 = vst [vmem:[%s17161_s13 + $0x388] sm:$0xff] %v470_v49  ;;  %v474_v51 = vld [vmem:[%s17156_s12 + $0xcf8] sm:$0xff]  ;;  %v476_v52 = vld [vmem:[%s17156_s12 + $0xd00] sm:$0xff] }
  0x4d   : > { %473 = vst [vmem:[%s17161_s13 + $0x390] sm:$0xff] %v472_v50  ;;  %475 = vst [vmem:[%s17161_s13 + $0x398] sm:$0xff] %v474_v51  ;;  %v478_v53 = vld [vmem:[%s17156_s12 + $0xd08] sm:$0xff]  ;;  %v480_v54 = vld [vmem:[%s17156_s12 + $0xd10] sm:$0xff] }
  0x4e   : > { %477 = vst [vmem:[%s17161_s13 + $0x3a0] sm:$0xff] %v476_v52  ;;  %v482_v55 = vld [vmem:[%s17156_s12 + $0xd18] sm:$0xff]  ;;  %479 = vst [vmem:[%s17161_s13 + $0x3a8] sm:$0xff] %v478_v53  ;;  %v484_v56 = vld [vmem:[%s17156_s12 + $0xf00] sm:$0xff] }
  0x4f   : > { %481 = vst [vmem:[%s17161_s13 + $0x3b0] sm:$0xff] %v480_v54  ;;  %483 = vst [vmem:[%s17161_s13 + $0x3b8] sm:$0xff] %v482_v55  ;;  %v486_v57 = vld [vmem:[%s17156_s12 + $0xf08] sm:$0xff]  ;;  %v488_v58 = vld [vmem:[%s17156_s12 + $0xf10] sm:$0xff] }
  0x50   : > { %485 = vst [vmem:[%s17161_s13 + $0x3c0] sm:$0xff] %v484_v56  ;;  %487 = vst [vmem:[%s17161_s13 + $0x3c8] sm:$0xff] %v486_v57  ;;  %v490_v59 = vld [vmem:[%s17156_s12 + $0xf18] sm:$0xff]  ;;  %v492_v60 = vld [vmem:[%s17156_s12 + $0xf20] sm:$0xff] }
  0x51   : > { %489 = vst [vmem:[%s17161_s13 + $0x3d0] sm:$0xff] %v488_v58  ;;  %v494_v61 = vld [vmem:[%s17156_s12 + $0xf28] sm:$0xff]  ;;  %491 = vst [vmem:[%s17161_s13 + $0x3d8] sm:$0xff] %v490_v59  ;;  %v496_v62 = vld [vmem:[%s17156_s12 + $0xf30] sm:$0xff] }
  0x52   : > { %493 = vst [vmem:[%s17161_s13 + $0x3e0] sm:$0xff] %v492_v60  ;;  %495 = vst [vmem:[%s17161_s13 + $0x3e8] sm:$0xff] %v494_v61  ;;  %v498_v63 = vld [vmem:[%s17156_s12 + $0xf38] sm:$0xff]  ;;  %v500_v0 = vld [vmem:[%s17156_s12 + $0xf40] sm:$0xff] }
  0x53   : > { %497 = vst [vmem:[%s17161_s13 + $0x3f0] sm:$0xff] %v496_v62  ;;  %499 = vst [vmem:[%s17161_s13 + $0x3f8] sm:$0xff] %v498_v63  ;;  %v502_v1 = vld [vmem:[%s17156_s12 + $0xf48] sm:$0xff]  ;;  %v504_v2 = vld [vmem:[%s17156_s12 + $0xf50] sm:$0xff] }
  0x54   : > { %501 = vst [vmem:[%s17161_s13 + $0x400] sm:$0xff] %v500_v0  ;;  %v506_v3 = vld [vmem:[%s17156_s12 + $0xf58] sm:$0xff]  ;;  %503 = vst [vmem:[%s17161_s13 + $0x408] sm:$0xff] %v502_v1  ;;  %v508_v4 = vld [vmem:[%s17156_s12 + $0xf60] sm:$0xff] }
  0x55   : > { %505 = vst [vmem:[%s17161_s13 + $0x410] sm:$0xff] %v504_v2  ;;  %507 = vst [vmem:[%s17161_s13 + $0x418] sm:$0xff] %v506_v3  ;;  %v510_v5 = vld [vmem:[%s17156_s12 + $0xf68] sm:$0xff]  ;;  %v512_v6 = vld [vmem:[%s17156_s12 + $0xf70] sm:$0xff] }
  0x56   : > { %509 = vst [vmem:[%s17161_s13 + $0x420] sm:$0xff] %v508_v4  ;;  %511 = vst [vmem:[%s17161_s13 + $0x428] sm:$0xff] %v510_v5  ;;  %v514_v7 = vld [vmem:[%s17156_s12 + $0xf78] sm:$0xff]  ;;  %v516_v8 = vld [vmem:[%s17156_s12 + $0xf80] sm:$0xff] }
  0x57   : > { %513 = vst [vmem:[%s17161_s13 + $0x430] sm:$0xff] %v512_v6  ;;  %v518_v9 = vld [vmem:[%s17156_s12 + $0xf88] sm:$0xff]  ;;  %515 = vst [vmem:[%s17161_s13 + $0x438] sm:$0xff] %v514_v7  ;;  %v520_v10 = vld [vmem:[%s17156_s12 + $0xf90] sm:$0xff] }
  0x58   : > { %517 = vst [vmem:[%s17161_s13 + $0x440] sm:$0xff] %v516_v8  ;;  %519 = vst [vmem:[%s17161_s13 + $0x448] sm:$0xff] %v518_v9  ;;  %v522_v11 = vld [vmem:[%s17156_s12 + $0xf98] sm:$0xff]  ;;  %v524_v12 = vld [vmem:[%s17156_s12 + $0x1180] sm:$0xff] }
  0x59   : > { %521 = vst [vmem:[%s17161_s13 + $0x450] sm:$0xff] %v520_v10  ;;  %523 = vst [vmem:[%s17161_s13 + $0x458] sm:$0xff] %v522_v11  ;;  %v526_v13 = vld [vmem:[%s17156_s12 + $0x1188] sm:$0xff]  ;;  %v528_v14 = vld [vmem:[%s17156_s12 + $0x1190] sm:$0xff] }
  0x5a   : > { %525 = vst [vmem:[%s17161_s13 + $0x460] sm:$0xff] %v524_v12  ;;  %v530_v15 = vld [vmem:[%s17156_s12 + $0x1198] sm:$0xff]  ;;  %527 = vst [vmem:[%s17161_s13 + $0x468] sm:$0xff] %v526_v13  ;;  %v532_v16 = vld [vmem:[%s17156_s12 + $0x11a0] sm:$0xff] }
  0x5b   : > { %529 = vst [vmem:[%s17161_s13 + $0x470] sm:$0xff] %v528_v14  ;;  %531 = vst [vmem:[%s17161_s13 + $0x478] sm:$0xff] %v530_v15  ;;  %v534_v17 = vld [vmem:[%s17156_s12 + $0x11a8] sm:$0xff]  ;;  %v536_v18 = vld [vmem:[%s17156_s12 + $0x11b0] sm:$0xff] }
  0x5c   : > { %533 = vst [vmem:[%s17161_s13 + $0x480] sm:$0xff] %v532_v16  ;;  %535 = vst [vmem:[%s17161_s13 + $0x488] sm:$0xff] %v534_v17  ;;  %v538_v19 = vld [vmem:[%s17156_s12 + $0x11b8] sm:$0xff]  ;;  %v540_v20 = vld [vmem:[%s17156_s12 + $0x11c0] sm:$0xff] }
  0x5d   : > { %537 = vst [vmem:[%s17161_s13 + $0x490] sm:$0xff] %v536_v18  ;;  %v542_v21 = vld [vmem:[%s17156_s12 + $0x11c8] sm:$0xff]  ;;  %539 = vst [vmem:[%s17161_s13 + $0x498] sm:$0xff] %v538_v19  ;;  %v544_v22 = vld [vmem:[%s17156_s12 + $0x11d0] sm:$0xff] }
  0x5e   : > { %541 = vst [vmem:[%s17161_s13 + $0x4a0] sm:$0xff] %v540_v20  ;;  %543 = vst [vmem:[%s17161_s13 + $0x4a8] sm:$0xff] %v542_v21  ;;  %v546_v23 = vld [vmem:[%s17156_s12 + $0x11d8] sm:$0xff]  ;;  %v548_v24 = vld [vmem:[%s17156_s12 + $0x11e0] sm:$0xff] }
  0x5f   : > { %545 = vst [vmem:[%s17161_s13 + $0x4b0] sm:$0xff] %v544_v22  ;;  %547 = vst [vmem:[%s17161_s13 + $0x4b8] sm:$0xff] %v546_v23  ;;  %v550_v25 = vld [vmem:[%s17156_s12 + $0x11e8] sm:$0xff]  ;;  %v552_v26 = vld [vmem:[%s17156_s12 + $0x11f0] sm:$0xff] }
  0x60   : > { %549 = vst [vmem:[%s17161_s13 + $0x4c0] sm:$0xff] %v548_v24  ;;  %v554_v27 = vld [vmem:[%s17156_s12 + $0x11f8] sm:$0xff]  ;;  %551 = vst [vmem:[%s17161_s13 + $0x4c8] sm:$0xff] %v550_v25  ;;  %v556_v28 = vld [vmem:[%s17156_s12 + $0x1200] sm:$0xff] }
  0x61   : > { %553 = vst [vmem:[%s17161_s13 + $0x4d0] sm:$0xff] %v552_v26  ;;  %555 = vst [vmem:[%s17161_s13 + $0x4d8] sm:$0xff] %v554_v27  ;;  %v558_v29 = vld [vmem:[%s17156_s12 + $0x1208] sm:$0xff]  ;;  %v560_v30 = vld [vmem:[%s17156_s12 + $0x1210] sm:$0xff] }
  0x62   : > { %557 = vst [vmem:[%s17161_s13 + $0x4e0] sm:$0xff] %v556_v28  ;;  %559 = vst [vmem:[%s17161_s13 + $0x4e8] sm:$0xff] %v558_v29  ;;  %v562_v31 = vld [vmem:[%s17156_s12 + $0x1218] sm:$0xff]  ;;  %v564_v32 = vld [vmem:[%s17156_s12 + $0x1400] sm:$0xff] }
  0x63   : > { %561 = vst [vmem:[%s17161_s13 + $0x4f0] sm:$0xff] %v560_v30  ;;  %v566_v33 = vld [vmem:[%s17156_s12 + $0x1408] sm:$0xff]  ;;  %563 = vst [vmem:[%s17161_s13 + $0x4f8] sm:$0xff] %v562_v31  ;;  %v568_v34 = vld [vmem:[%s17156_s12 + $0x1410] sm:$0xff] }
  0x64   : > { %565 = vst [vmem:[%s17161_s13 + $0x500] sm:$0xff] %v564_v32  ;;  %567 = vst [vmem:[%s17161_s13 + $0x508] sm:$0xff] %v566_v33  ;;  %v570_v35 = vld [vmem:[%s17156_s12 + $0x1418] sm:$0xff]  ;;  %v572_v36 = vld [vmem:[%s17156_s12 + $0x1420] sm:$0xff] }
  0x65   : > { %569 = vst [vmem:[%s17161_s13 + $0x510] sm:$0xff] %v568_v34  ;;  %571 = vst [vmem:[%s17161_s13 + $0x518] sm:$0xff] %v570_v35  ;;  %v574_v37 = vld [vmem:[%s17156_s12 + $0x1428] sm:$0xff]  ;;  %v576_v38 = vld [vmem:[%s17156_s12 + $0x1430] sm:$0xff] }
  0x66   : > { %573 = vst [vmem:[%s17161_s13 + $0x520] sm:$0xff] %v572_v36  ;;  %v578_v39 = vld [vmem:[%s17156_s12 + $0x1438] sm:$0xff]  ;;  %575 = vst [vmem:[%s17161_s13 + $0x528] sm:$0xff] %v574_v37  ;;  %v580_v40 = vld [vmem:[%s17156_s12 + $0x1440] sm:$0xff] }
  0x67   : > { %577 = vst [vmem:[%s17161_s13 + $0x530] sm:$0xff] %v576_v38  ;;  %579 = vst [vmem:[%s17161_s13 + $0x538] sm:$0xff] %v578_v39  ;;  %v582_v41 = vld [vmem:[%s17156_s12 + $0x1448] sm:$0xff]  ;;  %v584_v42 = vld [vmem:[%s17156_s12 + $0x1450] sm:$0xff] }
  0x68   : > { %581 = vst [vmem:[%s17161_s13 + $0x540] sm:$0xff] %v580_v40  ;;  %583 = vst [vmem:[%s17161_s13 + $0x548] sm:$0xff] %v582_v41  ;;  %v586_v43 = vld [vmem:[%s17156_s12 + $0x1458] sm:$0xff]  ;;  %v588_v44 = vld [vmem:[%s17156_s12 + $0x1460] sm:$0xff] }
  0x69   : > { %585 = vst [vmem:[%s17161_s13 + $0x550] sm:$0xff] %v584_v42  ;;  %v590_v45 = vld [vmem:[%s17156_s12 + $0x1468] sm:$0xff]  ;;  %587 = vst [vmem:[%s17161_s13 + $0x558] sm:$0xff] %v586_v43  ;;  %v592_v46 = vld [vmem:[%s17156_s12 + $0x1470] sm:$0xff] }
  0x6a   : > { %589 = vst [vmem:[%s17161_s13 + $0x560] sm:$0xff] %v588_v44  ;;  %591 = vst [vmem:[%s17161_s13 + $0x568] sm:$0xff] %v590_v45  ;;  %v594_v47 = vld [vmem:[%s17156_s12 + $0x1478] sm:$0xff]  ;;  %v596_v48 = vld [vmem:[%s17156_s12 + $0x1480] sm:$0xff] }
  0x6b   : > { %593 = vst [vmem:[%s17161_s13 + $0x570] sm:$0xff] %v592_v46  ;;  %595 = vst [vmem:[%s17161_s13 + $0x578] sm:$0xff] %v594_v47  ;;  %v598_v49 = vld [vmem:[%s17156_s12 + $0x1488] sm:$0xff]  ;;  %v600_v50 = vld [vmem:[%s17156_s12 + $0x1490] sm:$0xff] }
  0x6c   : > { %597 = vst [vmem:[%s17161_s13 + $0x580] sm:$0xff] %v596_v48  ;;  %v602_v51 = vld [vmem:[%s17156_s12 + $0x1498] sm:$0xff]  ;;  %599 = vst [vmem:[%s17161_s13 + $0x588] sm:$0xff] %v598_v49  ;;  %v604_v52 = vld [vmem:[%s17156_s12 + $0x1680] sm:$0xff] }
  0x6d   : > { %601 = vst [vmem:[%s17161_s13 + $0x590] sm:$0xff] %v600_v50  ;;  %603 = vst [vmem:[%s17161_s13 + $0x598] sm:$0xff] %v602_v51  ;;  %v606_v53 = vld [vmem:[%s17156_s12 + $0x1688] sm:$0xff]  ;;  %v608_v54 = vld [vmem:[%s17156_s12 + $0x1690] sm:$0xff] }
  0x6e   : > { %605 = vst [vmem:[%s17161_s13 + $0x5a0] sm:$0xff] %v604_v52  ;;  %607 = vst [vmem:[%s17161_s13 + $0x5a8] sm:$0xff] %v606_v53  ;;  %v610_v55 = vld [vmem:[%s17156_s12 + $0x1698] sm:$0xff]  ;;  %v612_v56 = vld [vmem:[%s17156_s12 + $0x16a0] sm:$0xff] }
  0x6f   : > { %609 = vst [vmem:[%s17161_s13 + $0x5b0] sm:$0xff] %v608_v54  ;;  %v614_v57 = vld [vmem:[%s17156_s12 + $0x16a8] sm:$0xff]  ;;  %611 = vst [vmem:[%s17161_s13 + $0x5b8] sm:$0xff] %v610_v55  ;;  %v616_v58 = vld [vmem:[%s17156_s12 + $0x16b0] sm:$0xff] }
  0x70   : > { %613 = vst [vmem:[%s17161_s13 + $0x5c0] sm:$0xff] %v612_v56  ;;  %615 = vst [vmem:[%s17161_s13 + $0x5c8] sm:$0xff] %v614_v57  ;;  %v618_v59 = vld [vmem:[%s17156_s12 + $0x16b8] sm:$0xff]  ;;  %v620_v60 = vld [vmem:[%s17156_s12 + $0x16c0] sm:$0xff] }
  0x71   : > { %617 = vst [vmem:[%s17161_s13 + $0x5d0] sm:$0xff] %v616_v58  ;;  %619 = vst [vmem:[%s17161_s13 + $0x5d8] sm:$0xff] %v618_v59  ;;  %v622_v61 = vld [vmem:[%s17156_s12 + $0x16c8] sm:$0xff]  ;;  %v624_v62 = vld [vmem:[%s17156_s12 + $0x16d0] sm:$0xff] }
  0x72   : > { %621 = vst [vmem:[%s17161_s13 + $0x5e0] sm:$0xff] %v620_v60  ;;  %v626_v63 = vld [vmem:[%s17156_s12 + $0x16d8] sm:$0xff]  ;;  %623 = vst [vmem:[%s17161_s13 + $0x5e8] sm:$0xff] %v622_v61  ;;  %v628_v0 = vld [vmem:[%s17156_s12 + $0x16e0] sm:$0xff] }
  0x73   : > { %625 = vst [vmem:[%s17161_s13 + $0x5f0] sm:$0xff] %v624_v62  ;;  %627 = vst [vmem:[%s17161_s13 + $0x5f8] sm:$0xff] %v626_v63  ;;  %v630_v1 = vld [vmem:[%s17156_s12 + $0x16e8] sm:$0xff]  ;;  %v632_v2 = vld [vmem:[%s17156_s12 + $0x16f0] sm:$0xff] }
  0x74   : > { %629 = vst [vmem:[%s17161_s13 + $0x600] sm:$0xff] %v628_v0  ;;  %631 = vst [vmem:[%s17161_s13 + $0x608] sm:$0xff] %v630_v1  ;;  %v634_v3 = vld [vmem:[%s17156_s12 + $0x16f8] sm:$0xff]  ;;  %v636_v4 = vld [vmem:[%s17156_s12 + $0x1700] sm:$0xff] }
  0x75   : > { %633 = vst [vmem:[%s17161_s13 + $0x610] sm:$0xff] %v632_v2  ;;  %v638_v5 = vld [vmem:[%s17156_s12 + $0x1708] sm:$0xff]  ;;  %635 = vst [vmem:[%s17161_s13 + $0x618] sm:$0xff] %v634_v3  ;;  %v640_v6 = vld [vmem:[%s17156_s12 + $0x1710] sm:$0xff] }
  0x76   : > { %637 = vst [vmem:[%s17161_s13 + $0x620] sm:$0xff] %v636_v4  ;;  %639 = vst [vmem:[%s17161_s13 + $0x628] sm:$0xff] %v638_v5  ;;  %v642_v7 = vld [vmem:[%s17156_s12 + $0x1718] sm:$0xff]  ;;  %v644_v8 = vld [vmem:[%s17156_s12 + $0x1900] sm:$0xff] }
  0x77   : > { %641 = vst [vmem:[%s17161_s13 + $0x630] sm:$0xff] %v640_v6  ;;  %643 = vst [vmem:[%s17161_s13 + $0x638] sm:$0xff] %v642_v7  ;;  %v646_v9 = vld [vmem:[%s17156_s12 + $0x1908] sm:$0xff]  ;;  %v648_v10 = vld [vmem:[%s17156_s12 + $0x1910] sm:$0xff] }
  0x78   : > { %645 = vst [vmem:[%s17161_s13 + $0x640] sm:$0xff] %v644_v8  ;;  %v650_v11 = vld [vmem:[%s17156_s12 + $0x1918] sm:$0xff]  ;;  %647 = vst [vmem:[%s17161_s13 + $0x648] sm:$0xff] %v646_v9  ;;  %v652_v12 = vld [vmem:[%s17156_s12 + $0x1920] sm:$0xff] }
  0x79   : > { %649 = vst [vmem:[%s17161_s13 + $0x650] sm:$0xff] %v648_v10  ;;  %651 = vst [vmem:[%s17161_s13 + $0x658] sm:$0xff] %v650_v11  ;;  %v654_v13 = vld [vmem:[%s17156_s12 + $0x1928] sm:$0xff]  ;;  %v656_v14 = vld [vmem:[%s17156_s12 + $0x1930] sm:$0xff] }
  0x7a   : > { %653 = vst [vmem:[%s17161_s13 + $0x660] sm:$0xff] %v652_v12  ;;  %655 = vst [vmem:[%s17161_s13 + $0x668] sm:$0xff] %v654_v13  ;;  %v658_v15 = vld [vmem:[%s17156_s12 + $0x1938] sm:$0xff]  ;;  %v660_v16 = vld [vmem:[%s17156_s12 + $0x1940] sm:$0xff] }
  0x7b   : > { %657 = vst [vmem:[%s17161_s13 + $0x670] sm:$0xff] %v656_v14  ;;  %v662_v17 = vld [vmem:[%s17156_s12 + $0x1948] sm:$0xff]  ;;  %659 = vst [vmem:[%s17161_s13 + $0x678] sm:$0xff] %v658_v15  ;;  %v664_v18 = vld [vmem:[%s17156_s12 + $0x1950] sm:$0xff] }
  0x7c   : > { %661 = vst [vmem:[%s17161_s13 + $0x680] sm:$0xff] %v660_v16  ;;  %663 = vst [vmem:[%s17161_s13 + $0x688] sm:$0xff] %v662_v17  ;;  %v666_v19 = vld [vmem:[%s17156_s12 + $0x1958] sm:$0xff]  ;;  %v668_v20 = vld [vmem:[%s17156_s12 + $0x1960] sm:$0xff] }
  0x7d   : > { %665 = vst [vmem:[%s17161_s13 + $0x690] sm:$0xff] %v664_v18  ;;  %667 = vst [vmem:[%s17161_s13 + $0x698] sm:$0xff] %v666_v19  ;;  %v670_v21 = vld [vmem:[%s17156_s12 + $0x1968] sm:$0xff]  ;;  %v672_v22 = vld [vmem:[%s17156_s12 + $0x1970] sm:$0xff] }
  0x7e   : > { %669 = vst [vmem:[%s17161_s13 + $0x6a0] sm:$0xff] %v668_v20  ;;  %v674_v23 = vld [vmem:[%s17156_s12 + $0x1978] sm:$0xff]  ;;  %671 = vst [vmem:[%s17161_s13 + $0x6a8] sm:$0xff] %v670_v21  ;;  %v676_v24 = vld [vmem:[%s17156_s12 + $0x1980] sm:$0xff] }
  0x7f   : > { %673 = vst [vmem:[%s17161_s13 + $0x6b0] sm:$0xff] %v672_v22  ;;  %675 = vst [vmem:[%s17161_s13 + $0x6b8] sm:$0xff] %v674_v23  ;;  %v678_v25 = vld [vmem:[%s17156_s12 + $0x1988] sm:$0xff]  ;;  %v680_v26 = vld [vmem:[%s17156_s12 + $0x1990] sm:$0xff] }
  0x80   : > { %677 = vst [vmem:[%s17161_s13 + $0x6c0] sm:$0xff] %v676_v24  ;;  %679 = vst [vmem:[%s17161_s13 + $0x6c8] sm:$0xff] %v678_v25  ;;  %v682_v27 = vld [vmem:[%s17156_s12 + $0x1998] sm:$0xff]  ;;  %v684_v28 = vld [vmem:[%s17156_s12 + $0x1b80] sm:$0xff] }
  0x81   : > { %681 = vst [vmem:[%s17161_s13 + $0x6d0] sm:$0xff] %v680_v26  ;;  %v686_v29 = vld [vmem:[%s17156_s12 + $0x1b88] sm:$0xff]  ;;  %683 = vst [vmem:[%s17161_s13 + $0x6d8] sm:$0xff] %v682_v27  ;;  %v688_v30 = vld [vmem:[%s17156_s12 + $0x1b90] sm:$0xff] }
  0x82   : > { %685 = vst [vmem:[%s17161_s13 + $0x6e0] sm:$0xff] %v684_v28  ;;  %687 = vst [vmem:[%s17161_s13 + $0x6e8] sm:$0xff] %v686_v29  ;;  %v690_v31 = vld [vmem:[%s17156_s12 + $0x1b98] sm:$0xff]  ;;  %v692_v32 = vld [vmem:[%s17156_s12 + $0x1ba0] sm:$0xff] }
  0x83   : > { %689 = vst [vmem:[%s17161_s13 + $0x6f0] sm:$0xff] %v688_v30  ;;  %691 = vst [vmem:[%s17161_s13 + $0x6f8] sm:$0xff] %v690_v31  ;;  %v694_v33 = vld [vmem:[%s17156_s12 + $0x1ba8] sm:$0xff]  ;;  %v696_v34 = vld [vmem:[%s17156_s12 + $0x1bb0] sm:$0xff] }
  0x84   : > { %693 = vst [vmem:[%s17161_s13 + $0x700] sm:$0xff] %v692_v32  ;;  %v698_v35 = vld [vmem:[%s17156_s12 + $0x1bb8] sm:$0xff]  ;;  %695 = vst [vmem:[%s17161_s13 + $0x708] sm:$0xff] %v694_v33  ;;  %v700_v36 = vld [vmem:[%s17156_s12 + $0x1bc0] sm:$0xff] }
  0x85   : > { %697 = vst [vmem:[%s17161_s13 + $0x710] sm:$0xff] %v696_v34  ;;  %699 = vst [vmem:[%s17161_s13 + $0x718] sm:$0xff] %v698_v35  ;;  %v702_v37 = vld [vmem:[%s17156_s12 + $0x1bc8] sm:$0xff]  ;;  %v704_v38 = vld [vmem:[%s17156_s12 + $0x1bd0] sm:$0xff] }
  0x86   : > { %701 = vst [vmem:[%s17161_s13 + $0x720] sm:$0xff] %v700_v36  ;;  %703 = vst [vmem:[%s17161_s13 + $0x728] sm:$0xff] %v702_v37  ;;  %v706_v39 = vld [vmem:[%s17156_s12 + $0x1bd8] sm:$0xff]  ;;  %v708_v40 = vld [vmem:[%s17156_s12 + $0x1be0] sm:$0xff] }
  0x87   : > { %705 = vst [vmem:[%s17161_s13 + $0x730] sm:$0xff] %v704_v38  ;;  %v710_v41 = vld [vmem:[%s17156_s12 + $0x1be8] sm:$0xff]  ;;  %707 = vst [vmem:[%s17161_s13 + $0x738] sm:$0xff] %v706_v39  ;;  %v712_v42 = vld [vmem:[%s17156_s12 + $0x1bf0] sm:$0xff] }
  0x88   : > { %709 = vst [vmem:[%s17161_s13 + $0x740] sm:$0xff] %v708_v40  ;;  %711 = vst [vmem:[%s17161_s13 + $0x748] sm:$0xff] %v710_v41  ;;  %v714_v43 = vld [vmem:[%s17156_s12 + $0x1bf8] sm:$0xff]  ;;  %v716_v44 = vld [vmem:[%s17156_s12 + $0x1c00] sm:$0xff] }
  0x89   : > { %713 = vst [vmem:[%s17161_s13 + $0x750] sm:$0xff] %v712_v42  ;;  %715 = vst [vmem:[%s17161_s13 + $0x758] sm:$0xff] %v714_v43  ;;  %v718_v45 = vld [vmem:[%s17156_s12 + $0x1c08] sm:$0xff]  ;;  %v720_v46 = vld [vmem:[%s17156_s12 + $0x1c10] sm:$0xff] }
  0x8a   : > { %717 = vst [vmem:[%s17161_s13 + $0x760] sm:$0xff] %v716_v44  ;;  %v722_v47 = vld [vmem:[%s17156_s12 + $0x1c18] sm:$0xff]  ;;  %719 = vst [vmem:[%s17161_s13 + $0x768] sm:$0xff] %v718_v45  ;;  %v724_v48 = vld [vmem:[%s17156_s12 + $0x1e00] sm:$0xff] }
  0x8b   : > { %721 = vst [vmem:[%s17161_s13 + $0x770] sm:$0xff] %v720_v46  ;;  %723 = vst [vmem:[%s17161_s13 + $0x778] sm:$0xff] %v722_v47  ;;  %v726_v49 = vld [vmem:[%s17156_s12 + $0x1e08] sm:$0xff]  ;;  %v728_v50 = vld [vmem:[%s17156_s12 + $0x1e10] sm:$0xff] }
  0x8c   : > { %725 = vst [vmem:[%s17161_s13 + $0x780] sm:$0xff] %v724_v48  ;;  %727 = vst [vmem:[%s17161_s13 + $0x788] sm:$0xff] %v726_v49  ;;  %v730_v51 = vld [vmem:[%s17156_s12 + $0x1e18] sm:$0xff]  ;;  %v732_v52 = vld [vmem:[%s17156_s12 + $0x1e20] sm:$0xff] }
  0x8d   : > { %729 = vst [vmem:[%s17161_s13 + $0x790] sm:$0xff] %v728_v50  ;;  %v734_v53 = vld [vmem:[%s17156_s12 + $0x1e28] sm:$0xff]  ;;  %731 = vst [vmem:[%s17161_s13 + $0x798] sm:$0xff] %v730_v51  ;;  %v736_v54 = vld [vmem:[%s17156_s12 + $0x1e30] sm:$0xff] }
  0x8e   : > { %733 = vst [vmem:[%s17161_s13 + $0x7a0] sm:$0xff] %v732_v52  ;;  %735 = vst [vmem:[%s17161_s13 + $0x7a8] sm:$0xff] %v734_v53  ;;  %v738_v55 = vld [vmem:[%s17156_s12 + $0x1e38] sm:$0xff]  ;;  %v740_v56 = vld [vmem:[%s17156_s12 + $0x1e40] sm:$0xff] }
  0x8f   : > { %737 = vst [vmem:[%s17161_s13 + $0x7b0] sm:$0xff] %v736_v54  ;;  %739 = vst [vmem:[%s17161_s13 + $0x7b8] sm:$0xff] %v738_v55  ;;  %v742_v57 = vld [vmem:[%s17156_s12 + $0x1e48] sm:$0xff]  ;;  %v744_v58 = vld [vmem:[%s17156_s12 + $0x1e50] sm:$0xff] }
  0x90   : > { %741 = vst [vmem:[%s17161_s13 + $0x7c0] sm:$0xff] %v740_v56  ;;  %v746_v59 = vld [vmem:[%s17156_s12 + $0x1e58] sm:$0xff]  ;;  %743 = vst [vmem:[%s17161_s13 + $0x7c8] sm:$0xff] %v742_v57  ;;  %v748_v60 = vld [vmem:[%s17156_s12 + $0x1e60] sm:$0xff] }
  0x91   : > { %745 = vst [vmem:[%s17161_s13 + $0x7d0] sm:$0xff] %v744_v58  ;;  %747 = vst [vmem:[%s17161_s13 + $0x7d8] sm:$0xff] %v746_v59  ;;  %v750_v61 = vld [vmem:[%s17156_s12 + $0x1e68] sm:$0xff]  ;;  %v752_v62 = vld [vmem:[%s17156_s12 + $0x1e70] sm:$0xff] }
  0x92   : > { %749 = vst [vmem:[%s17161_s13 + $0x7e0] sm:$0xff] %v748_v60  ;;  %751 = vst [vmem:[%s17161_s13 + $0x7e8] sm:$0xff] %v750_v61  ;;  %v754_v63 = vld [vmem:[%s17156_s12 + $0x1e78] sm:$0xff]  ;;  %v756_v0 = vld [vmem:[%s17156_s12 + $0x1e80] sm:$0xff] }
  0x93   : > { %753 = vst [vmem:[%s17161_s13 + $0x7f0] sm:$0xff] %v752_v62  ;;  %v758_v1 = vld [vmem:[%s17156_s12 + $0x1e88] sm:$0xff]  ;;  %755 = vst [vmem:[%s17161_s13 + $0x7f8] sm:$0xff] %v754_v63  ;;  %v760_v2 = vld [vmem:[%s17156_s12 + $0x1e90] sm:$0xff] }
  0x94   : > { %757 = vst [vmem:[%s17161_s13 + $0x800] sm:$0xff] %v756_v0  ;;  %759 = vst [vmem:[%s17161_s13 + $0x808] sm:$0xff] %v758_v1  ;;  %v762_v3 = vld [vmem:[%s17156_s12 + $0x1e98] sm:$0xff]  ;;  %v764_v4 = vld [vmem:[%s17156_s12 + $0x2080] sm:$0xff] }
  0x95   : > { %761 = vst [vmem:[%s17161_s13 + $0x810] sm:$0xff] %v760_v2  ;;  %763 = vst [vmem:[%s17161_s13 + $0x818] sm:$0xff] %v762_v3  ;;  %v766_v5 = vld [vmem:[%s17156_s12 + $0x2088] sm:$0xff]  ;;  %v768_v6 = vld [vmem:[%s17156_s12 + $0x2090] sm:$0xff] }
  0x96   : > { %765 = vst [vmem:[%s17161_s13 + $0x820] sm:$0xff] %v764_v4  ;;  %v770_v7 = vld [vmem:[%s17156_s12 + $0x2098] sm:$0xff]  ;;  %767 = vst [vmem:[%s17161_s13 + $0x828] sm:$0xff] %v766_v5  ;;  %v772_v8 = vld [vmem:[%s17156_s12 + $0x20a0] sm:$0xff] }
  0x97   : > { %769 = vst [vmem:[%s17161_s13 + $0x830] sm:$0xff] %v768_v6  ;;  %771 = vst [vmem:[%s17161_s13 + $0x838] sm:$0xff] %v770_v7  ;;  %v774_v9 = vld [vmem:[%s17156_s12 + $0x20a8] sm:$0xff]  ;;  %v776_v10 = vld [vmem:[%s17156_s12 + $0x20b0] sm:$0xff] }
  0x98   : > { %773 = vst [vmem:[%s17161_s13 + $0x840] sm:$0xff] %v772_v8  ;;  %775 = vst [vmem:[%s17161_s13 + $0x848] sm:$0xff] %v774_v9  ;;  %v778_v11 = vld [vmem:[%s17156_s12 + $0x20b8] sm:$0xff]  ;;  %v780_v12 = vld [vmem:[%s17156_s12 + $0x20c0] sm:$0xff] }
  0x99   : > { %777 = vst [vmem:[%s17161_s13 + $0x850] sm:$0xff] %v776_v10  ;;  %v782_v13 = vld [vmem:[%s17156_s12 + $0x20c8] sm:$0xff]  ;;  %779 = vst [vmem:[%s17161_s13 + $0x858] sm:$0xff] %v778_v11  ;;  %v784_v14 = vld [vmem:[%s17156_s12 + $0x20d0] sm:$0xff] }
  0x9a   : > { %781 = vst [vmem:[%s17161_s13 + $0x860] sm:$0xff] %v780_v12  ;;  %783 = vst [vmem:[%s17161_s13 + $0x868] sm:$0xff] %v782_v13  ;;  %v786_v15 = vld [vmem:[%s17156_s12 + $0x20d8] sm:$0xff]  ;;  %v788_v16 = vld [vmem:[%s17156_s12 + $0x20e0] sm:$0xff] }
  0x9b   : > { %785 = vst [vmem:[%s17161_s13 + $0x870] sm:$0xff] %v784_v14  ;;  %787 = vst [vmem:[%s17161_s13 + $0x878] sm:$0xff] %v786_v15  ;;  %v790_v17 = vld [vmem:[%s17156_s12 + $0x20e8] sm:$0xff]  ;;  %v792_v18 = vld [vmem:[%s17156_s12 + $0x20f0] sm:$0xff] }
  0x9c   : > { %789 = vst [vmem:[%s17161_s13 + $0x880] sm:$0xff] %v788_v16  ;;  %v794_v19 = vld [vmem:[%s17156_s12 + $0x20f8] sm:$0xff]  ;;  %791 = vst [vmem:[%s17161_s13 + $0x888] sm:$0xff] %v790_v17  ;;  %v796_v20 = vld [vmem:[%s17156_s12 + $0x2100] sm:$0xff] }
  0x9d   : > { %793 = vst [vmem:[%s17161_s13 + $0x890] sm:$0xff] %v792_v18  ;;  %795 = vst [vmem:[%s17161_s13 + $0x898] sm:$0xff] %v794_v19  ;;  %v798_v21 = vld [vmem:[%s17156_s12 + $0x2108] sm:$0xff]  ;;  %v800_v22 = vld [vmem:[%s17156_s12 + $0x2110] sm:$0xff] }
  0x9e   : > { %797 = vst [vmem:[%s17161_s13 + $0x8a0] sm:$0xff] %v796_v20  ;;  %799 = vst [vmem:[%s17161_s13 + $0x8a8] sm:$0xff] %v798_v21  ;;  %v802_v23 = vld [vmem:[%s17156_s12 + $0x2118] sm:$0xff]  ;;  %v804_v24 = vld [vmem:[%s17156_s12 + $0x2300] sm:$0xff] }
  0x9f   : > { %801 = vst [vmem:[%s17161_s13 + $0x8b0] sm:$0xff] %v800_v22  ;;  %v806_v25 = vld [vmem:[%s17156_s12 + $0x2308] sm:$0xff]  ;;  %803 = vst [vmem:[%s17161_s13 + $0x8b8] sm:$0xff] %v802_v23  ;;  %v808_v26 = vld [vmem:[%s17156_s12 + $0x2310] sm:$0xff] }
  0xa0   : > { %805 = vst [vmem:[%s17161_s13 + $0x8c0] sm:$0xff] %v804_v24  ;;  %807 = vst [vmem:[%s17161_s13 + $0x8c8] sm:$0xff] %v806_v25  ;;  %v810_v27 = vld [vmem:[%s17156_s12 + $0x2318] sm:$0xff]  ;;  %v812_v28 = vld [vmem:[%s17156_s12 + $0x2320] sm:$0xff] }
  0xa1   : > { %809 = vst [vmem:[%s17161_s13 + $0x8d0] sm:$0xff] %v808_v26  ;;  %811 = vst [vmem:[%s17161_s13 + $0x8d8] sm:$0xff] %v810_v27  ;;  %v814_v29 = vld [vmem:[%s17156_s12 + $0x2328] sm:$0xff]  ;;  %v816_v30 = vld [vmem:[%s17156_s12 + $0x2330] sm:$0xff] }
  0xa2   : > { %813 = vst [vmem:[%s17161_s13 + $0x8e0] sm:$0xff] %v812_v28  ;;  %v818_v31 = vld [vmem:[%s17156_s12 + $0x2338] sm:$0xff]  ;;  %815 = vst [vmem:[%s17161_s13 + $0x8e8] sm:$0xff] %v814_v29  ;;  %v820_v32 = vld [vmem:[%s17156_s12 + $0x2340] sm:$0xff] }
  0xa3   : > { %817 = vst [vmem:[%s17161_s13 + $0x8f0] sm:$0xff] %v816_v30  ;;  %819 = vst [vmem:[%s17161_s13 + $0x8f8] sm:$0xff] %v818_v31  ;;  %v822_v33 = vld [vmem:[%s17156_s12 + $0x2348] sm:$0xff]  ;;  %v824_v34 = vld [vmem:[%s17156_s12 + $0x2350] sm:$0xff] }
  0xa4   : > { %821 = vst [vmem:[%s17161_s13 + $0x900] sm:$0xff] %v820_v32  ;;  %823 = vst [vmem:[%s17161_s13 + $0x908] sm:$0xff] %v822_v33  ;;  %v826_v35 = vld [vmem:[%s17156_s12 + $0x2358] sm:$0xff]  ;;  %v828_v36 = vld [vmem:[%s17156_s12 + $0x2360] sm:$0xff] }
  0xa5   : > { %825 = vst [vmem:[%s17161_s13 + $0x910] sm:$0xff] %v824_v34  ;;  %v830_v37 = vld [vmem:[%s17156_s12 + $0x2368] sm:$0xff]  ;;  %827 = vst [vmem:[%s17161_s13 + $0x918] sm:$0xff] %v826_v35  ;;  %v832_v38 = vld [vmem:[%s17156_s12 + $0x2370] sm:$0xff] }
  0xa6   : > { %829 = vst [vmem:[%s17161_s13 + $0x920] sm:$0xff] %v828_v36  ;;  %831 = vst [vmem:[%s17161_s13 + $0x928] sm:$0xff] %v830_v37  ;;  %v834_v39 = vld [vmem:[%s17156_s12 + $0x2378] sm:$0xff]  ;;  %v836_v40 = vld [vmem:[%s17156_s12 + $0x2380] sm:$0xff] }
  0xa7   : > { %833 = vst [vmem:[%s17161_s13 + $0x930] sm:$0xff] %v832_v38  ;;  %835 = vst [vmem:[%s17161_s13 + $0x938] sm:$0xff] %v834_v39  ;;  %v838_v41 = vld [vmem:[%s17156_s12 + $0x2388] sm:$0xff]  ;;  %v840_v42 = vld [vmem:[%s17156_s12 + $0x2390] sm:$0xff] }
  0xa8   : > { %837 = vst [vmem:[%s17161_s13 + $0x940] sm:$0xff] %v836_v40  ;;  %v842_v43 = vld [vmem:[%s17156_s12 + $0x2398] sm:$0xff]  ;;  %839 = vst [vmem:[%s17161_s13 + $0x948] sm:$0xff] %v838_v41  ;;  %v844_v44 = vld [vmem:[%s17156_s12 + $0x2580] sm:$0xff] }
  0xa9   : > { %841 = vst [vmem:[%s17161_s13 + $0x950] sm:$0xff] %v840_v42  ;;  %843 = vst [vmem:[%s17161_s13 + $0x958] sm:$0xff] %v842_v43  ;;  %v846_v45 = vld [vmem:[%s17156_s12 + $0x2588] sm:$0xff]  ;;  %v848_v46 = vld [vmem:[%s17156_s12 + $0x2590] sm:$0xff] }
  0xaa   : > { %845 = vst [vmem:[%s17161_s13 + $0x960] sm:$0xff] %v844_v44  ;;  %847 = vst [vmem:[%s17161_s13 + $0x968] sm:$0xff] %v846_v45  ;;  %v850_v47 = vld [vmem:[%s17156_s12 + $0x2598] sm:$0xff]  ;;  %v852_v48 = vld [vmem:[%s17156_s12 + $0x25a0] sm:$0xff] }
  0xab   : > { %849 = vst [vmem:[%s17161_s13 + $0x970] sm:$0xff] %v848_v46  ;;  %v854_v49 = vld [vmem:[%s17156_s12 + $0x25a8] sm:$0xff]  ;;  %851 = vst [vmem:[%s17161_s13 + $0x978] sm:$0xff] %v850_v47  ;;  %v856_v50 = vld [vmem:[%s17156_s12 + $0x25b0] sm:$0xff] }
  0xac   : > { %853 = vst [vmem:[%s17161_s13 + $0x980] sm:$0xff] %v852_v48  ;;  %855 = vst [vmem:[%s17161_s13 + $0x988] sm:$0xff] %v854_v49  ;;  %v858_v51 = vld [vmem:[%s17156_s12 + $0x25b8] sm:$0xff]  ;;  %v860_v52 = vld [vmem:[%s17156_s12 + $0x25c0] sm:$0xff] }
  0xad   : > { %857 = vst [vmem:[%s17161_s13 + $0x990] sm:$0xff] %v856_v50  ;;  %859 = vst [vmem:[%s17161_s13 + $0x998] sm:$0xff] %v858_v51  ;;  %v862_v53 = vld [vmem:[%s17156_s12 + $0x25c8] sm:$0xff]  ;;  %v864_v54 = vld [vmem:[%s17156_s12 + $0x25d0] sm:$0xff] }
  0xae   : > { %861 = vst [vmem:[%s17161_s13 + $0x9a0] sm:$0xff] %v860_v52  ;;  %v866_v55 = vld [vmem:[%s17156_s12 + $0x25d8] sm:$0xff]  ;;  %863 = vst [vmem:[%s17161_s13 + $0x9a8] sm:$0xff] %v862_v53  ;;  %v868_v56 = vld [vmem:[%s17156_s12 + $0x25e0] sm:$0xff] }
  0xaf   : > { %865 = vst [vmem:[%s17161_s13 + $0x9b0] sm:$0xff] %v864_v54  ;;  %867 = vst [vmem:[%s17161_s13 + $0x9b8] sm:$0xff] %v866_v55  ;;  %v870_v57 = vld [vmem:[%s17156_s12 + $0x25e8] sm:$0xff]  ;;  %v872_v58 = vld [vmem:[%s17156_s12 + $0x25f0] sm:$0xff] }
  0xb0   : > { %869 = vst [vmem:[%s17161_s13 + $0x9c0] sm:$0xff] %v868_v56  ;;  %871 = vst [vmem:[%s17161_s13 + $0x9c8] sm:$0xff] %v870_v57  ;;  %v874_v59 = vld [vmem:[%s17156_s12 + $0x25f8] sm:$0xff]  ;;  %v876_v60 = vld [vmem:[%s17156_s12 + $0x2600] sm:$0xff] }
  0xb1   : > { %873 = vst [vmem:[%s17161_s13 + $0x9d0] sm:$0xff] %v872_v58  ;;  %v878_v61 = vld [vmem:[%s17156_s12 + $0x2608] sm:$0xff]  ;;  %875 = vst [vmem:[%s17161_s13 + $0x9d8] sm:$0xff] %v874_v59  ;;  %v880_v62 = vld [vmem:[%s17156_s12 + $0x2610] sm:$0xff] }
  0xb2   : > { %877 = vst [vmem:[%s17161_s13 + $0x9e0] sm:$0xff] %v876_v60  ;;  %879 = vst [vmem:[%s17161_s13 + $0x9e8] sm:$0xff] %v878_v61  ;;  %v882_v63 = vld [vmem:[%s17156_s12 + $0x2618] sm:$0xff]  ;;  %v884_v0 = vld [vmem:[%s17156_s12 + $0x2800] sm:$0xff] }
  0xb3   : > { %881 = vst [vmem:[%s17161_s13 + $0x9f0] sm:$0xff] %v880_v62  ;;  %883 = vst [vmem:[%s17161_s13 + $0x9f8] sm:$0xff] %v882_v63  ;;  %v886_v1 = vld [vmem:[%s17156_s12 + $0x2808] sm:$0xff]  ;;  %v888_v2 = vld [vmem:[%s17156_s12 + $0x2810] sm:$0xff] }
  0xb4   : > { %885 = vst [vmem:[%s17161_s13 + $0xa00] sm:$0xff] %v884_v0  ;;  %v890_v3 = vld [vmem:[%s17156_s12 + $0x2818] sm:$0xff]  ;;  %887 = vst [vmem:[%s17161_s13 + $0xa08] sm:$0xff] %v886_v1  ;;  %v892_v4 = vld [vmem:[%s17156_s12 + $0x2820] sm:$0xff] }
  0xb5   : > { %889 = vst [vmem:[%s17161_s13 + $0xa10] sm:$0xff] %v888_v2  ;;  %891 = vst [vmem:[%s17161_s13 + $0xa18] sm:$0xff] %v890_v3  ;;  %v894_v5 = vld [vmem:[%s17156_s12 + $0x2828] sm:$0xff]  ;;  %v896_v6 = vld [vmem:[%s17156_s12 + $0x2830] sm:$0xff] }
  0xb6   : > { %893 = vst [vmem:[%s17161_s13 + $0xa20] sm:$0xff] %v892_v4  ;;  %895 = vst [vmem:[%s17161_s13 + $0xa28] sm:$0xff] %v894_v5  ;;  %v898_v7 = vld [vmem:[%s17156_s12 + $0x2838] sm:$0xff]  ;;  %v900_v8 = vld [vmem:[%s17156_s12 + $0x2840] sm:$0xff] }
  0xb7   : > { %897 = vst [vmem:[%s17161_s13 + $0xa30] sm:$0xff] %v896_v6  ;;  %v902_v9 = vld [vmem:[%s17156_s12 + $0x2848] sm:$0xff]  ;;  %899 = vst [vmem:[%s17161_s13 + $0xa38] sm:$0xff] %v898_v7  ;;  %v904_v10 = vld [vmem:[%s17156_s12 + $0x2850] sm:$0xff] }
  0xb8   : > { %901 = vst [vmem:[%s17161_s13 + $0xa40] sm:$0xff] %v900_v8  ;;  %903 = vst [vmem:[%s17161_s13 + $0xa48] sm:$0xff] %v902_v9  ;;  %v906_v11 = vld [vmem:[%s17156_s12 + $0x2858] sm:$0xff]  ;;  %v908_v12 = vld [vmem:[%s17156_s12 + $0x2860] sm:$0xff] }
  0xb9   : > { %905 = vst [vmem:[%s17161_s13 + $0xa50] sm:$0xff] %v904_v10  ;;  %907 = vst [vmem:[%s17161_s13 + $0xa58] sm:$0xff] %v906_v11  ;;  %v910_v13 = vld [vmem:[%s17156_s12 + $0x2868] sm:$0xff]  ;;  %v912_v14 = vld [vmem:[%s17156_s12 + $0x2870] sm:$0xff] }
  0xba   : > { %909 = vst [vmem:[%s17161_s13 + $0xa60] sm:$0xff] %v908_v12  ;;  %v914_v15 = vld [vmem:[%s17156_s12 + $0x2878] sm:$0xff]  ;;  %911 = vst [vmem:[%s17161_s13 + $0xa68] sm:$0xff] %v910_v13  ;;  %v916_v16 = vld [vmem:[%s17156_s12 + $0x2880] sm:$0xff] }
  0xbb   : > { %913 = vst [vmem:[%s17161_s13 + $0xa70] sm:$0xff] %v912_v14  ;;  %915 = vst [vmem:[%s17161_s13 + $0xa78] sm:$0xff] %v914_v15  ;;  %v918_v17 = vld [vmem:[%s17156_s12 + $0x2888] sm:$0xff]  ;;  %v920_v18 = vld [vmem:[%s17156_s12 + $0x2890] sm:$0xff] }
  0xbc   : > { %917 = vst [vmem:[%s17161_s13 + $0xa80] sm:$0xff] %v916_v16  ;;  %919 = vst [vmem:[%s17161_s13 + $0xa88] sm:$0xff] %v918_v17  ;;  %v922_v19 = vld [vmem:[%s17156_s12 + $0x2898] sm:$0xff] }
  0xbd   : > { %921 = vst [vmem:[%s17161_s13 + $0xa90] sm:$0xff] %v920_v18  ;;  %923 = vst [vmem:[%s17161_s13 + $0xa98] sm:$0xff] %v922_v19 }
  0xbe PF: > { %p15381_p6 = scmp.ge.s32.totalorder %s17068_s25, 1  ;;  %p928_p7 = scmp.lt.s32.totalorder %s17068_s25, 5 }
  0xc0   : > { %p929_p8 = pnand %p15381_p6, %p928_p7 }
  0xc2   : > { %932 = sbr.rel (%p929_p8) target bundleno = 2535 (0x9e7), region = 63 }
  0xc9   : > { %s935_s14 = sand.u32 1, %s17052_s21   ;;  %p15382_p9 = scmp.ne.s32.totalorder %s17060_s23, 0 }
  0xca   : > { %s16934_s15 = smul.u32 2720, %s935_s14 }
  0xcb   : > { %966 = sbr.rel (%p15382_p9) target bundleno = 830 (0x33e), region = 71 }
  0xcc   : > { %s17843_s16 = scalar_lea.vmem [#allocation3], %s16934_s15 }
  0xd2   : > { %vm967_vm0 = vcmask 1041408   ;;  %vm968_vm1 = vcmask 19458   ;;  %v975_v20 = vld [vmem:[%s23322_s0] sm:$0xff]  ;;  %v976_v22 = vld [vmem:[%s23322_s0 + $0x8] sm:$0xff]  ;;  %vm1864_vm3 = vcmask 1044480   ;;  %vm1865_vm4 = vcmask 1045504  }
  0xd3   : > { %v1015_v21 = vld [vmem:[%s23322_s0 + $0x140] sm:$0xff]  ;;  %vm969_vm2 = vmor %vm968_vm1, %vm967_vm0  ;;  %v1016_v24 = vld [vmem:[%s23322_s0 + $0x148] sm:$0xff]  ;;  %v17070_v27 = vmov 0.0   ;;  %v17071_v34 = vmov 65535   ;;  %v23334_v46 = vmov 0   ;;  %vm1860_vm5 = vcmask 220160  }
  0xd4   : > { %v15385_v23 = vcombine.high %v975_v20, %v1015_v21  ;;  %v15384_v25 = vcombine.low %v975_v20, %v1015_v21  ;;  %v1055_v26 = vld [vmem:[%s23322_s0 + $0x280] sm:$0xff]  ;;  %970 = vst.msk [vmem:[#allocation4] sm:$0xf] %vm969_vm2, %v17070_v27  ;;  %v15387_v28 = vcombine.high %v976_v22, %v1016_v24  ;;  %v15386_v29 = vcombine.low %v976_v22, %v1016_v24  ;;  %v1056_v31 = vld [vmem:[%s23322_s0 + $0x288] sm:$0xff]  ;;  %v977_v40 = vld [vmem:[%s23322_s0 + $0x10] sm:$0xff] }
  0xd5   : > { %v1095_v30 = vld [vmem:[%s23322_s0 + $0x3c0] sm:$0x33]  ;;  %v1096_v32 = vld [vmem:[%s23322_s0 + $0x3c8] sm:$0x33]  ;;  %v1866_v35 = vsel %vm1864_vm3, 4294967295, %v17071_v34  ;;  %v1017_v41 = vld [vmem:[%s23322_s0 + $0x150] sm:$0xff]  ;;  %2140 = vmatprep.mubr.bf16.mxu0 %v23334_v46  ;;  %2183 = vmatprep.mubr.bf16.mxu1 %v23334_v46 }
  0xd6   : > { %2108 = vmatprep.subr.bf16.mxu0 %v15385_v23  ;;  %v15465_v33 = vcombine.high %v1055_v26, %v1095_v30  ;;  %v15467_v36 = vcombine.high %v1056_v31, %v1096_v32  ;;  %v15464_v37 = vcombine.low %v1055_v26, %v1095_v30  ;;  %2151 = vmatprep.subr.bf16.mxu1 %v15387_v28  ;;  %v17871_v38 = vsel %vm1865_vm4, %v1866_v35, 0  ;;  %v978_v42 = vld [vmem:[%s23322_s0 + $0x18] sm:$0xff]  ;;  %v1057_v48 = vld [vmem:[%s23322_s0 + $0x290] sm:$0xff]  ;;  %v17906_v54 = vld [vmem:[%s23323_s1] sm:$0xff]  }
  0xd7   : > { %2109 = vmatpush1.bf16.msra.mxu0 %v15384_v25  ;;  %v15466_v39 = vcombine.low %v1056_v31, %v1096_v32  ;;  %2152 = vmatpush1.bf16.msra.mxu1 %v15386_v29  ;;  %v1018_v47 = vld [vmem:[%s23322_s0 + $0x158] sm:$0xff]  ;;  %v1097_v49 = vld [vmem:[%s23322_s0 + $0x3d0] sm:$0x33]  ;;  %v15389_v51 = vcombine.high %v977_v40, %v1017_v41  ;;  %v15388_v57 = vcombine.low %v977_v40, %v1017_v41  ;;  %v979_v63 = vld [vmem:[%s23322_s0 + $0x20] sm:$0xff]  ;;  %vm4562_vm6 = vcmask 1040384  }
  0xd8   : > { %v1872_v43 = vand.u32 %v15465_v33, %v17871_v38  ;;  %v1878_v44 = vand.u32 %v15467_v36, %v17871_v38  ;;  %v1869_v45 = vand.u32 %v15464_v37, %v17871_v38  ;;  %v1058_v52 = vld [vmem:[%s23322_s0 + $0x298] sm:$0xff]  ;;  %v15391_v55 = vcombine.high %v978_v42, %v1018_v47  ;;  %v1019_v0 = vld [vmem:[%s23322_s0 + $0x160] sm:$0xff]  ;;  %v980_v2 = vld [vmem:[%s23322_s0 + $0x28] sm:$0xff]  ;;  %16988 = vset.pattern.permute.xlu0 %v23334_v46 }
  0xd9   : > { %v1875_v50 = vand.u32 %v15466_v39, %v17871_v38  ;;  %v1098_v53 = vld [vmem:[%s23322_s0 + $0x3d8] sm:$0x33]  ;;  %v15469_v56 = vcombine.high %v1057_v48, %v1097_v49  ;;  %v15468_v58 = vcombine.low %v1057_v48, %v1097_v49  ;;  %v15390_v60 = vcombine.low %v978_v42, %v1018_v47  ;;  %v1059_v3 = vld [vmem:[%s23322_s0 + $0x2a0] sm:$0xff]  ;;  %v1020_v5 = vld [vmem:[%s23322_s0 + $0x168] sm:$0xff] }
  0xda   : > { %2110 = vmatprep.subr.bf16.mxu0 %v1872_v43  ;;  %2153 = vmatprep.subr.bf16.mxu1 %v1878_v44  ;;  %v15471_v59 = vcombine.high %v1058_v52, %v1098_v53  ;;  %v15470_v62 = vcombine.low %v1058_v52, %v1098_v53  ;;  %v1099_v4 = vld [vmem:[%s23322_s0 + $0x3e0] sm:$0x33]  ;;  %v1060_v6 = vld [vmem:[%s23322_s0 + $0x2a8] sm:$0xff]  ;;  %v15393_v10 = vcombine.high %v979_v63, %v1019_v0  ;;  %v981_v19 = vld [vmem:[%s23322_s0 + $0x30] sm:$0xff]  ;;  %vm4563_vm7 = vsmask.f32 256 }
  0xdb   : > { %2111 = vmatpush1.bf16.msra.mxu0 %v1869_v45  ;;  %2154 = vmatpush1.bf16.msra.mxu1 %v1875_v50  ;;  %v1884_v61 = vand.u32 %v15469_v56, %v17871_v38  ;;  %v1100_v7 = vld [vmem:[%s23322_s0 + $0x3e8] sm:$0x33]  ;;  %v1881_v8 = vand.u32 %v15468_v58, %v17871_v38  ;;  %v15473_v11 = vcombine.high %v1059_v3, %v1099_v4  ;;  %v1021_v20 = vld [vmem:[%s23322_s0 + $0x170] sm:$0xff]  ;;  %v982_v22 = vld [vmem:[%s23322_s0 + $0x38] sm:$0xff]  ;;  %vm4565_vm8 = vcmask 1041409  }
  0xdc   : > { %2194 = vmatprep.subr.bf16.mxu0 %v15389_v51  ;;  %2237 = vmatprep.subr.bf16.mxu1 %v15391_v55  ;;  %v1890_v1 = vand.u32 %v15471_v59, %v17871_v38  ;;  %v1887_v9 = vand.u32 %v15470_v62, %v17871_v38  ;;  %v15395_v12 = vcombine.high %v980_v2, %v1020_v5  ;;  %v1061_v23 = vld [vmem:[%s23322_s0 + $0x2b0] sm:$0xff]  ;;  %v1022_v25 = vld [vmem:[%s23322_s0 + $0x178] sm:$0xff]  ;;  %v983_v40 = vld [vmem:[%s23322_s0 + $0x40] sm:$0xff]  ;;  %vm4566_vm9 = vsmask.f32 1280 }
  0xdd   : > { %v15475_v13 = vcombine.high %v1060_v6, %v1100_v7  ;;  %v15392_v14 = vcombine.low %v979_v63, %v1019_v0  ;;  %v15472_v15 = vcombine.low %v1059_v3, %v1099_v4  ;;  %v15394_v16 = vcombine.low %v980_v2, %v1020_v5  ;;  %v1101_v24 = vld [vmem:[%s23322_s0 + $0x3f0] sm:$0x33]  ;;  %v1062_v26 = vld [vmem:[%s23322_s0 + $0x2b8] sm:$0xff]  ;;  %v1023_v41 = vld [vmem:[%s23322_s0 + $0x180] sm:$0xff] }
  0xde   : > { %15544 = vmatmul.mubr.msk.bf16.vlgmr.msra.gmra.mrb[0].mxu0 %vm1860_vm5, %v17906_v54  ;;  %15545 = vmatmul.mubr.msk.bf16.vlgmr.msra.gmra.mrb[0].mxu1 %vm1860_vm5, %v17906_v54  ;;  %v1896_v17 = vand.u32 %v15473_v11, %v17871_v38  ;;  %v15474_v18 = vcombine.low %v1060_v6, %v1100_v7  ;;  %v1102_v27 = vld [vmem:[%s23322_s0 + $0x3f8] sm:$0x33]  ;;  %v15397_v30 = vcombine.high %v981_v19, %v1021_v20  ;;  %v984_v43 = vld [vmem:[%s23322_s0 + $0x48] sm:$0xff]  ;;  %v1063_v44 = vld [vmem:[%s23322_s0 + $0x2c0] sm:$0xff]  ;;  %vm4569_vm11 = vcmask 1042434  }
  0xdf   : > { %2195 = vmatpush1.bf16.msra.mxu0 %v15388_v57  ;;  %2238 = vmatpush1.bf16.msra.mxu1 %v15390_v60  ;;  %v1902_v21 = vand.u32 %v15475_v13, %v17871_v38  ;;  %v1893_v28 = vand.u32 %v15472_v15, %v17871_v38  ;;  %v15477_v31 = vcombine.high %v1061_v23, %v1101_v24  ;;  %v1103_v45 = vld [vmem:[%s23322_s0 + $0x400] sm:$0x33]  ;;  %v1024_v47 = vld [vmem:[%s23322_s0 + $0x188] sm:$0xff]  ;;  %v985_v62 = vld [vmem:[%s23322_s0 + $0x50] sm:$0xff]  ;;  %vm4570_vm12 = vsmask.f32 2304 }
  0xe0   : > { %2196 = vmatprep.subr.bf16.mxu0 %v1884_v61  ;;  %2239 = vmatprep.subr.bf16.mxu1 %v1890_v1  ;;  %v1899_v29 = vand.u32 %v15474_v18, %v17871_v38  ;;  %v15399_v32 = vcombine.high %v982_v22, %v1022_v25  ;;  %v15479_v33 = vcombine.high %v1062_v26, %v1102_v27  ;;  %v1064_v48 = vld [vmem:[%s23322_s0 + $0x2c8] sm:$0xff]  ;;  %v1025_v63 = vld [vmem:[%s23322_s0 + $0x190] sm:$0xff]  ;;  %v986_v1 = vld [vmem:[%s23322_s0 + $0x58] sm:$0xff]  ;;  %vm4573_vm14 = vcmask 1043459  }
  0xe1   : > { %2226 = vmatprep.mubr.bf16.mxu0 %v23334_v46  ;;  %2269 = vmatprep.mubr.bf16.mxu1 %v23334_v46  ;;  %v15396_v34 = vcombine.low %v981_v19, %v1021_v20  ;;  %v15476_v35 = vcombine.low %v1061_v23, %v1101_v24  ;;  %v15398_v36 = vcombine.low %v982_v22, %v1022_v25  ;;  %v1104_v49 = vld [vmem:[%s23322_s0 + $0x408] sm:$0x33]  ;;  %v1065_v2 = vld [vmem:[%s23322_s0 + $0x2d0] sm:$0xff]  ;;  %v1026_v4 = vld [vmem:[%s23322_s0 + $0x198] sm:$0xff]  ;;  %vm4574_vm15 = vsmask.f32 3328 }
  0xe2   : > { %v1908_v37 = vand.u32 %v15477_v31, %v17871_v38  ;;  %v15478_v39 = vcombine.low %v1062_v26, %v1102_v27  ;;  %v1914_v42 = vand.u32 %v15479_v33, %v17871_v38  ;;  %v15401_v52 = vcombine.high %v983_v40, %v1023_v41  ;;  %v1105_v3 = vld [vmem:[%s23322_s0 + $0x410] sm:$0x33]  ;;  %v1066_v5 = vld [vmem:[%s23322_s0 + $0x2d8] sm:$0xff]  ;;  %v987_v18 = vld [vmem:[%s23322_s0 + $0x60] sm:$0xff] }
  0xe3   : > { %2197 = vmatpush1.bf16.msra.mxu0 %v1881_v8  ;;  %2240 = vmatpush1.bf16.msra.mxu1 %v1887_v9  ;;  %v1905_v50 = vand.u32 %v15476_v35, %v17871_v38  ;;  %v15481_v53 = vcombine.high %v1063_v44, %v1103_v45  ;;  %v15403_v55 = vcombine.high %v984_v43, %v1024_v47  ;;  %v1106_v6 = vld [vmem:[%s23322_s0 + $0x418] sm:$0x33]  ;;  %v1027_v19 = vld [vmem:[%s23322_s0 + $0x1a0] sm:$0xff]  ;;  %v1028_v24 = vld [vmem:[%s23322_s0 + $0x1a8] sm:$0xff]  ;;  %vm4577_vm0 = vcmask 1044484  }
  0xe4   : > { %2280 = vmatprep.subr.bf16.mxu0 %v15393_v10  ;;  %2323 = vmatprep.subr.bf16.mxu1 %v15395_v12  ;;  %v1911_v51 = vand.u32 %v15478_v39, %v17871_v38  ;;  %v15483_v56 = vcombine.high %v1064_v48, %v1104_v49  ;;  %v15400_v57 = vcombine.low %v983_v40, %v1023_v41  ;;  %v1067_v22 = vld [vmem:[%s23322_s0 + $0x2e0] sm:$0xff]  ;;  %v1068_v25 = vld [vmem:[%s23322_s0 + $0x2e8] sm:$0xff]  ;;  %v989_v39 = vld [vmem:[%s23322_s0 + $0x70] sm:$0xff]  ;;  %vm4578_vm1 = vsmask.f32 4352 }
  0xe5   : > { %v15480_v58 = vcombine.low %v1063_v44, %v1103_v45  ;;  %v15402_v59 = vcombine.low %v984_v43, %v1024_v47  ;;  %v1920_v60 = vand.u32 %v15481_v53, %v17871_v38  ;;  %v15482_v61 = vcombine.low %v1064_v48, %v1104_v49  ;;  %v1107_v23 = vld [vmem:[%s23322_s0 + $0x420] sm:$0x33]  ;;  %v1108_v26 = vld [vmem:[%s23322_s0 + $0x428] sm:$0x33]  ;;  %v1029_v40 = vld [vmem:[%s23322_s0 + $0x1b0] sm:$0xff] }
  0xe6   : > { %15546 = vmatmul.mubr.msk.bf16.vlgmr.msra.gmra.mrb[4].mxu0 %vm1860_vm5, %v17906_v54  ;;  %15547 = vmatmul.mubr.msk.bf16.vlgmr.msra.gmra.mrb[4].mxu1 %vm1860_vm5, %v17906_v54  ;;  %v1926_v0 = vand.u32 %v15483_v56, %v17871_v38  ;;  %v15405_v9 = vcombine.high %v985_v62, %v1025_v63  ;;  %v15485_v10 = vcombine.high %v1065_v2, %v1105_v3  ;;  %v1069_v43 = vld [vmem:[%s23322_s0 + $0x2f0] sm:$0xff]  ;;  %v1030_v45 = vld [vmem:[%s23322_s0 + $0x1b8] sm:$0xff]  ;;  %vm19589_vm10 = vmand %vm4562_vm6, %vm4563_vm7  ;;  %vm4581_vm4 = vcmask 1045509  }
  0xe7   : > { %2281 = vmatpush1.bf16.msra.mxu0 %v15392_v14  ;;  %2324 = vmatpush1.bf16.msra.mxu1 %v15394_v16  ;;  %v1917_v7 = vand.u32 %v15480_v58, %v17871_v38  ;;  %v1923_v8 = vand.u32 %v15482_v61, %v17871_v38  ;;  %v15407_v11 = vcombine.high %v986_v1, %v1026_v4  ;;  %v1109_v44 = vld [vmem:[%s23322_s0 + $0x430] sm:$0x33]  ;;  %v1070_v47 = vld [vmem:[%s23322_s0 + $0x2f8] sm:$0xff]  ;;  %v991_v61 = vld [vmem:[%s23322_s0 + $0x80] sm:$0xff] }
  0xe8   : > { %2282 = vmatprep.subr.bf16.mxu0 %v1896_v17  ;;  %2325 = vmatprep.subr.bf16.mxu1 %v1902_v21  ;;  %v15487_v12 = vcombine.high %v1066_v5, %v1106_v6  ;;  %v15404_v13 = vcombine.low %v985_v62, %v1025_v63  ;;  %v15484_v14 = vcombine.low %v1065_v2, %v1105_v3  ;;  %v988_v21 = vld [vmem:[%s23322_s0 + $0x68] sm:$0xff]  ;;  %v1110_v48 = vld [vmem:[%s23322_s0 + $0x438] sm:$0x33]  ;;  %v1031_v62 = vld [vmem:[%s23322_s0 + $0x1c0] sm:$0xff] }
  0xe9   : > { %2312 = vmatprep.mubr.bf16.mxu0 %v23334_v46  ;;  %2355 = vmatprep.mubr.bf16.mxu1 %v23334_v46  ;;  %v15406_v15 = vcombine.low %v986_v1, %v1026_v4  ;;  %v1932_v16 = vand.u32 %v15485_v10, %v17871_v38  ;;  %v15486_v17 = vcombine.low %v1066_v5, %v1106_v6  ;;  %v1071_v1 = vld [vmem:[%s23322_s0 + $0x300] sm:$0xff]  ;;  %v1032_v3 = vld [vmem:[%s23322_s0 + $0x1c8] sm:$0xff]  ;;  %vm19596_vm13 = vmand %vm4565_vm8, %vm4566_vm9 }
  0xea   : > { %v1938_v20 = vand.u32 %v15487_v12, %v17871_v38  ;;  %v1929_v27 = vand.u32 %v15484_v14, %v17871_v38  ;;  %v15411_v31 = vcombine.high %v988_v21, %v1028_v24  ;;  %v15408_v33 = vcombine.low %v987_v18, %v1027_v19  ;;  %v1111_v2 = vld [vmem:[%s23322_s0 + $0x440] sm:$0x33]  ;;  %v1072_v4 = vld [vmem:[%s23322_s0 + $0x308] sm:$0xff]  ;;  %vm4568_vm2 = vmor %vm19596_vm13, %vm19589_vm10 }
  0xeb   : > { %2283 = vmatpush1.bf16.msra.mxu0 %v1893_v28  ;;  %2326 = vmatpush1.bf16.msra.mxu1 %v1899_v29  ;;  %v1935_v28 = vand.u32 %v15486_v17, %v17871_v38  ;;  %v15409_v29 = vcombine.high %v987_v18, %v1027_v19  ;;  %v15410_v35 = vcombine.low %v988_v21, %v1028_v24  ;;  %v1112_v5 = vld [vmem:[%s23322_s0 + $0x448] sm:$0x33]  ;;  %v993_v17 = vld [vmem:[%s23322_s0 + $0x90] sm:$0xff]  ;;  %v1074_v24 = vld [vmem:[%s23322_s0 + $0x318] sm:$0xff]  ;;  %vm4585_vm10 = vcmask 1046534  }
  0xec   : > { %2366 = vmatprep.subr.bf16.mxu0 %v15397_v30  ;;  %2409 = vmatprep.subr.bf16.mxu1 %v15399_v32  ;;  %v15489_v30 = vcombine.high %v1067_v22, %v1107_v23  ;;  %v15491_v32 = vcombine.high %v1068_v25, %v1108_v26  ;;  %v15412_v56 = vcombine.low %v989_v39, %v1029_v40  ;;  %v1033_v18 = vld [vmem:[%s23322_s0 + $0x1d0] sm:$0xff]  ;;  %vm19637_vm3 = vmand %vm4569_vm11, %vm4570_vm12  ;;  %vm4586_vm12 = vsmask.f32 6400 }
  0xed   : > { %v15416_v12 = vcombine.low %v991_v61, %v1031_v62  ;;  %v1073_v21 = vld [vmem:[%s23322_s0 + $0x310] sm:$0xff]  ;;  %vm19662_vm7 = vmor %vm19637_vm3, %vm4568_vm2  ;;  %vm4589_vm2 = vcmask 1047559   ;;  %vm4590_vm3 = vsmask.f32 7424 }
  0xee   : > { %15548 = vmatmul.mubr.msk.bf16.vlgmr.msra.gmra.mrb[8].mxu0 %vm1860_vm5, %v17906_v54  ;;  %15549 = vmatmul.mubr.msk.bf16.vlgmr.msra.gmra.mrb[8].mxu1 %vm1860_vm5, %v17906_v54  ;;  %v1950_v41 = vand.u32 %v15491_v32, %v17871_v38  ;;  %v15420_v32 = vcombine.low %v993_v17, %v1033_v18  ;;  %vm19674_vm9 = vmand %vm4573_vm14, %vm4574_vm15 }
  0xef   : > { %2367 = vmatpush1.bf16.msra.mxu0 %v15396_v34  ;;  %2410 = vmatpush1.bf16.msra.mxu1 %v15398_v36  ;;  %v15488_v34 = vcombine.low %v1067_v22, %v1107_v23  ;;  %v1944_v36 = vand.u32 %v15489_v30, %v17871_v38  ;;  %v1113_v22 = vld [vmem:[%s23322_s0 + $0x450] sm:$0x33]  ;;  %v1034_v23 = vld [vmem:[%s23322_s0 + $0x1d8] sm:$0xff]  ;;  %vm19701_vm13 = vmor %vm19674_vm9, %vm19662_vm7 }
  0xf0   : > { %2368 = vmatprep.subr.bf16.mxu0 %v1908_v37  ;;  %2411 = vmatprep.subr.bf16.mxu1 %v1914_v42  ;;  %v15490_v37 = vcombine.low %v1068_v25, %v1108_v26  ;;  %v990_v42 = vld [vmem:[%s23322_s0 + $0x78] sm:$0xff]  ;;  %vm19712_vm15 = vmand %vm4577_vm0, %vm4578_vm1 }
  0xf1   : > { %2398 = vmatprep.mubr.bf16.mxu0 %v23334_v46  ;;  %2441 = vmatprep.mubr.bf16.mxu1 %v23334_v46  ;;  %v1941_v49 = vand.u32 %v15488_v34, %v17871_v38  ;;  %v15415_v53 = vcombine.high %v990_v42, %v1030_v45  ;;  %v15414_v58 = vcombine.low %v990_v42, %v1030_v45  ;;  %v1114_v25 = vld [vmem:[%s23322_s0 + $0x458] sm:$0x33]  ;;  %v1075_v42 = vld [vmem:[%s23322_s0 + $0x320] sm:$0xff]  ;;  %v1076_v45 = vld [vmem:[%s23322_s0 + $0x328] sm:$0xff] }
  0xf2   : > { %vm4580_vm1 = vmor %vm19712_vm15, %vm19701_vm13 }
  0xf3   : > { %2369 = vmatpush1.bf16.msra.mxu0 %v1905_v50  ;;  %2412 = vmatpush1.bf16.msra.mxu1 %v1911_v51  ;;  %v1947_v50 = vand.u32 %v15490_v37, %v17871_v38  ;;  %v15413_v51 = vcombine.high %v989_v39, %v1029_v40  ;;  %v995_v37 = vld [vmem:[%s23322_s0 + $0xa0] sm:$0xff]  ;;  %vm19774_vm9 = vmand %vm4585_vm10, %vm4586_vm12 }
  0xf4   : > { %2452 = vmatprep.subr.bf16.mxu0 %v15401_v52  ;;  %2495 = vmatprep.subr.bf16.mxu1 %v15403_v55  ;;  %v15493_v52 = vcombine.high %v1069_v43, %v1109_v44  ;;  %v15495_v55 = vcombine.high %v1070_v47, %v1110_v48  ;;  %v1035_v39 = vld [vmem:[%s23322_s0 + $0x1e0] sm:$0xff]  ;;  %vm19813_vm15 = vmand %vm4589_vm2, %vm4590_vm3 }
  0xf6   : > { %15550 = vmatmul.mubr.msk.bf16.vlgmr.msra.gmra.mrb[12].mxu0 %vm1860_vm5, %v17906_v54  ;;  %15551 = vmatmul.mubr.msk.bf16.vlgmr.msra.gmra.mrb[12].mxu1 %vm1860_vm5, %v17906_v54  ;;  %v1962_v63 = vand.u32 %v15495_v55, %v17871_v38  ;;  %v15424_v55 = vcombine.low %v995_v37, %v1035_v39 }
  0xf7   : > { %2453 = vmatpush1.bf16.msra.mxu0 %v15400_v57  ;;  %2496 = vmatpush1.bf16.msra.mxu1 %v15402_v59  ;;  %v15492_v57 = vcombine.low %v1069_v43, %v1109_v44  ;;  %v1956_v59 = vand.u32 %v15493_v52, %v17871_v38  ;;  %v1115_v43 = vld [vmem:[%s23322_s0 + $0x460] sm:$0x33]  ;;  %v1036_v44 = vld [vmem:[%s23322_s0 + $0x1e8] sm:$0xff] }
  0xf8   : > { %2454 = vmatprep.subr.bf16.mxu0 %v1920_v60  ;;  %2497 = vmatprep.subr.bf16.mxu1 %v1926_v0  ;;  %v15494_v60 = vcombine.low %v1070_v47, %v1110_v48  ;;  %v992_v0 = vld [vmem:[%s23322_s0 + $0x88] sm:$0xff] }
  0xf9   : > { %2484 = vmatprep.mubr.bf16.mxu0 %v23334_v46  ;;  %2527 = vmatprep.mubr.bf16.mxu1 %v23334_v46  ;;  %v1953_v6 = vand.u32 %v15492_v57, %v17871_v38  ;;  %v15419_v10 = vcombine.high %v992_v0, %v1032_v3  ;;  %v15418_v14 = vcombine.low %v992_v0, %v1032_v3  ;;  %v1116_v47 = vld [vmem:[%s23322_s0 + $0x468] sm:$0x33]  ;;  %v1077_v0 = vld [vmem:[%s23322_s0 + $0x330] sm:$0xff]  ;;  %v1078_v3 = vld [vmem:[%s23322_s0 + $0x338] sm:$0xff] }
  0xfb   : > { %2455 = vmatpush1.bf16.msra.mxu0 %v1917_v7  ;;  %2498 = vmatpush1.bf16.msra.mxu1 %v1923_v8  ;;  %v1959_v7 = vand.u32 %v15494_v60, %v17871_v38  ;;  %v15417_v8 = vcombine.high %v991_v61, %v1031_v62  ;;  %v997_v60 = vld [vmem:[%s23322_s0 + $0xb0] sm:$0xff] }
  0xfc   : > { %2538 = vmatprep.subr.bf16.mxu0 %v15405_v9  ;;  %2581 = vmatprep.subr.bf16.mxu1 %v15407_v11  ;;  %v15497_v9 = vcombine.high %v1071_v1, %v1111_v2  ;;  %v15499_v11 = vcombine.high %v1072_v4, %v1112_v5  ;;  %v1037_v61 = vld [vmem:[%s23322_s0 + $0x1f0] sm:$0xff] }
  0xfe   : > { %15552 = vmatmul.mubr.msk.bf16.vlgmr.msra.gmra.mrb[16].mxu0 %vm1860_vm5, %v17906_v54  ;;  %15553 = vmatmul.mubr.msk.bf16.vlgmr.msra.gmra.mrb[16].mxu1 %vm1860_vm5, %v17906_v54  ;;  %v1974_v19 = vand.u32 %v15499_v11, %v17871_v38  ;;  %v15428_v11 = vcombine.low %v997_v60, %v1037_v61 }
  0xff   : > { %2539 = vmatpush1.bf16.msra.mxu0 %v15404_v13  ;;  %2582 = vmatpush1.bf16.msra.mxu1 %v15406_v15  ;;  %v15496_v13 = vcombine.low %v1071_v1, %v1111_v2  ;;  %v1968_v15 = vand.u32 %v15497_v9, %v17871_v38  ;;  %v1117_v1 = vld [vmem:[%s23322_s0 + $0x470] sm:$0x33]  ;;  %v1038_v2 = vld [vmem:[%s23322_s0 + $0x1f8] sm:$0xff] }
 0x100   : > { %2540 = vmatprep.subr.bf16.mxu0 %v1932_v16  ;;  %2583 = vmatprep.subr.bf16.mxu1 %v1938_v20  ;;  %v15498_v16 = vcombine.low %v1072_v4, %v1112_v5  ;;  %v994_v20 = vld [vmem:[%s23322_s0 + $0x98] sm:$0xff] }
 0x101   : > { %2570 = vmatprep.mubr.bf16.mxu0 %v23334_v46  ;;  %2613 = vmatprep.mubr.bf16.mxu1 %v23334_v46  ;;  %v1965_v26 = vand.u32 %v15496_v13, %v17871_v38  ;;  %v15423_v30 = vcombine.high %v994_v20, %v1034_v23  ;;  %v15422_v34 = vcombine.low %v994_v20, %v1034_v23  ;;  %v1118_v4 = vld [vmem:[%s23322_s0 + $0x478] sm:$0x33]  ;;  %v1079_v20 = vld [vmem:[%s23322_s0 + $0x340] sm:$0xff]  ;;  %v1080_v23 = vld [vmem:[%s23322_s0 + $0x348] sm:$0xff] }
 0x103   : > { %2541 = vmatpush1.bf16.msra.mxu0 %v1929_v27  ;;  %2584 = vmatpush1.bf16.msra.mxu1 %v1935_v28  ;;  %v1971_v27 = vand.u32 %v15498_v16, %v17871_v38  ;;  %v15421_v28 = vcombine.high %v993_v17, %v1033_v18  ;;  %v999_v16 = vld [vmem:[%s23322_s0 + $0xc0] sm:$0xff] }
 0x104   : > { %2624 = vmatprep.subr.bf16.mxu0 %v15409_v29  ;;  %2667 = vmatprep.subr.bf16.mxu1 %v15411_v31  ;;  %v15501_v29 = vcombine.high %v1073_v21, %v1113_v22  ;;  %v15503_v31 = vcombine.high %v1074_v24, %v1114_v25  ;;  %v1039_v17 = vld [vmem:[%s23322_s0 + $0x200] sm:$0xff] }
 0x106   : > { %15554 = vmatmul.mubr.msk.bf16.vlgmr.msra.gmra.mrb[20].mxu0 %vm1860_vm5, %v17906_v54  ;;  %15555 = vmatmul.mubr.msk.bf16.vlgmr.msra.gmra.mrb[20].mxu1 %vm1860_vm5, %v17906_v54  ;;  %v1986_v40 = vand.u32 %v15503_v31, %v17871_v38 }
 0x107   : > { %2625 = vmatpush1.bf16.msra.mxu0 %v15408_v33  ;;  %2668 = vmatpush1.bf16.msra.mxu1 %v15410_v35  ;;  %v15500_v33 = vcombine.low %v1073_v21, %v1113_v22  ;;  %v1980_v35 = vand.u32 %v15501_v29, %v17871_v38  ;;  %v1119_v21 = vld [vmem:[%s23322_s0 + $0x480] sm:$0x33]  ;;  %v1040_v22 = vld [vmem:[%s23322_s0 + $0x208] sm:$0xff] }
 0x108   : > { %2626 = vmatprep.subr.bf16.mxu0 %v1944_v36  ;;  %2669 = vmatprep.subr.bf16.mxu1 %v1950_v41  ;;  %v15502_v36 = vcombine.low %v1074_v24, %v1114_v25  ;;  %v996_v41 = vld [vmem:[%s23322_s0 + $0xa8] sm:$0xff]  ;;  %v973_v29 = vld [vmem:[%s23324_s2] sm:$0xff] }
 0x109   : > { %2656 = vmatprep.mubr.bf16.mxu0 %v23334_v46  ;;  %2699 = vmatprep.mubr.bf16.mxu1 %v23334_v46  ;;  %v1977_v48 = vand.u32 %v15500_v33, %v17871_v38  ;;  %v15427_v52 = vcombine.high %v996_v41, %v1036_v44  ;;  %v15426_v57 = vcombine.low %v996_v41, %v1036_v44  ;;  %v1120_v24 = vld [vmem:[%s23322_s0 + $0x488] sm:$0x33]  ;;  %v1002_v41 = vld [vmem:[%s23322_s0 + $0xd8] sm:$0xff] }
 0x10a   : > { %v15515_v31 = vcombine.high %v1080_v23, %v1120_v24  ;;  %v15512_v33 = vcombine.low %v1079_v20, %v1119_v21  ;;  %3950 = vperm.xlu0 %16988, %v973_v29   ;;  %v1042_v44 = vld [vmem:[%s23322_s0 + $0x218] sm:$0xff] }
 0x10b   : > { %2627 = vmatpush1.bf16.msra.mxu0 %v1941_v49  ;;  %2670 = vmatpush1.bf16.msra.mxu1 %v1947_v50  ;;  %v1983_v49 = vand.u32 %v15502_v36, %v17871_v38  ;;  %v15425_v50 = vcombine.high %v995_v37, %v1035_v39  ;;  %v15514_v36 = vcombine.low %v1080_v23, %v1120_v24  ;;  %v1001_v37 = vld [vmem:[%s23322_s0 + $0xd0] sm:$0xff]  ;;  %v1046_v23 = vld [vmem:[%s23322_s0 + $0x238] sm:$0xff] }
 0x10c   : > { %2710 = vmatprep.subr.bf16.mxu0 %v15413_v51  ;;  %2753 = vmatprep.subr.bf16.mxu1 %v15415_v53  ;;  %v15505_v51 = vcombine.high %v1075_v42, %v1115_v43  ;;  %v15507_v53 = vcombine.high %v1076_v45, %v1116_v47  ;;  %v1041_v39 = vld [vmem:[%s23322_s0 + $0x210] sm:$0xff]  ;;  %v1086_v24 = vld [vmem:[%s23322_s0 + $0x378] sm:$0xff] }
 0x10e   : > { %15556 = vmatmul.mubr.msk.bf16.vlgmr.msra.gmra.mrb[24].mxu0 %vm1860_vm5, %v17906_v54  ;;  %15557 = vmatmul.mubr.msk.bf16.vlgmr.msra.gmra.mrb[24].mxu1 %vm1860_vm5, %v17906_v54  ;;  %v1998_v62 = vand.u32 %v15507_v53, %v17871_v38  ;;  %v15439_v53 = vcombine.high %v1002_v41, %v1042_v44 }
 0x10f   : > { %2711 = vmatpush1.bf16.msra.mxu0 %v15412_v56  ;;  %2754 = vmatpush1.bf16.msra.mxu1 %v15414_v58  ;;  %v15504_v56 = vcombine.low %v1075_v42, %v1115_v43  ;;  %v1992_v58 = vand.u32 %v15505_v51, %v17871_v38  ;;  %v1081_v42 = vld [vmem:[%s23322_s0 + $0x350] sm:$0xff]  ;;  %v15437_v51 = vcombine.high %v1001_v37, %v1041_v39 }
 0x110   : > { %2712 = vmatprep.subr.bf16.mxu0 %v1956_v59  ;;  %2755 = vmatprep.subr.bf16.mxu1 %v1962_v63  ;;  %v15506_v59 = vcombine.low %v1076_v45, %v1116_v47  ;;  %v998_v63 = vld [vmem:[%s23322_s0 + $0xb8] sm:$0xff]  ;;  %v1121_v43 = vld [vmem:[%s23322_s0 + $0x490] sm:$0x33] }
 0x111   : > { %2742 = vmatprep.mubr.bf16.mxu0 %v23334_v46  ;;  %2785 = vmatprep.mubr.bf16.mxu1 %v23334_v46  ;;  %v1989_v5 = vand.u32 %v15504_v56, %v17871_v38  ;;  %v15431_v9 = vcombine.high %v998_v63, %v1038_v2  ;;  %v15430_v13 = vcombine.low %v998_v63, %v1038_v2  ;;  %v1082_v45 = vld [vmem:[%s23322_s0 + $0x358] sm:$0xff]  ;;  %v1123_v2 = vld [vmem:[%s23322_s0 + $0x4a0] sm:$0x33] }
 0x112   : > { %v1122_v47 = vld [vmem:[%s23322_s0 + $0x498] sm:$0x33]  ;;  %v15436_v56 = vcombine.low %v1001_v37, %v1041_v39  ;;  %v1007_v37 = vld [vmem:[%s23322_s0 + $0x100] sm:$0xff] }
 0x113   : > { %2713 = vmatpush1.bf16.msra.mxu0 %v1953_v6  ;;  %2756 = vmatpush1.bf16.msra.mxu1 %v1959_v7  ;;  %v1995_v6 = vand.u32 %v15506_v59, %v17871_v38  ;;  %v15429_v7 = vcombine.high %v997_v60, %v1037_v61  ;;  %v15518_v60 = vcombine.low %v1082_v45, %v1122_v47  ;;  %v1003_v61 = vld [vmem:[%s23322_s0 + $0xe0] sm:$0xff] }
 0x114   : > { %2796 = vmatprep.subr.bf16.mxu0 %v15417_v8  ;;  %2839 = vmatprep.subr.bf16.mxu1 %v15419_v10  ;;  %v15509_v8 = vcombine.high %v1077_v0, %v1117_v1  ;;  %v15511_v10 = vcombine.high %v1078_v3, %v1118_v4  ;;  %v1047_v39 = vld [vmem:[%s23322_s0 + $0x240] sm:$0xff] }
 0x116   : > { %15558 = vmatmul.mubr.msk.bf16.vlgmr.msra.gmra.mrb[28].mxu0 %vm1860_vm5, %v17906_v54  ;;  %15559 = vmatmul.mubr.msk.bf16.vlgmr.msra.gmra.mrb[28].mxu1 %vm1860_vm5, %v17906_v54  ;;  %v2010_v18 = vand.u32 %v15511_v10, %v17871_v38 }
 0x117   : > { %2797 = vmatpush1.bf16.msra.mxu0 %v15416_v12  ;;  %2840 = vmatpush1.bf16.msra.mxu1 %v15418_v14  ;;  %v15508_v12 = vcombine.low %v1077_v0, %v1117_v1  ;;  %v2004_v14 = vand.u32 %v15509_v8, %v17871_v38  ;;  %v1004_v0 = vld [vmem:[%s23322_s0 + $0xe8] sm:$0xff]  ;;  %v1083_v1 = vld [vmem:[%s23322_s0 + $0x360] sm:$0xff] }
 0x118   : > { %2798 = vmatprep.subr.bf16.mxu0 %v1968_v15  ;;  %2841 = vmatprep.subr.bf16.mxu1 %v1974_v19  ;;  %v15510_v15 = vcombine.low %v1078_v3, %v1118_v4  ;;  %v1000_v19 = vld [vmem:[%s23322_s0 + $0xc8] sm:$0xff] }
 0x119   : > { %2828 = vmatprep.mubr.bf16.mxu0 %v23334_v46  ;;  %2871 = vmatprep.mubr.bf16.mxu1 %v23334_v46  ;;  %v2001_v25 = vand.u32 %v15508_v12, %v17871_v38  ;;  %v1044_v3 = vld [vmem:[%s23322_s0 + $0x228] sm:$0xff] }
 0x11a   : > { %v1084_v4 = vld [vmem:[%s23322_s0 + $0x368] sm:$0xff]  ;;  %v15443_v10 = vcombine.high %v1004_v0, %v1044_v3 }
 0x11b   : > { %2799 = vmatpush1.bf16.msra.mxu0 %v1965_v26  ;;  %2842 = vmatpush1.bf16.msra.mxu1 %v1971_v27  ;;  %v2007_v26 = vand.u32 %v15510_v15, %v17871_v38  ;;  %v15433_v27 = vcombine.high %v999_v16, %v1039_v17 }
 0x11c   : > { %2882 = vmatprep.subr.bf16.mxu0 %v15421_v28  ;;  %2925 = vmatprep.subr.bf16.mxu1 %v15423_v30  ;;  %v15513_v28 = vcombine.high %v1079_v20, %v1119_v21  ;;  %v15435_v30 = vcombine.high %v1000_v19, %v1040_v22  ;;  %v1006_v20 = vld [vmem:[%s23322_s0 + $0xf8] sm:$0xff]  ;;  %v1085_v21 = vld [vmem:[%s23322_s0 + $0x370] sm:$0xff] }
 0x11e   : > { %15560 = vmatmul.mubr.msk.bf16.vlgmr.msra.gmra.mrb[32].mxu0 %vm1860_vm5, %v17906_v54  ;;  %15561 = vmatmul.mubr.msk.bf16.vlgmr.msra.gmra.mrb[32].mxu1 %vm1860_vm5, %v17906_v54 }
 0x11f   : > { %2883 = vmatpush1.bf16.msra.mxu0 %v15420_v32  ;;  %2926 = vmatpush1.bf16.msra.mxu1 %v15422_v34  ;;  %v15432_v32 = vcombine.low %v999_v16, %v1039_v17  ;;  %v15434_v34 = vcombine.low %v1000_v19, %v1040_v22  ;;  %v1005_v17 = vld [vmem:[%s23322_s0 + $0xf0] sm:$0xff] }
 0x120   : > { %2884 = vmatprep.subr.bf16.mxu0 %v1980_v35  ;;  %2927 = vmatprep.subr.bf16.mxu1 %v1986_v40  ;;  %v2016_v35 = vand.u32 %v15513_v28, %v17871_v38  ;;  %v2022_v40 = vand.u32 %v15515_v31, %v17871_v38  ;;  %v1125_v22 = vld [vmem:[%s23322_s0 + $0x4b0] sm:$0x33] }
 0x121   : > { %2914 = vmatprep.mubr.bf16.mxu0 %v23334_v46  ;;  %2957 = vmatprep.mubr.bf16.mxu1 %v23334_v46  ;;  %v15525_v29 = vcombine.high %v1085_v21, %v1125_v22 }
 0x123   : > { %2885 = vmatpush1.bf16.msra.mxu0 %v1977_v48  ;;  %2928 = vmatpush1.bf16.msra.mxu1 %v1983_v49  ;;  %v2013_v48 = vand.u32 %v15512_v33, %v17871_v38  ;;  %v974_v49 = vld [vmem:[%s23324_s2 + $0x8] sm:$0xff]  ;;  %v15524_v33 = vcombine.low %v1085_v21, %v1125_v22  ;;  %v18479_v21 = vld [vmem:[%s23323_s1] sm:$0xff]  }
 0x124   : > { %2968 = vmatprep.subr.bf16.mxu0 %v15425_v50  ;;  %3011 = vmatprep.subr.bf16.mxu1 %v15427_v52  ;;  %v2019_v50 = vand.u32 %v15514_v36, %v17871_v38  ;;  %v15517_v52 = vcombine.high %v1081_v42, %v1121_v43  ;;  %v1052_v22 = vld [vmem:[%s23322_s0 + $0x268] sm:$0xff] }
 0x125   : > { %3955 = vperm.xlu0 %16988, %v974_v49  }
 0x126   : > { %15562 = vmatmul.mubr.msk.bf16.vlgmr.msra.gmra.mrb[36].mxu0 %vm1860_vm5, %v17906_v54  ;;  %15563 = vmatmul.mubr.msk.bf16.vlgmr.msra.gmra.mrb[36].mxu1 %vm1860_vm5, %v17906_v54  ;;  %v2028_v59 = vand.u32 %v15517_v52, %v17871_v38 }
 0x127   : > { %2969 = vmatpush1.bf16.msra.mxu0 %v15424_v55  ;;  %3012 = vmatpush1.bf16.msra.mxu1 %v15426_v57  ;;  %v15519_v55 = vcombine.high %v1082_v45, %v1122_v47  ;;  %v15516_v57 = vcombine.low %v1081_v42, %v1121_v43  ;;  %v1087_v42 = vld [vmem:[%s23322_s0 + $0x380] sm:$0xff]  ;;  %v1088_v45 = vld [vmem:[%s23322_s0 + $0x388] sm:$0xff] }
 0x128   : > { %2970 = vmatprep.subr.bf16.mxu0 %v1992_v58  ;;  %3013 = vmatprep.subr.bf16.mxu1 %v1998_v62  ;;  %v15438_v58 = vcombine.low %v1002_v41, %v1042_v44  ;;  %v1043_v62 = vld [vmem:[%s23322_s0 + $0x220] sm:$0xff]  ;;  %v1008_v41 = vld [vmem:[%s23322_s0 + $0x108] sm:$0xff] }
 0x129   : > { %3000 = vmatprep.mubr.bf16.mxu0 %v23334_v46  ;;  %3043 = vmatprep.mubr.bf16.mxu1 %v23334_v46  ;;  %v2034_v63 = vand.u32 %v15519_v55, %v17871_v38  ;;  %v15441_v8 = vcombine.high %v1003_v61, %v1043_v62  ;;  %v15440_v12 = vcombine.low %v1003_v61, %v1043_v62  ;;  %v1127_v43 = vld [vmem:[%s23322_s0 + $0x4c0] sm:$0x33]  ;;  %v1048_v44 = vld [vmem:[%s23322_s0 + $0x248] sm:$0xff]  ;;  %v1049_v61 = vld [vmem:[%s23322_s0 + $0x250] sm:$0xff] }
 0x12a   : > { %v1128_v47 = vld [vmem:[%s23322_s0 + $0x4c8] sm:$0x33]  ;;  %v15451_v52 = vcombine.high %v1008_v41, %v1048_v44  ;;  %v15448_v55 = vcombine.low %v1007_v37, %v1047_v39 }
 0x12b   : > { %2971 = vmatpush1.bf16.msra.mxu0 %v1989_v5  ;;  %3014 = vmatpush1.bf16.msra.mxu1 %v1995_v6  ;;  %v1124_v5 = vld [vmem:[%s23322_s0 + $0x4a8] sm:$0x33]  ;;  %v2025_v6 = vand.u32 %v15516_v57, %v17871_v38  ;;  %v15450_v57 = vcombine.low %v1008_v41, %v1048_v44  ;;  %v1093_v41 = vld [vmem:[%s23322_s0 + $0x3b0] sm:$0xff]  ;;  %v1094_v44 = vld [vmem:[%s23322_s0 + $0x3b8] sm:$0xff] }
 0x12c   : > { %3054 = vmatprep.subr.bf16.mxu0 %v15429_v7  ;;  %3097 = vmatprep.subr.bf16.mxu1 %v15431_v9  ;;  %v2031_v7 = vand.u32 %v15518_v60, %v17871_v38  ;;  %v15521_v9 = vcombine.high %v1083_v1, %v1123_v2  ;;  %v15522_v16 = vcombine.low %v1084_v4, %v1124_v5  ;;  %v1009_v60 = vld [vmem:[%s23322_s0 + $0x110] sm:$0xff] }
 0x12e   : > { %15564 = vmatmul.mubr.msk.bf16.vlgmr.msra.gmra.mrb[40].mxu0 %vm1860_vm5, %v17906_v54  ;;  %15565 = vmatmul.mubr.msk.bf16.vlgmr.msra.gmra.mrb[40].mxu1 %vm1860_vm5, %v17906_v54  ;;  %v2040_v15 = vand.u32 %v15521_v9, %v17871_v38 }
 0x12f   : > { %3055 = vmatpush1.bf16.msra.mxu0 %v15428_v11  ;;  %3098 = vmatpush1.bf16.msra.mxu1 %v15430_v13  ;;  %v15523_v11 = vcombine.high %v1084_v4, %v1124_v5  ;;  %v15520_v13 = vcombine.low %v1083_v1, %v1123_v2  ;;  %v1129_v1 = vld [vmem:[%s23322_s0 + $0x4d0] sm:$0x33]  ;;  %v1050_v2 = vld [vmem:[%s23322_s0 + $0x258] sm:$0xff] }
 0x130   : > { %3056 = vmatprep.subr.bf16.mxu0 %v2004_v14  ;;  %3099 = vmatprep.subr.bf16.mxu1 %v2010_v18  ;;  %v15442_v14 = vcombine.low %v1004_v0, %v1044_v3  ;;  %v1045_v18 = vld [vmem:[%s23322_s0 + $0x230] sm:$0xff]  ;;  %v1090_v3 = vld [vmem:[%s23322_s0 + $0x398] sm:$0xff] }
 0x131   : > { %3086 = vmatprep.mubr.bf16.mxu0 %v23334_v46  ;;  %3129 = vmatprep.mubr.bf16.mxu1 %v23334_v46  ;;  %v2046_v19 = vand.u32 %v15523_v11, %v17871_v38  ;;  %v15445_v28 = vcombine.high %v1005_v17, %v1045_v18  ;;  %v1089_v0 = vld [vmem:[%s23322_s0 + $0x390] sm:$0xff]  ;;  %v1130_v4 = vld [vmem:[%s23322_s0 + $0x4d8] sm:$0x33]  ;;  %v15452_v11 = vcombine.low %v1009_v60, %v1049_v61 }
 0x133   : > { %3057 = vmatpush1.bf16.msra.mxu0 %v2001_v25  ;;  %3100 = vmatpush1.bf16.msra.mxu1 %v2007_v26  ;;  %v1126_v25 = vld [vmem:[%s23322_s0 + $0x4b8] sm:$0x33]  ;;  %v2037_v26 = vand.u32 %v15520_v13, %v17871_v38 }
 0x134   : > { %3140 = vmatprep.subr.bf16.mxu0 %v15433_v27  ;;  %3183 = vmatprep.subr.bf16.mxu1 %v15435_v30  ;;  %v2043_v27 = vand.u32 %v15522_v16, %v17871_v38  ;;  %v15447_v30 = vcombine.high %v1006_v20, %v1046_v23  ;;  %v15527_v31 = vcombine.high %v1086_v24, %v1126_v25  ;;  %v1051_v16 = vld [vmem:[%s23322_s0 + $0x260] sm:$0xff] }
 0x135   : > { %v15526_v36 = vcombine.low %v1086_v24, %v1126_v25  ;;  %v1132_v24 = vld [vmem:[%s23322_s0 + $0x4e8] sm:$0x33] }
 0x136   : > { %15566 = vmatmul.mubr.msk.bf16.vlgmr.msra.gmra.mrb[44].mxu0 %vm1860_vm5, %v17906_v54  ;;  %15567 = vmatmul.mubr.msk.bf16.vlgmr.msra.gmra.mrb[44].mxu1 %vm1860_vm5, %v17906_v54 }
 0x137   : > { %3141 = vmatpush1.bf16.msra.mxu0 %v15432_v32  ;;  %3184 = vmatpush1.bf16.msra.mxu1 %v15434_v34  ;;  %v15444_v32 = vcombine.low %v1005_v17, %v1045_v18  ;;  %v15446_v34 = vcombine.low %v1006_v20, %v1046_v23  ;;  %v2055_v49 = vand.u32 %v15526_v36, %v17871_v38  ;;  %v1012_v18 = vld [vmem:[%s23322_s0 + $0x128] sm:$0xff]  ;;  %v1131_v20 = vld [vmem:[%s23322_s0 + $0x4e0] sm:$0x33]  ;;  %v1013_v36 = vld [vmem:[%s23322_s0 + $0x130] sm:$0xff] }
 0x138   : > { %3142 = vmatprep.subr.bf16.mxu0 %v2016_v35  ;;  %3185 = vmatprep.subr.bf16.mxu1 %v2022_v40  ;;  %v2052_v35 = vand.u32 %v15525_v29, %v17871_v38  ;;  %v2058_v40 = vand.u32 %v15527_v31, %v17871_v38  ;;  %v1092_v23 = vld [vmem:[%s23322_s0 + $0x3a8] sm:$0xff]  ;;  %v15459_v29 = vcombine.high %v1012_v18, %v1052_v22 }
 0x139   : > { %3172 = vmatprep.mubr.bf16.mxu0 %v23334_v46  ;;  %3215 = vmatprep.mubr.bf16.mxu1 %v23334_v46 }
 0x13b   : > { %3143 = vmatpush1.bf16.msra.mxu0 %v2013_v48  ;;  %3186 = vmatpush1.bf16.msra.mxu1 %v2019_v50  ;;  %v2049_v48 = vand.u32 %v15524_v33, %v17871_v38  ;;  %v15449_v50 = vcombine.high %v1007_v37, %v1047_v39  ;;  %v15458_v33 = vcombine.low %v1012_v18, %v1052_v22  ;;  %v1053_v37 = vld [vmem:[%s23322_s0 + $0x270] sm:$0xff]  ;;  %v15711_v22 = vld [vmem:[%s23322_s0 + $0x798] sm:$0xff] }
 0x13c   : > { %3226 = vmatprep.subr.bf16.mxu0 %v15437_v51  ;;  %3269 = vmatprep.subr.bf16.mxu1 %v15439_v53  ;;  %v15529_v51 = vcombine.high %v1087_v42, %v1127_v43  ;;  %v15531_v53 = vcombine.high %v1088_v45, %v1128_v47  ;;  %v15710_v18 = vld [vmem:[%s23322_s0 + $0x790] sm:$0xff] }
 0x13e   : > { %15568 = vmatmul.mubr.msk.bf16.vlgmr.msra.gmra.mrb[48].mxu0 %vm1860_vm5, %v17906_v54  ;;  %15569 = vmatmul.mubr.msk.bf16.vlgmr.msra.gmra.mrb[48].mxu1 %vm1860_vm5, %v17906_v54  ;;  %v2070_v62 = vand.u32 %v15531_v53, %v17871_v38  ;;  %v15460_v53 = vcombine.low %v1013_v36, %v1053_v37 }
 0x13f   : > { %3227 = vmatpush1.bf16.msra.mxu0 %v15436_v56  ;;  %3270 = vmatpush1.bf16.msra.mxu1 %v15438_v58  ;;  %v15528_v56 = vcombine.low %v1087_v42, %v1127_v43  ;;  %v2064_v58 = vand.u32 %v15529_v51, %v17871_v38  ;;  %v1133_v42 = vld [vmem:[%s23322_s0 + $0x4f0] sm:$0x33]  ;;  %v1054_v43 = vld [vmem:[%s23322_s0 + $0x278] sm:$0xff] }
 0x140   : > { %3228 = vmatprep.subr.bf16.mxu0 %v2028_v59  ;;  %3271 = vmatprep.subr.bf16.mxu1 %v2034_v63  ;;  %v15530_v59 = vcombine.low %v1088_v45, %v1128_v47  ;;  %v1010_v63 = vld [vmem:[%s23322_s0 + $0x118] sm:$0xff] }
 0x141   : > { %3258 = vmatprep.mubr.bf16.mxu0 %v23334_v46  ;;  %3301 = vmatprep.mubr.bf16.mxu1 %v23334_v46  ;;  %v2061_v5 = vand.u32 %v15528_v56, %v17871_v38  ;;  %v15455_v9 = vcombine.high %v1010_v63, %v1050_v2  ;;  %v1134_v45 = vld [vmem:[%s23322_s0 + $0x4f8] sm:$0x33] }
 0x143   : > { %3229 = vmatpush1.bf16.msra.mxu0 %v2025_v6  ;;  %3272 = vmatpush1.bf16.msra.mxu1 %v2031_v7  ;;  %v2067_v6 = vand.u32 %v15530_v59, %v17871_v38  ;;  %v15453_v7 = vcombine.high %v1009_v60, %v1049_v61  ;;  %v15628_v59 = vld [vmem:[%s23322_s0 + $0x500] sm:$0xff] }
 0x144   : > { %3312 = vmatprep.subr.bf16.mxu0 %v15441_v8  ;;  %3355 = vmatprep.subr.bf16.mxu1 %v15443_v10  ;;  %v15533_v8 = vcombine.high %v1089_v0, %v1129_v1  ;;  %v15535_v10 = vcombine.high %v1090_v3, %v1130_v4  ;;  %v15668_v60 = vld [vmem:[%s23322_s0 + $0x640] sm:$0xff] }
 0x146   : > { %15570 = vmatmul.mubr.msk.bf16.vlgmr.msra.gmra.mrb[52].mxu0 %vm1860_vm5, %v17906_v54  ;;  %15571 = vmatmul.mubr.msk.bf16.vlgmr.msra.gmra.mrb[52].mxu1 %vm1860_vm5, %v17906_v54  ;;  %v2076_v13 = vand.u32 %v15533_v8, %v17871_v38  ;;  %v2082_v17 = vand.u32 %v15535_v10, %v17871_v38  ;;  %v15788_v10 = vcombine.low %v15628_v59, %v15668_v60 }
 0x147   : > { %3313 = vmatpush1.bf16.msra.mxu0 %v15440_v12  ;;  %3356 = vmatpush1.bf16.msra.mxu1 %v15442_v14  ;;  %v15532_v12 = vcombine.low %v1089_v0, %v1129_v1  ;;  %v15534_v14 = vcombine.low %v1090_v3, %v1130_v4  ;;  %v15748_v0 = vld [vmem:[%s23322_s0 + $0x8c0] sm:$0x33]  ;;  %v15669_v1 = vld [vmem:[%s23322_s0 + $0x648] sm:$0xff] }
 0x148   : > { %3314 = vmatprep.subr.bf16.mxu0 %v2040_v15  ;;  %3357 = vmatprep.subr.bf16.mxu1 %v2046_v19  ;;  %v1011_v15 = vld [vmem:[%s23322_s0 + $0x120] sm:$0xff]  ;;  %v15749_v3 = vld [vmem:[%s23322_s0 + $0x8c8] sm:$0x33] }
 0x149   : > { %3344 = vmatprep.mubr.bf16.mxu0 %v23334_v46  ;;  %3387 = vmatprep.mubr.bf16.mxu1 %v23334_v46  ;;  %v1091_v19 = vld [vmem:[%s23322_s0 + $0x3a0] sm:$0xff]  ;;  %v2073_v25 = vand.u32 %v15532_v12, %v17871_v38  ;;  %v15456_v31 = vcombine.low %v1011_v15, %v1051_v16 }
 0x14b   : > { %3315 = vmatpush1.bf16.msra.mxu0 %v2037_v26  ;;  %3358 = vmatpush1.bf16.msra.mxu1 %v2043_v27  ;;  %v2079_v26 = vand.u32 %v15534_v14, %v17871_v38  ;;  %v15457_v27 = vcombine.high %v1011_v15, %v1051_v16  ;;  %v15630_v14 = vld [vmem:[%s23322_s0 + $0x510] sm:$0xff] }
 0x14c   : > { %3398 = vmatprep.subr.bf16.mxu0 %v15445_v28  ;;  %3441 = vmatprep.subr.bf16.mxu1 %v15447_v30  ;;  %v15537_v28 = vcombine.high %v1091_v19, %v1131_v20  ;;  %v15539_v30 = vcombine.high %v1092_v23, %v1132_v24  ;;  %v15670_v15 = vld [vmem:[%s23322_s0 + $0x650] sm:$0xff] }
 0x14e   : > { %15572 = vmatmul.mubr.msk.bf16.vlgmr.msra.gmra.mrb[56].mxu0 %vm1860_vm5, %v17906_v54  ;;  %15573 = vmatmul.mubr.msk.bf16.vlgmr.msra.gmra.mrb[56].mxu1 %vm1860_vm5, %v17906_v54  ;;  %v2094_v39 = vand.u32 %v15539_v30, %v17871_v38  ;;  %v15792_v30 = vcombine.low %v15630_v14, %v15670_v15 }
 0x14f   : > { %3399 = vmatpush1.bf16.msra.mxu0 %v15444_v32  ;;  %3442 = vmatpush1.bf16.msra.mxu1 %v15446_v34  ;;  %v15536_v32 = vcombine.low %v1091_v19, %v1131_v20  ;;  %v2088_v34 = vand.u32 %v15537_v28, %v17871_v38  ;;  %v15750_v19 = vld [vmem:[%s23322_s0 + $0x8d0] sm:$0x33]  ;;  %v15671_v20 = vld [vmem:[%s23322_s0 + $0x658] sm:$0xff] }
 0x150   : > { %3400 = vmatprep.subr.bf16.mxu0 %v2052_v35  ;;  %3443 = vmatprep.subr.bf16.mxu1 %v2058_v40  ;;  %v15538_v35 = vcombine.low %v1092_v23, %v1132_v24  ;;  %v1014_v40 = vld [vmem:[%s23322_s0 + $0x138] sm:$0xff] }
 0x151   : > { %3430 = vmatprep.mubr.bf16.mxu0 %v23334_v46  ;;  %3473 = vmatprep.mubr.bf16.mxu1 %v23334_v46  ;;  %v2085_v47 = vand.u32 %v15536_v32, %v17871_v38  ;;  %v15463_v51 = vcombine.high %v1014_v40, %v1054_v43  ;;  %v15462_v56 = vcombine.low %v1014_v40, %v1054_v43  ;;  %v15751_v23 = vld [vmem:[%s23322_s0 + $0x8d8] sm:$0x33]  ;;  %v15712_v40 = vld [vmem:[%s23322_s0 + $0x7a0] sm:$0xff]  ;;  %v15713_v43 = vld [vmem:[%s23322_s0 + $0x7a8] sm:$0xff] }
 0x153   : > { %3401 = vmatpush1.bf16.msra.mxu0 %v2049_v48  ;;  %3444 = vmatpush1.bf16.msra.mxu1 %v2055_v49  ;;  %v2091_v48 = vand.u32 %v15538_v35, %v17871_v38  ;;  %v15461_v49 = vcombine.high %v1013_v36, %v1053_v37  ;;  %v15632_v35 = vld [vmem:[%s23322_s0 + $0x520] sm:$0xff] }
 0x154   : > { %3484 = vmatprep.subr.bf16.mxu0 %v15449_v50  ;;  %3527 = vmatprep.subr.bf16.mxu1 %v15451_v52  ;;  %v15541_v50 = vcombine.high %v1093_v41, %v1133_v42  ;;  %v15543_v52 = vcombine.high %v1094_v44, %v1134_v45  ;;  %v15672_v36 = vld [vmem:[%s23322_s0 + $0x660] sm:$0xff] }
 0x156   : > { %15574 = vmatmul.mubr.msk.bf16.vlgmr.msra.gmra.mrb[60].mxu0 %vm1860_vm5, %v17906_v54  ;;  %15575 = vmatmul.mubr.msk.bf16.vlgmr.msra.gmra.mrb[60].mxu1 %vm1860_vm5, %v17906_v54  ;;  %v15454_v54 = vcombine.low %v1010_v63, %v1050_v2  ;;  %v2106_v61 = vand.u32 %v15543_v52, %v17871_v38  ;;  %v15708_v63 = vld [vmem:[%s23322_s0 + $0x780] sm:$0xff]  ;;  %v15709_v2 = vld [vmem:[%s23322_s0 + $0x788] sm:$0xff]  ;;  %v15796_v52 = vcombine.low %v15632_v35, %v15672_v36 }
 0x157   : > { %3485 = vmatpush1.bf16.msra.mxu0 %v15448_v55  ;;  %3528 = vmatpush1.bf16.msra.mxu1 %v15450_v57  ;;  %v15540_v55 = vcombine.low %v1093_v41, %v1133_v42  ;;  %v2100_v57 = vand.u32 %v15541_v50, %v17871_v38  ;;  %v15752_v41 = vld [vmem:[%s23322_s0 + $0x8e0] sm:$0x33]  ;;  %v15673_v42 = vld [vmem:[%s23322_s0 + $0x668] sm:$0xff] }
 0x158   : > { %3486 = vmatprep.subr.bf16.mxu0 %v2064_v58  ;;  %3529 = vmatprep.subr.bf16.mxu1 %v2070_v62  ;;  %v15542_v58 = vcombine.low %v1094_v44, %v1134_v45  ;;  %v15629_v62 = vld [vmem:[%s23322_s0 + $0x508] sm:$0xff] }
 0x159   : > { %3516 = vmatprep.mubr.bf16.mxu0 %v23334_v46  ;;  %3559 = vmatprep.mubr.bf16.mxu1 %v23334_v46  ;;  %v2097_v4 = vand.u32 %v15540_v55, %v17871_v38  ;;  %v15791_v8 = vcombine.high %v15629_v62, %v15669_v1  ;;  %v15790_v12 = vcombine.low %v15629_v62, %v15669_v1  ;;  %v15753_v44 = vld [vmem:[%s23322_s0 + $0x8e8] sm:$0x33]  ;;  %v15714_v62 = vld [vmem:[%s23322_s0 + $0x7b0] sm:$0xff]  ;;  %v15715_v1 = vld [vmem:[%s23322_s0 + $0x7b8] sm:$0xff] }
 0x15b   : > { %3487 = vmatpush1.bf16.msra.mxu0 %v2061_v5  ;;  %3530 = vmatpush1.bf16.msra.mxu1 %v2067_v6  ;;  %v2103_v5 = vand.u32 %v15542_v58, %v17871_v38  ;;  %v15789_v6 = vcombine.high %v15628_v59, %v15668_v60  ;;  %v15634_v58 = vld [vmem:[%s23322_s0 + $0x530] sm:$0xff] }
 0x15c   : > { %3570 = vmatprep.subr.bf16.mxu0 %v15453_v7  ;;  %3613 = vmatprep.subr.bf16.mxu1 %v15455_v9  ;;  %v15869_v7 = vcombine.high %v15708_v63, %v15748_v0  ;;  %v15871_v9 = vcombine.high %v15709_v2, %v15749_v3  ;;  %v15674_v59 = vld [vmem:[%s23322_s0 + $0x670] sm:$0xff] }
 0x15e   : > { %15576 = vmatmul.mubr.msk.bf16.vlgmr.msra.gmra.mrb[64].mxu0 %vm1860_vm5, %v18479_v21  ;;  %15577 = vmatmul.mubr.msk.bf16.vlgmr.msra.gmra.mrb[64].mxu1 %vm1860_vm5, %v18479_v21  ;;  %v5628_v16 = vand.u32 %v15871_v9, %v17871_v38  ;;  %v15800_v9 = vcombine.low %v15634_v58, %v15674_v59 }
 0x15f   : > { %3571 = vmatpush1.bf16.msra.mxu0 %v15452_v11  ;;  %3614 = vmatpush1.bf16.msra.mxu1 %v15454_v54  ;;  %v15868_v11 = vcombine.low %v15708_v63, %v15748_v0  ;;  %v5622_v54 = vand.u32 %v15869_v7, %v17871_v38  ;;  %v15754_v63 = vld [vmem:[%s23322_s0 + $0x8f0] sm:$0x33]  ;;  %v15675_v0 = vld [vmem:[%s23322_s0 + $0x678] sm:$0xff] }
 0x160   : > { %3572 = vmatprep.subr.bf16.mxu0 %v2076_v13  ;;  %3615 = vmatprep.subr.bf16.mxu1 %v2082_v17  ;;  %v15870_v13 = vcombine.low %v15709_v2, %v15749_v3  ;;  %v15631_v17 = vld [vmem:[%s23322_s0 + $0x518] sm:$0xff] }
 0x161   : > { %3602 = vmatprep.mubr.bf16.mxu0 %v23334_v46  ;;  %3645 = vmatprep.mubr.bf16.mxu1 %v23334_v46  ;;  %v5619_v24 = vand.u32 %v15868_v11, %v17871_v38  ;;  %v15795_v28 = vcombine.high %v15631_v17, %v15671_v20  ;;  %v15794_v32 = vcombine.low %v15631_v17, %v15671_v20  ;;  %v15755_v2 = vld [vmem:[%s23322_s0 + $0x8f8] sm:$0x33]  ;;  %v15716_v17 = vld [vmem:[%s23322_s0 + $0x7c0] sm:$0xff]  ;;  %v15717_v20 = vld [vmem:[%s23322_s0 + $0x7c8] sm:$0xff] }
 0x163   : > { %3573 = vmatpush1.bf16.msra.mxu0 %v2073_v25  ;;  %3616 = vmatpush1.bf16.msra.mxu1 %v2079_v26  ;;  %v5625_v25 = vand.u32 %v15870_v13, %v17871_v38  ;;  %v15793_v26 = vcombine.high %v15630_v14, %v15670_v15  ;;  %v15636_v13 = vld [vmem:[%s23322_s0 + $0x540] sm:$0xff] }
 0x164   : > { %3656 = vmatprep.subr.bf16.mxu0 %v15457_v27  ;;  %3699 = vmatprep.subr.bf16.mxu1 %v15459_v29  ;;  %v15873_v27 = vcombine.high %v15710_v18, %v15750_v19  ;;  %v15875_v29 = vcombine.high %v15711_v22, %v15751_v23  ;;  %v15676_v14 = vld [vmem:[%s23322_s0 + $0x680] sm:$0xff] }
 0x166   : > { %15578 = vmatmul.mubr.msk.bf16.vlgmr.msra.gmra.mrb[68].mxu0 %vm1860_vm5, %v18479_v21  ;;  %15579 = vmatmul.mubr.msk.bf16.vlgmr.msra.gmra.mrb[68].mxu1 %vm1860_vm5, %v18479_v21  ;;  %v5640_v37 = vand.u32 %v15875_v29, %v17871_v38  ;;  %v15804_v29 = vcombine.low %v15636_v13, %v15676_v14 }
 0x167   : > { %3657 = vmatpush1.bf16.msra.mxu0 %v15456_v31  ;;  %3700 = vmatpush1.bf16.msra.mxu1 %v15458_v33  ;;  %v15872_v31 = vcombine.low %v15710_v18, %v15750_v19  ;;  %v5634_v33 = vand.u32 %v15873_v27, %v17871_v38  ;;  %v15756_v18 = vld [vmem:[%s23322_s0 + $0x900] sm:$0x33]  ;;  %v15677_v19 = vld [vmem:[%s23322_s0 + $0x688] sm:$0xff] }
 0x168   : > { %3658 = vmatprep.subr.bf16.mxu0 %v2088_v34  ;;  %3701 = vmatprep.subr.bf16.mxu1 %v2094_v39  ;;  %v15874_v34 = vcombine.low %v15711_v22, %v15751_v23  ;;  %v15633_v39 = vld [vmem:[%s23322_s0 + $0x528] sm:$0xff] }
 0x169   : > { %3688 = vmatprep.mubr.bf16.mxu0 %v23334_v46  ;;  %3731 = vmatprep.mubr.bf16.mxu1 %v23334_v46  ;;  %v5631_v45 = vand.u32 %v15872_v31, %v17871_v38  ;;  %v15799_v50 = vcombine.high %v15633_v39, %v15673_v42  ;;  %v15798_v55 = vcombine.low %v15633_v39, %v15673_v42  ;;  %v15757_v22 = vld [vmem:[%s23322_s0 + $0x908] sm:$0x33]  ;;  %v15718_v39 = vld [vmem:[%s23322_s0 + $0x7d0] sm:$0xff]  ;;  %v15719_v42 = vld [vmem:[%s23322_s0 + $0x7d8] sm:$0xff] }
 0x16b   : > { %3659 = vmatpush1.bf16.msra.mxu0 %v2085_v47  ;;  %3702 = vmatpush1.bf16.msra.mxu1 %v2091_v48  ;;  %v5637_v47 = vand.u32 %v15874_v34, %v17871_v38  ;;  %v15797_v48 = vcombine.high %v15632_v35, %v15672_v36  ;;  %v15638_v34 = vld [vmem:[%s23322_s0 + $0x550] sm:$0xff] }
 0x16c   : > { %3742 = vmatprep.subr.bf16.mxu0 %v15461_v49  ;;  %3785 = vmatprep.subr.bf16.mxu1 %v15463_v51  ;;  %v15877_v49 = vcombine.high %v15712_v40, %v15752_v41  ;;  %v15879_v51 = vcombine.high %v15713_v43, %v15753_v44  ;;  %v15678_v35 = vld [vmem:[%s23322_s0 + $0x690] sm:$0xff] }
 0x16e   : > { %15580 = vmatmul.mubr.msk.bf16.vlgmr.msra.gmra.mrb[72].mxu0 %vm1860_vm5, %v18479_v21  ;;  %15581 = vmatmul.mubr.msk.bf16.vlgmr.msra.gmra.mrb[72].mxu1 %vm1860_vm5, %v18479_v21  ;;  %v5652_v60 = vand.u32 %v15879_v51, %v17871_v38  ;;  %v15808_v51 = vcombine.low %v15638_v34, %v15678_v35 }
 0x16f   : > { %3743 = vmatpush1.bf16.msra.mxu0 %v15460_v53  ;;  %3786 = vmatpush1.bf16.msra.mxu1 %v15462_v56  ;;  %v15876_v53 = vcombine.low %v15712_v40, %v15752_v41  ;;  %v5646_v56 = vand.u32 %v15877_v49, %v17871_v38  ;;  %v15758_v40 = vld [vmem:[%s23322_s0 + $0x910] sm:$0x33]  ;;  %v15679_v41 = vld [vmem:[%s23322_s0 + $0x698] sm:$0xff] }
 0x170   : > { %3744 = vmatprep.subr.bf16.mxu0 %v2100_v57  ;;  %3787 = vmatprep.subr.bf16.mxu1 %v2106_v61  ;;  %v15878_v57 = vcombine.low %v15713_v43, %v15753_v44  ;;  %v15635_v61 = vld [vmem:[%s23322_s0 + $0x538] sm:$0xff] }
 0x171   : > { %3774 = vmatprep.mubr.bf16.mxu0 %v23334_v46  ;;  %3817 = vmatprep.mubr.bf16.mxu1 %v23334_v46  ;;  %v5643_v3 = vand.u32 %v15876_v53, %v17871_v38  ;;  %v15803_v7 = vcombine.high %v15635_v61, %v15675_v0  ;;  %v15802_v11 = vcombine.low %v15635_v61, %v15675_v0  ;;  %v15759_v43 = vld [vmem:[%s23322_s0 + $0x918] sm:$0x33]  ;;  %v15720_v61 = vld [vmem:[%s23322_s0 + $0x7e0] sm:$0xff]  ;;  %v15721_v0 = vld [vmem:[%s23322_s0 + $0x7e8] sm:$0xff] }
 0x173   : > { %3745 = vmatpush1.bf16.msra.mxu0 %v2097_v4  ;;  %3788 = vmatpush1.bf16.msra.mxu1 %v2103_v5  ;;  %v5649_v4 = vand.u32 %v15878_v57, %v17871_v38  ;;  %v15801_v5 = vcombine.high %v15634_v58, %v15674_v59  ;;  %v15640_v57 = vld [vmem:[%s23322_s0 + $0x560] sm:$0xff] }
 0x174   : > { %5858 = vmatprep.subr.bf16.mxu0 %v15789_v6  ;;  %5901 = vmatprep.subr.bf16.mxu1 %v15791_v8  ;;  %v15881_v6 = vcombine.high %v15714_v62, %v15754_v63  ;;  %v15883_v8 = vcombine.high %v15715_v1, %v15755_v2  ;;  %v15680_v58 = vld [vmem:[%s23322_s0 + $0x6a0] sm:$0xff] }
 0x176   : > { %15582 = vmatmul.mubr.msk.bf16.vlgmr.msra.gmra.mrb[76].mxu0 %vm1860_vm5, %v18479_v21  ;;  %15583 = vmatmul.mubr.msk.bf16.vlgmr.msra.gmra.mrb[76].mxu1 %vm1860_vm5, %v18479_v21  ;;  %v5664_v15 = vand.u32 %v15883_v8, %v17871_v38  ;;  %v15812_v8 = vcombine.low %v15640_v57, %v15680_v58 }
 0x177   : > { %5859 = vmatpush1.bf16.msra.mxu0 %v15788_v10  ;;  %5902 = vmatpush1.bf16.msra.mxu1 %v15790_v12  ;;  %v15880_v10 = vcombine.low %v15714_v62, %v15754_v63  ;;  %v5658_v12 = vand.u32 %v15881_v6, %v17871_v38  ;;  %v15760_v62 = vld [vmem:[%s23322_s0 + $0x920] sm:$0x33]  ;;  %v15681_v63 = vld [vmem:[%s23322_s0 + $0x6a8] sm:$0xff] }
 0x178   : > { %5860 = vmatprep.subr.bf16.mxu0 %v5622_v54  ;;  %5903 = vmatprep.subr.bf16.mxu1 %v5628_v16  ;;  %v15882_v54 = vcombine.low %v15715_v1, %v15755_v2  ;;  %v15637_v16 = vld [vmem:[%s23322_s0 + $0x548] sm:$0xff] }
 0x179   : > { %5890 = vmatprep.mubr.bf16.mxu0 %v23334_v46  ;;  %5933 = vmatprep.mubr.bf16.mxu1 %v23334_v46  ;;  %v5655_v23 = vand.u32 %v15880_v10, %v17871_v38  ;;  %v15807_v27 = vcombine.high %v15637_v16, %v15677_v19  ;;  %v15806_v31 = vcombine.low %v15637_v16, %v15677_v19  ;;  %v15761_v1 = vld [vmem:[%s23322_s0 + $0x928] sm:$0x33]  ;;  %v15722_v16 = vld [vmem:[%s23322_s0 + $0x7f0] sm:$0xff]  ;;  %v15723_v19 = vld [vmem:[%s23322_s0 + $0x7f8] sm:$0xff] }
 0x17b   : > { %5861 = vmatpush1.bf16.msra.mxu0 %v5619_v24  ;;  %5904 = vmatpush1.bf16.msra.mxu1 %v5625_v25  ;;  %v5661_v24 = vand.u32 %v15882_v54, %v17871_v38  ;;  %v15805_v25 = vcombine.high %v15636_v13, %v15676_v14  ;;  %v15642_v54 = vld [vmem:[%s23322_s0 + $0x570] sm:$0xff] }
 0x17c   : > { %5944 = vmatprep.subr.bf16.mxu0 %v15793_v26  ;;  %5987 = vmatprep.subr.bf16.mxu1 %v15795_v28  ;;  %v15885_v26 = vcombine.high %v15716_v17, %v15756_v18  ;;  %v15887_v28 = vcombine.high %v15717_v20, %v15757_v22  ;;  %v15682_v13 = vld [vmem:[%s23322_s0 + $0x6b0] sm:$0xff] }
 0x17e   : > { %15948 = vmatmul.mubr.msk.bf16.vlgmr.msra.gmra.mrb[80].mxu0 %vm1860_vm5, %v18479_v21  ;;  %15949 = vmatmul.mubr.msk.bf16.vlgmr.msra.gmra.mrb[80].mxu1 %vm1860_vm5, %v18479_v21  ;;  %v5676_v36 = vand.u32 %v15887_v28, %v17871_v38  ;;  %v15816_v28 = vcombine.low %v15642_v54, %v15682_v13 }
 0x17f   : > { %5945 = vmatpush1.bf16.msra.mxu0 %v15792_v30  ;;  %5988 = vmatpush1.bf16.msra.mxu1 %v15794_v32  ;;  %v15884_v30 = vcombine.low %v15716_v17, %v15756_v18  ;;  %v5670_v32 = vand.u32 %v15885_v26, %v17871_v38  ;;  %v15762_v17 = vld [vmem:[%s23322_s0 + $0x930] sm:$0x33]  ;;  %v15683_v18 = vld [vmem:[%s23322_s0 + $0x6b8] sm:$0xff] }
 0x180   : > { %5946 = vmatprep.subr.bf16.mxu0 %v5634_v33  ;;  %5989 = vmatprep.subr.bf16.mxu1 %v5640_v37  ;;  %v15886_v33 = vcombine.low %v15717_v20, %v15757_v22  ;;  %v15639_v37 = vld [vmem:[%s23322_s0 + $0x558] sm:$0xff] }
 0x181   : > { %5976 = vmatprep.mubr.bf16.mxu0 %v23334_v46  ;;  %6019 = vmatprep.mubr.bf16.mxu1 %v23334_v46  ;;  %v5667_v44 = vand.u32 %v15884_v30, %v17871_v38  ;;  %v15811_v49 = vcombine.high %v15639_v37, %v15679_v41  ;;  %v15810_v53 = vcombine.low %v15639_v37, %v15679_v41  ;;  %v15763_v20 = vld [vmem:[%s23322_s0 + $0x938] sm:$0x33]  ;;  %v15724_v37 = vld [vmem:[%s23322_s0 + $0x800] sm:$0xff]  ;;  %v15725_v41 = vld [vmem:[%s23322_s0 + $0x808] sm:$0xff] }
 0x183   : > { %5947 = vmatpush1.bf16.msra.mxu0 %v5631_v45  ;;  %5990 = vmatpush1.bf16.msra.mxu1 %v5637_v47  ;;  %v5673_v45 = vand.u32 %v15886_v33, %v17871_v38  ;;  %v15809_v47 = vcombine.high %v15638_v34, %v15678_v35  ;;  %v15644_v33 = vld [vmem:[%s23322_s0 + $0x580] sm:$0xff] }
 0x184   : > { %6030 = vmatprep.subr.bf16.mxu0 %v15797_v48  ;;  %6073 = vmatprep.subr.bf16.mxu1 %v15799_v50  ;;  %v15889_v48 = vcombine.high %v15718_v39, %v15758_v40  ;;  %v15891_v50 = vcombine.high %v15719_v42, %v15759_v43  ;;  %v15684_v34 = vld [vmem:[%s23322_s0 + $0x6c0] sm:$0xff] }
 0x186   : > { %15950 = vmatmul.mubr.msk.bf16.vlgmr.msra.gmra.mrb[84].mxu0 %vm1860_vm5, %v18479_v21  ;;  %15951 = vmatmul.mubr.msk.bf16.vlgmr.msra.gmra.mrb[84].mxu1 %vm1860_vm5, %v18479_v21  ;;  %v5688_v59 = vand.u32 %v15891_v50, %v17871_v38 }
 0x187   : > { %6031 = vmatpush1.bf16.msra.mxu0 %v15796_v52  ;;  %6074 = vmatpush1.bf16.msra.mxu1 %v15798_v55  ;;  %v15888_v52 = vcombine.low %v15718_v39, %v15758_v40  ;;  %v5682_v55 = vand.u32 %v15889_v48, %v17871_v38  ;;  %v15764_v39 = vld [vmem:[%s23322_s0 + $0x940] sm:$0x33]  ;;  %v15685_v40 = vld [vmem:[%s23322_s0 + $0x6c8] sm:$0xff] }
 0x188   : > { %6032 = vmatprep.subr.bf16.mxu0 %v5646_v56  ;;  %6075 = vmatprep.subr.bf16.mxu1 %v5652_v60  ;;  %v15890_v56 = vcombine.low %v15719_v42, %v15759_v43  ;;  %v15641_v60 = vld [vmem:[%s23322_s0 + $0x568] sm:$0xff] }
 0x189   : > { %6062 = vmatprep.mubr.bf16.mxu0 %v23334_v46  ;;  %6105 = vmatprep.mubr.bf16.mxu1 %v23334_v46  ;;  %v5679_v2 = vand.u32 %v15888_v52, %v17871_v38  ;;  %v15815_v6 = vcombine.high %v15641_v60, %v15681_v63  ;;  %v15814_v10 = vcombine.low %v15641_v60, %v15681_v63  ;;  %v15765_v42 = vld [vmem:[%s23322_s0 + $0x948] sm:$0x33]  ;;  %v15646_v63 = vld [vmem:[%s23322_s0 + $0x590] sm:$0xff] }
 0x18a   : > { %v15903_v50 = vcombine.high %v15725_v41, %v15765_v42 }
 0x18b   : > { %6033 = vmatpush1.bf16.msra.mxu0 %v5643_v3  ;;  %6076 = vmatpush1.bf16.msra.mxu1 %v5649_v4  ;;  %v5685_v3 = vand.u32 %v15890_v56, %v17871_v38  ;;  %v15813_v4 = vcombine.high %v15640_v57, %v15680_v58  ;;  %v15820_v56 = vcombine.low %v15644_v33, %v15684_v34 }
 0x18c   : > { %6116 = vmatprep.subr.bf16.mxu0 %v15801_v5  ;;  %6159 = vmatprep.subr.bf16.mxu1 %v15803_v7  ;;  %v15893_v5 = vcombine.high %v15720_v61, %v15760_v62  ;;  %v15895_v7 = vcombine.high %v15721_v0, %v15761_v1  ;;  %v15900_v57 = vcombine.low %v15724_v37, %v15764_v39 }
 0x18e   : > { %15952 = vmatmul.mubr.msk.bf16.vlgmr.msra.gmra.mrb[88].mxu0 %vm1860_vm5, %v18479_v21  ;;  %15953 = vmatmul.mubr.msk.bf16.vlgmr.msra.gmra.mrb[88].mxu1 %vm1860_vm5, %v18479_v21  ;;  %v5700_v14 = vand.u32 %v15895_v7, %v17871_v38  ;;  %v15727_v7 = vld [vmem:[%s23322_s0 + $0x818] sm:$0xff] }
 0x18f   : > { %6117 = vmatpush1.bf16.msra.mxu0 %v15800_v9  ;;  %6160 = vmatpush1.bf16.msra.mxu1 %v15802_v11  ;;  %v15892_v9 = vcombine.low %v15720_v61, %v15760_v62  ;;  %v5694_v11 = vand.u32 %v15893_v5, %v17871_v38  ;;  %v15902_v62 = vcombine.low %v15725_v41, %v15765_v42  ;;  %v15766_v5 = vld [vmem:[%s23322_s0 + $0x950] sm:$0x33] }
 0x190   : > { %6118 = vmatprep.subr.bf16.mxu0 %v5658_v12  ;;  %6161 = vmatprep.subr.bf16.mxu1 %v5664_v15  ;;  %v15894_v12 = vcombine.low %v15721_v0, %v15761_v1  ;;  %v15643_v15 = vld [vmem:[%s23322_s0 + $0x578] sm:$0xff]  ;;  %v15686_v0 = vld [vmem:[%s23322_s0 + $0x6d0] sm:$0xff] }
 0x191   : > { %6148 = vmatprep.mubr.bf16.mxu0 %v23334_v46  ;;  %6191 = vmatprep.mubr.bf16.mxu1 %v23334_v46  ;;  %v5691_v22 = vand.u32 %v15892_v9, %v17871_v38  ;;  %v15819_v26 = vcombine.high %v15643_v15, %v15683_v18  ;;  %v15818_v30 = vcombine.low %v15643_v15, %v15683_v18 }
 0x192   : > { %v5715_v9 = vand.u32 %v15900_v57, %v17871_v38 }
 0x193   : > { %6119 = vmatpush1.bf16.msra.mxu0 %v5655_v23  ;;  %6162 = vmatpush1.bf16.msra.mxu1 %v5661_v24  ;;  %v5697_v23 = vand.u32 %v15894_v12, %v17871_v38  ;;  %v15817_v24 = vcombine.high %v15642_v54, %v15682_v13 }
 0x194   : > { %6202 = vmatprep.subr.bf16.mxu0 %v15805_v25  ;;  %6245 = vmatprep.subr.bf16.mxu1 %v15807_v27  ;;  %v15897_v25 = vcombine.high %v15722_v16, %v15762_v17  ;;  %v15899_v27 = vcombine.high %v15723_v19, %v15763_v20 }
 0x196   : > { %15954 = vmatmul.mubr.msk.bf16.vlgmr.msra.gmra.mrb[92].mxu0 %vm1860_vm5, %v18479_v21  ;;  %15955 = vmatmul.mubr.msk.bf16.vlgmr.msra.gmra.mrb[92].mxu1 %vm1860_vm5, %v18479_v21  ;;  %v5712_v35 = vand.u32 %v15899_v27, %v17871_v38  ;;  %v15648_v27 = vld [vmem:[%s23322_s0 + $0x5a0] sm:$0xff] }
 0x197   : > { %6203 = vmatpush1.bf16.msra.mxu0 %v15804_v29  ;;  %6246 = vmatpush1.bf16.msra.mxu1 %v15806_v31  ;;  %v15896_v29 = vcombine.low %v15722_v16, %v15762_v17  ;;  %v5706_v31 = vand.u32 %v15897_v25, %v17871_v38 }
 0x198   : > { %6204 = vmatprep.subr.bf16.mxu0 %v5670_v32  ;;  %6247 = vmatprep.subr.bf16.mxu1 %v5676_v36  ;;  %v15898_v32 = vcombine.low %v15723_v19, %v15763_v20  ;;  %v15645_v36 = vld [vmem:[%s23322_s0 + $0x588] sm:$0xff]  ;;  %v15824_v19 = vcombine.low %v15646_v63, %v15686_v0 }
 0x199   : > { %6234 = vmatprep.mubr.bf16.mxu0 %v23334_v46  ;;  %6277 = vmatprep.mubr.bf16.mxu1 %v23334_v46  ;;  %v5703_v43 = vand.u32 %v15896_v29, %v17871_v38  ;;  %v15822_v60 = vcombine.low %v15645_v36, %v15685_v40 }
 0x19b   : > { %6205 = vmatpush1.bf16.msra.mxu0 %v5667_v44  ;;  %6248 = vmatpush1.bf16.msra.mxu1 %v5673_v45  ;;  %v5709_v44 = vand.u32 %v15898_v32, %v17871_v38  ;;  %v15821_v45 = vcombine.high %v15644_v33, %v15684_v34  ;;  %v15728_v32 = vld [vmem:[%s23322_s0 + $0x820] sm:$0xff]  ;;  %v15689_v34 = vld [vmem:[%s23322_s0 + $0x6e8] sm:$0xff] }
 0x19c   : > { %6288 = vmatprep.subr.bf16.mxu0 %v15809_v47  ;;  %6331 = vmatprep.subr.bf16.mxu1 %v15811_v49  ;;  %v15901_v47 = vcombine.high %v15724_v37, %v15764_v39  ;;  %v15823_v49 = vcombine.high %v15645_v36, %v15685_v40  ;;  %v15768_v33 = vld [vmem:[%s23322_s0 + $0x960] sm:$0x33]  ;;  %v15769_v36 = vld [vmem:[%s23322_s0 + $0x968] sm:$0x33] }
 0x19d   : > { %v15909_v41 = vcombine.high %v15728_v32, %v15768_v33  ;;  %v15908_v57 = vcombine.low %v15728_v32, %v15768_v33 }
 0x19e   : > { %15956 = vmatmul.mubr.msk.bf16.vlgmr.msra.gmra.mrb[96].mxu0 %vm1860_vm5, %v18479_v21  ;;  %15957 = vmatmul.mubr.msk.bf16.vlgmr.msra.gmra.mrb[96].mxu1 %vm1860_vm5, %v18479_v21  ;;  %v5718_v61 = vand.u32 %v15901_v47, %v17871_v38 }
 0x19f   : > { %6289 = vmatpush1.bf16.msra.mxu0 %v15808_v51  ;;  %6332 = vmatpush1.bf16.msra.mxu1 %v15810_v53 }
 0x1a0   : > { %6290 = vmatprep.subr.bf16.mxu0 %v5682_v55  ;;  %6333 = vmatprep.subr.bf16.mxu1 %v5688_v59 }
 0x1a1   : > { %6320 = vmatprep.mubr.bf16.mxu0 %v23334_v46  ;;  %6363 = vmatprep.mubr.bf16.mxu1 %v23334_v46 }
 0x1a3   : > { %6291 = vmatpush1.bf16.msra.mxu0 %v5679_v2  ;;  %6334 = vmatpush1.bf16.msra.mxu1 %v5685_v3  ;;  %v5724_v2 = vand.u32 %v15903_v50, %v17871_v38  ;;  %v15647_v3 = vld [vmem:[%s23322_s0 + $0x598] sm:$0xff] }
 0x1a4   : > { %6374 = vmatprep.subr.bf16.mxu0 %v15813_v4  ;;  %6417 = vmatprep.subr.bf16.mxu1 %v15815_v6  ;;  %v15726_v4 = vld [vmem:[%s23322_s0 + $0x810] sm:$0xff]  ;;  %v15687_v6 = vld [vmem:[%s23322_s0 + $0x6d8] sm:$0xff] }
 0x1a5   : > { %v15905_v12 = vcombine.high %v15726_v4, %v15766_v5  ;;  %v15827_v13 = vcombine.high %v15647_v3, %v15687_v6  ;;  %v15904_v20 = vcombine.low %v15726_v4, %v15766_v5 }
 0x1a6   : > { %15958 = vmatmul.mubr.msk.bf16.vlgmr.msra.gmra.mrb[100].mxu0 %vm1860_vm5, %v18479_v21  ;;  %15959 = vmatmul.mubr.msk.bf16.vlgmr.msra.gmra.mrb[100].mxu1 %vm1860_vm5, %v18479_v21 }
 0x1a7   : > { %6375 = vmatpush1.bf16.msra.mxu0 %v15812_v8  ;;  %6418 = vmatpush1.bf16.msra.mxu1 %v15814_v10  ;;  %v15767_v8 = vld [vmem:[%s23322_s0 + $0x958] sm:$0x33]  ;;  %v5721_v10 = vand.u32 %v15902_v62, %v17871_v38  ;;  %v5730_v25 = vand.u32 %v15905_v12, %v17871_v38  ;;  %v5727_v37 = vand.u32 %v15904_v20, %v17871_v38 }
 0x1a8   : > { %6376 = vmatprep.subr.bf16.mxu0 %v5694_v11  ;;  %6419 = vmatprep.subr.bf16.mxu1 %v5700_v14  ;;  %v15825_v11 = vcombine.high %v15646_v63, %v15686_v0  ;;  %v15907_v14 = vcombine.high %v15727_v7, %v15767_v8  ;;  %v5742_v63 = vand.u32 %v15909_v41, %v17871_v38 }
 0x1a9   : > { %6406 = vmatprep.mubr.bf16.mxu0 %v23334_v46  ;;  %6449 = vmatprep.mubr.bf16.mxu1 %v23334_v46  ;;  %v5739_v12 = vand.u32 %v15908_v57, %v17871_v38  ;;  %v15772_v57 = vld [vmem:[%s23322_s0 + $0x980] sm:$0x33] }
 0x1ab   : > { %6377 = vmatpush1.bf16.msra.mxu0 %v5691_v22  ;;  %6420 = vmatpush1.bf16.msra.mxu1 %v5697_v23 }
 0x1ac   : > { %6460 = vmatprep.subr.bf16.mxu0 %v15817_v24  ;;  %6503 = vmatprep.subr.bf16.mxu1 %v15819_v26  ;;  %v15826_v24 = vcombine.low %v15647_v3, %v15687_v6  ;;  %v15906_v26 = vcombine.low %v15727_v7, %v15767_v8  ;;  %v15690_v3 = vld [vmem:[%s23322_s0 + $0x6f0] sm:$0xff]  ;;  %v15651_v6 = vld [vmem:[%s23322_s0 + $0x5b8] sm:$0xff] }
 0x1ad   : > { %v15730_v7 = vld [vmem:[%s23322_s0 + $0x830] sm:$0xff] }
 0x1ae   : > { %15960 = vmatmul.mubr.msk.bf16.vlgmr.msra.gmra.mrb[104].mxu0 %vm1860_vm5, %v18479_v21  ;;  %15961 = vmatmul.mubr.msk.bf16.vlgmr.msra.gmra.mrb[104].mxu1 %vm1860_vm5, %v18479_v21  ;;  %v5733_v39 = vand.u32 %v15906_v26, %v17871_v38  ;;  %v15770_v8 = vld [vmem:[%s23322_s0 + $0x970] sm:$0x33] }
 0x1af   : > { %6461 = vmatpush1.bf16.msra.mxu0 %v15816_v28  ;;  %6504 = vmatpush1.bf16.msra.mxu1 %v15818_v30  ;;  %v15688_v28 = vld [vmem:[%s23322_s0 + $0x6e0] sm:$0xff]  ;;  %v5736_v30 = vand.u32 %v15907_v14, %v17871_v38  ;;  %v15912_v32 = vcombine.low %v15730_v7, %v15770_v8 }
 0x1b0   : > { %6462 = vmatprep.subr.bf16.mxu0 %v5706_v31  ;;  %6505 = vmatprep.subr.bf16.mxu1 %v5712_v35  ;;  %v15649_v31 = vld [vmem:[%s23322_s0 + $0x5a8] sm:$0xff]  ;;  %v15829_v40 = vcombine.high %v15648_v27, %v15688_v28 }
 0x1b1   : > { %v18836_v48 = vpop.f32.mrb[0].mxu0  ;;  %6492 = vmatprep.mubr.bf16.mxu0 %v23334_v46  ;;  %v18839_v51 = vpop.f32.mrb[0].mxu1  ;;  %6535 = vmatprep.mubr.bf16.mxu1 %v23334_v46  ;;  %v15729_v35 = vld [vmem:[%s23322_s0 + $0x828] sm:$0xff]  ;;  %v15830_v62 = vcombine.low %v15649_v31, %v15689_v34 }
 0x1b2   : > { %23456 = vst [vmem:[#allocation7_spill] sm:$0xff] %v18836_v48  ;;  %v18841_v52 = vpop.f32.mrb[1].mxu0  ;;  %v18844_v53 = vpop.f32.mrb[1].mxu1  ;;  %v15910_v0 = vcombine.low %v15729_v35, %v15769_v36 }
 0x1b3   : > { %v18846_v55 = vpop.f32.mrb[2].mxu0  ;;  %6463 = vmatpush1.bf16.msra.mxu0 %v5703_v43  ;;  %v18848_v58 = vpop.f32.mrb[2].mxu1  ;;  %6506 = vmatpush1.bf16.msra.mxu1 %v5709_v44  ;;  %v15831_v43 = vcombine.high %v15649_v31, %v15689_v34  ;;  %v15911_v44 = vcombine.high %v15729_v35, %v15769_v36 }
 0x1b4   : > { %23457 = vst [vmem:[#allocation8_spill] sm:$0xff] %v18848_v58  ;;  %v18850_v59 = vpop.f32.mrb[3].mxu0  ;;  %6546 = vmatprep.subr.bf16.mxu0 %v15821_v45  ;;  %v18859_v1 = vpop.f32.mrb[3].mxu1  ;;  %6589 = vmatprep.subr.bf16.mxu1 %v15823_v49 }
 0x1b5   : > { %23458 = vst [vmem:[#allocation9_spill] sm:$0xff] %v18850_v59  ;;  %23459 = vst [vmem:[#allocation10_spill] sm:$0xff] %v18859_v1  ;;  %v5748_v5 = vand.u32 %v15911_v44, %v17871_v38  ;;  %v15653_v44 = vld [vmem:[%s23322_s0 + $0x5c8] sm:$0xff] }
 0x1b6   : > { %15962 = vmatmul.mubr.msk.bf16.vlgmr.msra.gmra.mrb[108].mxu0 %vm1860_vm5, %v18479_v21  ;;  %15963 = vmatmul.mubr.msk.bf16.vlgmr.msra.gmra.mrb[108].mxu1 %vm1860_vm5, %v18479_v21 }
 0x1b7   : > { %6547 = vmatpush1.bf16.msra.mxu0 %v15820_v56  ;;  %6590 = vmatpush1.bf16.msra.mxu1 %v15822_v60  ;;  %v15828_v56 = vcombine.low %v15648_v27, %v15688_v28 }
 0x1b8   : > { %6548 = vmatprep.subr.bf16.mxu0 %v5718_v61  ;;  %6591 = vmatprep.subr.bf16.mxu1 %v5724_v2  ;;  %v15650_v2 = vld [vmem:[%s23322_s0 + $0x5b0] sm:$0xff] }
 0x1b9   : > { %v18886_v54 = vpop.f32.mrb[4].mxu0  ;;  %6578 = vmatprep.mubr.bf16.mxu0 %v23334_v46  ;;  %v18889_v15 = vpop.f32.mrb[4].mxu1  ;;  %6621 = vmatprep.mubr.bf16.mxu1 %v23334_v46  ;;  %v15833_v14 = vcombine.high %v15650_v2, %v15690_v3  ;;  %v15832_v31 = vcombine.low %v15650_v2, %v15690_v3  ;;  %v5751_v2 = vand.u32 %v15912_v32, %v17871_v38 }
 0x1ba   : > { %23460 = vst [vmem:[#allocation11_spill] sm:$0xff] %v18886_v54  ;;  %v18891_v16 = vpop.f32.mrb[5].mxu0  ;;  %v18894_v17 = vpop.f32.mrb[5].mxu1 }
 0x1bb   : > { %v18896_v18 = vpop.f32.mrb[6].mxu0  ;;  %6549 = vmatpush1.bf16.msra.mxu0 %v5715_v9  ;;  %v18898_v22 = vpop.f32.mrb[6].mxu1  ;;  %6592 = vmatpush1.bf16.msra.mxu1 %v5721_v10  ;;  %v15691_v9 = vld [vmem:[%s23322_s0 + $0x6f8] sm:$0xff] }
 0x1bc   : > { %23461 = vst [vmem:[#allocation12_spill] sm:$0xff] %v18898_v22  ;;  %v18900_v23 = vpop.f32.mrb[7].mxu0  ;;  %6632 = vmatprep.subr.bf16.mxu0 %v15825_v11  ;;  %v18909_v29 = vpop.f32.mrb[7].mxu1  ;;  %6675 = vmatprep.subr.bf16.mxu1 %v15827_v13  ;;  %v15731_v10 = vld [vmem:[%s23322_s0 + $0x838] sm:$0xff]  ;;  %v5745_v13 = vand.u32 %v15910_v0, %v17871_v38  ;;  %v15834_v35 = vcombine.low %v15651_v6, %v15691_v9  ;;  %v15773_v0 = vld [vmem:[%s23322_s0 + $0x988] sm:$0x33] }
 0x1bd   : > { %23462 = vst [vmem:[#allocation13_spill] sm:$0xff] %v18900_v23  ;;  %23463 = vst [vmem:[#allocation14_spill] sm:$0xff] %v18909_v29  ;;  %v15771_v11 = vld [vmem:[%s23322_s0 + $0x978] sm:$0x33] }
 0x1be   : > { %15964 = vmatmul.mubr.msk.bf16.vlgmr.msra.gmra.mrb[112].mxu0 %vm1860_vm5, %v18479_v21  ;;  %15965 = vmatmul.mubr.msk.bf16.vlgmr.msra.gmra.mrb[112].mxu1 %vm1860_vm5, %v18479_v21 }
 0x1bf   : > { %6633 = vmatpush1.bf16.msra.mxu0 %v15824_v19  ;;  %6676 = vmatpush1.bf16.msra.mxu1 %v15826_v24  ;;  %v15913_v19 = vcombine.high %v15730_v7, %v15770_v8  ;;  %v15835_v24 = vcombine.high %v15651_v6, %v15691_v9 }
 0x1c0   : > { %6634 = vmatprep.subr.bf16.mxu0 %v5730_v25  ;;  %6677 = vmatprep.subr.bf16.mxu1 %v5736_v30  ;;  %v15915_v25 = vcombine.high %v15731_v10, %v15771_v11 }
 0x1c1   : > { %v18936_v42 = vpop.f32.mrb[8].mxu0  ;;  %6664 = vmatprep.mubr.bf16.mxu0 %v23334_v46  ;;  %v18939_v45 = vpop.f32.mrb[8].mxu1  ;;  %6707 = vmatprep.mubr.bf16.mxu1 %v23334_v46  ;;  %v5754_v36 = vand.u32 %v15913_v19, %v17871_v38 }
 0x1c2   : > { %23464 = vst [vmem:[#allocation15_spill] sm:$0xff] %v18936_v42  ;;  %v18941_v47 = vpop.f32.mrb[9].mxu0  ;;  %v18944_v49 = vpop.f32.mrb[9].mxu1 }
 0x1c3   : > { %v18946_v50 = vpop.f32.mrb[10].mxu0  ;;  %6635 = vmatpush1.bf16.msra.mxu0 %v5727_v37  ;;  %v18948_v60 = vpop.f32.mrb[10].mxu1  ;;  %6678 = vmatpush1.bf16.msra.mxu1 %v5733_v39  ;;  %v15914_v37 = vcombine.low %v15731_v10, %v15771_v11  ;;  %v15652_v39 = vld [vmem:[%s23322_s0 + $0x5c0] sm:$0xff] }
 0x1c4   : > { %23465 = vst [vmem:[#allocation16_spill] sm:$0xff] %v18946_v50  ;;  %23466 = vst [vmem:[#allocation17_spill] sm:$0xff] %v18948_v60  ;;  %v18950_v61 = vpop.f32.mrb[11].mxu0  ;;  %6718 = vmatprep.subr.bf16.mxu0 %v15829_v40  ;;  %v18959_v4 = vpop.f32.mrb[11].mxu1  ;;  %6761 = vmatprep.subr.bf16.mxu1 %v15831_v43  ;;  %v15692_v40 = vld [vmem:[%s23322_s0 + $0x700] sm:$0xff]  ;;  %v5760_v43 = vand.u32 %v15915_v25, %v17871_v38 }
 0x1c5   : > { %23467 = vst [vmem:[#allocation18_spill] sm:$0xff] %v18950_v61  ;;  %23468 = vst [vmem:[#allocation19_spill] sm:$0xff] %v18959_v4  ;;  %v5757_v3 = vand.u32 %v15914_v37, %v17871_v38 }
 0x1c6   : > { %15966 = vmatmul.mubr.msk.bf16.vlgmr.msra.gmra.mrb[116].mxu0 %vm1860_vm5, %v18479_v21  ;;  %15967 = vmatmul.mubr.msk.bf16.vlgmr.msra.gmra.mrb[116].mxu1 %vm1860_vm5, %v18479_v21 }
 0x1c7   : > { %6719 = vmatpush1.bf16.msra.mxu0 %v15828_v56  ;;  %6762 = vmatpush1.bf16.msra.mxu1 %v15830_v62  ;;  %v15732_v56 = vld [vmem:[%s23322_s0 + $0x840] sm:$0xff]  ;;  %v15693_v62 = vld [vmem:[%s23322_s0 + $0x708] sm:$0xff] }
 0x1c8   : > { %6720 = vmatprep.subr.bf16.mxu0 %v5742_v63  ;;  %6763 = vmatprep.subr.bf16.mxu1 %v5748_v5  ;;  %v15733_v63 = vld [vmem:[%s23322_s0 + $0x848] sm:$0xff]  ;;  %v15837_v5 = vcombine.high %v15652_v39, %v15692_v40  ;;  %v15917_v6 = vcombine.high %v15732_v56, %v15772_v57  ;;  %v15839_v8 = vcombine.high %v15653_v44, %v15693_v62 }
 0x1c9   : > { %v18986_v20 = vpop.f32.mrb[12].mxu0  ;;  %6750 = vmatprep.mubr.bf16.mxu0 %v23334_v46  ;;  %v18989_v26 = vpop.f32.mrb[12].mxu1  ;;  %6793 = vmatprep.mubr.bf16.mxu1 %v23334_v46  ;;  %v15919_v9 = vcombine.high %v15733_v63, %v15773_v0  ;;  %v15838_v25 = vcombine.low %v15653_v44, %v15693_v62  ;;  %v15918_v32 = vcombine.low %v15733_v63, %v15773_v0  ;;  %v15774_v44 = vld [vmem:[%s23322_s0 + $0x990] sm:$0x33]  ;;  %v15735_v62 = vld [vmem:[%s23322_s0 + $0x858] sm:$0xff] }
 0x1ca   : > { %23469 = vst [vmem:[#allocation20_spill] sm:$0xff] %v18986_v20  ;;  %23470 = vst [vmem:[#allocation21_spill] sm:$0xff] %v18989_v26  ;;  %v18991_v27 = vpop.f32.mrb[13].mxu0  ;;  %v18994_v28 = vpop.f32.mrb[13].mxu1  ;;  %v15775_v63 = vld [vmem:[%s23322_s0 + $0x998] sm:$0x33] }
 0x1cb   : > { %23471 = vst [vmem:[#allocation22_spill] sm:$0xff] %v18991_v27  ;;  %23472 = vst [vmem:[#allocation23_spill] sm:$0xff] %v18994_v28  ;;  %v18996_v30 = vpop.f32.mrb[14].mxu0  ;;  %6721 = vmatpush1.bf16.msra.mxu0 %v5739_v12  ;;  %v18998_v33 = vpop.f32.mrb[14].mxu1  ;;  %6764 = vmatpush1.bf16.msra.mxu1 %v5745_v13  ;;  %v15836_v13 = vcombine.low %v15652_v39, %v15692_v40  ;;  %v5772_v39 = vand.u32 %v15919_v9, %v17871_v38  ;;  %v15655_v40 = vld [vmem:[%s23322_s0 + $0x5d8] sm:$0xff] }
 0x1cc   : > { %23473 = vst [vmem:[#allocation24_spill] sm:$0xff] %v18996_v30  ;;  %23474 = vst [vmem:[#allocation25_spill] sm:$0xff] %v18998_v33  ;;  %v19000_v34 = vpop.f32.mrb[15].mxu0  ;;  %6804 = vmatprep.subr.bf16.mxu0 %v15833_v14  ;;  %v19009_v41 = vpop.f32.mrb[15].mxu1  ;;  %6847 = vmatprep.subr.bf16.mxu1 %v15835_v24  ;;  %v15916_v14 = vcombine.low %v15732_v56, %v15772_v57  ;;  %v19074_v56 = vld [vmem:[%s23323_s1] sm:$0xff]   ;;  %v15695_v57 = vld [vmem:[%s23322_s0 + $0x718] sm:$0xff]  ;;  %v15923_v9 = vcombine.high %v15735_v62, %v15775_v63 }
 0x1cd   : > { %23475 = vst [vmem:[#allocation26_spill] sm:$0xff] %v19000_v34  ;;  %23476 = vst [vmem:[#allocation27_spill] sm:$0xff] %v19009_v41 }
 0x1ce   : > { %15968 = vmatmul.mubr.msk.bf16.vlgmr.msra.gmra.mrb[120].mxu0 %vm1860_vm5, %v18479_v21  ;;  %15969 = vmatmul.mubr.msk.bf16.vlgmr.msra.gmra.mrb[120].mxu1 %vm1860_vm5, %v18479_v21  ;;  %v5763_v0 = vand.u32 %v15916_v14, %v17871_v38 }
 0x1cf   : > { %6805 = vmatpush1.bf16.msra.mxu0 %v15832_v31  ;;  %6848 = vmatpush1.bf16.msra.mxu1 %v15834_v35  ;;  %v5766_v31 = vand.u32 %v15917_v6, %v17871_v38  ;;  %v15654_v35 = vld [vmem:[%s23322_s0 + $0x5d0] sm:$0xff] }
 0x1d0   : > { %6806 = vmatprep.subr.bf16.mxu0 %v5754_v36  ;;  %6849 = vmatprep.subr.bf16.mxu1 %v5760_v43  ;;  %v15694_v36 = vld [vmem:[%s23322_s0 + $0x710] sm:$0xff] }
 0x1d1   : > { %v19036_v7 = vpop.f32.mrb[16].mxu0  ;;  %6836 = vmatprep.mubr.bf16.mxu0 %v23334_v46  ;;  %v19039_v10 = vpop.f32.mrb[16].mxu1  ;;  %6879 = vmatprep.mubr.bf16.mxu1 %v23334_v46  ;;  %v15734_v43 = vld [vmem:[%s23322_s0 + $0x850] sm:$0xff]  ;;  %v15840_v14 = vcombine.low %v15654_v35, %v15694_v36 }
 0x1d2   : > { %23477 = vst [vmem:[#allocation28_spill] sm:$0xff] %v19036_v7  ;;  %23478 = vst [vmem:[#allocation29_spill] sm:$0xff] %v19039_v10  ;;  %v19041_v11 = vpop.f32.mrb[17].mxu0  ;;  %v19044_v21 = vpop.f32.mrb[17].mxu1  ;;  %v15744_v7 = vld [vmem:[%s23322_s0 + $0x8a0] sm:$0xff] }
 0x1d3   : > { %23479 = vst [vmem:[#allocation30_spill] sm:$0xff] %v19041_v11  ;;  %23480 = vst [vmem:[#allocation31_spill] sm:$0xff] %v19044_v21  ;;  %v19046_v12 = vpop.f32.mrb[18].mxu0  ;;  %6807 = vmatpush1.bf16.msra.mxu0 %v5751_v2  ;;  %v19048_v19 = vpop.f32.mrb[18].mxu1  ;;  %6850 = vmatpush1.bf16.msra.mxu1 %v5757_v3  ;;  %v5769_v2 = vand.u32 %v15918_v32, %v17871_v38  ;;  %v15841_v3 = vcombine.high %v15654_v35, %v15694_v36  ;;  %v15777_v35 = vld [vmem:[%s23322_s0 + $0x9a8] sm:$0x33] }
 0x1d4   : > { %23481 = vst [vmem:[#allocation32_spill] sm:$0xff] %v19046_v12  ;;  %23482 = vst [vmem:[#allocation33_spill] sm:$0xff] %v19048_v19  ;;  %v19050_v24 = vpop.f32.mrb[19].mxu0  ;;  %6890 = vmatprep.subr.bf16.mxu0 %v15837_v5  ;;  %v19059_v37 = vpop.f32.mrb[19].mxu1  ;;  %6933 = vmatprep.subr.bf16.mxu1 %v15839_v8  ;;  %v15921_v5 = vcombine.high %v15734_v43, %v15774_v44  ;;  %v15843_v8 = vcombine.high %v15655_v40, %v15695_v57  ;;  %v15666_v11 = vld [vmem:[%s23322_s0 + $0x630] sm:$0xff] }
 0x1d5   : > { %23483 = vst [vmem:[#allocation34_spill] sm:$0xff] %v19050_v24  ;;  %23484 = vst [vmem:[#allocation35_spill] sm:$0xff] %v19059_v37  ;;  %v15920_v37 = vcombine.low %v15734_v43, %v15774_v44  ;;  %v19126_v43 = vld [vmem:[%s23322_s0 + $0x720] sm:$0xff] }
 0x1d6   : > { %15970 = vmatmul.mubr.msk.bf16.vlgmr.msra.gmra.mrb[124].mxu0 %vm1860_vm5, %v19074_v56  ;;  %15971 = vmatmul.mubr.msk.bf16.vlgmr.msra.gmra.mrb[124].mxu1 %vm1860_vm5, %v19074_v56  ;;  %v15776_v44 = vld [vmem:[%s23322_s0 + $0x9a0] sm:$0x33] }
 0x1d7   : > { %6891 = vmatpush1.bf16.msra.mxu0 %v15836_v13  ;;  %6934 = vmatpush1.bf16.msra.mxu1 %v15838_v25  ;;  %v15842_v25 = vcombine.low %v15655_v40, %v15695_v57  ;;  %v5778_v57 = vand.u32 %v15921_v5, %v17871_v38  ;;  %v15736_v5 = vld [vmem:[%s23322_s0 + $0x860] sm:$0xff] }
 0x1d8   : > { %6892 = vmatprep.subr.bf16.mxu0 %v5766_v31  ;;  %6935 = vmatprep.subr.bf16.mxu1 %v5772_v39  ;;  %v15925_v31 = vcombine.high %v15736_v5, %v15776_v44 }
 0x1d9   : > { %v19091_v6 = vpop.f32.mrb[20].mxu0  ;;  %6922 = vmatprep.mubr.bf16.mxu0 %v23334_v46  ;;  %v19096_v24 = vpop.f32.mrb[20].mxu1  ;;  %6965 = vmatprep.mubr.bf16.mxu1 %v23334_v46 }
 0x1da   : > { %23485 = vst [vmem:[#allocation36_spill] sm:$0xff] %v19091_v6  ;;  %v19098_v13 = vpop.f32.mrb[21].mxu0  ;;  %v19105_v39 = vpop.f32.mrb[21].mxu1  ;;  %v15922_v6 = vcombine.low %v15735_v62, %v15775_v63  ;;  %v5775_v62 = vand.u32 %v15920_v37, %v17871_v38 }
 0x1db   : > { %v19107_v19 = vpop.f32.mrb[22].mxu0  ;;  %6893 = vmatpush1.bf16.msra.mxu0 %v5763_v0  ;;  %v19113_v36 = vpop.f32.mrb[22].mxu1  ;;  %6936 = vmatpush1.bf16.msra.mxu1 %v5769_v2  ;;  %v19121_v0 = vld [vmem:[%s23322_s0 + $0x5e0] sm:$0xff]  ;;  %v5784_v2 = vand.u32 %v15923_v9, %v17871_v38  ;;  %v15737_v9 = vld [vmem:[%s23322_s0 + $0x868] sm:$0xff] }
 0x1dc   : > { %23486 = vst [vmem:[#allocation37_spill] sm:$0xff] %v19113_v36  ;;  %v19115_v40 = vpop.f32.mrb[23].mxu0  ;;  %6976 = vmatprep.subr.bf16.mxu0 %v15841_v3  ;;  %v19132_v63 = vpop.f32.mrb[23].mxu1  ;;  %7019 = vmatprep.subr.bf16.mxu1 %v15843_v8  ;;  %v15657_v3 = vld [vmem:[%s23322_s0 + $0x5e8] sm:$0xff]  ;;  %v5781_v48 = vand.u32 %v15922_v6, %v17871_v38  ;;  %v15845_v32 = vcombine.high %v19121_v0, %v19126_v43 }
 0x1dd   : > { %23487 = vst [vmem:[#allocation38_spill] sm:$0xff] %v19115_v40  ;;  %23488 = vst [vmem:[#allocation39_spill] sm:$0xff] %v19132_v63  ;;  %v15697_v8 = vld [vmem:[%s23322_s0 + $0x728] sm:$0xff]  ;;  %v23490_v63 = vmov 0   ;;  %v15927_v40 = vcombine.high %v15737_v9, %v15777_v35  ;;  %v15844_v6 = vcombine.low %v19121_v0, %v19126_v43  ;;  %v15779_v0 = vld [vmem:[%s23322_s0 + $0x9b8] sm:$0x33] }
 0x1de   : > { %15972 = vmatmul.mubr.msk.bf16.vlgmr.msra.gmra.mrb[128].mxu0 %vm1860_vm5, %v19074_v56  ;;  %15973 = vmatmul.mubr.msk.bf16.vlgmr.msra.gmra.mrb[128].mxu1 %vm1860_vm5, %v19074_v56  ;;  %v15847_v1 = vcombine.high %v15657_v3, %v15697_v8 }
 0x1df   : > { %6977 = vmatpush1.bf16.msra.mxu0 %v15840_v14  ;;  %7020 = vmatpush1.bf16.msra.mxu1 %v15842_v25  ;;  %v15846_v25 = vcombine.low %v15657_v3, %v15697_v8  ;;  %v15924_v14 = vcombine.low %v15736_v5, %v15776_v44  ;;  %v5790_v8 = vand.u32 %v15925_v31, %v17871_v38  ;;  %v15778_v44 = vld [vmem:[%s23322_s0 + $0x9b0] sm:$0x33] }
 0x1e0   : > { %6978 = vmatprep.subr.bf16.mxu0 %v5778_v57  ;;  %7021 = vmatprep.subr.bf16.mxu1 %v5784_v2  ;;  %v5796_v31 = vand.u32 %v15927_v40, %v17871_v38  ;;  %v15739_v40 = vld [vmem:[%s23322_s0 + $0x878] sm:$0xff] }
 0x1e1   : > { %v19163_v46 = vpop.f32.mrb[24].mxu0  ;;  %7008 = vmatprep.mubr.bf16.mxu0 %v23490_v63  ;;  %v19168_v59 = vpop.f32.mrb[24].mxu1  ;;  %7051 = vmatprep.mubr.bf16.mxu1 %v23490_v63 }
 0x1e2   : > { %23489 = vst [vmem:[#allocation40_spill] sm:$0xff] %v19163_v46  ;;  %v19170_v37 = vpop.f32.mrb[25].mxu0  ;;  %v19179_v36 = vpop.f32.mrb[25].mxu1  ;;  %v15926_v46 = vcombine.low %v15737_v9, %v15777_v35  ;;  %v19200_v35 = vld [vmem:[%s23322_s0 + $0x730] sm:$0xff] }
 0x1e3   : > { %v19181_v58 = vpop.f32.mrb[26].mxu0  ;;  %6979 = vmatpush1.bf16.msra.mxu0 %v5775_v62  ;;  %v19187_v43 = vpop.f32.mrb[26].mxu1  ;;  %7022 = vmatpush1.bf16.msra.mxu1 %v5781_v48  ;;  %v19195_v62 = vld [vmem:[%s23322_s0 + $0x5f0] sm:$0xff]  ;;  %v5787_v48 = vand.u32 %v15924_v14, %v17871_v38 }
 0x1e4   : > { %23491 = vst [vmem:[#allocation41_spill] sm:$0xff] %v19187_v43  ;;  %v19189_v3 = vpop.f32.mrb[27].mxu0  ;;  %7062 = vmatprep.subr.bf16.mxu0 %v15845_v32  ;;  %v19206_v5 = vpop.f32.mrb[27].mxu1  ;;  %7105 = vmatprep.subr.bf16.mxu1 %v15847_v1  ;;  %v15659_v32 = vld [vmem:[%s23322_s0 + $0x5f8] sm:$0xff]  ;;  %v15738_v9 = vld [vmem:[%s23322_s0 + $0x870] sm:$0xff]  ;;  %v5793_v54 = vand.u32 %v15926_v46, %v17871_v38  ;;  %v15849_v2 = vcombine.high %v19195_v62, %v19200_v35 }
 0x1e5   : > { %23492 = vst [vmem:[#allocation42_spill] sm:$0xff] %v19189_v3  ;;  %23493 = vst [vmem:[#allocation43_spill] sm:$0xff] %v19206_v5  ;;  %v15699_v1 = vld [vmem:[%s23322_s0 + $0x738] sm:$0xff]  ;;  %v15929_v57 = vcombine.high %v15738_v9, %v15778_v44  ;;  %v15931_v3 = vcombine.high %v15739_v40, %v15779_v0  ;;  %v15848_v46 = vcombine.low %v19195_v62, %v19200_v35  ;;  %v15781_v62 = vld [vmem:[%s23322_s0 + $0x9c8] sm:$0x33] }
 0x1e6   : > { %15974 = vmatmul.mubr.msk.bf16.vlgmr.msra.gmra.mrb[132].mxu0 %vm1860_vm5, %v19074_v56  ;;  %15975 = vmatmul.mubr.msk.bf16.vlgmr.msra.gmra.mrb[132].mxu1 %vm1860_vm5, %v19074_v56  ;;  %v15851_v29 = vcombine.high %v15659_v32, %v15699_v1 }
 0x1e7   : > { %7063 = vmatpush1.bf16.msra.mxu0 %v15844_v6  ;;  %7106 = vmatpush1.bf16.msra.mxu1 %v15846_v25  ;;  %v15850_v25 = vcombine.low %v15659_v32, %v15699_v1  ;;  %v15928_v6 = vcombine.low %v15738_v9, %v15778_v44  ;;  %v5802_v1 = vand.u32 %v15929_v57, %v17871_v38  ;;  %v15780_v44 = vld [vmem:[%s23322_s0 + $0x9c0] sm:$0x33] }
 0x1e8   : > { %7064 = vmatprep.subr.bf16.mxu0 %v5790_v8  ;;  %7107 = vmatprep.subr.bf16.mxu1 %v5796_v31  ;;  %v5808_v57 = vand.u32 %v15931_v3, %v17871_v38  ;;  %v15741_v3 = vld [vmem:[%s23322_s0 + $0x888] sm:$0xff] }
 0x1e9   : > { %v19237_v5 = vpop.f32.mrb[28].mxu0  ;;  %7094 = vmatprep.mubr.bf16.mxu0 %v23490_v63  ;;  %v19242_v23 = vpop.f32.mrb[28].mxu1  ;;  %7137 = vmatprep.mubr.bf16.mxu1 %v23490_v63 }
 0x1ea   : > { %23494 = vst [vmem:[#allocation44_spill] sm:$0xff] %v19237_v5  ;;  %v19244_v14 = vpop.f32.mrb[29].mxu0  ;;  %v19253_v43 = vpop.f32.mrb[29].mxu1  ;;  %v15930_v5 = vcombine.low %v15739_v40, %v15779_v0  ;;  %v19274_v0 = vld [vmem:[%s23322_s0 + $0x740] sm:$0xff] }
 0x1eb   : > { %23495 = vst [vmem:[#allocation45_spill] sm:$0xff] %v19253_v43  ;;  %v19255_v22 = vpop.f32.mrb[30].mxu0  ;;  %7065 = vmatpush1.bf16.msra.mxu0 %v5787_v48  ;;  %v19261_v35 = vpop.f32.mrb[30].mxu1  ;;  %7108 = vmatpush1.bf16.msra.mxu1 %v5793_v54  ;;  %v19269_v48 = vld [vmem:[%s23322_s0 + $0x600] sm:$0xff]  ;;  %v5799_v54 = vand.u32 %v15928_v6, %v17871_v38 }
 0x1ec   : > { %23496 = vst [vmem:[#allocation46_spill] sm:$0xff] %v19255_v22  ;;  %23497 = vst [vmem:[#allocation47_spill] sm:$0xff] %v19261_v35  ;;  %v19263_v32 = vpop.f32.mrb[31].mxu0  ;;  %7148 = vmatprep.subr.bf16.mxu0 %v15849_v2  ;;  %v19280_v9 = vpop.f32.mrb[31].mxu1  ;;  %7191 = vmatprep.subr.bf16.mxu1 %v15851_v29  ;;  %v15661_v2 = vld [vmem:[%s23322_s0 + $0x608] sm:$0xff]  ;;  %v15740_v40 = vld [vmem:[%s23322_s0 + $0x880] sm:$0xff]  ;;  %v5805_v42 = vand.u32 %v15930_v5, %v17871_v38  ;;  %v15853_v31 = vcombine.high %v19269_v48, %v19274_v0 }
 0x1ed   : > { %23498 = vst [vmem:[#allocation48_spill] sm:$0xff] %v19263_v32  ;;  %23499 = vst [vmem:[#allocation49_spill] sm:$0xff] %v19280_v9  ;;  %v15701_v29 = vld [vmem:[%s23322_s0 + $0x748] sm:$0xff]  ;;  %v15933_v8 = vcombine.high %v15740_v40, %v15780_v44  ;;  %v15935_v32 = vcombine.high %v15741_v3, %v15781_v62  ;;  %v15852_v5 = vcombine.low %v19269_v48, %v19274_v0  ;;  %v15783_v48 = vld [vmem:[%s23322_s0 + $0x9d8] sm:$0x33] }
 0x1ee   : > { %15976 = vmatmul.mubr.msk.bf16.vlgmr.msra.gmra.mrb[136].mxu0 %vm1860_vm5, %v19074_v56  ;;  %15977 = vmatmul.mubr.msk.bf16.vlgmr.msra.gmra.mrb[136].mxu1 %vm1860_vm5, %v19074_v56  ;;  %v15855_v4 = vcombine.high %v15661_v2, %v15701_v29  ;;  %v23544_v22 = vmax.f32 %v18841_v52, %v19098_v13  ;;  %v23549_v13 = vld [vmem:[#allocation37_spill] sm:$0xff] }
 0x1ef   : > { %7149 = vmatpush1.bf16.msra.mxu0 %v15848_v46  ;;  %7192 = vmatpush1.bf16.msra.mxu1 %v15850_v25  ;;  %v15854_v25 = vcombine.low %v15661_v2, %v15701_v29  ;;  %v15932_v46 = vcombine.low %v15740_v40, %v15780_v44  ;;  %v5814_v29 = vand.u32 %v15933_v8, %v17871_v38  ;;  %v15782_v44 = vld [vmem:[%s23322_s0 + $0x9d0] sm:$0x33] }
 0x1f0   : > { %7150 = vmatprep.subr.bf16.mxu0 %v5802_v1  ;;  %7193 = vmatprep.subr.bf16.mxu1 %v5808_v57  ;;  %v5820_v8 = vand.u32 %v15935_v32, %v17871_v38  ;;  %v15743_v32 = vld [vmem:[%s23322_s0 + $0x898] sm:$0xff] }
 0x1f1   : > { %v19311_v9 = vpop.f32.mrb[32].mxu0  ;;  %7180 = vmatprep.mubr.bf16.mxu0 %v23490_v63  ;;  %v19316_v61 = vpop.f32.mrb[32].mxu1  ;;  %7223 = vmatprep.mubr.bf16.mxu1 %v23490_v63 }
 0x1f2   : > { %23500 = vst [vmem:[#allocation50_spill] sm:$0xff] %v19311_v9  ;;  %23501 = vst [vmem:[#allocation51_spill] sm:$0xff] %v19316_v61  ;;  %v19318_v6 = vpop.f32.mrb[33].mxu0  ;;  %v19327_v35 = vpop.f32.mrb[33].mxu1  ;;  %v15934_v9 = vcombine.low %v15741_v3, %v15781_v62  ;;  %v19348_v62 = vld [vmem:[%s23322_s0 + $0x750] sm:$0xff] }
 0x1f3   : > { %23502 = vst [vmem:[#allocation52_spill] sm:$0xff] %v19318_v6  ;;  %23503 = vst [vmem:[#allocation53_spill] sm:$0xff] %v19327_v35  ;;  %v19329_v60 = vpop.f32.mrb[34].mxu0  ;;  %7151 = vmatpush1.bf16.msra.mxu0 %v5799_v54  ;;  %v19335_v0 = vpop.f32.mrb[34].mxu1  ;;  %7194 = vmatpush1.bf16.msra.mxu1 %v5805_v42  ;;  %v19343_v54 = vld [vmem:[%s23322_s0 + $0x610] sm:$0xff]  ;;  %v5811_v42 = vand.u32 %v15932_v46, %v17871_v38 }
 0x1f4   : > { %23504 = vst [vmem:[#allocation54_spill] sm:$0xff] %v19329_v60  ;;  %23505 = vst [vmem:[#allocation55_spill] sm:$0xff] %v19335_v0  ;;  %v19337_v2 = vpop.f32.mrb[35].mxu0  ;;  %7234 = vmatprep.subr.bf16.mxu0 %v15853_v31  ;;  %v19354_v40 = vpop.f32.mrb[35].mxu1  ;;  %7277 = vmatprep.subr.bf16.mxu1 %v15855_v4  ;;  %v15663_v31 = vld [vmem:[%s23322_s0 + $0x618] sm:$0xff]  ;;  %v15742_v3 = vld [vmem:[%s23322_s0 + $0x890] sm:$0xff]  ;;  %v5817_v20 = vand.u32 %v15934_v9, %v17871_v38  ;;  %v15857_v57 = vcombine.high %v19343_v54, %v19348_v62 }
 0x1f5   : > { %23506 = vst [vmem:[#allocation56_spill] sm:$0xff] %v19337_v2  ;;  %23507 = vst [vmem:[#allocation57_spill] sm:$0xff] %v19354_v40  ;;  %v15703_v4 = vld [vmem:[%s23322_s0 + $0x758] sm:$0xff]  ;;  %v15937_v1 = vcombine.high %v15742_v3, %v15782_v44  ;;  %v15939_v2 = vcombine.high %v15743_v32, %v15783_v48  ;;  %v15856_v9 = vcombine.low %v19343_v54, %v19348_v62 }
 0x1f6   : > { %15978 = vmatmul.mubr.msk.bf16.vlgmr.msra.gmra.mrb[140].mxu0 %vm1860_vm5, %v19074_v56  ;;  %15979 = vmatmul.mubr.msk.bf16.vlgmr.msra.gmra.mrb[140].mxu1 %vm1860_vm5, %v19074_v56  ;;  %v15859_v41 = vcombine.high %v15663_v31, %v15703_v4 }
 0x1f7   : > { %7235 = vmatpush1.bf16.msra.mxu0 %v15852_v5  ;;  %7278 = vmatpush1.bf16.msra.mxu1 %v15854_v25  ;;  %v15858_v25 = vcombine.low %v15663_v31, %v15703_v4  ;;  %v15936_v5 = vcombine.low %v15742_v3, %v15782_v44  ;;  %v5826_v4 = vand.u32 %v15937_v1, %v17871_v38  ;;  %v15665_v1 = vld [vmem:[%s23322_s0 + $0x628] sm:$0xff]  ;;  %v15784_v3 = vld [vmem:[%s23322_s0 + $0x9e0] sm:$0x33] }
 0x1f8   : > { %7236 = vmatprep.subr.bf16.mxu0 %v5814_v29  ;;  %7279 = vmatprep.subr.bf16.mxu1 %v5820_v8  ;;  %v15785_v29 = vld [vmem:[%s23322_s0 + $0x9e8] sm:$0x33] }
 0x1f9   : > { %v19385_v40 = vpop.f32.mrb[36].mxu0  ;;  %7266 = vmatprep.mubr.bf16.mxu0 %v23490_v63  ;;  %v19390_v34 = vpop.f32.mrb[36].mxu1  ;;  %7309 = vmatprep.mubr.bf16.mxu1 %v23490_v63  ;;  %v5823_v54 = vand.u32 %v15936_v5, %v17871_v38 }
 0x1fa   : > { %23508 = vst [vmem:[#allocation58_spill] sm:$0xff] %v19385_v40  ;;  %23509 = vst [vmem:[#allocation59_spill] sm:$0xff] %v19390_v34  ;;  %v19392_v46 = vpop.f32.mrb[37].mxu0  ;;  %v19401_v0 = vpop.f32.mrb[37].mxu1  ;;  %v15938_v40 = vcombine.low %v15743_v32, %v15783_v48  ;;  %v15704_v48 = vld [vmem:[%s23322_s0 + $0x760] sm:$0xff] }
 0x1fb   : > { %23510 = vst [vmem:[#allocation60_spill] sm:$0xff] %v19392_v46  ;;  %23511 = vst [vmem:[#allocation61_spill] sm:$0xff] %v19401_v0  ;;  %v19403_v33 = vpop.f32.mrb[38].mxu0  ;;  %7237 = vmatpush1.bf16.msra.mxu0 %v5811_v42  ;;  %v19409_v62 = vpop.f32.mrb[38].mxu1  ;;  %7280 = vmatpush1.bf16.msra.mxu1 %v5817_v20  ;;  %v15664_v42 = vld [vmem:[%s23322_s0 + $0x620] sm:$0xff] }
 0x1fc   : > { %23512 = vst [vmem:[#allocation62_spill] sm:$0xff] %v19403_v33  ;;  %23513 = vst [vmem:[#allocation63_spill] sm:$0xff] %v19409_v62  ;;  %v19411_v31 = vpop.f32.mrb[39].mxu0  ;;  %7320 = vmatprep.subr.bf16.mxu0 %v15857_v57  ;;  %v19424_v20 = vpop.f32.mrb[39].mxu1  ;;  %7363 = vmatprep.subr.bf16.mxu1 %v15859_v41  ;;  %v5832_v57 = vand.u32 %v15939_v2, %v17871_v38  ;;  %v15705_v41 = vld [vmem:[%s23322_s0 + $0x768] sm:$0xff]  ;;  %v15861_v8 = vcombine.high %v15664_v42, %v15704_v48 }
 0x1fd   : > { %23514 = vst [vmem:[#allocation64_spill] sm:$0xff] %v19411_v31  ;;  %23517 = vst [vmem:[#allocation65_spill] sm:$0xff] %v19424_v20  ;;  %v15745_v2 = vld [vmem:[%s23322_s0 + $0x8a8] sm:$0xff]  ;;  %v5829_v20 = vand.u32 %v15938_v40, %v17871_v38  ;;  %v15941_v31 = vcombine.high %v15744_v7, %v15784_v3  ;;  %v15863_v62 = vcombine.high %v15665_v1, %v15705_v41 }
 0x1fe   : > { %15980 = vmatmul.mubr.msk.bf16.vlgmr.msra.gmra.mrb[144].mxu0 %vm1860_vm5, %v19074_v56  ;;  %15981 = vmatmul.mubr.msk.bf16.vlgmr.msra.gmra.mrb[144].mxu1 %vm1860_vm5, %v19074_v56  ;;  %v15943_v44 = vcombine.high %v15745_v2, %v15785_v29  ;;  %v15860_v40 = vcombine.low %v15664_v42, %v15704_v48  ;;  %v15862_v0 = vcombine.low %v15665_v1, %v15705_v41  ;;  %v15747_v48 = vld [vmem:[%s23322_s0 + $0x8b8] sm:$0xff] }
 0x1ff   : > { %7321 = vmatpush1.bf16.msra.mxu0 %v15856_v9  ;;  %7364 = vmatpush1.bf16.msra.mxu1 %v15858_v25  ;;  %v15940_v25 = vcombine.low %v15744_v7, %v15784_v3  ;;  %v5838_v21 = vand.u32 %v15941_v31, %v17871_v38  ;;  %v15942_v46 = vcombine.low %v15745_v2, %v15785_v29  ;;  %v15746_v29 = vld [vmem:[%s23322_s0 + $0x8b0] sm:$0xff] }
 0x200   : > { %7322 = vmatprep.subr.bf16.mxu0 %v5826_v4  ;;  %7365 = vmatprep.subr.bf16.mxu1 %v5832_v57  ;;  %v5844_v7 = vand.u32 %v15943_v44, %v17871_v38  ;;  %v15786_v31 = vld [vmem:[%s23322_s0 + $0x9f0] sm:$0x33]  ;;  %v15787_v44 = vld [vmem:[%s23322_s0 + $0x9f8] sm:$0x33] }
 0x201   : > { %v19453_v32 = vpop.f32.mrb[40].mxu0  ;;  %7352 = vmatprep.mubr.bf16.mxu0 %v23490_v63  ;;  %v19456_v33 = vpop.f32.mrb[40].mxu1  ;;  %7395 = vmatprep.mubr.bf16.mxu1 %v23490_v63  ;;  %v5835_v3 = vand.u32 %v15940_v25, %v17871_v38  ;;  %v15945_v41 = vcombine.high %v15746_v29, %v15786_v31  ;;  %v15947_v10 = vcombine.high %v15747_v48, %v15787_v44 }
 0x202   : > { %v19458_v12 = vpop.f32.mrb[41].mxu0  ;;  %v19461_v5 = vpop.f32.mrb[41].mxu1  ;;  %v15946_v6 = vcombine.low %v15747_v48, %v15787_v44 }
 0x203   : > { %v19463_v9 = vpop.f32.mrb[42].mxu0  ;;  %7323 = vmatpush1.bf16.msra.mxu0 %v5823_v54  ;;  %v19465_v4 = vpop.f32.mrb[42].mxu1  ;;  %7366 = vmatpush1.bf16.msra.mxu1 %v5829_v20  ;;  %v15706_v54 = vld [vmem:[%s23322_s0 + $0x770] sm:$0xff]  ;;  %v5841_v20 = vand.u32 %v15942_v46, %v17871_v38  ;;  %v15944_v46 = vcombine.low %v15746_v29, %v15786_v31  ;;  %v5850_v28 = vand.u32 %v15945_v41, %v17871_v38 }
 0x204   : > { %v19467_v57 = vpop.f32.mrb[43].mxu0  ;;  %7406 = vmatprep.subr.bf16.mxu0 %v15861_v8  ;;  %v19476_v42 = vpop.f32.mrb[43].mxu1  ;;  %7449 = vmatprep.subr.bf16.mxu1 %v15863_v62  ;;  %v15667_v8 = vld [vmem:[%s23322_s0 + $0x638] sm:$0xff]  ;;  %v15865_v1 = vcombine.high %v15666_v11, %v15706_v54  ;;  %v5856_v61 = vand.u32 %v15947_v10, %v17871_v38 }
 0x205   : > { %v15707_v62 = vld [vmem:[%s23322_s0 + $0x778] sm:$0xff] }
 0x206   : > { %15982 = vmatmul.mubr.msk.bf16.vlgmr.msra.gmra.mrb[148].mxu0 %vm1860_vm5, %v19074_v56  ;;  %15983 = vmatmul.mubr.msk.bf16.vlgmr.msra.gmra.mrb[148].mxu1 %vm1860_vm5, %v19074_v56  ;;  %v15867_v34 = vcombine.high %v15667_v8, %v15707_v62  ;;  %v15866_v35 = vcombine.low %v15667_v8, %v15707_v62 }
 0x207   : > { %7407 = vmatpush1.bf16.msra.mxu0 %v15860_v40  ;;  %7450 = vmatpush1.bf16.msra.mxu1 %v15862_v0  ;;  %v15864_v0 = vcombine.low %v15666_v11, %v15706_v54  ;;  %v5847_v11 = vand.u32 %v15944_v46, %v17871_v38  ;;  %v5853_v54 = vand.u32 %v15946_v6, %v17871_v38 }
 0x208   : > { %7408 = vmatprep.subr.bf16.mxu0 %v5838_v21  ;;  %7451 = vmatprep.subr.bf16.mxu1 %v5844_v7 }
 0x209   : > { %v19503_v2 = vpop.f32.mrb[44].mxu0  ;;  %7438 = vmatprep.mubr.bf16.mxu0 %v23490_v63  ;;  %v19506_v60 = vpop.f32.mrb[44].mxu1  ;;  %7481 = vmatprep.mubr.bf16.mxu1 %v23490_v63 }
 0x20a   : > { %v19508_v30 = vpop.f32.mrb[45].mxu0  ;;  %v19511_v40 = vpop.f32.mrb[45].mxu1 }
 0x20b   : > { %v19513_v21 = vpop.f32.mrb[46].mxu0  ;;  %7409 = vmatpush1.bf16.msra.mxu0 %v5835_v3  ;;  %v19515_v25 = vpop.f32.mrb[46].mxu1  ;;  %7452 = vmatpush1.bf16.msra.mxu1 %v5841_v20 }
 0x20c   : > { %v19517_v7 = vpop.f32.mrb[47].mxu0  ;;  %7492 = vmatprep.subr.bf16.mxu0 %v15865_v1  ;;  %v19520_v27 = vpop.f32.mrb[47].mxu1  ;;  %7535 = vmatprep.subr.bf16.mxu1 %v15867_v34 }
 0x20e   : > { %15984 = vmatmul.mubr.msk.bf16.vlgmr.msra.gmra.mrb[152].mxu0 %vm1860_vm5, %v19074_v56  ;;  %15985 = vmatmul.mubr.msk.bf16.vlgmr.msra.gmra.mrb[152].mxu1 %vm1860_vm5, %v19074_v56 }
 0x20f   : > { %7493 = vmatpush1.bf16.msra.mxu0 %v15864_v0  ;;  %7536 = vmatpush1.bf16.msra.mxu1 %v15866_v35  ;;  %v17073_v0 = vmov 1966171168  }
 0x210   : > { %7494 = vmatprep.subr.bf16.mxu0 %v5850_v28  ;;  %7537 = vmatprep.subr.bf16.mxu1 %v5856_v61  ;;  %v4087_v46 = vunpack.c.l.s4 %v17073_v0 }
 0x211   : > { %v19529_v8 = vpop.f32.mrb[48].mxu0  ;;  %7524 = vmatprep.mubr.bf16.mxu0 %v23490_v63  ;;  %v19532_v34 = vpop.f32.mrb[48].mxu1  ;;  %7567 = vmatprep.mubr.bf16.mxu1 %v23490_v63 }
 0x212   : > { %v19534_v10 = vpop.f32.mrb[49].mxu0  ;;  %v19537_v29 = vpop.f32.mrb[49].mxu1 }
 0x213   : > { %v19539_v31 = vpop.f32.mrb[50].mxu0  ;;  %7495 = vmatpush1.bf16.msra.mxu0 %v5847_v11  ;;  %v19541_v35 = vpop.f32.mrb[50].mxu1  ;;  %7538 = vmatpush1.bf16.msra.mxu1 %v5853_v54  ;;  %v4089_v11 = vlaneseq }
 0x214   : > { %v19543_v38 = vpop.f32.mrb[51].mxu0  ;;  %v19545_v28 = vpop.f32.mrb[51].mxu1 }
 0x216   : > { %15986 = vmatmul.mubr.msk.bf16.vlgmr.msra.gmra.mrb[156].mxu0 %vm1860_vm5, %v19074_v56  ;;  %15987 = vmatmul.mubr.msk.bf16.vlgmr.msra.gmra.mrb[156].mxu1 %vm1860_vm5, %v19074_v56  ;;  %vm4582_vm5 = vsmask.f32 5376 }
 0x217   : > { %vm19734_vm7 = vmand %vm4581_vm4, %vm4582_vm5 }
 0x218   : > { %vm19767_vm5 = vmor %vm19734_vm7, %vm4580_vm1  ;;  %vm8304_vm1 = vsmask.f32 7942 }
 0x219   : > { %v19551_v61 = vpop.f32.mrb[52].mxu0  ;;  %v19553_v63 = vpop.f32.mrb[52].mxu1  ;;  %vm4588_vm12 = vmor %vm19774_vm9, %vm19767_vm5  ;;  %vm8307_vm5 = vsmask.f32 7946 }
 0x21a   : > { %23519 = vst [vmem:[#allocation66_spill] sm:$0xff] %v19551_v61  ;;  %23520 = vst [vmem:[#allocation67_spill] sm:$0xff] %v19553_v63  ;;  %v19555_v6 = vpop.f32.mrb[53].mxu0  ;;  %v19557_v62 = vpop.f32.mrb[53].mxu1 }
 0x21b   : > { %23521 = vst [vmem:[#allocation68_spill] sm:$0xff] %v19555_v6  ;;  %23522 = vst [vmem:[#allocation69_spill] sm:$0xff] %v19557_v62  ;;  %v19559_v48 = vpop.f32.mrb[54].mxu0  ;;  %v19561_v44 = vpop.f32.mrb[54].mxu1  ;;  %v4090_v62 = vshrl.u32 %v4089_v11, 7 }
 0x21c   : > { %23523 = vst [vmem:[#allocation70_spill] sm:$0xff] %v19559_v48  ;;  %23524 = vst [vmem:[#allocation71_spill] sm:$0xff] %v19561_v44  ;;  %v19563_v3 = vpop.f32.mrb[55].mxu0  ;;  %v19565_v20 = vpop.f32.mrb[55].mxu1 }
 0x21d   : > { %23525 = vst [vmem:[#allocation72_spill] sm:$0xff] %v19563_v3  ;;  %23526 = vst [vmem:[#allocation73_spill] sm:$0xff] %v19565_v20  ;;  %v4088_v20 = vunpack.c.0.s8 %v4087_v46 }
 0x21e   : > { %vm19846_vm3 = vmor %vm19813_vm15, %vm4588_vm12  ;;  %vm8313_vm12 = vsmask.f32 7954 }
 0x21f   : > { %vm20487_vm9 = vmand %vm4565_vm8, %vm8304_vm1  ;;  %vm8319_vm1 = vsmask.f32 7962 }
 0x220   : > { %vm20526_vm15 = vmand %vm4569_vm11, %vm8307_vm5  ;;  %vm8322_vm5 = vsmask.f32 7966 }
 0x221   : > { %v19567_v1 = vpop.f32.mrb[56].mxu0  ;;  %v19569_v41 = vpop.f32.mrb[56].mxu1 }
 0x222   : > { %23527 = vst [vmem:[#allocation74_spill] sm:$0xff] %v19567_v1  ;;  %23528 = vst [vmem:[#allocation75_spill] sm:$0xff] %v19569_v41  ;;  %v19571_v56 = vpop.f32.mrb[57].mxu0  ;;  %v19573_v54 = vpop.f32.mrb[57].mxu1 }
 0x223   : > { %23529 = vst [vmem:[#allocation76_spill] sm:$0xff] %v19571_v56  ;;  %23530 = vst [vmem:[#allocation77_spill] sm:$0xff] %v19573_v54  ;;  %v19575_v26 = vpop.f32.mrb[58].mxu0  ;;  %v19577_v48 = vpop.f32.mrb[58].mxu1 }
 0x224   : > { %23531 = vst [vmem:[#allocation78_spill] sm:$0xff] %v19575_v26  ;;  %23532 = vst [vmem:[#allocation79_spill] sm:$0xff] %v19577_v48  ;;  %v19579_v44 = vpop.f32.mrb[59].mxu0  ;;  %v19581_v3 = vpop.f32.mrb[59].mxu1  ;;  %v19586_v26 = vsub.s32 %v4088_v20, %v4090_v62  ;;  %v23540_v62 = vld [vmem:[#allocation7_spill] sm:$0xff]  ;;  %v23541_v20 = vld [vmem:[#allocation36_spill] sm:$0xff] }
 0x225   : > { %23533 = vst [vmem:[#allocation80_spill] sm:$0xff] %v19579_v44  ;;  %23534 = vst [vmem:[#allocation81_spill] sm:$0xff] %v19581_v3  ;;  %v19583_v1 = vpop.permute.xlu0 %3950 }
 0x226   : > { %23535 = vst [vmem:[#allocation82_spill] sm:$0xff] %v19583_v1 }
 0x229   : > { %v3432_v0 = vpop.f32.mrb[60].mxu0  ;;  %v3475_v54 = vpop.f32.mrb[60].mxu1 }
 0x22a   : > { %v3868_v56 = vmax.f32 %v19453_v32, %v3432_v0  ;;  %v3434_v41 = vpop.f32.mrb[61].mxu0  ;;  %v3870_v46 = vmax.f32 %v19456_v33, %v3475_v54  ;;  %v3477_v3 = vpop.f32.mrb[61].mxu1  ;;  %v23542_v0 = vmax.f32 %v23540_v62, %v23541_v20 }
 0x22b   : > { %v3869_v11 = vmax.f32 %v19458_v12, %v3434_v41  ;;  %v3436_v48 = vpop.f32.mrb[62].mxu0  ;;  %v3871_v63 = vmax.f32 %v19461_v5, %v3477_v3  ;;  %v3479_v33 = vpop.f32.mrb[62].mxu1  ;;  %v23543_v12 = vmax.f32 %v18839_v51, %v19096_v24  ;;  %v23547_v3 = vmax.f32 %v18846_v55, %v19107_v19 }
 0x22c   : > { %v3908_v6 = vmax.f32 %v23542_v0, %v3868_v56  ;;  %v3888_v61 = vmax.f32 %v19463_v9, %v3436_v48  ;;  %v3438_v54 = vpop.f32.mrb[63].mxu0  ;;  %v3890_v43 = vmax.f32 %v19465_v4, %v3479_v33  ;;  %v3481_v62 = vpop.f32.mrb[63].mxu1  ;;  %v23546_v9 = vmax.f32 %v18844_v53, %v19105_v39  ;;  %v23552_v53 = vld [vmem:[#allocation38_spill] sm:$0xff] }
 0x22d   : > { %v3910_v41 = vmax.f32 %v23543_v12, %v3870_v46  ;;  %v3909_v50 = vmax.f32 %v23544_v22, %v3869_v11  ;;  %v3889_v56 = vmax.f32 %v19467_v57, %v3438_v54  ;;  %v19613_v5 = vpop.permute.xlu0 %3955  ;;  %v3891_v24 = vmax.f32 %v19476_v42, %v3481_v62  ;;  %v23548_v22 = vld [vmem:[#allocation8_spill] sm:$0xff]  ;;  %v23551_v46 = vld [vmem:[#allocation9_spill] sm:$0xff] }
 0x22e   : > { %23545 = vst [vmem:[#allocation7_spill] sm:$0xff] %v19613_v5  ;;  %v3911_v48 = vmax.f32 %v23546_v9, %v3871_v63  ;;  %v3928_v51 = vmax.f32 %v23547_v3, %v3888_v61  ;;  %v3958_v52 = vadd.f32 %v19583_v1, %v3908_v6  ;;  %v23550_v4 = vmax.f32 %v23548_v22, %v23549_v13  ;;  %v23556_v61 = vld [vmem:[#allocation10_spill] sm:$0xff]  ;;  %v23557_v6 = vld [vmem:[#allocation39_spill] sm:$0xff] }
 0x22f   : > { %v23553_v39 = vmax.f32 %v23551_v46, %v23552_v53  ;;  %v3959_v55 = vadd.f32 %v19583_v1, %v3909_v50  ;;  %v3960_v19 = vadd.f32 %v19583_v1, %v3910_v41  ;;  %v23558_v11 = vmax.f32 %v23556_v61, %v23557_v6  ;;  %v23563_v46 = vld [vmem:[#allocation11_spill] sm:$0xff]  ;;  %v23564_v53 = vld [vmem:[#allocation40_spill] sm:$0xff] }
 0x230   : > { %v3930_v57 = vmax.f32 %v23550_v4, %v3890_v43  ;;  %v3961_v43 = vadd.f32 %v19583_v1, %v3911_v48  ;;  %v3998_v0 = vmax.f32 %v3958_v52, 0.0  ;;  %v19646_v33 = vadd.f32 %v19613_v5, %v3928_v51 }
 0x231   : > { %v3929_v63 = vmax.f32 %v23553_v39, %v3889_v56  ;;  %v3931_v20 = vmax.f32 %v23558_v11, %v3891_v24  ;;  %v3518_v50 = vpop.f32.mrb[64].mxu0  ;;  %v3999_v54 = vmax.f32 %v3959_v55, 0.0  ;;  %v4000_v12 = vmax.f32 %v3960_v19, 0.0  ;;  %v3561_v9 = vpop.f32.mrb[64].mxu1 }
 0x232   : > { %v19652_v56 = vadd.f32 %v19613_v5, %v3930_v57  ;;  %v3872_v62 = vmax.f32 %v19503_v2, %v3518_v50  ;;  %v3520_v3 = vpop.f32.mrb[65].mxu0  ;;  %v4001_v48 = vmax.f32 %v3961_v43, 0.0  ;;  %v4018_v52 = vmax.f32 %v19646_v33, 0.0  ;;  %v3563_v13 = vpop.f32.mrb[65].mxu1 }
 0x233   : > { %v19649_v41 = vadd.f32 %v19613_v5, %v3929_v63  ;;  %v19667_v24 = vadd.f32 %v19613_v5, %v3931_v20  ;;  %v3874_v2 = vmax.f32 %v19506_v60, %v3561_v9  ;;  %v3873_v22 = vmax.f32 %v19508_v30, %v3520_v3  ;;  %v3522_v4 = vpop.f32.mrb[66].mxu0  ;;  %v3565_v19 = vpop.f32.mrb[66].mxu1 }
 0x234   : > { %v15584_v32 = vpack.c.bf16 %v3999_v54, %v3998_v0  ;;  %v23565_v39 = vmax.f32 %v23563_v46, %v23564_v53  ;;  %v3875_v55 = vmax.f32 %v19511_v40, %v3563_v13  ;;  %v15586_v60 = vpack.c.bf16 %v4001_v48, %v4000_v12  ;;  %v3524_v42 = vpop.f32.mrb[67].mxu0  ;;  %v3567_v40 = vpop.f32.mrb[67].mxu1 }
 0x235   : > { %v4019_v57 = vmax.f32 %v19649_v41, 0.0  ;;  %v3892_v30 = vmax.f32 %v19513_v21, %v3522_v4  ;;  %v23566_v61 = vmax.f32 %v18889_v15, %v19168_v59  ;;  %v23567_v11 = vmax.f32 %v18891_v16, %v19170_v37  ;;  %v23575_v41 = vld [vmem:[#allocation41_spill] sm:$0xff] }
 0x236   : > { %v3912_v63 = vmax.f32 %v23565_v39, %v3872_v62  ;;  %v4092_v43 = vrot.slane %v15584_v32, %v19586_v26  ;;  %v3894_v0 = vmax.f32 %v19515_v25, %v3565_v19  ;;  %v23568_v21 = vmax.f32 %v18894_v17, %v19179_v36  ;;  %v23574_v36 = vld [vmem:[#allocation12_spill] sm:$0xff]  ;;  %v23578_v39 = vld [vmem:[#allocation42_spill] sm:$0xff] }
 0x237   : > { %v3914_v6 = vmax.f32 %v23566_v61, %v3874_v2  ;;  %v3913_v20 = vmax.f32 %v23567_v11, %v3873_v22  ;;  %v4106_v12 = vrot.slane %v15586_v60, %v19586_v26  ;;  %v23571_v15 = vmax.f32 %v18896_v18, %v19181_v58 }
 0x238   : > { %v3962_v50 = vadd.f32 %v19583_v1, %v3912_v63  ;;  %v3915_v54 = vmax.f32 %v23568_v21, %v3875_v55  ;;  %v23576_v62 = vmax.f32 %v23574_v36, %v23575_v41  ;;  %v3893_v3 = vmax.f32 %v19517_v7, %v3524_v42  ;;  %v23577_v7 = vld [vmem:[#allocation13_spill] sm:$0xff] }
 0x239   : > { %v3932_v16 = vmax.f32 %v23571_v15, %v3892_v30  ;;  %v3964_v37 = vadd.f32 %v19583_v1, %v3914_v6  ;;  %v3963_v25 = vadd.f32 %v19583_v1, %v3913_v20  ;;  %v4142_v18 = vcombine.low %v4092_v43, %v4106_v12  ;;  %v3604_v44 = vpop.f32.mrb[68].mxu0  ;;  %v3647_v60 = vpop.f32.mrb[68].mxu1 }
 0x23a   : > { %v3934_v9 = vmax.f32 %v23576_v62, %v3894_v0  ;;  %v4002_v48 = vmax.f32 %v3962_v50, 0.0  ;;  %v3965_v58 = vadd.f32 %v19583_v1, %v3915_v54  ;;  %v4143_v51 = vcombine.high %v4092_v43, %v4106_v12  ;;  %v3606_v30 = vpop.f32.mrb[69].mxu0  ;;  %v19739_v20 = vpop.f32.mrb[69].mxu1 }
 0x23b   : > { %v4004_v2 = vmax.f32 %v3964_v37, 0.0  ;;  %v4003_v22 = vmax.f32 %v3963_v25, 0.0  ;;  %v3982_v13 = vadd.f32 %v19613_v5, %v3932_v16  ;;  %v4156_v46 = vrot.slane %v4142_v18, %v19586_v26  ;;  %v19741_v43 = vpop.f32.mrb[70].mxu0  ;;  %v19746_v12 = vpop.f32.mrb[70].mxu1  ;;  %v23582_v37 = vld [vmem:[#allocation14_spill] sm:$0xff]  ;;  %v23583_v25 = vld [vmem:[#allocation43_spill] sm:$0xff] }
 0x23c   : > { %v3984_v32 = vadd.f32 %v19613_v5, %v3934_v9  ;;  %v4005_v4 = vmax.f32 %v3965_v58, 0.0  ;;  %v4170_v53 = vrot.slane %v4143_v51, %v19586_v26  ;;  %v23579_v63 = vmax.f32 %v23577_v7, %v23578_v39  ;;  %v19748_v15 = vpop.f32.mrb[71].mxu0  ;;  %v19757_v62 = vpop.f32.mrb[71].mxu1 }
 0x23d   : > { %v15588_v19 = vpack.c.bf16 %v4003_v22, %v4002_v48  ;;  %v4022_v61 = vmax.f32 %v3982_v13, 0.0  ;;  %v3895_v11 = vmax.f32 %v19520_v27, %v3567_v40  ;;  %v4020_v21 = vmax.f32 %v19652_v56, 0.0  ;;  %v23590_v48 = vld [vmem:[#allocation44_spill] sm:$0xff] }
 0x23e   : > { %v3933_v55 = vmax.f32 %v23579_v63, %v3893_v3  ;;  %v4024_v6 = vmax.f32 %v3984_v32, 0.0  ;;  %v15590_v0 = vpack.c.bf16 %v4005_v4, %v4004_v2  ;;  %v4021_v54 = vmax.f32 %v19667_v24, 0.0  ;;  %v23589_v3 = vld [vmem:[#allocation15_spill] sm:$0xff] }
 0x23f   : > { %v4120_v16 = vrot.slane %v15588_v19, %v19586_v26  ;;  %v23584_v27 = vmax.f32 %v23582_v37, %v23583_v25  ;;  %v15585_v36 = vpack.c.bf16 %v4019_v57, %v4018_v52  ;;  %v3876_v41 = vmax.f32 %v19529_v8, %v3604_v44 }
 0x240   : > { %v3983_v50 = vadd.f32 %v19613_v5, %v3933_v55  ;;  %v4134_v56 = vrot.slane %v15590_v0, %v19586_v26  ;;  %v15587_v33 = vpack.c.bf16 %v4021_v54, %v4020_v21  ;;  %v3878_v52 = vmax.f32 %v19532_v34, %v3647_v60 }
 0x241   : > { %v3935_v40 = vmax.f32 %v23584_v27, %v3895_v11  ;;  %v4099_v17 = vrot.slane %v15585_v36, %v19586_v26  ;;  %v23591_v58 = vmax.f32 %v23589_v3, %v23590_v48  ;;  %v3877_v51 = vmax.f32 %v19534_v10, %v3606_v30  ;;  %v19796_v55 = vpop.f32.mrb[72].mxu0  ;;  %v4629_v36 = vld [vmem:[#allocation2 + $0x50] sm:$0xff] }
 0x242   : > { %v4023_v9 = vmax.f32 %v3983_v50, 0.0  ;;  %v4146_v2 = vcombine.low %v4120_v16, %v4134_v56  ;;  %v4147_v22 = vcombine.high %v4120_v16, %v4134_v56  ;;  %v4113_v34 = vrot.slane %v15587_v33, %v19586_v26  ;;  %v4602_v48 = vld [vmem:[#allocation2 + $0x14] sm:$0xff] }
 0x243   : > { %v3985_v57 = vadd.f32 %v19613_v5, %v3935_v40  ;;  %v3916_v18 = vmax.f32 %v23591_v58, %v3876_v41  ;;  %v23592_v4 = vmax.f32 %v18939_v45, %v19242_v23  ;;  %v23593_v39 = vmax.f32 %v18941_v47, %v19244_v14  ;;  %v19807_v45 = vpop.f32.mrb[72].mxu1  ;;  %v19809_v47 = vpop.f32.mrb[73].mxu0  ;;  %v4593_v40 = vld [vmem:[#allocation2] sm:$0xff]  ;;  %v4647_v58 = vld [vmem:[#allocation2 + $0x78] sm:$0xff] }
 0x244   : > { %v15589_v13 = vpack.c.bf16 %v4023_v9, %v4022_v61  ;;  %v4184_v10 = vrot.slane %v4146_v2, %v19586_v26  ;;  %v4198_v60 = vrot.slane %v4147_v22, %v19586_v26  ;;  %v4144_v23 = vcombine.low %v4099_v17, %v4113_v34  ;;  %v19821_v0 = vpop.f32.mrb[73].mxu1  ;;  %v19823_v50 = vpop.f32.mrb[74].mxu0 }
 0x245   : > { %v4025_v32 = vmax.f32 %v3985_v57, 0.0  ;;  %v19786_v44 = vadd.f32 %v19583_v1, %v3916_v18  ;;  %v3918_v7 = vmax.f32 %v23592_v4, %v3878_v52  ;;  %v19794_v63 = vmax.f32 %v23593_v39, %v3877_v51  ;;  %v19825_v25 = vpop.f32.mrb[74].mxu1  ;;  %v19827_v27 = vpop.f32.mrb[75].mxu0 }
 0x246   : > { %v19805_v30 = vrot.slane %v15589_v13, %v19586_v26  ;;  %v4145_v42 = vcombine.high %v4099_v17, %v4113_v34  ;;  %v4206_v21 = vcombine.low %v4156_v46, %v4184_v10  ;;  %v4207_v54 = vcombine.high %v4156_v46, %v4184_v10  ;;  %v19837_v46 = vpop.f32.mrb[75].mxu1  ;;  %v4620_v13 = vld [vmem:[#allocation2 + $0x3c] sm:$0xff]  ;;  %v4638_v34 = vld [vmem:[#allocation2 + $0x64] sm:$0xff] }
 0x247   : > { %v15591_v19 = vpack.c.bf16 %v4025_v32, %v4024_v6  ;;  %v4006_v61 = vmax.f32 %v19786_v44, 0.0  ;;  %v19819_v11 = vadd.f32 %v19583_v1, %v3918_v7  ;;  %v4210_v16 = vcombine.low %v4170_v53, %v4198_v60  ;;  %v4611_v6 = vld [vmem:[#allocation2 + $0x28] sm:$0xff] }
 0x248   : > { %v4211_v37 = vcombine.high %v4170_v53, %v4198_v60  ;;  %v19831_v56 = vrot.slane %v4144_v23, %v19586_v26  ;;  %v19834_v9 = vrot.slane %v4145_v42, %v19586_v26  ;;  %v4421_v53 = vunpack.i.h.s16 %v4206_v21  ;;  %v4656_v32 = vld [vmem:[#allocation2 + $0x8c] sm:$0xff] }
 0x249   : > { %v4141_v41 = vrot.slane %v15591_v19, %v19586_v26  ;;  %v4008_v33 = vmax.f32 %v19819_v11, 0.0  ;;  %v4427_v52 = vunpack.i.h.s16 %v4210_v16  ;;  %v4433_v57 = vunpack.i.h.s16 %v4207_v54  ;;  %v19858_v14 = vpop.f32.mrb[76].mxu0 }
 0x24a   : > { %v4439_v17 = vunpack.i.h.s16 %v4211_v37  ;;  %v15604_v18 = vpack.i.b16 %v4206_v21, %v4206_v21  ;;  %v15607_v51 = vpack.i.b16 %v4210_v16, %v4210_v16  ;;  %v15610_v2 = vpack.i.b16 %v4207_v54, %v4207_v54  ;;  %v19868_v16 = vpop.f32.mrb[76].mxu1 }
 0x24b   : > { %v15613_v22 = vpack.i.b16 %v4211_v37, %v4211_v37  ;;  %v4469_v4 = vpack.i.b16 %v4421_v53, %v4421_v53  ;;  %v4475_v8 = vpack.i.b16 %v4427_v52, %v4427_v52  ;;  %v4481_v7 = vpack.i.b16 %v4433_v57, %v4433_v57  ;;  %v19870_v37 = vpop.f32.mrb[77].mxu0  ;;  %v19878_v52 = vpop.f32.mrb[77].mxu1 }
 0x24c   : > { %v4487_v24 = vpack.i.b16 %v4439_v17, %v4439_v17  ;;  %v4594_v39 = vsel %vm19846_vm3, %v15604_v18, %v4593_v40  ;;  %v4612_v10 = vsel %vm19846_vm3, %v15607_v51, %v4611_v6  ;;  %v4630_v60 = vsel %vm19846_vm3, %v15610_v2, %v4629_v36  ;;  %v19880_v57 = vpop.f32.mrb[78].mxu0 }
 0x24d   : > { %v4648_v23 = vsel %vm19846_vm3, %v15613_v22, %v4647_v58  ;;  %4595 = vst [vmem:[#allocation2] sm:$0xff] %v4594_v39  ;;  %v4603_v19 = vsel %vm19846_vm3, %v4469_v4, %v4602_v48  ;;  %4613 = vst [vmem:[#allocation2 + $0x28] sm:$0xff] %v4612_v10  ;;  %v4621_v42 = vsel %vm19846_vm3, %v4475_v8, %v4620_v13 }
 0x24e   : > { %4631 = vst [vmem:[#allocation2 + $0x50] sm:$0xff] %v4630_v60  ;;  %v4639_v21 = vsel %vm19846_vm3, %v4481_v7, %v4638_v34  ;;  %4649 = vst [vmem:[#allocation2 + $0x78] sm:$0xff] %v4648_v23  ;;  %v4657_v54 = vsel %vm19846_vm3, %v4487_v24, %v4656_v32  ;;  %v4148_v40 = vcombine.low %v19805_v30, %v4141_v41  ;;  %v23606_v34 = vld [vmem:[#allocation18_spill] sm:$0xff]  ;;  %v23607_v32 = vld [vmem:[#allocation48_spill] sm:$0xff] }
 0x24f   : > { %4604 = vst [vmem:[#allocation2 + $0x14] sm:$0xff] %v4603_v19  ;;  %4622 = vst [vmem:[#allocation2 + $0x3c] sm:$0xff] %v4621_v42  ;;  %v4149_v6 = vcombine.high %v19805_v30, %v4141_v41  ;;  %v3967_v36 = vadd.f32 %v19583_v1, %v19794_v63  ;;  %v3879_v53 = vmax.f32 %v19537_v29, %v19739_v20  ;;  %v19890_v63 = vpop.f32.mrb[78].mxu1  ;;  %v19892_v41 = vpop.f32.mrb[79].mxu0  ;;  %v23609_v7 = vld [vmem:[#allocation19_spill] sm:$0xff]  ;;  %v23610_v24 = vld [vmem:[#allocation49_spill] sm:$0xff] }
 0x250   : > { %4640 = vst [vmem:[#allocation2 + $0x64] sm:$0xff] %v4639_v21  ;;  %4658 = vst [vmem:[#allocation2 + $0x8c] sm:$0xff] %v4657_v54  ;;  %v3896_v17 = vmax.f32 %v19539_v31, %v19741_v43  ;;  %v3898_v48 = vmax.f32 %v19541_v35, %v19746_v12  ;;  %v3897_v58 = vmax.f32 %v19543_v38, %v19748_v15  ;;  %v23598_v31 = vld [vmem:[#allocation45_spill] sm:$0xff]  ;;  %v19899_v35 = vpop.f32.mrb[79].mxu1  ;;  %v23600_v12 = vld [vmem:[#allocation16_spill] sm:$0xff] }
 0x251   : > { %v3899_v30 = vmax.f32 %v19545_v28, %v19757_v62  ;;  %v4191_v29 = vrot.slane %v4148_v40, %v19586_v26  ;;  %v4205_v20 = vrot.slane %v4149_v6, %v19586_v26  ;;  %v4007_v18 = vmax.f32 %v3967_v36, 0.0  ;;  %v23601_v38 = vld [vmem:[#allocation46_spill] sm:$0xff]  ;;  %v23603_v28 = vld [vmem:[#allocation17_spill] sm:$0xff]  ;;  %v23604_v62 = vld [vmem:[#allocation47_spill] sm:$0xff] }
 0x252   : > { %v23599_v43 = vmax.f32 %v18944_v49, %v23598_v31  ;;  %v23602_v15 = vmax.f32 %v23600_v12, %v23601_v38  ;;  %v23605_v22 = vmax.f32 %v23603_v28, %v23604_v62  ;;  %v23608_v4 = vmax.f32 %v23606_v34, %v23607_v32  ;;  %v4665_v42 = vld [vmem:[#allocation2 + $0xa0] sm:$0xff]  ;;  %v4683_v21 = vld [vmem:[#allocation2 + $0xc8] sm:$0xff]  ;;  %v19928_v12 = vpop.f32.mrb[80].mxu1 }
 0x253   : > { %v23611_v39 = vmax.f32 %v23609_v7, %v23610_v24  ;;  %v4208_v49 = vcombine.low %v19831_v56, %v4191_v29  ;;  %v4209_v60 = vcombine.high %v19831_v56, %v4191_v29  ;;  %v4212_v23 = vcombine.low %v19834_v9, %v4205_v20  ;;  %v19926_v29 = vpop.f32.mrb[80].mxu0  ;;  %v4692_v31 = vld [vmem:[#allocation2 + $0xdc] sm:$0xff] }
 0x254   : > { %v3919_v51 = vmax.f32 %v23599_v43, %v3879_v53  ;;  %v3936_v2 = vmax.f32 %v23602_v15, %v3896_v17  ;;  %v3938_v13 = vmax.f32 %v23605_v22, %v3898_v48  ;;  %v3937_v8 = vmax.f32 %v23608_v4, %v3897_v58  ;;  %v4674_v58 = vld [vmem:[#allocation2 + $0xb4] sm:$0xff]  ;;  %v4710_v43 = vld [vmem:[#allocation2 + $0x104] sm:$0xff]  ;;  %v19930_v38 = vpop.f32.mrb[81].mxu0  ;;  %v19932_v22 = vpop.f32.mrb[81].mxu1 }
 0x255   : > { %v3939_v10 = vmax.f32 %v23611_v39, %v3899_v30  ;;  %v4213_v19 = vcombine.high %v19834_v9, %v4205_v20  ;;  %v15592_v54 = vpack.c.bf16 %v4007_v18, %v4006_v61  ;;  %v4445_v53 = vunpack.i.h.s16 %v4208_v49  ;;  %v4701_v30 = vld [vmem:[#allocation2 + $0xf0] sm:$0xff]  ;;  %v4719_v9 = vld [vmem:[#allocation2 + $0x118] sm:$0xff]  ;;  %v19944_v24 = vpop.f32.mrb[82].mxu1 }
 0x256   : > { %v3969_v40 = vadd.f32 %v19583_v1, %v3919_v51  ;;  %v19921_v6 = vadd.f32 %v19613_v5, %v3936_v2  ;;  %v19924_v36 = vadd.f32 %v19613_v5, %v3938_v13  ;;  %v4451_v17 = vunpack.i.h.s16 %v4212_v23  ;;  %v4728_v51 = vld [vmem:[#allocation2 + $0x12c] sm:$0xff]  ;;  %v19934_v13 = vpop.f32.mrb[82].mxu0  ;;  %23612 = vst [vmem:[#allocation36_spill] sm:$0xff] %v19944_v24 }
 0x257   : > { %v4457_v56 = vunpack.i.h.s16 %v4209_v60  ;;  %v4463_v48 = vunpack.i.h.s16 %v4213_v19  ;;  %v15616_v20 = vpack.i.b16 %v4208_v49, %v4208_v49  ;;  %v15619_v44 = vpack.i.b16 %v4212_v23, %v4212_v23  ;;  %v19946_v39 = vpop.f32.mrb[83].mxu0 }
 0x258   : > { %v15622_v61 = vpack.i.b16 %v4209_v60, %v4209_v60  ;;  %v15625_v18 = vpack.i.b16 %v4213_v19, %v4213_v19  ;;  %v4493_v15 = vpack.i.b16 %v4445_v53, %v4445_v53  ;;  %v4499_v2 = vpack.i.b16 %v4451_v17, %v4451_v17  ;;  %23613 = vst [vmem:[#allocation8_spill] sm:$0xff] %v19946_v39 }
 0x259   : > { %v4505_v28 = vpack.i.b16 %v4457_v56, %v4457_v56  ;;  %v4511_v62 = vpack.i.b16 %v4463_v48, %v4463_v48  ;;  %v4666_v34 = vsel %vm19846_vm3, %v15616_v20, %v4665_v42  ;;  %v4684_v32 = vsel %vm19846_vm3, %v15619_v44, %v4683_v21  ;;  %v19956_v42 = vpop.f32.mrb[83].mxu1  ;;  %v23616_v20 = vld [vmem:[#allocation67_spill] sm:$0xff] }
 0x25a   : > { %v4702_v4 = vsel %vm19846_vm3, %v15622_v61, %v4701_v30  ;;  %v4720_v7 = vsel %vm19846_vm3, %v15625_v18, %v4719_v9  ;;  %4667 = vst [vmem:[#allocation2 + $0xa0] sm:$0xff] %v4666_v34  ;;  %v4675_v49 = vsel %vm19846_vm3, %v4493_v15, %v4674_v58  ;;  %4685 = vst [vmem:[#allocation2 + $0xc8] sm:$0xff] %v4684_v32  ;;  %v4009_v53 = vmax.f32 %v3969_v40, 0.0  ;;  %v23615_v30 = vld [vmem:[#allocation66_spill] sm:$0xff]  ;;  %v23627_v34 = vld [vmem:[#allocation52_spill] sm:$0xff] }
 0x25b   : > { %v4693_v60 = vsel %vm19846_vm3, %v4499_v2, %v4692_v31  ;;  %4703 = vst [vmem:[#allocation2 + $0xf0] sm:$0xff] %v4702_v4  ;;  %v4711_v23 = vsel %vm19846_vm3, %v4505_v28, %v4710_v43  ;;  %4721 = vst [vmem:[#allocation2 + $0x118] sm:$0xff] %v4720_v7  ;;  %v4729_v19 = vsel %vm19846_vm3, %v4511_v62, %v4728_v51  ;;  %v4026_v17 = vmax.f32 %v19921_v6, 0.0  ;;  %v23618_v6 = vld [vmem:[#allocation69_spill] sm:$0xff]  ;;  %v23620_v43 = vld [vmem:[#allocation20_spill] sm:$0xff] }
 0x25c   : > { %23614 = vst [vmem:[#allocation37_spill] sm:$0xff] %v19956_v42  ;;  %4676 = vst [vmem:[#allocation2 + $0xb4] sm:$0xff] %v4675_v49  ;;  %v4228_v21 = vrot.slane %v15592_v54, %v19586_v26  ;;  %v4028_v56 = vmax.f32 %v19924_v36, 0.0  ;;  %v3987_v48 = vadd.f32 %v19613_v5, %v3937_v8  ;;  %v3989_v58 = vadd.f32 %v19613_v5, %v3939_v10  ;;  %v23617_v54 = vld [vmem:[#allocation68_spill] sm:$0xff]  ;;  %v23619_v36 = vld [vmem:[#allocation70_spill] sm:$0xff] }
 0x25d   : > { %4694 = vst [vmem:[#allocation2 + $0xdc] sm:$0xff] %v4693_v60  ;;  %4712 = vst [vmem:[#allocation2 + $0x104] sm:$0xff] %v4711_v23  ;;  %v3880_v9 = vmax.f32 %v23615_v30, %v19796_v55  ;;  %v3882_v44 = vmax.f32 %v23616_v20, %v19807_v45  ;;  %v15594_v61 = vpack.c.bf16 %v4009_v53, %v4008_v33  ;;  %v23621_v51 = vld [vmem:[#allocation50_spill] sm:$0xff]  ;;  %v23623_v2 = vld [vmem:[#allocation21_spill] sm:$0xff]  ;;  %v19981_v33 = vpop.f32.mrb[84].mxu0 }
 0x25e   : > { %4730 = vst [vmem:[#allocation2 + $0x12c] sm:$0xff] %v4729_v19  ;;  %v3881_v40 = vmax.f32 %v23617_v54, %v19809_v47  ;;  %v3883_v18 = vmax.f32 %v23618_v6, %v19821_v0  ;;  %v3900_v8 = vmax.f32 %v23619_v36, %v19823_v50  ;;  %v4027_v31 = vmax.f32 %v3987_v48, 0.0  ;;  %v23624_v45 = vld [vmem:[#allocation51_spill] sm:$0xff]  ;;  %v23626_v62 = vld [vmem:[#allocation22_spill] sm:$0xff]  ;;  %v23630_v50 = vld [vmem:[#allocation53_spill] sm:$0xff]  ;;  %v19993_v48 = vpop.f32.mrb[84].mxu1 }
 0x25f   : > { %v4029_v10 = vmax.f32 %v3989_v58, 0.0  ;;  %v23622_v55 = vmax.f32 %v23620_v43, %v23621_v51  ;;  %v23625_v28 = vmax.f32 %v23623_v2, %v23624_v45  ;;  %v4242_v47 = vrot.slane %v15594_v61, %v19586_v26  ;;  %v23629_v4 = vld [vmem:[#allocation23_spill] sm:$0xff]  ;;  %v23632_v60 = vld [vmem:[#allocation24_spill] sm:$0xff]  ;;  %v23633_v23 = vld [vmem:[#allocation54_spill] sm:$0xff]  ;;  %v19995_v58 = vpop.f32.mrb[85].mxu0  ;;  %v19999_v61 = vpop.f32.mrb[85].mxu1 }
 0x260   : > { %v23628_v0 = vmax.f32 %v23626_v62, %v23627_v34  ;;  %v23631_v7 = vmax.f32 %v23629_v4, %v23630_v50  ;;  %v23634_v19 = vmax.f32 %v23632_v60, %v23633_v23  ;;  %23635 = vst [vmem:[#allocation9_spill] sm:$0xff] %v19995_v58  ;;  %v15593_v30 = vpack.c.bf16 %v4027_v31, %v4026_v17  ;;  %v20001_v54 = vpop.f32.mrb[86].mxu0  ;;  %v23639_v50 = vld [vmem:[#allocation73_spill] sm:$0xff] }
 0x261   : > { %v3920_v15 = vmax.f32 %v23622_v55, %v3880_v9  ;;  %v3922_v11 = vmax.f32 %v23625_v28, %v3882_v44  ;;  %v15595_v9 = vpack.c.bf16 %v4029_v10, %v4028_v56  ;;  %23636 = vst [vmem:[#allocation38_spill] sm:$0xff] %v19999_v61  ;;  %v4279_v6 = vcombine.high %v4228_v21, %v4242_v47  ;;  %v20007_v43 = vpop.f32.mrb[87].mxu0  ;;  %v4734_v61 = vld [vmem:[#allocation2 + $0x13c] sm:$0xf] }
 0x262   : > { %v3921_v32 = vmax.f32 %v23628_v0, %v3881_v40  ;;  %v3923_v49 = vmax.f32 %v23631_v7, %v3883_v18  ;;  %v3940_v53 = vmax.f32 %v23634_v19, %v3900_v8  ;;  %v4278_v40 = vcombine.low %v4228_v21, %v4242_v47  ;;  %v20005_v8 = vpop.f32.mrb[86].mxu1  ;;  %v23637_v47 = vld [vmem:[#allocation71_spill] sm:$0xff]  ;;  %v23640_v19 = vld [vmem:[#allocation25_spill] sm:$0xff] }
 0x263   : > { %v3970_v20 = vadd.f32 %v19583_v1, %v3920_v15  ;;  %v3972_v44 = vadd.f32 %v19583_v1, %v3922_v11  ;;  %v4235_v17 = vrot.slane %v15593_v30, %v19586_v26  ;;  %v4249_v56 = vrot.slane %v15595_v9, %v19586_v26  ;;  %v20011_v51 = vpop.f32.mrb[87].mxu1 }
 0x264   : > { %v3971_v18 = vadd.f32 %v19583_v1, %v3921_v32  ;;  %v3973_v36 = vadd.f32 %v19583_v1, %v3923_v49  ;;  %v4292_v55 = vrot.slane %v4278_v40, %v19586_v26  ;;  %v4306_v21 = vrot.slane %v4279_v6, %v19586_v26  ;;  %v23638_v32 = vld [vmem:[#allocation72_spill] sm:$0xff] }
 0x265   : > { %v4010_v31 = vmax.f32 %v3970_v20, 0.0  ;;  %v4012_v10 = vmax.f32 %v3972_v44, 0.0  ;;  %v4280_v45 = vcombine.low %v4235_v17, %v4249_v56  ;;  %v4281_v28 = vcombine.high %v4235_v17, %v4249_v56  ;;  %v23643_v44 = vld [vmem:[#allocation26_spill] sm:$0xff]  ;;  %v23644_v40 = vld [vmem:[#allocation56_spill] sm:$0xff] }
 0x266   : > { %v4011_v15 = vmax.f32 %v3971_v18, 0.0  ;;  %v4013_v2 = vmax.f32 %v3973_v36, 0.0  ;;  %v3990_v11 = vadd.f32 %v19613_v5, %v3940_v53  ;;  %v3902_v62 = vmax.f32 %v23637_v47, %v19825_v25  ;;  %v23641_v53 = vld [vmem:[#allocation55_spill] sm:$0xff]  ;;  %v20031_v25 = vpop.f32.mrb[88].mxu0  ;;  %v23647_v36 = vld [vmem:[#allocation57_spill] sm:$0xff]  ;;  %v23652_v47 = vld [vmem:[#allocation76_spill] sm:$0xff] }
 0x267   : > { %v3901_v4 = vmax.f32 %v23638_v32, %v19827_v27  ;;  %v3903_v7 = vmax.f32 %v23639_v50, %v19837_v46  ;;  %v20023_v49 = vrot.slane %v4280_v45, %v19586_v26  ;;  %v20026_v60 = vrot.slane %v4281_v28, %v19586_v26  ;;  %v23646_v18 = vld [vmem:[#allocation27_spill] sm:$0xff] }
 0x268   : > { %v15596_v34 = vpack.c.bf16 %v4011_v15, %v4010_v31  ;;  %v15598_v0 = vpack.c.bf16 %v4013_v2, %v4012_v10  ;;  %v4030_v23 = vmax.f32 %v3990_v11, 0.0  ;;  %v23642_v30 = vmax.f32 %v23640_v19, %v23641_v53  ;;  %v20041_v31 = vpop.f32.mrb[88].mxu1  ;;  %v20043_v10 = vpop.f32.mrb[89].mxu0  ;;  %v23650_v2 = vld [vmem:[#allocation74_spill] sm:$0xff]  ;;  %v23651_v28 = vld [vmem:[#allocation75_spill] sm:$0xff] }
 0x269   : > { %v23645_v46 = vmax.f32 %v23643_v44, %v23644_v40  ;;  %v23648_v17 = vmax.f32 %v23646_v18, %v23647_v36  ;;  %23649 = vst [vmem:[#allocation10_spill] sm:$0xff] %v20043_v10  ;;  %v3884_v45 = vmax.f32 %v23650_v2, %v19858_v14  ;;  %v3886_v11 = vmax.f32 %v23651_v28, %v19868_v16  ;;  %v23658_v16 = vld [vmem:[#allocation58_spill] sm:$0xff]  ;;  %v23661_v40 = vld [vmem:[#allocation59_spill] sm:$0xff] }
 0x26a   : > { %v3942_v9 = vmax.f32 %v23642_v30, %v3902_v62  ;;  %v4256_v20 = vrot.slane %v15596_v34, %v19586_v26  ;;  %v4270_v27 = vrot.slane %v15598_v0, %v19586_v26  ;;  %v3885_v62 = vmax.f32 %v23652_v47, %v19870_v37  ;;  %v20052_v34 = vpop.f32.mrb[89].mxu1  ;;  %v20054_v0 = vpop.f32.mrb[90].mxu0  ;;  %v23657_v30 = vld [vmem:[#allocation28_spill] sm:$0xff]  ;;  %v23660_v37 = vld [vmem:[#allocation29_spill] sm:$0xff]  ;;  %v23663_v36 = vld [vmem:[#allocation30_spill] sm:$0xff] }
 0x26b   : > { %v3941_v6 = vmax.f32 %v23645_v46, %v3901_v4  ;;  %v3943_v56 = vmax.f32 %v23648_v17, %v3903_v7  ;;  %23653 = vst [vmem:[#allocation39_spill] sm:$0xff] %v20052_v34  ;;  %23654 = vst [vmem:[#allocation11_spill] sm:$0xff] %v20054_v0  ;;  %v20058_v19 = vpop.f32.mrb[90].mxu1  ;;  %v20060_v53 = vpop.f32.mrb[91].mxu0  ;;  %v23662_v46 = vmax.f32 %v23660_v37, %v23661_v40  ;;  %v23664_v17 = vld [vmem:[#allocation60_spill] sm:$0xff] }
 0x26c   : > { %v3992_v15 = vadd.f32 %v19613_v5, %v3942_v9  ;;  %v4282_v32 = vcombine.low %v4256_v20, %v4270_v27  ;;  %v4283_v4 = vcombine.high %v4256_v20, %v4270_v27  ;;  %23655 = vst [vmem:[#allocation40_spill] sm:$0xff] %v20058_v19  ;;  %23656 = vst [vmem:[#allocation12_spill] sm:$0xff] %v20060_v53  ;;  %v4596_v40 = vld [vmem:[#allocation2 + $0x8] sm:$0xff] }
 0x26d   : > { %v3991_v50 = vadd.f32 %v19613_v5, %v3941_v6  ;;  %v3993_v7 = vadd.f32 %v19613_v5, %v3943_v56  ;;  %v23659_v9 = vmax.f32 %v23657_v30, %v23658_v16  ;;  %v3926_v18 = vmax.f32 %v23662_v46, %v3886_v11  ;;  %v20071_v6 = vpop.f32.mrb[91].mxu1  ;;  %v23667_v30 = vld [vmem:[#allocation77_spill] sm:$0xff] }
 0x26e   : > { %v4032_v14 = vmax.f32 %v3992_v15, 0.0  ;;  %v23665_v20 = vmax.f32 %v23663_v36, %v23664_v17  ;;  %23666 = vst [vmem:[#allocation41_spill] sm:$0xff] %v20071_v6  ;;  %v4320_v56 = vrot.slane %v4282_v32, %v19586_v26  ;;  %v4334_v2 = vrot.slane %v4283_v4, %v19586_v26  ;;  %v4614_v4 = vld [vmem:[#allocation2 + $0x30] sm:$0xff]  ;;  %v4605_v6 = vld [vmem:[#allocation2 + $0x1c] sm:$0xff] }
 0x26f   : > { %v3924_v44 = vmax.f32 %v23659_v9, %v3884_v45  ;;  %v4031_v28 = vmax.f32 %v3991_v50, 0.0  ;;  %v4033_v15 = vmax.f32 %v3993_v7, 0.0  ;;  %v20079_v45 = vadd.f32 %v19583_v1, %v3926_v18  ;;  %v20088_v18 = vpop.f32.mrb[92].mxu0 }
 0x270   : > { %v3925_v27 = vmax.f32 %v23665_v20, %v3885_v62  ;;  %v3887_v62 = vmax.f32 %v23667_v30, %v19878_v52  ;;  %v4342_v16 = vcombine.low %v4292_v55, %v4320_v56  ;;  %v4343_v9 = vcombine.high %v4292_v55, %v4320_v56  ;;  %23668 = vst [vmem:[#allocation13_spill] sm:$0xff] %v20088_v18  ;;  %v4632_v52 = vld [vmem:[#allocation2 + $0x58] sm:$0xff]  ;;  %v4650_v30 = vld [vmem:[#allocation2 + $0x80] sm:$0xff]  ;;  %v20090_v55 = vpop.f32.mrb[92].mxu1 }
 0x271   : > { %v20076_v47 = vadd.f32 %v19583_v1, %v3924_v44  ;;  %v4346_v37 = vcombine.low %v4306_v21, %v4334_v2  ;;  %v4347_v32 = vcombine.high %v4306_v21, %v4334_v2  ;;  %v15597_v50 = vpack.c.bf16 %v4031_v28, %v4030_v23  ;;  %23669 = vst [vmem:[#allocation42_spill] sm:$0xff] %v20090_v55  ;;  %v20092_v21 = vpop.f32.mrb[93].mxu0  ;;  %v4623_v28 = vld [vmem:[#allocation2 + $0x44] sm:$0xff]  ;;  %v20094_v46 = vpop.f32.mrb[93].mxu1 }
 0x272   : > { %v20082_v11 = vadd.f32 %v19583_v1, %v3925_v27  ;;  %v15599_v7 = vpack.c.bf16 %v4033_v15, %v4032_v14  ;;  %v4422_v36 = vunpack.i.h.s16 %v4342_v16  ;;  %v4434_v20 = vunpack.i.h.s16 %v4343_v9  ;;  %23670 = vst [vmem:[#allocation14_spill] sm:$0xff] %v20092_v21  ;;  %v4641_v15 = vld [vmem:[#allocation2 + $0x6c] sm:$0xff]  ;;  %23671 = vst [vmem:[#allocation43_spill] sm:$0xff] %v20094_v46  ;;  %v20096_v18 = vpop.f32.mrb[94].mxu0  ;;  %v20098_v10 = vpop.f32.mrb[94].mxu1  ;;  %v23716_v59 = vld [vmem:[#allocation39_spill] sm:$0xff] }
 0x273   : > { %v4014_v44 = vmax.f32 %v20076_v47, 0.0  ;;  %v4428_v17 = vunpack.i.h.s16 %v4346_v37  ;;  %v4440_v27 = vunpack.i.h.s16 %v4347_v32  ;;  %v15605_v56 = vpack.i.b16 %v4342_v16, %v4342_v16  ;;  %v4659_v47 = vld [vmem:[#allocation2 + $0x94] sm:$0xff]  ;;  %23672 = vst [vmem:[#allocation15_spill] sm:$0xff] %v20096_v18  ;;  %23673 = vst [vmem:[#allocation44_spill] sm:$0xff] %v20098_v10  ;;  %v20100_v55 = vpop.f32.mrb[95].mxu0 }
 0x274   : > { %v15608_v23 = vpack.i.b16 %v4346_v37, %v4346_v37  ;;  %v15611_v14 = vpack.i.b16 %v4343_v9, %v4343_v9  ;;  %v15614_v2 = vpack.i.b16 %v4347_v32, %v4347_v32  ;;  %v4470_v53 = vpack.i.b16 %v4422_v36, %v4422_v36  ;;  %23674 = vst [vmem:[#allocation45_spill] sm:$0xff] %v20100_v55  ;;  %v20110_v36 = vpop.f32.mrb[95].mxu1 }
 0x275   : > { %v4476_v19 = vpack.i.b16 %v4428_v17, %v4428_v17  ;;  %v4482_v0 = vpack.i.b16 %v4434_v20, %v4434_v20  ;;  %v4488_v34 = vpack.i.b16 %v4440_v27, %v4440_v27  ;;  %v4597_v16 = vsel %vm19846_vm3, %v15605_v56, %v4596_v40  ;;  %23675 = vst [vmem:[#allocation16_spill] sm:$0xff] %v20110_v36 }
 0x276   : > { %v4615_v9 = vsel %vm19846_vm3, %v15608_v23, %v4614_v4  ;;  %v4633_v37 = vsel %vm19846_vm3, %v15611_v14, %v4632_v52  ;;  %v4651_v32 = vsel %vm19846_vm3, %v15614_v2, %v4650_v30  ;;  %4598 = vst [vmem:[#allocation2 + $0x8] sm:$0xff] %v4597_v16  ;;  %v4606_v17 = vsel %vm19846_vm3, %v4470_v53, %v4605_v6  ;;  %v23676_v52 = vld [vmem:[#allocation31_spill] sm:$0xff]  ;;  %v23681_v2 = vld [vmem:[#allocation80_spill] sm:$0xff] }
 0x277   : > { %4616 = vst [vmem:[#allocation2 + $0x30] sm:$0xff] %v4615_v9  ;;  %v4624_v20 = vsel %vm19846_vm3, %v4476_v19, %v4623_v28  ;;  %4634 = vst [vmem:[#allocation2 + $0x58] sm:$0xff] %v4633_v37  ;;  %v4642_v40 = vsel %vm19846_vm3, %v4482_v0, %v4641_v15  ;;  %v4660_v4 = vsel %vm19846_vm3, %v4488_v34, %v4659_v47  ;;  %v4015_v6 = vmax.f32 %v20082_v11, 0.0  ;;  %v23677_v19 = vld [vmem:[#allocation61_spill] sm:$0xff]  ;;  %v23679_v0 = vld [vmem:[#allocation78_spill] sm:$0xff]  ;;  %v20135_v9 = vpop.f32.mrb[96].mxu0 }
 0x278   : > { %4652 = vst [vmem:[#allocation2 + $0x80] sm:$0xff] %v4651_v32  ;;  %4607 = vst [vmem:[#allocation2 + $0x1c] sm:$0xff] %v4606_v17  ;;  %v4263_v27 = vrot.slane %v15597_v50, %v19586_v26  ;;  %v4277_v53 = vrot.slane %v15599_v7, %v19586_v26  ;;  %v23678_v30 = vmax.f32 %v23676_v52, %v23677_v19  ;;  %v23680_v14 = vld [vmem:[#allocation79_spill] sm:$0xff]  ;;  %v23682_v15 = vld [vmem:[#allocation81_spill] sm:$0xff] }
 0x279   : > { %4625 = vst [vmem:[#allocation2 + $0x44] sm:$0xff] %v4624_v20  ;;  %4643 = vst [vmem:[#allocation2 + $0x6c] sm:$0xff] %v4642_v40  ;;  %v3904_v23 = vmax.f32 %v23679_v0, %v19880_v57  ;;  %v3906_v34 = vmax.f32 %v23680_v14, %v19890_v63  ;;  %v3905_v28 = vmax.f32 %v23681_v2, %v19892_v41  ;;  %v23685_v37 = vld [vmem:[#allocation62_spill] sm:$0xff]  ;;  %v23687_v17 = vld [vmem:[#allocation33_spill] sm:$0xff] }
 0x27a   : > { %4661 = vst [vmem:[#allocation2 + $0x94] sm:$0xff] %v4660_v4  ;;  %v3927_v56 = vmax.f32 %v23678_v30, %v3887_v62  ;;  %v3907_v50 = vmax.f32 %v23682_v15, %v19899_v35  ;;  %v4284_v47 = vcombine.low %v4263_v27, %v4277_v53  ;;  %v4285_v7 = vcombine.high %v4263_v27, %v4277_v53  ;;  %v23684_v62 = vld [vmem:[#allocation32_spill] sm:$0xff]  ;;  %v23688_v20 = vld [vmem:[#allocation63_spill] sm:$0xff]  ;;  %v23690_v4 = vld [vmem:[#allocation34_spill] sm:$0xff]  ;;  %v20149_v53 = vpop.f32.mrb[96].mxu1 }
 0x27b   : > { %v15600_v16 = vpack.c.bf16 %v4015_v6, %v4014_v44  ;;  %23683 = vst [vmem:[#allocation46_spill] sm:$0xff] %v20135_v9  ;;  %v23686_v32 = vmax.f32 %v23684_v62, %v23685_v37  ;;  %v23689_v63 = vmax.f32 %v23687_v17, %v23688_v20  ;;  %v23691_v41 = vld [vmem:[#allocation64_spill] sm:$0xff]  ;;  %v23693_v35 = vld [vmem:[#allocation35_spill] sm:$0xff]  ;;  %v23694_v30 = vld [vmem:[#allocation65_spill] sm:$0xff]  ;;  %v20151_v6 = vpop.f32.mrb[97].mxu0 }
 0x27c   : > { %v3977_v11 = vadd.f32 %v19583_v1, %v3927_v56  ;;  %v23692_v52 = vmax.f32 %v23690_v4, %v23691_v41  ;;  %v23695_v27 = vmax.f32 %v23693_v35, %v23694_v30  ;;  %23696 = vst [vmem:[#allocation17_spill] sm:$0xff] %v20149_v53  ;;  %23697 = vst [vmem:[#allocation47_spill] sm:$0xff] %v20151_v6  ;;  %v20160_v2 = vpop.f32.mrb[98].mxu0  ;;  %v4668_v17 = vld [vmem:[#allocation2 + $0xa8] sm:$0xff]  ;;  %v4686_v20 = vld [vmem:[#allocation2 + $0xd0] sm:$0xff] }
 0x27d   : > { %v3944_v57 = vmax.f32 %v23686_v32, %v3904_v23  ;;  %v3946_v40 = vmax.f32 %v23689_v63, %v3906_v34  ;;  %v4327_v56 = vrot.slane %v4284_v47, %v19586_v26  ;;  %v4341_v0 = vrot.slane %v4285_v7, %v19586_v26  ;;  %v20158_v34 = vpop.f32.mrb[97].mxu1  ;;  %23699 = vst [vmem:[#allocation48_spill] sm:$0xff] %v20160_v2  ;;  %v20172_v7 = vpop.f32.mrb[99].mxu0 }
 0x27e   : > { %v3945_v19 = vmax.f32 %v23692_v52, %v3905_v28  ;;  %v3947_v44 = vmax.f32 %v23695_v27, %v3907_v50  ;;  %v20156_v23 = vrot.slane %v15600_v16, %v19586_v26  ;;  %v4017_v14 = vmax.f32 %v3977_v11, 0.0  ;;  %23698 = vst [vmem:[#allocation18_spill] sm:$0xff] %v20158_v34  ;;  %v20170_v47 = vpop.f32.mrb[98].mxu1  ;;  %23701 = vst [vmem:[#allocation49_spill] sm:$0xff] %v20172_v7  ;;  %v4713_v7 = vld [vmem:[#allocation2 + $0x10c] sm:$0xff] }
 0x27f   : > { %v3994_v28 = vadd.f32 %v19613_v5, %v3944_v57  ;;  %v20164_v15 = vadd.f32 %v19613_v5, %v3946_v40  ;;  %23700 = vst [vmem:[#allocation19_spill] sm:$0xff] %v20170_v47  ;;  %v4344_v16 = vcombine.low %v20023_v49, %v4327_v56  ;;  %v4345_v11 = vcombine.high %v20023_v49, %v4327_v56  ;;  %v20178_v57 = vpop.f32.mrb[99].mxu1  ;;  %v4677_v49 = vld [vmem:[#allocation2 + $0xbc] sm:$0xff]  ;;  %v4731_v47 = vld [vmem:[#allocation2 + $0x134] sm:$0xff] }
 0x280   : > { %v3995_v50 = vadd.f32 %v19613_v5, %v3945_v19  ;;  %v20168_v62 = vadd.f32 %v19613_v5, %v3947_v44  ;;  %v4348_v37 = vcombine.low %v20026_v60, %v4341_v0  ;;  %v4349_v32 = vcombine.high %v20026_v60, %v4341_v0  ;;  %23702 = vst [vmem:[#allocation66_spill] sm:$0xff] %v20178_v57  ;;  %v4704_v44 = vld [vmem:[#allocation2 + $0xf8] sm:$0xff]  ;;  %v4722_v56 = vld [vmem:[#allocation2 + $0x120] sm:$0xff] }
 0x281   : > { %v23703_v63 = vmax.f32 %v20079_v45, 0.0  ;;  %v4034_v4 = vmax.f32 %v3994_v28, 0.0  ;;  %v4036_v41 = vmax.f32 %v20164_v15, 0.0  ;;  %v4446_v19 = vunpack.i.h.s16 %v4344_v16  ;;  %v4695_v57 = vld [vmem:[#allocation2 + $0xe4] sm:$0xff]  ;;  %v20183_v15 = vpop.f32.mrb[100].mxu0 }
 0x282   : > { %v4035_v52 = vmax.f32 %v3995_v50, 0.0  ;;  %v4452_v35 = vunpack.i.h.s16 %v4348_v37  ;;  %v4458_v30 = vunpack.i.h.s16 %v4345_v11  ;;  %v4464_v27 = vunpack.i.h.s16 %v4349_v32 }
 0x283   : > { %v15602_v40 = vpack.c.bf16 %v4017_v14, %v23703_v63  ;;  %v15617_v5 = vpack.i.b16 %v4344_v16, %v4344_v16  ;;  %v15620_v60 = vpack.i.b16 %v4348_v37, %v4348_v37  ;;  %v15623_v0 = vpack.i.b16 %v4345_v11, %v4345_v11  ;;  %v20193_v37 = vpop.f32.mrb[100].mxu1 }
 0x284   : > { %v15626_v1 = vpack.i.b16 %v4349_v32, %v4349_v32  ;;  %v4494_v45 = vpack.i.b16 %v4446_v19, %v4446_v19  ;;  %v4500_v14 = vpack.i.b16 %v4452_v35, %v4452_v35  ;;  %v4506_v28 = vpack.i.b16 %v4458_v30, %v4458_v30  ;;  %v20195_v32 = vpop.f32.mrb[101].mxu0 }
 0x285   : > { %v4512_v63 = vpack.i.b16 %v4464_v27, %v4464_v27  ;;  %v4669_v50 = vsel %vm19846_vm3, %v15617_v5, %v4668_v17  ;;  %v4687_v2 = vsel %vm19846_vm3, %v15620_v60, %v4686_v20  ;;  %v4705_v16 = vsel %vm19846_vm3, %v15623_v0, %v4704_v44  ;;  %v20205_v20 = vpop.f32.mrb[101].mxu1  ;;  %v20207_v35 = vpop.f32.mrb[102].mxu0 }
 0x286   : > { %v4723_v11 = vsel %vm19846_vm3, %v15626_v1, %v4722_v56  ;;  %4670 = vst [vmem:[#allocation2 + $0xa8] sm:$0xff] %v4669_v50  ;;  %v4678_v19 = vsel %vm19846_vm3, %v4494_v45, %v4677_v49  ;;  %4688 = vst [vmem:[#allocation2 + $0xd0] sm:$0xff] %v4687_v2  ;;  %v4696_v5 = vsel %vm19846_vm3, %v4500_v14, %v4695_v57  ;;  %v4037_v57 = vmax.f32 %v20168_v62, 0.0  ;;  %v20213_v27 = vpop.f32.mrb[102].mxu1  ;;  %v20215_v3 = vpop.f32.mrb[103].mxu0 }
 0x287   : > { %4706 = vst [vmem:[#allocation2 + $0xf8] sm:$0xff] %v4705_v16  ;;  %v4714_v17 = vsel %vm19846_vm3, %v4506_v28, %v4713_v7  ;;  %4724 = vst [vmem:[#allocation2 + $0x120] sm:$0xff] %v4723_v11  ;;  %v4732_v1 = vsel %vm19846_vm3, %v4512_v63, %v4731_v47  ;;  %v4374_v2 = vrot.slane %v15602_v40, %v19586_v26  ;;  %v20225_v62 = vpop.f32.mrb[103].mxu1  ;;  %v20239_v16 = vpop.f32.mrb[104].mxu0  ;;  %v4608_v14 = vld [vmem:[#allocation2 + $0x24] sm:$0xf] }
 0x288   : > { %23704 = vst [vmem:[#allocation67_spill] sm:$0xff] %v20207_v35  ;;  %4679 = vst [vmem:[#allocation2 + $0xbc] sm:$0xff] %v4678_v19  ;;  %v15601_v30 = vpack.c.bf16 %v4035_v52, %v4034_v4  ;;  %v15603_v56 = vpack.c.bf16 %v4037_v57, %v4036_v41  ;;  %v4635_v7 = vld [vmem:[#allocation2 + $0x60] sm:$0xf]  ;;  %vm8316_vm3 = vsmask.f32 7958 }
 0x289   : > { %4697 = vst [vmem:[#allocation2 + $0xe4] sm:$0xff] %v4696_v5  ;;  %4715 = vst [vmem:[#allocation2 + $0x10c] sm:$0xff] %v4714_v17  ;;  %v4382_v4 = vcombine.low %v20156_v23, %v4374_v2  ;;  %v4383_v52 = vcombine.high %v20156_v23, %v4374_v2  ;;  %v4599_v5 = vld [vmem:[#allocation2 + $0x10] sm:$0xf]  ;;  %v4617_v17 = vld [vmem:[#allocation2 + $0x38] sm:$0xf] }
 0x28a   : > { %4733 = vst [vmem:[#allocation2 + $0x134] sm:$0xff] %v4732_v1  ;;  %23705 = vst [vmem:[#allocation68_spill] sm:$0xff] %v20213_v27  ;;  %v4367_v60 = vrot.slane %v15601_v30, %v19586_v26  ;;  %v4381_v50 = vrot.slane %v15603_v56, %v19586_v26  ;;  %v20241_v1 = vpop.f32.mrb[104].mxu1  ;;  %v20243_v2 = vpop.f32.mrb[105].mxu0  ;;  %v4662_v27 = vld [vmem:[#allocation2 + $0x9c] sm:$0xf] }
 0x28b   : > { %23706 = vst [vmem:[#allocation69_spill] sm:$0xff] %v20215_v3  ;;  %23707 = vst [vmem:[#allocation70_spill] sm:$0xff] %v20225_v62  ;;  %v4392_v28 = vrot.slane %v4382_v4, %v19586_v26  ;;  %v4406_v63 = vrot.slane %v4383_v52, %v19586_v26  ;;  %v4626_v4 = vld [vmem:[#allocation2 + $0x4c] sm:$0xf]  ;;  %v20245_v0 = vpop.f32.mrb[105].mxu1  ;;  %v20247_v56 = vpop.f32.mrb[106].mxu0 }
 0x28c   : > { %23708 = vst [vmem:[#allocation20_spill] sm:$0xff] %v20241_v1  ;;  %23709 = vst [vmem:[#allocation50_spill] sm:$0xff] %v20243_v2  ;;  %v4384_v45 = vcombine.low %v4367_v60, %v4381_v50  ;;  %v4385_v52 = vcombine.high %v4367_v60, %v4381_v50  ;;  %v4653_v62 = vld [vmem:[#allocation2 + $0x88] sm:$0xf]  ;;  %v20249_v42 = vpop.f32.mrb[106].mxu1  ;;  %v20251_v3 = vpop.f32.mrb[107].mxu0 }
 0x28d   : > { %v4414_v23 = vcombine.high %v4392_v28, %v4392_v28  ;;  %v4416_v41 = vcombine.high %v4406_v63, %v4406_v63  ;;  %v4423_v11 = vunpack.i.h.s16 %v4392_v28  ;;  %v4429_v19 = vunpack.i.h.s16 %v4406_v63  ;;  %23710 = vst [vmem:[#allocation21_spill] sm:$0xff] %v20245_v0  ;;  %v4644_v50 = vld [vmem:[#allocation2 + $0x74] sm:$0xf]  ;;  %v20257_v24 = vpop.f32.mrb[107].mxu1 }
 0x28e   : > { %v15606_v30 = vpack.i.b16 %v4392_v28, %v4392_v28  ;;  %v15609_v57 = vpack.i.b16 %v4406_v63, %v4406_v63  ;;  %v4716_v0 = vld [vmem:[#allocation2 + $0x114] sm:$0xf] }
 0x28f   : > { %v4435_v40 = vunpack.i.h.s16 %v4414_v23  ;;  %v4441_v44 = vunpack.i.h.s16 %v4416_v41  ;;  %v4471_v49 = vpack.i.b16 %v4423_v11, %v4423_v11  ;;  %v4477_v47 = vpack.i.b16 %v4429_v19, %v4429_v19 }
 0x290   : > { %v15612_v28 = vpack.i.b16 %v4414_v23, %v4414_v23  ;;  %v15615_v63 = vpack.i.b16 %v4416_v41, %v4416_v41  ;;  %v4600_v39 = vsel %vm19701_vm13, %v15606_v30, %v4599_v5  ;;  %v4618_v60 = vsel %vm19701_vm13, %v15609_v57, %v4617_v17  ;;  %v4689_v30 = vld [vmem:[#allocation2 + $0xd8] sm:$0xf]  ;;  %v20277_v57 = vpop.f32.mrb[108].mxu0 }
 0x291   : > { %v4483_v11 = vpack.i.b16 %v4435_v40, %v4435_v40  ;;  %v4489_v19 = vpack.i.b16 %v4441_v44, %v4441_v44  ;;  %4601 = vst [vmem:[#allocation2 + $0x10] sm:$0xf] %v4600_v39  ;;  %v4609_v35 = vsel %vm19701_vm13, %v4471_v49, %v4608_v14  ;;  %4619 = vst [vmem:[#allocation2 + $0x38] sm:$0xf] %v4618_v60  ;;  %v4671_v14 = vld [vmem:[#allocation2 + $0xb0] sm:$0xf] }
 0x292   : > { %v4627_v23 = vsel %vm19701_vm13, %v4477_v47, %v4626_v4  ;;  %4610 = vst [vmem:[#allocation2 + $0x24] sm:$0xf] %v4609_v35  ;;  %v4636_v41 = vsel %vm19701_vm13, %v15612_v28, %v4635_v7  ;;  %v4654_v5 = vsel %vm19701_vm13, %v15615_v63, %v4653_v62  ;;  %v4399_v17 = vrot.slane %v4384_v45, %v19586_v26  ;;  %v4680_v28 = vld [vmem:[#allocation2 + $0xc4] sm:$0xf] }
 0x293   : > { %4628 = vst [vmem:[#allocation2 + $0x4c] sm:$0xf] %v4627_v23  ;;  %v4413_v44 = vrot.slane %v4385_v52, %v19586_v26  ;;  %4637 = vst [vmem:[#allocation2 + $0x60] sm:$0xf] %v4636_v41  ;;  %v4645_v39 = vsel %vm19701_vm13, %v4483_v11, %v4644_v50  ;;  %v4663_v47 = vsel %vm19701_vm13, %v4489_v19, %v4662_v27  ;;  %v4698_v27 = vld [vmem:[#allocation2 + $0xec] sm:$0xf] }
 0x294   : > { %4655 = vst [vmem:[#allocation2 + $0x88] sm:$0xf] %v4654_v5  ;;  %4646 = vst [vmem:[#allocation2 + $0x74] sm:$0xf] %v4645_v39  ;;  %v4415_v49 = vcombine.high %v4399_v17, %v4399_v17  ;;  %v4447_v62 = vunpack.i.h.s16 %v4399_v17  ;;  %v15618_v4 = vpack.i.b16 %v4399_v17, %v4399_v17  ;;  %v20283_v50 = vpop.f32.mrb[108].mxu1  ;;  %v20285_v11 = vpop.f32.mrb[109].mxu0 }
 0x295   : > { %4664 = vst [vmem:[#allocation2 + $0x9c] sm:$0xf] %v4663_v47  ;;  %v4417_v40 = vcombine.high %v4413_v44, %v4413_v44  ;;  %v4453_v45 = vunpack.i.h.s16 %v4413_v44  ;;  %v15621_v52 = vpack.i.b16 %v4413_v44, %v4413_v44  ;;  %v4707_v39 = vld [vmem:[#allocation2 + $0x100] sm:$0xf]  ;;  %v4725_v47 = vld [vmem:[#allocation2 + $0x128] sm:$0xf] }
 0x296   : > { %v4459_v19 = vunpack.i.h.s16 %v4415_v49  ;;  %v4495_v41 = vpack.i.b16 %v4447_v62, %v4447_v62  ;;  %v20287_v17 = vpop.f32.mrb[109].mxu1  ;;  %v20289_v44 = vpop.f32.mrb[110].mxu0  ;;  %v15624_v7 = vpack.i.b16 %v4415_v49, %v4415_v49  ;;  %v4672_v63 = vsel %vm19701_vm13, %v15618_v4, %v4671_v14 }
 0x297   : > { %v4465_v23 = vunpack.i.h.s16 %v4417_v40  ;;  %v4501_v5 = vpack.i.b16 %v4453_v45, %v4453_v45  ;;  %23711 = vst [vmem:[#allocation51_spill] sm:$0xff] %v20289_v44  ;;  %v15627_v35 = vpack.i.b16 %v4417_v40, %v4417_v40  ;;  %v4690_v60 = vsel %vm19701_vm13, %v15621_v52, %v4689_v30  ;;  %v20295_v2 = vpop.f32.mrb[110].mxu1  ;;  %v20297_v62 = vpop.f32.mrb[111].mxu0  ;;  %4673 = vst [vmem:[#allocation2 + $0xb0] sm:$0xf] %v4672_v63 }
 0x298   : > { %23712 = vst [vmem:[#allocation22_spill] sm:$0xff] %v20295_v2  ;;  %23713 = vst [vmem:[#allocation52_spill] sm:$0xff] %v20297_v62  ;;  %v4507_v45 = vpack.i.b16 %v4459_v19, %v4459_v19  ;;  %v4681_v1 = vsel %vm19701_vm13, %v4495_v41, %v4680_v28  ;;  %v20303_v40 = vpop.f32.mrb[111].mxu1  ;;  %v4708_v14 = vsel %vm19701_vm13, %v15624_v7, %v4707_v39 }
 0x299   : > { %v4513_v58 = vpack.i.b16 %v4465_v23, %v4465_v23  ;;  %4691 = vst [vmem:[#allocation2 + $0xd8] sm:$0xf] %v4690_v60  ;;  %v4699_v49 = vsel %vm19701_vm13, %v4501_v5, %v4698_v27  ;;  %23714 = vst [vmem:[#allocation23_spill] sm:$0xff] %v20303_v40  ;;  %v4726_v30 = vsel %vm19701_vm13, %v15627_v35, %v4725_v47 }
 0x29a   : > { %4682 = vst [vmem:[#allocation2 + $0xc4] sm:$0xf] %v4681_v1  ;;  %4700 = vst [vmem:[#allocation2 + $0xec] sm:$0xf] %v4699_v49  ;;  %v4717_v28 = vsel %vm19701_vm13, %v4507_v45, %v4716_v0  ;;  %v23715_v0 = vld [vmem:[#allocation10_spill] sm:$0xff]  ;;  %v20337_v49 = vpop.f32.mrb[112].mxu0 }
 0x29b   : > { %4709 = vst [vmem:[#allocation2 + $0x100] sm:$0xf] %v4708_v14  ;;  %4727 = vst [vmem:[#allocation2 + $0x128] sm:$0xf] %v4726_v30  ;;  %v4735_v1 = vsel %vm19701_vm13, %v4513_v58, %v4734_v61  ;;  %vm8302_vm13 = vsmask.f32 7938 }
 0x29c   : > { %4718 = vst [vmem:[#allocation2 + $0x114] sm:$0xf] %v4717_v28  ;;  %4736 = vst [vmem:[#allocation2 + $0x13c] sm:$0xf] %v4735_v1  ;;  %v20341_v28 = vpop.f32.mrb[112].mxu1  ;;  %v20343_v1 = vpop.f32.mrb[113].mxu0 }
 0x29d   : > { %23721 = vst [vmem:[#allocation53_spill] sm:$0xff] %v20337_v49  ;;  %23723 = vst [vmem:[#allocation24_spill] sm:$0xff] %v20341_v28  ;;  %v20349_v60 = vpop.f32.mrb[113].mxu1  ;;  %v20351_v39 = vpop.f32.mrb[114].mxu0 }
 0x29e   : > { %23724 = vst [vmem:[#allocation54_spill] sm:$0xff] %v20343_v1  ;;  %23726 = vst [vmem:[#allocation71_spill] sm:$0xff] %v20349_v60  ;;  %v20357_v63 = vpop.f32.mrb[114].mxu1  ;;  %v20359_v27 = vpop.f32.mrb[115].mxu0 }
 0x29f   : > { %23727 = vst [vmem:[#allocation72_spill] sm:$0xff] %v20351_v39  ;;  %23728 = vst [vmem:[#allocation73_spill] sm:$0xff] %v20357_v63  ;;  %v20365_v35 = vpop.f32.mrb[115].mxu1  ;;  %v20369_v52 = vpop.f32.mrb[116].mxu0 }
 0x2a0   : > { %23729 = vst [vmem:[#allocation25_spill] sm:$0xff] %v20359_v27  ;;  %23730 = vst [vmem:[#allocation55_spill] sm:$0xff] %v20365_v35  ;;  %v20373_v45 = vpop.f32.mrb[116].mxu1  ;;  %v20375_v4 = vpop.f32.mrb[117].mxu0 }
 0x2a1   : > { %23731 = vst [vmem:[#allocation26_spill] sm:$0xff] %v20369_v52  ;;  %23732 = vst [vmem:[#allocation56_spill] sm:$0xff] %v20373_v45  ;;  %v20381_v27 = vpop.f32.mrb[117].mxu1  ;;  %v20383_v55 = vpop.f32.mrb[118].mxu0 }
 0x2a2   : > { %23733 = vst [vmem:[#allocation27_spill] sm:$0xff] %v20375_v4  ;;  %23734 = vst [vmem:[#allocation57_spill] sm:$0xff] %v20381_v27  ;;  %v20389_v52 = vpop.f32.mrb[118].mxu1  ;;  %v20391_v9 = vpop.f32.mrb[119].mxu0 }
 0x2a3   : > { %23735 = vst [vmem:[#allocation74_spill] sm:$0xff] %v20383_v55  ;;  %23737 = vst [vmem:[#allocation75_spill] sm:$0xff] %v20389_v52  ;;  %v20397_v4 = vpop.f32.mrb[119].mxu1  ;;  %v6752_v63 = vpop.f32.mrb[120].mxu0 }
 0x2a4   : > { %23738 = vst [vmem:[#allocation76_spill] sm:$0xff] %v20391_v9  ;;  %23741 = vst [vmem:[#allocation28_spill] sm:$0xff] %v20397_v4  ;;  %v6795_v7 = vpop.f32.mrb[120].mxu1  ;;  %v6754_v27 = vpop.f32.mrb[121].mxu0 }
 0x2a5   : > { %v20401_v34 = vpop.f32.mrb[121].mxu1  ;;  %v20403_v30 = vpop.f32.mrb[122].mxu0  ;;  %vm20476_vm7 = vmand %vm4562_vm6, %vm8302_vm13  ;;  %vm8310_vm6 = vsmask.f32 7950 }
 0x2a6   : > { %v20405_v55 = vpop.f32.mrb[122].mxu1  ;;  %v20407_v35 = vpop.f32.mrb[123].mxu0  ;;  %vm8306_vm8 = vmor %vm20487_vm9, %vm20476_vm7 }
 0x2a7   : > { %v20409_v58 = vpop.f32.mrb[123].mxu1  ;;  %vm20542_vm11 = vmor %vm20526_vm15, %vm8306_vm8 }
 0x2a8   : > { %vm20552_vm13 = vmand %vm4573_vm14, %vm8310_vm6 }
 0x2a9   : > { %v20411_v52 = vpop.f32.mrb[124].mxu0  ;;  %v20413_v41 = vpop.f32.mrb[124].mxu1  ;;  %vm20575_vm14 = vmor %vm20552_vm13, %vm20542_vm11 }
 0x2aa   : > { %v20415_v9 = vpop.f32.mrb[125].mxu0  ;;  %v20417_v53 = vpop.f32.mrb[125].mxu1  ;;  %vm20583_vm7 = vmand %vm4577_vm0, %vm8313_vm12 }
 0x2ab   : > { %v20419_v4 = vpop.f32.mrb[126].mxu0  ;;  %v20421_v6 = vpop.f32.mrb[126].mxu1  ;;  %vm8315_vm0 = vmor %vm20583_vm7, %vm20575_vm14 }
 0x2ac   : > { %v20423_v45 = vpop.f32.mrb[127].mxu0  ;;  %v20425_v36 = vpop.f32.mrb[127].mxu1  ;;  %vm20614_vm9 = vmand %vm4581_vm4, %vm8316_vm3 }
 0x2ad   : > { %vm20646_vm4 = vmor %vm20614_vm9, %vm8315_vm0 }
 0x2ae   : > { %vm20654_vm6 = vmand %vm4585_vm10, %vm8319_vm1 }
 0x2af   : > { %vm8321_vm10 = vmor %vm20654_vm6, %vm20646_vm4 }
 0x2b0   : > { %vm20697_vm12 = vmand %vm4589_vm2, %vm8322_vm5 }
 0x2b1   : > { %v20427_v10 = vpop.f32.mrb[128].mxu0  ;;  %v20429_v39 = vpop.f32.mrb[128].mxu1  ;;  %vm20726_vm2 = vmor %vm20697_vm12, %vm8321_vm10 }
 0x2b2   : > { %v20431_v18 = vpop.f32.mrb[129].mxu0  ;;  %v20433_v60 = vpop.f32.mrb[129].mxu1 }
 0x2b3   : > { %v20435_v46 = vpop.f32.mrb[130].mxu0  ;;  %v20437_v1 = vpop.f32.mrb[130].mxu1 }
 0x2b4   : > { %23743 = vst [vmem:[#allocation58_spill] sm:$0xff] %v20437_v1  ;;  %v20439_v21 = vpop.f32.mrb[131].mxu0  ;;  %v20441_v28 = vpop.f32.mrb[131].mxu1  ;;  %v23771_v1 = vld [vmem:[#allocation67_spill] sm:$0xff] }
 0x2b5   : > { %23744 = vst [vmem:[#allocation29_spill] sm:$0xff] %v20439_v21  ;;  %23745 = vst [vmem:[#allocation59_spill] sm:$0xff] %v20441_v28 }
 0x2b9   : > { %v20443_v19 = vpop.f32.mrb[132].mxu0  ;;  %v20445_v49 = vpop.f32.mrb[132].mxu1 }
 0x2ba   : > { %23746 = vst [vmem:[#allocation30_spill] sm:$0xff] %v20443_v19  ;;  %23747 = vst [vmem:[#allocation60_spill] sm:$0xff] %v20445_v49  ;;  %v20447_v14 = vpop.f32.mrb[133].mxu0  ;;  %v20449_v40 = vpop.f32.mrb[133].mxu1 }
 0x2bb   : > { %23748 = vst [vmem:[#allocation77_spill] sm:$0xff] %v20447_v14  ;;  %23749 = vst [vmem:[#allocation31_spill] sm:$0xff] %v20449_v40  ;;  %v20451_v47 = vpop.f32.mrb[134].mxu0  ;;  %v20453_v62 = vpop.f32.mrb[134].mxu1 }
 0x2bc   : > { %23750 = vst [vmem:[#allocation61_spill] sm:$0xff] %v20451_v47  ;;  %23751 = vst [vmem:[#allocation78_spill] sm:$0xff] %v20453_v62  ;;  %v20455_v5 = vpop.f32.mrb[135].mxu0  ;;  %v20457_v2 = vpop.f32.mrb[135].mxu1 }
 0x2bd   : > { %23752 = vst [vmem:[#allocation79_spill] sm:$0xff] %v20455_v5  ;;  %23753 = vst [vmem:[#allocation80_spill] sm:$0xff] %v20457_v2 }
 0x2c1   : > { %v20459_v23 = vpop.f32.mrb[136].mxu0  ;;  %v20461_v44 = vpop.f32.mrb[136].mxu1 }
 0x2c2   : > { %23754 = vst [vmem:[#allocation81_spill] sm:$0xff] %v20459_v23  ;;  %23755 = vst [vmem:[#allocation32_spill] sm:$0xff] %v20461_v44  ;;  %v20463_v61 = vpop.f32.mrb[137].mxu0  ;;  %v20465_v19 = vpop.f32.mrb[137].mxu1 }
 0x2c3   : > { %23756 = vst [vmem:[#allocation62_spill] sm:$0xff] %v20463_v61  ;;  %23757 = vst [vmem:[#allocation33_spill] sm:$0xff] %v20465_v19  ;;  %v20467_v49 = vpop.f32.mrb[138].mxu0  ;;  %v20469_v14 = vpop.f32.mrb[138].mxu1 }
 0x2c4   : > { %23758 = vst [vmem:[#allocation63_spill] sm:$0xff] %v20467_v49  ;;  %23759 = vst [vmem:[#allocation34_spill] sm:$0xff] %v20469_v14  ;;  %v20471_v40 = vpop.f32.mrb[139].mxu0  ;;  %v20473_v47 = vpop.f32.mrb[139].mxu1 }
 0x2c5   : > { %23760 = vst [vmem:[#allocation64_spill] sm:$0xff] %v20471_v40  ;;  %23761 = vst [vmem:[#allocation35_spill] sm:$0xff] %v20473_v47  ;;  %v23764_v40 = vmax.f32 %v19926_v29, %v20183_v15  ;;  %v23768_v29 = vmax.f32 %v19930_v38, %v20195_v32  ;;  %v23773_v32 = vld [vmem:[#allocation36_spill] sm:$0xff] }
 0x2c9   : > { %v7182_v5 = vpop.f32.mrb[140].mxu0  ;;  %v7225_v62 = vpop.f32.mrb[140].mxu1 }
 0x2ca   : > { %v7618_v2 = vmax.f32 %v6752_v63, %v7182_v5  ;;  %v7184_v23 = vpop.f32.mrb[141].mxu0  ;;  %v7620_v28 = vmax.f32 %v6795_v7, %v7225_v62  ;;  %v7227_v21 = vpop.f32.mrb[141].mxu1  ;;  %v23767_v7 = vmax.f32 %v19928_v12, %v20193_v37  ;;  %v23772_v12 = vmax.f32 %v19934_v13, %v23771_v1  ;;  %v23781_v1 = vld [vmem:[#allocation70_spill] sm:$0xff] }
 0x2cb   : > { %v7619_v44 = vmax.f32 %v6754_v27, %v7184_v23  ;;  %v7186_v61 = vpop.f32.mrb[142].mxu0  ;;  %v7621_v14 = vmax.f32 %v20401_v34, %v7227_v21  ;;  %v7229_v5 = vpop.f32.mrb[142].mxu1  ;;  %v23770_v23 = vmax.f32 %v19932_v22, %v20205_v20  ;;  %v23779_v20 = vld [vmem:[#allocation7_spill] sm:$0xff] }
 0x2cc   : > { %v7658_v47 = vmax.f32 %v23764_v40, %v7618_v2  ;;  %v7638_v63 = vmax.f32 %v20403_v30, %v7186_v61  ;;  %v7188_v49 = vpop.f32.mrb[143].mxu0  ;;  %v7660_v27 = vmax.f32 %v23767_v7, %v7620_v28  ;;  %v7640_v21 = vmax.f32 %v20405_v55, %v7229_v5  ;;  %v7231_v2 = vpop.f32.mrb[143].mxu1  ;;  %v23769_v40 = vld [vmem:[#allocation82_spill] sm:$0xff]  ;;  %v23776_v5 = vld [vmem:[#allocation8_spill] sm:$0xff] }
 0x2cd   : > { %v7659_v15 = vmax.f32 %v23768_v29, %v7619_v44  ;;  %v7639_v34 = vmax.f32 %v20407_v35, %v7188_v49  ;;  %v7661_v30 = vmax.f32 %v23770_v23, %v7621_v14  ;;  %v7641_v28 = vmax.f32 %v20409_v58, %v7231_v2  ;;  %v23774_v44 = vld [vmem:[#allocation68_spill] sm:$0xff]  ;;  %v23780_v14 = vld [vmem:[#allocation37_spill] sm:$0xff] }
 0x2ce   : > { %v7698_v61 = vadd.f32 %v7658_v47, %v23769_v40  ;;  %v7678_v37 = vmax.f32 %v23772_v12, %v7638_v63  ;;  %v7700_v38 = vadd.f32 %v7660_v27, %v23769_v40  ;;  %v23775_v35 = vmax.f32 %v23773_v32, %v23774_v44  ;;  %v23777_v47 = vld [vmem:[#allocation69_spill] sm:$0xff] }
 0x2cf   : > { %v7699_v55 = vadd.f32 %v7659_v15, %v23769_v40  ;;  %v23778_v7 = vmax.f32 %v23776_v5, %v23777_v47  ;;  %v7701_v13 = vadd.f32 %v7661_v30, %v23769_v40  ;;  %v23782_v63 = vmax.f32 %v23780_v14, %v23781_v1 }
 0x2d0   : > { %v7680_v49 = vmax.f32 %v23775_v35, %v7640_v21  ;;  %v7738_v22 = vmax.f32 %v7698_v61, 0.0  ;;  %v7718_v58 = vadd.f32 %v7678_v37, %v23779_v20  ;;  %v7740_v21 = vmax.f32 %v7700_v38, 0.0 }
 0x2d1   : > { %v7679_v29 = vmax.f32 %v23778_v7, %v7639_v34  ;;  %v7681_v27 = vmax.f32 %v23782_v63, %v7641_v28  ;;  %v7739_v34 = vmax.f32 %v7699_v55, 0.0  ;;  %v7268_v23 = vpop.f32.mrb[144].mxu0  ;;  %v7741_v30 = vmax.f32 %v7701_v13, 0.0  ;;  %v7311_v32 = vpop.f32.mrb[144].mxu1  ;;  %v23790_v63 = vld [vmem:[#allocation20_spill] sm:$0xff] }
 0x2d2   : > { %v7720_v2 = vadd.f32 %v7680_v49, %v23779_v20  ;;  %v7758_v12 = vmax.f32 %v7718_v58, 0.0  ;;  %v7622_v28 = vmax.f32 %v20411_v52, %v7268_v23  ;;  %v7270_v44 = vpop.f32.mrb[145].mxu0  ;;  %v7624_v38 = vmax.f32 %v20413_v41, %v7311_v32  ;;  %v7313_v55 = vpop.f32.mrb[145].mxu1 }
 0x2d3   : > { %v7719_v61 = vadd.f32 %v7679_v29, %v23779_v20  ;;  %v7721_v37 = vadd.f32 %v7681_v27, %v23779_v20  ;;  %v15988_v35 = vpack.c.bf16 %v7739_v34, %v7738_v22  ;;  %v7272_v52 = vpop.f32.mrb[146].mxu0  ;;  %v15990_v7 = vpack.c.bf16 %v7741_v30, %v7740_v21  ;;  %v7315_v62 = vpop.f32.mrb[146].mxu1 }
 0x2d4   : > { %v7760_v5 = vmax.f32 %v7720_v2, 0.0  ;;  %v23787_v22 = vmax.f32 %v19981_v33, %v20239_v16  ;;  %v7623_v41 = vmax.f32 %v20415_v9, %v7270_v44  ;;  %v7274_v58 = vpop.f32.mrb[147].mxu0  ;;  %v23791_v27 = vmax.f32 %v19993_v48, %v23790_v63  ;;  %v7317_v16 = vpop.f32.mrb[147].mxu1  ;;  %v23792_v2 = vld [vmem:[#allocation9_spill] sm:$0xff] }
 0x2d5   : > { %v7759_v47 = vmax.f32 %v7719_v61, 0.0  ;;  %v7761_v29 = vmax.f32 %v7721_v37, 0.0  ;;  %v7832_v14 = vrot.slane %v15988_v35, %v19586_v26  ;;  %v7625_v33 = vmax.f32 %v20417_v53, %v7313_v55  ;;  %v23793_v61 = vld [vmem:[#allocation50_spill] sm:$0xff]  ;;  %v23796_v48 = vld [vmem:[#allocation21_spill] sm:$0xff] }
 0x2d6   : > { %v7662_v13 = vmax.f32 %v23787_v22, %v7622_v28  ;;  %v7664_v15 = vmax.f32 %v23791_v27, %v7624_v38  ;;  %v7846_v9 = vrot.slane %v15990_v7, %v19586_v26  ;;  %v23794_v23 = vmax.f32 %v23792_v2, %v23793_v61  ;;  %v23795_v28 = vld [vmem:[#allocation38_spill] sm:$0xff] }
 0x2d7   : > { %v15989_v1 = vpack.c.bf16 %v7759_v47, %v7758_v12  ;;  %v15991_v21 = vpack.c.bf16 %v7761_v29, %v7760_v5  ;;  %v23797_v32 = vmax.f32 %v23795_v28, %v23796_v48  ;;  %v7642_v35 = vmax.f32 %v20419_v4, %v7272_v52 }
 0x2d8   : > { %v7702_v34 = vadd.f32 %v7662_v13, %v23769_v40  ;;  %v7663_v30 = vmax.f32 %v23794_v23, %v7623_v41  ;;  %v7704_v12 = vadd.f32 %v7664_v15, %v23769_v40  ;;  %v7882_v5 = vcombine.low %v7832_v14, %v7846_v9 }
 0x2d9   : > { %v7839_v37 = vrot.slane %v15989_v1, %v19586_v26  ;;  %v7665_v44 = vmax.f32 %v23797_v32, %v7625_v33  ;;  %v7883_v47 = vcombine.high %v7832_v14, %v7846_v9  ;;  %v7853_v38 = vrot.slane %v15991_v21, %v19586_v26  ;;  %v7354_v13 = vpop.f32.mrb[148].mxu0  ;;  %v7397_v63 = vpop.f32.mrb[148].mxu1 }
 0x2da   : > { %v7742_v55 = vmax.f32 %v7702_v34, 0.0  ;;  %v7744_v49 = vmax.f32 %v7704_v12, 0.0  ;;  %v7703_v29 = vadd.f32 %v7663_v30, %v23769_v40  ;;  %v23802_v4 = vmax.f32 %v20001_v54, %v20247_v56  ;;  %v7356_v27 = vpop.f32.mrb[149].mxu0  ;;  %v7399_v9 = vpop.f32.mrb[149].mxu1 }
 0x2db   : > { %v7705_v22 = vadd.f32 %v7665_v44, %v23769_v40  ;;  %v20593_v41 = vrot.slane %v7882_v5, %v19586_v26  ;;  %v20596_v19 = vrot.slane %v7883_v47, %v19586_v26  ;;  %v7884_v14 = vcombine.low %v7839_v37, %v7853_v38  ;;  %v20604_v21 = vpop.f32.mrb[150].mxu0 }
 0x2dc   : > { %v7682_v52 = vmax.f32 %v23802_v4, %v7642_v35  ;;  %v7885_v1 = vcombine.high %v7839_v37, %v7853_v38  ;;  %v7743_v15 = vmax.f32 %v7703_v29, 0.0  ;;  %v7644_v56 = vmax.f32 %v20421_v6, %v7315_v62  ;;  %v20620_v6 = vpop.f32.mrb[150].mxu1  ;;  %v20622_v62 = vpop.f32.mrb[151].mxu0 }
 0x2dd   : > { %v7745_v33 = vmax.f32 %v7705_v22, 0.0  ;;  %v20607_v34 = vrot.slane %v7884_v14, %v19586_v26  ;;  %v7643_v23 = vmax.f32 %v20423_v45, %v7274_v58  ;;  %v7645_v30 = vmax.f32 %v20425_v36, %v7317_v16  ;;  %v20627_v44 = vpop.f32.mrb[151].mxu1 }
 0x2de   : > { %v7722_v54 = vadd.f32 %v7682_v52, %v23779_v20  ;;  %v20610_v2 = vrot.slane %v7885_v1, %v19586_v26  ;;  %v15992_v37 = vpack.c.bf16 %v7743_v15, %v7742_v55  ;;  %v23805_v48 = vmax.f32 %v20005_v8, %v20249_v42  ;;  %v8379_v42 = vld [vmem:[#allocation2 + $0x78] sm:$0xff] }
 0x2df   : > { %v15994_v12 = vpack.c.bf16 %v7745_v33, %v7744_v49  ;;  %v23806_v35 = vmax.f32 %v20007_v43, %v20251_v3  ;;  %v23807_v36 = vmax.f32 %v20011_v51, %v20257_v24  ;;  %v7626_v58 = vmax.f32 %v20427_v10, %v7354_v13  ;;  %v8334_v43 = vld [vmem:[#allocation2 + $0x14] sm:$0xff] }
 0x2e0   : > { %v7762_v28 = vmax.f32 %v7722_v54, 0.0  ;;  %v7684_v32 = vmax.f32 %v23805_v48, %v7644_v56  ;;  %v7628_v16 = vmax.f32 %v20429_v39, %v7397_v63  ;;  %v7860_v47 = vrot.slane %v15992_v37, %v19586_v26 }
 0x2e1   : > { %v7683_v5 = vmax.f32 %v23806_v35, %v7643_v23  ;;  %v7685_v45 = vmax.f32 %v23807_v36, %v7645_v30  ;;  %v7874_v38 = vrot.slane %v15994_v12, %v19586_v26  ;;  %v7627_v8 = vmax.f32 %v20431_v18, %v7356_v27  ;;  %v20669_v52 = vpop.f32.mrb[152].mxu0 }
 0x2e2   : > { %v7724_v24 = vadd.f32 %v7684_v32, %v23779_v20  ;;  %v23812_v3 = vmax.f32 %v20031_v25, %v20277_v57  ;;  %v23813_v55 = vmax.f32 %v20041_v31, %v20283_v50  ;;  %v23814_v22 = vmax.f32 %v23715_v0, %v20285_v11  ;;  %v20677_v57 = vpop.f32.mrb[152].mxu1  ;;  %v20679_v31 = vpop.f32.mrb[153].mxu0 }
 0x2e3   : > { %v7723_v51 = vadd.f32 %v7683_v5, %v23779_v20  ;;  %v7725_v10 = vadd.f32 %v7685_v45, %v23779_v20  ;;  %v7886_v49 = vcombine.low %v7860_v47, %v7874_v38  ;;  %v7887_v18 = vcombine.high %v7860_v47, %v7874_v38  ;;  %v20691_v27 = vpop.f32.mrb[153].mxu1  ;;  %v20693_v15 = vpop.f32.mrb[154].mxu0 }
 0x2e4   : > { %v7666_v39 = vmax.f32 %v23812_v3, %v7626_v58  ;;  %v7668_v7 = vmax.f32 %v23813_v55, %v7628_v16  ;;  %v7764_v29 = vmax.f32 %v7724_v24, 0.0  ;;  %v7667_v4 = vmax.f32 %v23814_v22, %v7627_v8  ;;  %v20703_v30 = vpop.f32.mrb[154].mxu1  ;;  %v20705_v37 = vpop.f32.mrb[155].mxu0  ;;  %v8352_v22 = vld [vmem:[#allocation2 + $0x3c] sm:$0xff] }
 0x2e5   : > { %v7763_v13 = vmax.f32 %v7723_v51, 0.0  ;;  %v7765_v14 = vmax.f32 %v7725_v10, 0.0  ;;  %v7924_v50 = vrot.slane %v7886_v49, %v19586_v26  ;;  %v7938_v63 = vrot.slane %v7887_v18, %v19586_v26  ;;  %v20711_v32 = vpop.f32.mrb[155].mxu1  ;;  %v8343_v51 = vld [vmem:[#allocation2 + $0x28] sm:$0xff] }
 0x2e6   : > { %v20672_v1 = vadd.f32 %v7666_v39, %v23769_v40  ;;  %v20675_v25 = vadd.f32 %v7668_v7, %v23769_v40  ;;  %v20688_v11 = vadd.f32 %v7667_v4, %v23769_v40  ;;  %v7629_v0 = vmax.f32 %v20433_v60, %v7399_v9  ;;  %v8361_v7 = vld [vmem:[#allocation2 + $0x50] sm:$0xff] }
 0x2e7   : > { %v15993_v54 = vpack.c.bf16 %v7763_v13, %v7762_v28  ;;  %v15995_v56 = vpack.c.bf16 %v7765_v14, %v7764_v29  ;;  %v7946_v60 = vcombine.low %v20593_v41, %v7924_v50  ;;  %v7947_v9 = vcombine.high %v20593_v41, %v7924_v50  ;;  %v8370_v13 = vld [vmem:[#allocation2 + $0x64] sm:$0xff] }
 0x2e8   : > { %v7746_v61 = vmax.f32 %v20672_v1, 0.0  ;;  %v7748_v23 = vmax.f32 %v20675_v25, 0.0  ;;  %v7950_v12 = vcombine.low %v20596_v19, %v7938_v63  ;;  %v7951_v48 = vcombine.high %v20596_v19, %v7938_v63  ;;  %v8388_v1 = vld [vmem:[#allocation2 + $0x8c] sm:$0xff] }
 0x2e9   : > { %v7867_v28 = vrot.slane %v15993_v54, %v19586_v26  ;;  %v7881_v35 = vrot.slane %v15995_v56, %v19586_v26  ;;  %v7747_v5 = vmax.f32 %v20688_v11, 0.0  ;;  %v23817_v36 = vmax.f32 %v23716_v59, %v20287_v17  ;;  %v8325_v59 = vld [vmem:[#allocation2] sm:$0xff]  ;;  %v20730_v49 = vpop.f32.mrb[156].mxu0  ;;  %v20740_v50 = vpop.f32.mrb[156].mxu1 }
 0x2ea   : > { %v8161_v58 = vunpack.i.h.s16 %v7946_v60  ;;  %v8167_v16 = vunpack.i.h.s16 %v7950_v12  ;;  %v8173_v47 = vunpack.i.h.s16 %v7947_v9  ;;  %v8179_v41 = vunpack.i.h.s16 %v7951_v48  ;;  %v20742_v63 = vpop.f32.mrb[157].mxu0  ;;  %v20752_v56 = vpop.f32.mrb[157].mxu1 }
 0x2eb   : > { %v7669_v45 = vmax.f32 %v23817_v36, %v7629_v0  ;;  %v16008_v38 = vpack.i.b16 %v7946_v60, %v7946_v60  ;;  %v16011_v24 = vpack.i.b16 %v7950_v12, %v7950_v12  ;;  %v16014_v8 = vpack.i.b16 %v7947_v9, %v7947_v9  ;;  %v20754_v60 = vpop.f32.mrb[158].mxu0 }
 0x2ec   : > { %v16017_v17 = vpack.i.b16 %v7951_v48, %v7951_v48  ;;  %v8209_v10 = vpack.i.b16 %v8161_v58, %v8161_v58  ;;  %v8215_v3 = vpack.i.b16 %v8167_v16, %v8167_v16  ;;  %v8221_v39 = vpack.i.b16 %v8173_v47, %v8173_v47  ;;  %v20757_v58 = vpop.f32.mrb[158].mxu1  ;;  %v20759_v16 = vpop.f32.mrb[159].mxu0 }
 0x2ed   : > { %v8227_v55 = vpack.i.b16 %v8179_v41, %v8179_v41  ;;  %v8326_v18 = vsel %vm20726_vm2, %v16008_v38, %v8325_v59  ;;  %v8344_v29 = vsel %vm20726_vm2, %v16011_v24, %v8343_v51  ;;  %v8362_v4 = vsel %vm20726_vm2, %v16014_v8, %v8361_v7  ;;  %v23820_v41 = vld [vmem:[#allocation58_spill] sm:$0xff]  ;;  %v23821_v24 = vld [vmem:[#allocation29_spill] sm:$0xff] }
 0x2ee   : > { %v8380_v14 = vsel %vm20726_vm2, %v16017_v17, %v8379_v42  ;;  %8327 = vst [vmem:[#allocation2] sm:$0xff] %v8326_v18  ;;  %v8335_v11 = vsel %vm20726_vm2, %v8209_v10, %v8334_v43  ;;  %8345 = vst [vmem:[#allocation2 + $0x28] sm:$0xff] %v8344_v29  ;;  %v8353_v0 = vsel %vm20726_vm2, %v8215_v3, %v8352_v22  ;;  %v23822_v17 = vld [vmem:[#allocation59_spill] sm:$0xff]  ;;  %v23826_v10 = vld [vmem:[#allocation40_spill] sm:$0xff] }
 0x2ef   : > { %8363 = vst [vmem:[#allocation2 + $0x50] sm:$0xff] %v8362_v4  ;;  %v8371_v33 = vsel %vm20726_vm2, %v8221_v39, %v8370_v13  ;;  %8381 = vst [vmem:[#allocation2 + $0x78] sm:$0xff] %v8380_v14  ;;  %v8389_v54 = vsel %vm20726_vm2, %v8227_v55, %v8388_v1  ;;  %v7888_v9 = vcombine.low %v7867_v28, %v7881_v35  ;;  %v23827_v3 = vld [vmem:[#allocation22_spill] sm:$0xff]  ;;  %v23829_v55 = vld [vmem:[#allocation12_spill] sm:$0xff] }
 0x2f0   : > { %8336 = vst [vmem:[#allocation2 + $0x14] sm:$0xff] %v8335_v11  ;;  %8354 = vst [vmem:[#allocation2 + $0x3c] sm:$0xff] %v8353_v0  ;;  %v7889_v12 = vcombine.high %v7867_v28, %v7881_v35  ;;  %v15996_v48 = vpack.c.bf16 %v7747_v5, %v7746_v61  ;;  %v7709_v36 = vadd.f32 %v7669_v45, %v23769_v40  ;;  %v20769_v28 = vpop.f32.mrb[159].mxu1  ;;  %v23832_v42 = vld [vmem:[#allocation41_spill] sm:$0xff]  ;;  %v23833_v18 = vld [vmem:[#allocation23_spill] sm:$0xff] }
 0x2f1   : > { %8372 = vst [vmem:[#allocation2 + $0x64] sm:$0xff] %v8371_v33  ;;  %8390 = vst [vmem:[#allocation2 + $0x8c] sm:$0xff] %v8389_v54  ;;  %v7646_v47 = vmax.f32 %v20435_v46, %v20604_v21  ;;  %v7648_v38 = vmax.f32 %v23820_v41, %v20620_v6  ;;  %v7647_v8 = vmax.f32 %v23821_v24, %v20622_v62  ;;  %v23823_v46 = vld [vmem:[#allocation11_spill] sm:$0xff] }
 0x2f2   : > { %v7649_v59 = vmax.f32 %v23822_v17, %v20627_v44  ;;  %v7931_v61 = vrot.slane %v7888_v9, %v19586_v26  ;;  %v7945_v35 = vrot.slane %v7889_v12, %v19586_v26  ;;  %v20774_v5 = vrot.slane %v15996_v48, %v19586_v26  ;;  %v23824_v21 = vld [vmem:[#allocation51_spill] sm:$0xff]  ;;  %v23830_v44 = vld [vmem:[#allocation52_spill] sm:$0xff] }
 0x2f3   : > { %v7749_v45 = vmax.f32 %v7709_v36, 0.0  ;;  %v23825_v51 = vmax.f32 %v23823_v46, %v23824_v21  ;;  %v23828_v62 = vmax.f32 %v23826_v10, %v23827_v3  ;;  %v23831_v43 = vmax.f32 %v23829_v55, %v23830_v44  ;;  %v8397_v24 = vld [vmem:[#allocation2 + $0xa0] sm:$0xff]  ;;  %v8460_v3 = vld [vmem:[#allocation2 + $0x12c] sm:$0xff] }
 0x2f4   : > { %v23834_v29 = vmax.f32 %v23832_v42, %v23833_v18  ;;  %v7948_v4 = vcombine.low %v20607_v34, %v7931_v61  ;;  %v7949_v13 = vcombine.high %v20607_v34, %v7931_v61  ;;  %v7952_v14 = vcombine.low %v20610_v2, %v7945_v35  ;;  %v8433_v61 = vld [vmem:[#allocation2 + $0xf0] sm:$0xff]  ;;  %v8424_v21 = vld [vmem:[#allocation2 + $0xdc] sm:$0xff] }
 0x2f5   : > { %v7686_v6 = vmax.f32 %v23825_v51, %v7646_v47  ;;  %v7688_v39 = vmax.f32 %v23828_v62, %v7648_v38  ;;  %v7687_v7 = vmax.f32 %v23831_v43, %v7647_v8  ;;  %v7953_v1 = vcombine.high %v20610_v2, %v7945_v35  ;;  %v8415_v8 = vld [vmem:[#allocation2 + $0xc8] sm:$0xff]  ;;  %v8451_v35 = vld [vmem:[#allocation2 + $0x118] sm:$0xff] }
 0x2f6   : > { %v7689_v22 = vmax.f32 %v23834_v29, %v7649_v59  ;;  %v15998_v11 = vpack.c.bf16 %v7749_v45, %v7748_v23  ;;  %v8185_v9 = vunpack.i.h.s16 %v7948_v4  ;;  %v8191_v12 = vunpack.i.h.s16 %v7952_v14  ;;  %v8406_v59 = vld [vmem:[#allocation2 + $0xb4] sm:$0xff] }
 0x2f7   : > { %v7726_v0 = vadd.f32 %v7686_v6, %v23779_v20  ;;  %v7728_v33 = vadd.f32 %v7688_v39, %v23779_v20  ;;  %v7727_v54 = vadd.f32 %v7687_v7, %v23779_v20  ;;  %v8197_v48 = vunpack.i.h.s16 %v7949_v13  ;;  %v8442_v6 = vld [vmem:[#allocation2 + $0x104] sm:$0xff] }
 0x2f8   : > { %v8203_v36 = vunpack.i.h.s16 %v7953_v1  ;;  %v16020_v47 = vpack.i.b16 %v7948_v4, %v7948_v4  ;;  %v16023_v41 = vpack.i.b16 %v7952_v14, %v7952_v14  ;;  %v16026_v34 = vpack.i.b16 %v7949_v13, %v7949_v13  ;;  %v23835_v4 = vld [vmem:[#allocation30_spill] sm:$0xff]  ;;  %v23836_v14 = vld [vmem:[#allocation60_spill] sm:$0xff] }
 0x2f9   : > { %v16029_v38 = vpack.i.b16 %v7953_v1, %v7953_v1  ;;  %v8233_v2 = vpack.i.b16 %v8185_v9, %v8185_v9  ;;  %v8239_v17 = vpack.i.b16 %v8191_v12, %v8191_v12  ;;  %v8245_v25 = vpack.i.b16 %v8197_v48, %v8197_v48  ;;  %v23837_v9 = vld [vmem:[#allocation77_spill] sm:$0xff] }
 0x2fa   : > { %v8251_v23 = vpack.i.b16 %v8203_v36, %v8203_v36  ;;  %v8398_v45 = vsel %vm20726_vm2, %v16020_v47, %v8397_v24  ;;  %v8416_v46 = vsel %vm20726_vm2, %v16023_v41, %v8415_v8  ;;  %v8434_v51 = vsel %vm20726_vm2, %v16026_v34, %v8433_v61  ;;  %v23845_v8 = vld [vmem:[#allocation14_spill] sm:$0xff] }
 0x2fb   : > { %v8452_v10 = vsel %vm20726_vm2, %v16029_v38, %v8451_v35  ;;  %8399 = vst [vmem:[#allocation2 + $0xa0] sm:$0xff] %v8398_v45  ;;  %v8407_v62 = vsel %vm20726_vm2, %v8233_v2, %v8406_v59  ;;  %8417 = vst [vmem:[#allocation2 + $0xc8] sm:$0xff] %v8416_v46  ;;  %v8425_v39 = vsel %vm20726_vm2, %v8239_v17, %v8424_v21  ;;  %v7766_v7 = vmax.f32 %v7726_v0, 0.0  ;;  %v23843_v38 = vld [vmem:[#allocation24_spill] sm:$0xff]  ;;  %v23846_v2 = vld [vmem:[#allocation54_spill] sm:$0xff] }
 0x2fc   : > { %8435 = vst [vmem:[#allocation2 + $0xf0] sm:$0xff] %v8434_v51  ;;  %v8443_v55 = vsel %vm20726_vm2, %v8245_v25, %v8442_v6  ;;  %8453 = vst [vmem:[#allocation2 + $0x118] sm:$0xff] %v8452_v10  ;;  %v8461_v44 = vsel %vm20726_vm2, %v8251_v23, %v8460_v3  ;;  %v7982_v43 = vrot.slane %v15998_v11, %v19586_v26  ;;  %v7768_v42 = vmax.f32 %v7728_v33, 0.0  ;;  %v23838_v11 = vld [vmem:[#allocation31_spill] sm:$0xff]  ;;  %v23851_v10 = vld [vmem:[#allocation61_spill] sm:$0xff] }
 0x2fd   : > { %8408 = vst [vmem:[#allocation2 + $0xb4] sm:$0xff] %v8407_v62  ;;  %8426 = vst [vmem:[#allocation2 + $0xdc] sm:$0xff] %v8425_v39  ;;  %v7767_v18 = vmax.f32 %v7727_v54, 0.0  ;;  %v7729_v29 = vadd.f32 %v7689_v22, %v23779_v20  ;;  %v7630_v13 = vmax.f32 %v23835_v4, %v20669_v52  ;;  %v7632_v1 = vmax.f32 %v23836_v14, %v20677_v57  ;;  %v23839_v54 = vld [vmem:[#allocation13_spill] sm:$0xff]  ;;  %v23842_v52 = vld [vmem:[#allocation42_spill] sm:$0xff] }
 0x2fe   : > { %8444 = vst [vmem:[#allocation2 + $0x104] sm:$0xff] %v8443_v55  ;;  %8462 = vst [vmem:[#allocation2 + $0x12c] sm:$0xff] %v8461_v44  ;;  %v7631_v12 = vmax.f32 %v23837_v9, %v20679_v31  ;;  %v8018_v48 = vcombine.low %v20774_v5, %v7982_v43  ;;  %v8019_v36 = vcombine.high %v20774_v5, %v7982_v43  ;;  %v23840_v22 = vld [vmem:[#allocation53_spill] sm:$0xff]  ;;  %v23849_v59 = vld [vmem:[#allocation71_spill] sm:$0xff] }
 0x2ff   : > { %v15997_v47 = vpack.c.bf16 %v7767_v18, %v7766_v7  ;;  %v7633_v0 = vmax.f32 %v23838_v11, %v20691_v27  ;;  %v7769_v33 = vmax.f32 %v7729_v29, 0.0  ;;  %v23841_v41 = vmax.f32 %v23839_v54, %v23840_v22  ;;  %v23848_v27 = vld [vmem:[#allocation43_spill] sm:$0xff]  ;;  %v23852_v62 = vld [vmem:[#allocation78_spill] sm:$0xff]  ;;  %v23857_v9 = vld [vmem:[#allocation44_spill] sm:$0xff] }
 0x300   : > { %v23844_v24 = vmax.f32 %v23842_v52, %v23843_v38  ;;  %v23847_v31 = vmax.f32 %v23845_v8, %v23846_v2  ;;  %v8032_v25 = vrot.slane %v8018_v48, %v19586_v26  ;;  %v8046_v5 = vrot.slane %v8019_v36, %v19586_v26  ;;  %v23853_v55 = vld [vmem:[#allocation79_spill] sm:$0xff]  ;;  %v23860_v36 = vld [vmem:[#allocation45_spill] sm:$0xff]  ;;  %v23863_v54 = vld [vmem:[#allocation80_spill] sm:$0xff] }
 0x301   : > { %v7670_v34 = vmax.f32 %v23841_v41, %v7630_v13  ;;  %v7975_v23 = vrot.slane %v15997_v47, %v19586_v26  ;;  %v23850_v61 = vmax.f32 %v23848_v27, %v23849_v59  ;;  %v15999_v45 = vpack.c.bf16 %v7769_v33, %v7768_v42  ;;  %v23854_v4 = vld [vmem:[#allocation15_spill] sm:$0xff]  ;;  %v23855_v13 = vld [vmem:[#allocation72_spill] sm:$0xff]  ;;  %v23861_v47 = vld [vmem:[#allocation25_spill] sm:$0xff] }
 0x302   : > { %v7672_v57 = vmax.f32 %v23844_v24, %v7632_v1  ;;  %v7671_v17 = vmax.f32 %v23847_v31, %v7631_v12  ;;  %v7650_v3 = vmax.f32 %v23851_v10, %v20693_v15  ;;  %v7652_v39 = vmax.f32 %v23852_v62, %v20703_v30  ;;  %v23858_v12 = vld [vmem:[#allocation73_spill] sm:$0xff]  ;;  %v23864_v2 = vld [vmem:[#allocation16_spill] sm:$0xff]  ;;  %v23865_v31 = vld [vmem:[#allocation55_spill] sm:$0xff] }
 0x303   : > { %v7673_v35 = vmax.f32 %v23850_v61, %v7633_v0  ;;  %v7710_v46 = vadd.f32 %v7670_v34, %v23769_v40  ;;  %v7651_v44 = vmax.f32 %v23853_v55, %v20705_v37  ;;  %v7989_v43 = vrot.slane %v15999_v45, %v19586_v26  ;;  %v23867_v45 = vld [vmem:[#allocation81_spill] sm:$0xff] }
 0x304   : > { %v7712_v21 = vadd.f32 %v7672_v57, %v23769_v40  ;;  %v7711_v51 = vadd.f32 %v7671_v17, %v23769_v40  ;;  %v23856_v14 = vmax.f32 %v23854_v4, %v23855_v13  ;;  %v23859_v48 = vmax.f32 %v23857_v9, %v23858_v12  ;;  %v23870_v55 = vld [vmem:[#allocation33_spill] sm:$0xff]  ;;  %v23875_v13 = vld [vmem:[#allocation56_spill] sm:$0xff] }
 0x305   : > { %v7713_v6 = vadd.f32 %v7673_v35, %v23769_v40  ;;  %v7750_v7 = vmax.f32 %v7710_v46, 0.0  ;;  %v23862_v30 = vmax.f32 %v23860_v36, %v23861_v47  ;;  %v8020_v0 = vcombine.low %v7975_v23, %v7989_v43  ;;  %v23874_v4 = vld [vmem:[#allocation17_spill] sm:$0xff] }
 0x306   : > { %v7752_v42 = vmax.f32 %v7712_v21, 0.0  ;;  %v7751_v18 = vmax.f32 %v7711_v51, 0.0  ;;  %v7690_v1 = vmax.f32 %v23856_v14, %v7650_v3  ;;  %v7692_v15 = vmax.f32 %v23859_v48, %v7652_v39  ;;  %v23868_v21 = vld [vmem:[#allocation32_spill] sm:$0xff]  ;;  %v23881_v36 = vld [vmem:[#allocation57_spill] sm:$0xff] }
 0x307   : > { %v7753_v29 = vmax.f32 %v7713_v6, 0.0  ;;  %v7691_v11 = vmax.f32 %v23862_v30, %v7651_v44  ;;  %v8021_v37 = vcombine.high %v7975_v23, %v7989_v43  ;;  %v7653_v22 = vmax.f32 %v23863_v54, %v20711_v32  ;;  %v23869_v6 = vld [vmem:[#allocation62_spill] sm:$0xff] }
 0x308   : > { %v16000_v33 = vpack.c.bf16 %v7751_v18, %v7750_v7  ;;  %v7730_v34 = vadd.f32 %v7690_v1, %v23779_v20  ;;  %v7732_v52 = vadd.f32 %v7692_v15, %v23779_v20  ;;  %v20866_v24 = vrot.slane %v8020_v0, %v19586_v26  ;;  %v23871_v7 = vld [vmem:[#allocation46_spill] sm:$0xff]  ;;  %v23877_v1 = vld [vmem:[#allocation47_spill] sm:$0xff] }
 0x309   : > { %v16002_v41 = vpack.c.bf16 %v7753_v29, %v7752_v42  ;;  %v7731_v38 = vadd.f32 %v7691_v11, %v23779_v20  ;;  %v20869_v57 = vrot.slane %v8021_v37, %v19586_v26  ;;  %v23866_v17 = vmax.f32 %v23864_v2, %v23865_v31  ;;  %v23872_v42 = vld [vmem:[#allocation26_spill] sm:$0xff] }
 0x30a   : > { %v7996_v8 = vrot.slane %v16000_v33, %v19586_v26  ;;  %v7770_v27 = vmax.f32 %v7730_v34, 0.0  ;;  %v7772_v59 = vmax.f32 %v7732_v52, 0.0  ;;  %v7634_v46 = vmax.f32 %v23867_v45, %v20730_v49  ;;  %v8328_v45 = vld [vmem:[#allocation2 + $0x8] sm:$0xff] }
 0x30b   : > { %v7693_v23 = vmax.f32 %v23866_v17, %v7653_v22  ;;  %v8010_v32 = vrot.slane %v16002_v41, %v19586_v26  ;;  %v7771_v61 = vmax.f32 %v7731_v38, 0.0  ;;  %v7636_v51 = vmax.f32 %v23868_v21, %v20740_v50  ;;  %v23878_v50 = vld [vmem:[#allocation27_spill] sm:$0xff] }
 0x30c   : > { %v7635_v10 = vmax.f32 %v23869_v6, %v20742_v63  ;;  %v7637_v44 = vmax.f32 %v23870_v55, %v20752_v56  ;;  %v23873_v18 = vmax.f32 %v23871_v7, %v23872_v42  ;;  %v23876_v49 = vmax.f32 %v23874_v4, %v23875_v13  ;;  %v23880_v56 = vld [vmem:[#allocation18_spill] sm:$0xff]  ;;  %v8337_v6 = vld [vmem:[#allocation2 + $0x1c] sm:$0xff]  ;;  %v8355_v55 = vld [vmem:[#allocation2 + $0x44] sm:$0xff] }
 0x30d   : > { %v7733_v35 = vadd.f32 %v7693_v23, %v23779_v20  ;;  %v8022_v3 = vcombine.low %v7996_v8, %v8010_v32  ;;  %v8023_v62 = vcombine.high %v7996_v8, %v8010_v32  ;;  %v16001_v39 = vpack.c.bf16 %v7771_v61, %v7770_v27  ;;  %v8391_v42 = vld [vmem:[#allocation2 + $0x94] sm:$0xff] }
 0x30e   : > { %v7674_v29 = vmax.f32 %v23873_v18, %v7634_v46  ;;  %v7676_v14 = vmax.f32 %v23876_v49, %v7636_v51  ;;  %v23879_v9 = vmax.f32 %v23877_v1, %v23878_v50  ;;  %v23882_v47 = vmax.f32 %v23880_v56, %v23881_v36  ;;  %v8346_v46 = vld [vmem:[#allocation2 + $0x30] sm:$0xff]  ;;  %v23885_v56 = vld [vmem:[#allocation64_spill] sm:$0xff] }
 0x30f   : > { %v7773_v43 = vmax.f32 %v7733_v35, 0.0  ;;  %v8060_v63 = vrot.slane %v8022_v3, %v19586_v26  ;;  %v8074_v48 = vrot.slane %v8023_v62, %v19586_v26  ;;  %v8003_v15 = vrot.slane %v16001_v39, %v19586_v26  ;;  %v8382_v3 = vld [vmem:[#allocation2 + $0x80] sm:$0xff] }
 0x310   : > { %v7675_v12 = vmax.f32 %v23879_v9, %v7635_v10  ;;  %v7677_v30 = vmax.f32 %v23882_v47, %v7637_v44  ;;  %v7714_v0 = vadd.f32 %v7674_v29, %v23769_v40  ;;  %v20902_v37 = vadd.f32 %v7676_v14, %v23769_v40  ;;  %v8364_v10 = vld [vmem:[#allocation2 + $0x58] sm:$0xff] }
 0x311   : > { %v16003_v11 = vpack.c.bf16 %v7773_v43, %v7772_v59  ;;  %v8082_v54 = vcombine.low %v8032_v25, %v8060_v63  ;;  %v8083_v22 = vcombine.high %v8032_v25, %v8060_v63  ;;  %v8086_v41 = vcombine.low %v8046_v5, %v8074_v48  ;;  %v8373_v43 = vld [vmem:[#allocation2 + $0x6c] sm:$0xff]  ;;  %v23883_v9 = vld [vmem:[#allocation63_spill] sm:$0xff]  ;;  %v23884_v63 = vld [vmem:[#allocation34_spill] sm:$0xff] }
 0x312   : > { %v7715_v33 = vadd.f32 %v7675_v12, %v23769_v40  ;;  %v8087_v34 = vcombine.high %v8046_v5, %v8074_v48  ;;  %v7754_v38 = vmax.f32 %v7714_v0, 0.0  ;;  %v7756_v8 = vmax.f32 %v20902_v37, 0.0  ;;  %v23886_v47 = vld [vmem:[#allocation35_spill] sm:$0xff] }
 0x313   : > { %v8017_v52 = vrot.slane %v16003_v11, %v19586_v26  ;;  %v8162_v31 = vunpack.i.h.s16 %v8082_v54  ;;  %v8168_v17 = vunpack.i.h.s16 %v8086_v41  ;;  %v8174_v23 = vunpack.i.h.s16 %v8083_v22 }
 0x314   : > { %v7755_v2 = vmax.f32 %v7715_v33, 0.0  ;;  %v8180_v32 = vunpack.i.h.s16 %v8087_v34  ;;  %v16009_v27 = vpack.i.b16 %v8082_v54, %v8082_v54  ;;  %v16012_v59 = vpack.i.b16 %v8086_v41, %v8086_v41  ;;  %v23891_v41 = vld [vmem:[#allocation75_spill] sm:$0xff] }
 0x315   : > { %v16015_v61 = vpack.i.b16 %v8083_v22, %v8083_v22  ;;  %v16018_v35 = vpack.i.b16 %v8087_v34, %v8087_v34  ;;  %v8210_v21 = vpack.i.b16 %v8162_v31, %v8162_v31  ;;  %v8216_v25 = vpack.i.b16 %v8168_v17, %v8168_v17  ;;  %v23890_v22 = vld [vmem:[#allocation19_spill] sm:$0xff]  ;;  %v23897_v31 = vld [vmem:[#allocation28_spill] sm:$0xff] }
 0x316   : > { %v8222_v51 = vpack.i.b16 %v8174_v23, %v8174_v23  ;;  %v8228_v5 = vpack.i.b16 %v8180_v32, %v8180_v32  ;;  %v8329_v62 = vsel %vm20726_vm2, %v16009_v27, %v8328_v45  ;;  %v8347_v39 = vsel %vm20726_vm2, %v16012_v59, %v8346_v46 }
 0x317   : > { %v8365_v44 = vsel %vm20726_vm2, %v16015_v61, %v8364_v10  ;;  %v8383_v7 = vsel %vm20726_vm2, %v16018_v35, %v8382_v3  ;;  %8330 = vst [vmem:[#allocation2 + $0x8] sm:$0xff] %v8329_v62  ;;  %v8338_v18 = vsel %vm20726_vm2, %v8210_v21, %v8337_v6  ;;  %8348 = vst [vmem:[#allocation2 + $0x30] sm:$0xff] %v8347_v39 }
 0x318   : > { %v8356_v29 = vsel %vm20726_vm2, %v8216_v25, %v8355_v55  ;;  %8366 = vst [vmem:[#allocation2 + $0x58] sm:$0xff] %v8365_v44  ;;  %v8374_v4 = vsel %vm20726_vm2, %v8222_v51, %v8373_v43  ;;  %8384 = vst [vmem:[#allocation2 + $0x80] sm:$0xff] %v8383_v7  ;;  %v8392_v13 = vsel %vm20726_vm2, %v8228_v5, %v8391_v42  ;;  %v8418_v55 = vld [vmem:[#allocation2 + $0xd0] sm:$0xff]  ;;  %v8409_v7 = vld [vmem:[#allocation2 + $0xbc] sm:$0xff] }
 0x319   : > { %8339 = vst [vmem:[#allocation2 + $0x1c] sm:$0xff] %v8338_v18  ;;  %8357 = vst [vmem:[#allocation2 + $0x44] sm:$0xff] %v8356_v29  ;;  %v8024_v49 = vcombine.low %v8003_v15, %v8017_v52  ;;  %v8025_v14 = vcombine.high %v8003_v15, %v8017_v52  ;;  %v16004_v1 = vpack.c.bf16 %v7755_v2, %v7754_v38  ;;  %v23893_v52 = vld [vmem:[#allocation49_spill] sm:$0xff]  ;;  %v8436_v42 = vld [vmem:[#allocation2 + $0xf8] sm:$0xff] }
 0x31a   : > { %8375 = vst [vmem:[#allocation2 + $0x6c] sm:$0xff] %v8374_v4  ;;  %8393 = vst [vmem:[#allocation2 + $0x94] sm:$0xff] %v8392_v13  ;;  %v7717_v50 = vadd.f32 %v7677_v30, %v23769_v40  ;;  %v7654_v12 = vmax.f32 %v23883_v9, %v20754_v60  ;;  %v7656_v48 = vmax.f32 %v23884_v63, %v20757_v58  ;;  %v23887_v40 = vld [vmem:[#allocation48_spill] sm:$0xff]  ;;  %v23888_v30 = vld [vmem:[#allocation74_spill] sm:$0xff] }
 0x31b   : > { %v7655_v36 = vmax.f32 %v23885_v56, %v20759_v16  ;;  %v7657_v11 = vmax.f32 %v23886_v47, %v20769_v28  ;;  %v8067_v0 = vrot.slane %v8024_v49, %v19586_v26  ;;  %v8081_v37 = vrot.slane %v8025_v14, %v19586_v26  ;;  %v23894_v16 = vld [vmem:[#allocation76_spill] sm:$0xff]  ;;  %v23896_v28 = vld [vmem:[#allocation66_spill] sm:$0xff]  ;;  %v8445_v14 = vld [vmem:[#allocation2 + $0x10c] sm:$0xff] }
 0x31c   : > { %v8100_v15 = vrot.slane %v16004_v1, %v19586_v26  ;;  %v7757_v33 = vmax.f32 %v7717_v50, 0.0  ;;  %v23889_v54 = vmax.f32 %v23887_v40, %v23888_v30  ;;  %v23892_v58 = vmax.f32 %v23890_v22, %v23891_v41  ;;  %v8454_v18 = vld [vmem:[#allocation2 + $0x120] sm:$0xff]  ;;  %v8463_v50 = vld [vmem:[#allocation2 + $0x134] sm:$0xff] }
 0x31d   : > { %v23895_v38 = vmax.f32 %v23893_v52, %v23894_v16  ;;  %v23898_v17 = vmax.f32 %v23896_v28, %v23897_v31  ;;  %v8084_v32 = vcombine.low %v20866_v24, %v8067_v0  ;;  %v8085_v27 = vcombine.high %v20866_v24, %v8067_v0  ;;  %v8400_v24 = vld [vmem:[#allocation2 + $0xa8] sm:$0xff] }
 0x31e   : > { %v7694_v60 = vmax.f32 %v23889_v54, %v7654_v12  ;;  %v7696_v34 = vmax.f32 %v23892_v58, %v7656_v48  ;;  %v8088_v59 = vcombine.low %v20869_v57, %v8081_v37  ;;  %v8089_v61 = vcombine.high %v20869_v57, %v8081_v37  ;;  %v8427_v13 = vld [vmem:[#allocation2 + $0xe4] sm:$0xff] }
 0x31f   : > { %v7695_v2 = vmax.f32 %v23895_v38, %v7655_v36  ;;  %v7697_v23 = vmax.f32 %v23898_v17, %v7657_v11  ;;  %v16006_v35 = vpack.c.bf16 %v7757_v33, %v7756_v8  ;;  %v8186_v25 = vunpack.i.h.s16 %v8084_v32  ;;  %v8331_v17 = vld [vmem:[#allocation2 + $0x10] sm:$0xf] }
 0x320   : > { %v7734_v45 = vadd.f32 %v7694_v60, %v23779_v20  ;;  %v7736_v46 = vadd.f32 %v7696_v34, %v23779_v20  ;;  %v8192_v51 = vunpack.i.h.s16 %v8088_v59  ;;  %v8198_v5 = vunpack.i.h.s16 %v8085_v27 }
 0x321   : > { %v7735_v21 = vadd.f32 %v7695_v2, %v23779_v20  ;;  %v8204_v6 = vunpack.i.h.s16 %v8089_v61  ;;  %v16021_v10 = vpack.i.b16 %v8084_v32, %v8084_v32  ;;  %v16024_v3 = vpack.i.b16 %v8088_v59, %v8088_v59 }
 0x322   : > { %v16027_v62 = vpack.i.b16 %v8085_v27, %v8085_v27  ;;  %v16030_v39 = vpack.i.b16 %v8089_v61, %v8089_v61  ;;  %v8234_v44 = vpack.i.b16 %v8186_v25, %v8186_v25  ;;  %v8240_v43 = vpack.i.b16 %v8192_v51, %v8192_v51  ;;  %v8340_v61 = vld [vmem:[#allocation2 + $0x24] sm:$0xf] }
 0x323   : > { %v8246_v57 = vpack.i.b16 %v8198_v5, %v8198_v5  ;;  %v8252_v8 = vpack.i.b16 %v8204_v6, %v8204_v6  ;;  %v8401_v29 = vsel %vm20726_vm2, %v16021_v10, %v8400_v24  ;;  %v8419_v4 = vsel %vm20726_vm2, %v16024_v3, %v8418_v55  ;;  %v8367_v5 = vld [vmem:[#allocation2 + $0x60] sm:$0xf]  ;;  %v8385_v6 = vld [vmem:[#allocation2 + $0x88] sm:$0xf]  ;;  %v8376_v3 = vld [vmem:[#allocation2 + $0x74] sm:$0xf] }
 0x324   : > { %v8437_v49 = vsel %vm20726_vm2, %v16027_v62, %v8436_v42  ;;  %v8455_v1 = vsel %vm20726_vm2, %v16030_v39, %v8454_v18  ;;  %8402 = vst [vmem:[#allocation2 + $0xa8] sm:$0xff] %v8401_v29  ;;  %v8410_v9 = vsel %vm20726_vm2, %v8234_v44, %v8409_v7  ;;  %8420 = vst [vmem:[#allocation2 + $0xd0] sm:$0xff] %v8419_v4  ;;  %v7774_v36 = vmax.f32 %v7734_v45, 0.0  ;;  %v8358_v45 = vld [vmem:[#allocation2 + $0x4c] sm:$0xf] }
 0x325   : > { %v8428_v12 = vsel %vm20726_vm2, %v8240_v43, %v8427_v13  ;;  %8438 = vst [vmem:[#allocation2 + $0xf8] sm:$0xff] %v8437_v49  ;;  %v8446_v63 = vsel %vm20726_vm2, %v8246_v57, %v8445_v14  ;;  %8456 = vst [vmem:[#allocation2 + $0x120] sm:$0xff] %v8455_v1  ;;  %v8464_v48 = vsel %vm20726_vm2, %v8252_v8, %v8463_v50  ;;  %v7775_v47 = vmax.f32 %v7735_v21, 0.0  ;;  %v8394_v39 = vld [vmem:[#allocation2 + $0x9c] sm:$0xf] }
 0x326   : > { %8411 = vst [vmem:[#allocation2 + $0xbc] sm:$0xff] %v8410_v9  ;;  %8429 = vst [vmem:[#allocation2 + $0xe4] sm:$0xff] %v8428_v12  ;;  %v8114_v56 = vrot.slane %v16006_v35, %v19586_v26  ;;  %v7776_v11 = vmax.f32 %v7736_v46, 0.0  ;;  %v7737_v0 = vadd.f32 %v7697_v23, %v23779_v20  ;;  %v8349_v23 = vld [vmem:[#allocation2 + $0x38] sm:$0xf] }
 0x327   : > { %8447 = vst [vmem:[#allocation2 + $0x10c] sm:$0xff] %v8446_v63  ;;  %8465 = vst [vmem:[#allocation2 + $0x134] sm:$0xff] %v8464_v48  ;;  %v16005_v40 = vpack.c.bf16 %v7775_v47, %v7774_v36  ;;  %v8403_v9 = vld [vmem:[#allocation2 + $0xb0] sm:$0xf]  ;;  %v8421_v12 = vld [vmem:[#allocation2 + $0xd8] sm:$0xf] }
 0x328   : > { %v8122_v37 = vcombine.low %v8100_v15, %v8114_v56  ;;  %v8123_v33 = vcombine.high %v8100_v15, %v8114_v56  ;;  %v7777_v30 = vmax.f32 %v7737_v0, 0.0  ;;  %v8412_v36 = vld [vmem:[#allocation2 + $0xc4] sm:$0xf]  ;;  %v8430_v47 = vld [vmem:[#allocation2 + $0xec] sm:$0xf] }
 0x329   : > { %v8107_v38 = vrot.slane %v16005_v40, %v19586_v26  ;;  %v8439_v40 = vld [vmem:[#allocation2 + $0x100] sm:$0xf] }
 0x32a   : > { %v8132_v54 = vrot.slane %v8122_v37, %v19586_v26  ;;  %v8146_v19 = vrot.slane %v8123_v33, %v19586_v26  ;;  %v16007_v60 = vpack.c.bf16 %v7777_v30, %v7776_v11  ;;  %v8457_v30 = vld [vmem:[#allocation2 + $0x128] sm:$0xf] }
 0x32c   : > { %v8154_v22 = vcombine.high %v8132_v54, %v8132_v54  ;;  %v8156_v41 = vcombine.high %v8146_v19, %v8146_v19  ;;  %v8163_v58 = vunpack.i.h.s16 %v8132_v54  ;;  %v8169_v34 = vunpack.i.h.s16 %v8146_v19 }
 0x32d   : > { %v16010_v52 = vpack.i.b16 %v8132_v54, %v8132_v54  ;;  %v16013_v16 = vpack.i.b16 %v8146_v19, %v8146_v19  ;;  %v8121_v2 = vrot.slane %v16007_v60, %v19586_v26  ;;  %v8448_v19 = vld [vmem:[#allocation2 + $0x114] sm:$0xf] }
 0x32e   : > { %v8175_v20 = vunpack.i.h.s16 %v8154_v22  ;;  %v8181_v28 = vunpack.i.h.s16 %v8156_v41  ;;  %v8211_v15 = vpack.i.b16 %v8163_v58, %v8163_v58  ;;  %v8217_v31 = vpack.i.b16 %v8169_v34, %v8169_v34 }
 0x32f   : > { %v16016_v32 = vpack.i.b16 %v8154_v22, %v8154_v22  ;;  %v16019_v27 = vpack.i.b16 %v8156_v41, %v8156_v41  ;;  %v8332_v59 = vsel %vm20575_vm14, %v16010_v52, %v8331_v17  ;;  %v8350_v35 = vsel %vm20575_vm14, %v16013_v16, %v8349_v23  ;;  %v8466_v22 = vld [vmem:[#allocation2 + $0x13c] sm:$0xf] }
 0x330   : > { %v8223_v46 = vpack.i.b16 %v8175_v20, %v8175_v20  ;;  %v8229_v21 = vpack.i.b16 %v8181_v28, %v8181_v28  ;;  %8333 = vst [vmem:[#allocation2 + $0x10] sm:$0xf] %v8332_v59  ;;  %v8341_v25 = vsel %vm20575_vm14, %v8211_v15, %v8340_v61  ;;  %8351 = vst [vmem:[#allocation2 + $0x38] sm:$0xf] %v8350_v35 }
 0x331   : > { %v8359_v51 = vsel %vm20575_vm14, %v8217_v31, %v8358_v45  ;;  %8342 = vst [vmem:[#allocation2 + $0x24] sm:$0xf] %v8341_v25  ;;  %v8368_v10 = vsel %vm20575_vm14, %v16016_v32, %v8367_v5  ;;  %v8386_v62 = vsel %vm20575_vm14, %v16019_v27, %v8385_v6  ;;  %v8124_v24 = vcombine.low %v8107_v38, %v8121_v2 }
 0x332   : > { %8360 = vst [vmem:[#allocation2 + $0x4c] sm:$0xf] %v8359_v51  ;;  %v8125_v55 = vcombine.high %v8107_v38, %v8121_v2  ;;  %8369 = vst [vmem:[#allocation2 + $0x60] sm:$0xf] %v8368_v10  ;;  %v8377_v44 = vsel %vm20575_vm14, %v8223_v46, %v8376_v3  ;;  %v8395_v43 = vsel %vm20575_vm14, %v8229_v21, %v8394_v39 }
 0x333   : > { %8387 = vst [vmem:[#allocation2 + $0x88] sm:$0xf] %v8386_v62  ;;  %8378 = vst [vmem:[#allocation2 + $0x74] sm:$0xf] %v8377_v44  ;;  %v8139_v57 = vrot.slane %v8124_v24, %v19586_v26 }
 0x334   : > { %8396 = vst [vmem:[#allocation2 + $0x9c] sm:$0xf] %v8395_v43  ;;  %v8153_v8 = vrot.slane %v8125_v55, %v19586_v26 }
 0x335   : > { %v8155_v7 = vcombine.high %v8139_v57, %v8139_v57  ;;  %v8187_v18 = vunpack.i.h.s16 %v8139_v57  ;;  %v16022_v4 = vpack.i.b16 %v8139_v57, %v8139_v57 }
 0x336   : > { %v8157_v42 = vcombine.high %v8153_v8, %v8153_v8  ;;  %v8193_v29 = vunpack.i.h.s16 %v8153_v8  ;;  %v16025_v13 = vpack.i.b16 %v8153_v8, %v8153_v8 }
 0x337   : > { %v8199_v49 = vunpack.i.h.s16 %v8155_v7  ;;  %v8235_v1 = vpack.i.b16 %v8187_v18, %v8187_v18  ;;  %v16028_v63 = vpack.i.b16 %v8155_v7, %v8155_v7  ;;  %v8404_v56 = vsel %vm20575_vm14, %v16022_v4, %v8403_v9 }
 0x338   : > { %v8205_v14 = vunpack.i.h.s16 %v8157_v42  ;;  %v8241_v50 = vpack.i.b16 %v8193_v29, %v8193_v29  ;;  %v16031_v48 = vpack.i.b16 %v8157_v42, %v8157_v42  ;;  %v8422_v26 = vsel %vm20575_vm14, %v16025_v13, %v8421_v12  ;;  %8405 = vst [vmem:[#allocation2 + $0xb0] sm:$0xf] %v8404_v56 }
 0x339   : > { %v8247_v11 = vpack.i.b16 %v8199_v49, %v8199_v49  ;;  %v8413_v37 = vsel %vm20575_vm14, %v8235_v1, %v8412_v36  ;;  %8423 = vst [vmem:[#allocation2 + $0xd8] sm:$0xf] %v8422_v26  ;;  %v8440_v54 = vsel %vm20575_vm14, %v16028_v63, %v8439_v40 }
 0x33a   : > { %v8253_v0 = vpack.i.b16 %v8205_v14, %v8205_v14  ;;  %v8431_v33 = vsel %vm20575_vm14, %v8241_v50, %v8430_v47  ;;  %8414 = vst [vmem:[#allocation2 + $0xc4] sm:$0xf] %v8413_v37  ;;  %v8458_v60 = vsel %vm20575_vm14, %v16031_v48, %v8457_v30  ;;  %8441 = vst [vmem:[#allocation2 + $0x100] sm:$0xf] %v8440_v54 }
 0x33b   : > { %8432 = vst [vmem:[#allocation2 + $0xec] sm:$0xf] %v8431_v33  ;;  %v8449_v41 = vsel %vm20575_vm14, %v8247_v11, %v8448_v19  ;;  %8459 = vst [vmem:[#allocation2 + $0x128] sm:$0xf] %v8458_v60 }
 0x33c   : > { %v8467_v58 = vsel %vm20575_vm14, %v8253_v0, %v8466_v22  ;;  %8450 = vst [vmem:[#allocation2 + $0x114] sm:$0xf] %v8449_v41 }
 0x33d   : > { %8468 = vst [vmem:[#allocation2 + $0x13c] sm:$0xf] %v8467_v58 }
 0x33e PF: > { %v21011_v34 = vld [vmem:[%s17843_s16 + $0x28] sm:$0xff]  ;;  %v21017_v16 = vld [vmem:[%s17843_s16 + $0x50] sm:$0xff]  ;;  %s16033_s10 = smul.u32 80, %s17060_s23  ;;  %v9000_v37 = vlaneseq  ;;  %v17074_v41 = vmov 1966171168   ;;  %vm15232_vm8 = vcmask 1041408  }
 0x33f   : > { %v21014_v52 = vld [vmem:[%s17843_s16 + $0xc8] sm:$0xff]  ;;  %v8823_v53 = vunpack.c.l.s8.bf16 %v21011_v34  ;;  %v8824_v38 = vunpack.c.h.s8.bf16 %v21011_v34  ;;  %v21024_v28 = vld [vmem:[%s17843_s16 + $0xf0] sm:$0xff]  ;;  %v11934_v17 = vunpack.c.l.s8.bf16 %v21017_v16  ;;  %v11935_v23 = vunpack.c.h.s8.bf16 %v21017_v16  ;;  %p16773_p10 = scmp.ne.s32.totalorder %s17060_s23, 3 }
 0x340   : > { %v8833_v2 = vunpack.c.l.s8.bf16 %v21014_v52  ;;  %v8834_v20 = vunpack.c.h.s8.bf16 %v21014_v52  ;;  %v21027_v15 = vld [vmem:[%s17843_s16 + $0x168] sm:$0xff]  ;;  %v11944_v32 = vunpack.c.l.s8.bf16 %v21024_v28  ;;  %v11945_v27 = vunpack.c.h.s8.bf16 %v21024_v28  ;;  %v21037_v59 = vld [vmem:[%s17843_s16 + $0x190] sm:$0xff]  ;;  %s21119_s11 = scalar_lea.vmem [#allocation2], %s16033_s10 }
 0x341   : > { %v21030_v31 = vld [vmem:[%s17843_s16 + $0x208] sm:$0xff]  ;;  %v21040_v61 = vld [vmem:[%s17843_s16 + $0x230] sm:$0xff]  ;;  %v8843_v21 = vunpack.c.l.s8.bf16 %v21027_v15  ;;  %v11954_v62 = vunpack.c.l.s8.bf16 %v21037_v59  ;;  %v8998_v58 = vunpack.c.l.s4 %v17074_v41  ;;  %v11955_v34 = vunpack.c.h.s8.bf16 %v21037_v59 }
 0x342   : > { %v16041_v35 = vcombine.high %v8823_v53, %v8833_v2  ;;  %v21046_v45 = vcombine.low %v8824_v38, %v8834_v20  ;;  %v16040_v46 = vcombine.low %v8823_v53, %v8833_v2  ;;  %v16408_v25 = vcombine.high %v11934_v17, %v11944_v32  ;;  %v21057_v10 = vld [vmem:[%s17843_s16 + $0x2a8] sm:$0xff]  ;;  %v21065_v24 = vld [vmem:[%s17843_s16 + $0x2d0] sm:$0xff] }
 0x343   : > { %v21053_v51 = vcombine.low %v11935_v23, %v11945_v27  ;;  %v16407_v5 = vcombine.low %v11934_v17, %v11944_v32  ;;  %v8853_v6 = vunpack.c.l.s8.bf16 %v21030_v31  ;;  %v21060_v3 = vld [vmem:[%s17843_s16 + $0x348] sm:$0xff]  ;;  %v11964_v39 = vunpack.c.l.s8.bf16 %v21040_v61  ;;  %v21068_v55 = vld [vmem:[%s17843_s16 + $0x370] sm:$0xff] }
 0x344   : > { %10008 = vmatprep.subr.bf16.mxu1 %v16041_v35  ;;  %13119 = vmatprep.subr.bf16.mxu0 %v16408_v25  ;;  %v8863_v57 = vunpack.c.l.s8.bf16 %v21057_v10  ;;  %v8873_v8 = vunpack.c.l.s8.bf16 %v21060_v3  ;;  %v11974_v7 = vunpack.c.l.s8.bf16 %v21065_v24  ;;  %v11984_v42 = vunpack.c.l.s8.bf16 %v21068_v55  ;;  %v21075_v13 = vld [vmem:[%s17843_s16 + $0x3e8] sm:$0xff]  ;;  %v21081_v14 = vld [vmem:[%s17843_s16 + $0x410] sm:$0xff] }
 0x345   : > { %10009 = vmatpush1.bf16.xpose.msra.mxu1 %v16040_v46  ;;  %v16061_v44 = vcombine.high %v8843_v21, %v8853_v6  ;;  %13120 = vmatpush1.bf16.xpose.msra.mxu0 %v16407_v5  ;;  %v16428_v43 = vcombine.high %v11954_v62, %v11964_v39  ;;  %v16060_v18 = vcombine.low %v8843_v21, %v8853_v6  ;;  %v21078_v49 = vld [vmem:[%s17843_s16 + $0x488] sm:$0xff]  ;;  %v21084_v50 = vld [vmem:[%s17843_s16 + $0x4b0] sm:$0xff]  ;;  %v8883_v63 = vunpack.c.l.s8.bf16 %v21075_v13 }
 0x346   : > { %v16427_v29 = vcombine.low %v11954_v62, %v11964_v39  ;;  %v16081_v4 = vcombine.high %v8863_v57, %v8873_v8  ;;  %v16448_v1 = vcombine.high %v11974_v7, %v11984_v42  ;;  %v21087_v9 = vld [vmem:[%s17843_s16 + $0x528] sm:$0xff]  ;;  %v8893_v48 = vunpack.c.l.s8.bf16 %v21078_v49  ;;  %v21100_v11 = vld [vmem:[%s17843_s16 + $0x550] sm:$0xff] }
 0x347   : > { %10010 = vmatprep.subr.bf16.mxu1 %v16061_v44  ;;  %13121 = vmatprep.subr.bf16.mxu0 %v16428_v43  ;;  %v21090_v12 = vld [vmem:[%s17843_s16 + $0x5c8] sm:$0xff]  ;;  %v11994_v56 = vunpack.c.l.s8.bf16 %v21081_v14  ;;  %v12004_v36 = vunpack.c.l.s8.bf16 %v21084_v50  ;;  %v8903_v26 = vunpack.c.l.s8.bf16 %v21087_v9  ;;  %v21103_v0 = vld [vmem:[%s17843_s16 + $0x5f0] sm:$0xff]  ;;  %v16080_v33 = vcombine.low %v8863_v57, %v8873_v8 }
 0x348   : > { %v8913_v47 = vunpack.c.l.s8.bf16 %v21090_v12  ;;  %v16447_v40 = vcombine.low %v11974_v7, %v11984_v42  ;;  %v21106_v30 = vld [vmem:[%s17843_s16 + $0x668] sm:$0xff]  ;;  %v16101_v54 = vcombine.high %v8883_v63, %v8893_v48  ;;  %v16100_v19 = vcombine.low %v8883_v63, %v8893_v48  ;;  %v21122_v6 = vld [vmem:[%s21119_s11 + $0x14] sm:$0xff] }
 0x349   : > { %v12014_v60 = vunpack.c.l.s8.bf16 %v21100_v11  ;;  %v21110_v22 = vld [vmem:[%s17843_s16 + $0x708] sm:$0xff]  ;;  %v16468_v53 = vcombine.high %v11994_v56, %v12004_v36  ;;  %v16467_v2 = vcombine.low %v11994_v56, %v12004_v36  ;;  %v12024_v32 = vunpack.c.l.s8.bf16 %v21103_v0  ;;  %23900 = vst [vmem:[#allocation84_spill] sm:$0xff] %v21122_v6  ;;  %v21150_v28 = vld [vmem:[%s17843_s16 + $0x730] sm:$0xff] }
 0x34a   : > { %v16121_v17 = vcombine.high %v8903_v26, %v8913_v47  ;;  %v21113_v35 = vcombine.low %v8903_v26, %v8913_v47  ;;  %v23450_v46 = vunpack.c.l.s8.bf16 %v21106_v30  ;;  %v8999_v21 = vunpack.c.0.s8 %v8998_v58  ;;  %v21131_v39 = vld [vmem:[%s21119_s11 + $0x28] sm:$0xff] }
 0x34b   : > { %v21116_v25 = vshrl.u32 %v9000_v37, 7  ;;  %v23451_v5 = vunpack.c.l.s8.bf16 %v21110_v22  ;;  %v21128_v62 = vcombine.high %v8824_v38, %v8834_v20  ;;  %23901 = vst [vmem:[#allocation85_spill] sm:$0xff] %v21131_v39  ;;  %v21137_v44 = vcombine.high %v11935_v23, %v11945_v27  ;;  %v21147_v20 = vld [vmem:[%s17843_s16 + $0x690] sm:$0xff] }
 0x34c   : > { %v8844_v43 = vunpack.c.h.s8.bf16 %v21027_v15  ;;  %v8854_v52 = vunpack.c.h.s8.bf16 %v21030_v31  ;;  %v11965_v38 = vunpack.c.h.s8.bf16 %v21040_v61  ;;  %v8864_v16 = vunpack.c.h.s8.bf16 %v21057_v10 }
 0x34d   : > { %10011 = vmatpush1.bf16.xpose.msra.mxu1 %v16060_v18  ;;  %13122 = vmatpush1.bf16.xpose.msra.mxu0 %v16427_v29  ;;  %23899 = vst [vmem:[#allocation83_spill] sm:$0xff] %v21116_v25  ;;  %v21141_v57 = vsub.s32 %v8999_v21, %v21116_v25  ;;  %v8874_v15 = vunpack.c.h.s8.bf16 %v21060_v3  ;;  %v11975_v23 = vunpack.c.h.s8.bf16 %v21065_v24  ;;  %v11985_v27 = vunpack.c.h.s8.bf16 %v21068_v55 }
 0x34e   : > { %10012 = vmatprep.subr.bf16.mxu1 %v16081_v4  ;;  %13123 = vmatprep.subr.bf16.mxu0 %v16448_v1  ;;  %v21164_v61 = vcombine.high %v8844_v43, %v8854_v52  ;;  %v21166_v8 = vcombine.high %v11955_v34, %v11965_v38  ;;  %v21168_v10 = vcombine.low %v8844_v43, %v8854_v52  ;;  %v23448_v7 = vunpack.c.l.s8.bf16 %v21147_v20  ;;  %v11909_v52 = vld [vmem:[%s17843_s16 + $0x7d0] sm:$0xff] }
 0x34f   : > { %v21158_v31 = vrot.slane %v21122_v6, %v21141_v57  ;;  %v21162_v59 = vrot.slane %v21131_v39, %v21141_v57  ;;  %v21170_v3 = vcombine.low %v11955_v34, %v11965_v38  ;;  %v21172_v24 = vcombine.high %v8864_v16, %v8874_v15  ;;  %v11914_v34 = vld [vmem:[%s17843_s16 + $0x870] sm:$0xff] }
 0x350   : > { %v21174_v55 = vcombine.high %v11975_v23, %v11985_v27  ;;  %v23449_v42 = vunpack.c.l.s8.bf16 %v21150_v28  ;;  %v21182_v4 = vcombine.low %v8864_v16, %v8874_v15  ;;  %v21184_v1 = vcombine.low %v11975_v23, %v11985_v27  ;;  %v8808_v27 = vld [vmem:[%s17843_s16 + $0x8e8] sm:$0xff] }
 0x351   : > { %v9011_v18 = vcombine.high %v21158_v31, %v21158_v31  ;;  %v12122_v29 = vcombine.high %v21162_v59, %v21162_v59  ;;  %v8884_v63 = vunpack.c.h.s8.bf16 %v21075_v13  ;;  %v8894_v48 = vunpack.c.h.s8.bf16 %v21078_v49 }
 0x352   : > { %v16488_v56 = vcombine.high %v12014_v60, %v12024_v32  ;;  %v16487_v36 = vcombine.low %v12014_v60, %v12024_v32  ;;  %v16141_v13 = vcombine.high %v23450_v46, %v23451_v5  ;;  %v16508_v49 = vcombine.high %v23448_v7, %v23449_v42  ;;  %v8803_v32 = vld [vmem:[%s17843_s16 + $0x848] sm:$0xff] }
 0x353   : > { %v21189_v26 = vrot.slane %v9011_v18, %v21141_v57  ;;  %v21192_v47 = vrot.slane %v12122_v29, %v21141_v57  ;;  %v21194_v37 = vcombine.high %v8884_v63, %v8894_v48  ;;  %v12015_v41 = vunpack.c.h.s8.bf16 %v21100_v11  ;;  %v8813_v18 = vld [vmem:[%s17843_s16 + $0x988] sm:$0xff] }
 0x354   : > { %v12025_v58 = vunpack.c.h.s8.bf16 %v21103_v0  ;;  %v12035_v0 = vunpack.c.h.s8.bf16 %v21147_v20  ;;  %v12045_v43 = vunpack.c.h.s8.bf16 %v21150_v28  ;;  %v8954_v23 = vunpack.c.h.s8.bf16 %v8803_v32 }
 0x355   : > { %10013 = vmatpush1.bf16.xpose.msra.mxu1 %v16080_v33  ;;  %13124 = vmatpush1.bf16.xpose.msra.mxu0 %v16447_v40  ;;  %v11995_v33 = vunpack.c.h.s8.bf16 %v21081_v14  ;;  %v12005_v40 = vunpack.c.h.s8.bf16 %v21084_v50  ;;  %v8904_v14 = vunpack.c.h.s8.bf16 %v21087_v9  ;;  %v8914_v50 = vunpack.c.h.s8.bf16 %v21090_v12 }
 0x356   : > { %10014 = vmatprep.subr.bf16.mxu1 %v16101_v54  ;;  %13125 = vmatprep.subr.bf16.mxu0 %v16468_v53  ;;  %v21198_v54 = vcombine.low %v8884_v63, %v8894_v48  ;;  %v8924_v12 = vunpack.c.h.s8.bf16 %v21106_v30  ;;  %v21226_v21 = vcombine.high %v12015_v41, %v12025_v58  ;;  %v21228_v11 = vcombine.low %v12015_v41, %v12025_v58 }
 0x357   : > { %10040 = vmatprep.mubr.bf16.mxu1 %v21189_v26  ;;  %v21213_v60 = vcombine.low %v11995_v33, %v12005_v40  ;;  %13151 = vmatprep.mubr.bf16.mxu0 %v21192_v47  ;;  %v21218_v53 = vcombine.high %v8904_v14, %v8914_v50  ;;  %v21220_v9 = vcombine.low %v8904_v14, %v8914_v50  ;;  %v12055_v48 = vunpack.c.h.s8.bf16 %v11909_v52 }
 0x358   : > { %v21240_v29 = vcombine.high %v12035_v0, %v12045_v43  ;;  %v21242_v63 = vcombine.low %v12035_v0, %v12045_v43  ;;  %v8964_v41 = vunpack.c.h.s8.bf16 %v8808_v27  ;;  %v8974_v58 = vunpack.c.h.s8.bf16 %v8813_v18 }
 0x359   : > { %v8953_v5 = vunpack.c.l.s8.bf16 %v8803_v32  ;;  %v12054_v25 = vunpack.c.l.s8.bf16 %v11909_v52  ;;  %v23903_v39 = vunpack.c.l.s8.bf16 %v21106_v30  ;;  %v23904_v6 = vunpack.c.l.s8.bf16 %v21150_v28  ;;  %v21272_v28 = vld [vmem:[%s17843_s16 + $0xa28] sm:$0x55] }
 0x35a   : > { %v21255_v0 = vcombine.high %v8964_v41, %v8974_v58  ;;  %v21257_v43 = vcombine.low %v8964_v41, %v8974_v58  ;;  %v23905_v41 = vunpack.c.l.s8.bf16 %v21147_v20  ;;  %v21275_v20 = vld [vmem:[%s17843_s16 + $0xa50] sm:$0x55]  ;;  %v21287_v58 = vrot.slane %v21162_v59, %v21141_v57 }
 0x35b   : > { %vm15233_vm15 = vcmask 19458  }
 0x35c   : > { %vm23262_vm3 = vmor %vm15233_vm15, %vm15232_vm8 }
 0x35d   : > { %10015 = vmatpush1.bf16.xpose.msra.mxu1 %v16100_v19  ;;  %13126 = vmatpush1.bf16.xpose.msra.mxu0 %v16467_v2  ;;  %v21211_v19 = vcombine.high %v11995_v33, %v12005_v40  ;;  %v8934_v2 = vunpack.c.h.s8.bf16 %v21110_v22  ;;  %v11919_v33 = vld [vmem:[%s17843_s16 + $0x910] sm:$0xff] }
 0x35e   : > { %10016 = vmatprep.subr.bf16.mxu1 %v16121_v17  ;;  %13127 = vmatprep.subr.bf16.mxu0 %v16488_v56  ;;  %v8798_v17 = vld [vmem:[%s17843_s16 + $0x7a8] sm:$0xff]  ;;  %v12065_v56 = vunpack.c.h.s8.bf16 %v11914_v34  ;;  %v11924_v40 = vld [vmem:[%s17843_s16 + $0x9b0] sm:$0xff]  ;;  %v12075_v7 = vunpack.c.h.s8.bf16 %v11919_v33 }
 0x35f   : > { %v21234_v38 = vcombine.high %v8924_v12, %v8934_v2  ;;  %v21236_v16 = vcombine.low %v8924_v12, %v8934_v2  ;;  %v8944_v15 = vunpack.c.h.s8.bf16 %v8798_v17  ;;  %v12085_v42 = vunpack.c.h.s8.bf16 %v11924_v40 }
 0x360   : > { %v21250_v12 = vcombine.high %v12055_v48, %v12065_v56  ;;  %v21252_v2 = vcombine.low %v12055_v48, %v12065_v56  ;;  %v8943_v46 = vunpack.c.l.s8.bf16 %v8798_v17  ;;  %v12064_v48 = vunpack.c.l.s8.bf16 %v11914_v34 }
 0x361   : > { %v21246_v14 = vcombine.high %v8944_v15, %v8954_v23  ;;  %v21248_v50 = vcombine.low %v8944_v15, %v8954_v23  ;;  %v21259_v15 = vcombine.high %v12075_v7, %v12085_v42  ;;  %v21261_v23 = vcombine.low %v12075_v7, %v12085_v42 }
 0x362   : > { %v23902_v56 = vunpack.c.l.s8.bf16 %v21110_v22  ;;  %v16528_v17 = vcombine.high %v12054_v25, %v12064_v48  ;;  %v8963_v7 = vunpack.c.l.s8.bf16 %v8808_v27  ;;  %v8973_v42 = vunpack.c.l.s8.bf16 %v8813_v18 }
 0x363   : > { %v12084_v22 = vunpack.c.l.s8.bf16 %v11924_v40  ;;  %v16160_v32 = vcombine.low %v8943_v46, %v8953_v5  ;;  %v16527_v30 = vcombine.low %v12054_v25, %v12064_v48  ;;  %v12094_v34 = vunpack.c.l.s8.bf16 %v21275_v20 }
 0x364   : > { %v16180_v27 = vcombine.low %v8963_v7, %v8973_v42  ;;  %v9043_v48 = vcombine.high %v21189_v26, %v21189_v26 }
 0x365   : > { %10017 = vmatpush1.bf16.xpose.msra.mxu1 %v21113_v35  ;;  %13128 = vmatpush1.bf16.xpose.msra.mxu0 %v16487_v36  ;;  %v16140_v35 = vcombine.low %v23903_v39, %v23902_v56  ;;  %v16507_v36 = vcombine.low %v23905_v41, %v23904_v6  ;;  %v16181_v39 = vcombine.high %v8963_v7, %v8973_v42  ;;  %v8983_v6 = vunpack.c.l.s8.bf16 %v21272_v28  ;;  %v21338_v41 = vld [vmem:[%s17843_s16 + $0x238] sm:$0xff] }
 0x366   : > { %10018 = vmatprep.subr.bf16.mxu1 %v16141_v13  ;;  %13129 = vmatprep.subr.bf16.mxu0 %v16508_v49  ;;  %v16161_v13 = vcombine.high %v8943_v46, %v8953_v5  ;;  %v12074_v49 = vunpack.c.l.s8.bf16 %v11919_v33  ;;  %v16568_v40 = vcombine.high %v12094_v34, %v12094_v34  ;;  %v16567_v25 = vcombine.low %v12094_v34, %v12094_v34 }
 0x367   : > { %v16201_v33 = vcombine.high %v8983_v6, %v8983_v6  ;;  %v16200_v46 = vcombine.low %v8983_v6, %v8983_v6  ;;  %v21283_v5 = vrot.slane %v21158_v31, %v21141_v57  ;;  %v12154_v56 = vcombine.high %v21192_v47, %v21192_v47 }
 0x368   : > { %v16548_v52 = vcombine.high %v12074_v49, %v12084_v22  ;;  %v16547_v18 = vcombine.low %v12074_v49, %v12084_v22  ;;  %v21354_v22 = vld [vmem:[%s17843_s16 + $0x2b0] sm:$0xff] }
 0x36d   : > { %10019 = vmatpush1.bf16.xpose.msra.mxu1 %v16140_v35  ;;  %13130 = vmatpush1.bf16.xpose.msra.mxu0 %v16507_v36  ;;  %v21332_v35 = vld [vmem:[%s17843_s16 + $0x210] sm:$0xff] }
 0x36e   : > { %10020 = vmatprep.subr.bf16.mxu1 %v16161_v13  ;;  %13131 = vmatprep.subr.bf16.mxu0 %v16528_v17  ;;  %v8856_v13 = vunpack.c.h.s8.bf16 %v21332_v35 }
 0x375   : > { %10021 = vmatpush1.bf16.xpose.msra.mxu1 %v16160_v32  ;;  %13132 = vmatpush1.bf16.xpose.msra.mxu0 %v16527_v30  ;;  %v21363_v32 = vld [vmem:[%s17843_s16 + $0x2d8] sm:$0xff] }
 0x376   : > { %10022 = vmatprep.subr.bf16.mxu1 %v16181_v39  ;;  %13133 = vmatprep.subr.bf16.mxu0 %v16548_v52  ;;  %v21366_v30 = vld [vmem:[%s17843_s16 + $0x378] sm:$0xff]  ;;  %v11977_v52 = vunpack.c.h.s8.bf16 %v21363_v32 }
 0x377   : > { %v11987_v6 = vunpack.c.h.s8.bf16 %v21366_v30 }
 0x379   : > { %v21377_v34 = vcombine.high %v11977_v52, %v11987_v6 }
 0x37d   : > { %10023 = vmatpush1.bf16.xpose.msra.mxu1 %v16180_v27  ;;  %13134 = vmatpush1.bf16.xpose.msra.mxu0 %v16547_v18  ;;  %v21381_v18 = vcombine.low %v11977_v52, %v11987_v6 }
 0x37e   : > { %10024 = vmatprep.subr.bf16.mxu1 %v16201_v33  ;;  %13135 = vmatprep.subr.bf16.mxu0 %v16568_v40  ;;  %v8855_v33 = vunpack.c.l.s8.bf16 %v21332_v35 }
 0x385   : > { %10025 = vmatpush1.bf16.xpose.msra.mxu1 %v16200_v46  ;;  %13136 = vmatpush1.bf16.xpose.msra.mxu0 %v16567_v25  ;;  %v11966_v46 = vunpack.c.l.s8.bf16 %v21338_v41 }
 0x386   : > { %10049 = vmatprep.subr.bf16.mxu1 %v21128_v62  ;;  %13160 = vmatprep.subr.bf16.mxu0 %v21137_v44  ;;  %v21301_v62 = vld [vmem:[%s17843_s16 + $0x30] sm:$0xff] }
 0x387   : > { %v21304_v44 = vld [vmem:[%s17843_s16 + $0xd0] sm:$0xff]  ;;  %v8826_v31 = vunpack.c.h.s8.bf16 %v21301_v62 }
 0x388   : > { %v8836_v59 = vunpack.c.h.s8.bf16 %v21304_v44 }
 0x38a   : > { %v21326_v26 = vcombine.low %v8826_v31, %v8836_v59 }
 0x38c   : > { %10041 = vmatmul.mubr.bf16.vlgmr.msra.gmra.mrb[0].mxu1 %v21283_v5  ;;  %13152 = vmatmul.mubr.bf16.vlgmr.msra.gmra.mrb[0].mxu0 %v21287_v58 }
 0x38d   : > { %10050 = vmatpush1.bf16.xpose.msra.mxu1 %v21046_v45  ;;  %13161 = vmatpush1.bf16.xpose.msra.mxu0 %v21053_v51  ;;  %v21309_v45 = vld [vmem:[%s17843_s16 + $0x58] sm:$0xff] }
 0x38e   : > { %10051 = vmatprep.subr.bf16.mxu1 %v21164_v61  ;;  %13162 = vmatprep.subr.bf16.mxu0 %v21166_v8  ;;  %v21312_v51 = vld [vmem:[%s17843_s16 + $0xf8] sm:$0xff]  ;;  %v11937_v61 = vunpack.c.h.s8.bf16 %v21309_v45 }
 0x38f   : > { %10081 = vmatprep.mubr.bf16.mxu1 %v9043_v48  ;;  %13192 = vmatprep.mubr.bf16.mxu0 %v12154_v56  ;;  %v11947_v8 = vunpack.c.h.s8.bf16 %v21312_v51  ;;  %v9041_v48 = vcombine.high %v21283_v5, %v21283_v5  ;;  %v8865_v5 = vunpack.c.l.s8.bf16 %v21354_v22 }
 0x391   : > { %v21328_v47 = vcombine.low %v11937_v61, %v11947_v8 }
 0x395   : > { %10052 = vmatpush1.bf16.xpose.msra.mxu1 %v21168_v10  ;;  %13163 = vmatpush1.bf16.xpose.msra.mxu0 %v21170_v3  ;;  %v21319_v10 = vcombine.high %v8826_v31, %v8836_v59  ;;  %v21321_v3 = vcombine.high %v11937_v61, %v11947_v8  ;;  %v11976_v8 = vunpack.c.l.s8.bf16 %v21363_v32 }
 0x396   : > { %10053 = vmatprep.subr.bf16.mxu1 %v21172_v24  ;;  %13164 = vmatprep.subr.bf16.mxu0 %v21174_v55  ;;  %v21324_v24 = vld [vmem:[%s17843_s16 + $0x170] sm:$0xff]  ;;  %v21335_v55 = vld [vmem:[%s17843_s16 + $0x198] sm:$0xff] }
 0x397   : > { %v8846_v36 = vunpack.c.h.s8.bf16 %v21324_v24  ;;  %v11957_v17 = vunpack.c.h.s8.bf16 %v21335_v55  ;;  %v11956_v40 = vunpack.c.l.s8.bf16 %v21335_v55 }
 0x399   : > { %v21347_v7 = vcombine.high %v8846_v36, %v8856_v13  ;;  %v21351_v49 = vcombine.low %v8846_v36, %v8856_v13  ;;  %v16432_v31 = vcombine.high %v11956_v40, %v11966_v46  ;;  %v16431_v55 = vcombine.low %v11956_v40, %v11966_v46  ;;  %v21438_v13 = vld [vmem:[%s17843_s16 + $0x3f0] sm:$0xff] }
 0x39d   : > { %10054 = vmatpush1.bf16.xpose.msra.mxu1 %v21182_v4  ;;  %13165 = vmatpush1.bf16.xpose.msra.mxu0 %v21184_v1  ;;  %v11967_v4 = vunpack.c.h.s8.bf16 %v21338_v41 }
 0x39e   : > { %10055 = vmatprep.subr.bf16.mxu1 %v21194_v37  ;;  %13166 = vmatprep.subr.bf16.mxu0 %v21211_v19  ;;  %v21360_v37 = vld [vmem:[%s17843_s16 + $0x350] sm:$0xff]  ;;  %v8866_v19 = vunpack.c.h.s8.bf16 %v21354_v22  ;;  %v21447_v22 = vld [vmem:[%s17843_s16 + $0x4b8] sm:$0xff] }
 0x39f   : > { %v21349_v42 = vcombine.high %v11957_v17, %v11967_v4  ;;  %v21356_v1 = vcombine.low %v11957_v17, %v11967_v4  ;;  %v8876_v39 = vunpack.c.h.s8.bf16 %v21360_v37  ;;  %v21441_v17 = vld [vmem:[%s17843_s16 + $0x490] sm:$0xff]  ;;  %v21444_v4 = vld [vmem:[%s17843_s16 + $0x418] sm:$0xff] }
 0x3a0   : > { %v8895_v32 = vunpack.c.l.s8.bf16 %v21441_v17 }
 0x3a1   : > { %v21379_v27 = vcombine.low %v8866_v19, %v8876_v39 }
 0x3a5   : > { %10056 = vmatpush1.bf16.xpose.msra.mxu1 %v21198_v54  ;;  %13167 = vmatpush1.bf16.xpose.msra.mxu0 %v21213_v60  ;;  %v21375_v54 = vcombine.high %v8866_v19, %v8876_v39  ;;  %v8984_v60 = vunpack.c.h.s8.bf16 %v21272_v28  ;;  %v12006_v19 = vunpack.c.l.s8.bf16 %v21447_v22 }
 0x3a6   : > { %10057 = vmatprep.subr.bf16.mxu1 %v21218_v53  ;;  %13168 = vmatprep.subr.bf16.mxu0 %v21226_v21  ;;  %v12095_v53 = vunpack.c.h.s8.bf16 %v21275_v20  ;;  %v8845_v20 = vunpack.c.l.s8.bf16 %v21324_v24  ;;  %v11986_v24 = vunpack.c.l.s8.bf16 %v21366_v30  ;;  %v11996_v30 = vunpack.c.l.s8.bf16 %v21444_v4 }
 0x3a8   : > { %v16570_v21 = vcombine.high %v12095_v53, %v12095_v53  ;;  %v16064_v35 = vcombine.low %v8845_v20, %v8855_v33  ;;  %v16452_v36 = vcombine.high %v11976_v8, %v11986_v24  ;;  %v16451_v52 = vcombine.low %v11976_v8, %v11986_v24 }
 0x3ad   : > { %10058 = vmatpush1.bf16.xpose.msra.mxu1 %v21220_v9  ;;  %13169 = vmatpush1.bf16.xpose.msra.mxu0 %v21228_v11  ;;  %v16203_v9 = vcombine.high %v8984_v60, %v8984_v60  ;;  %v8825_v11 = vunpack.c.l.s8.bf16 %v21301_v62  ;;  %v12152_v62 = vcombine.high %v21287_v58, %v21287_v58  ;;  %v8875_v58 = vunpack.c.l.s8.bf16 %v21360_v37 }
 0x3ae   : > { %10059 = vmatprep.subr.bf16.mxu1 %v21234_v38  ;;  %13170 = vmatprep.subr.bf16.mxu0 %v21240_v29  ;;  %v8835_v38 = vunpack.c.l.s8.bf16 %v21304_v44  ;;  %v8885_v37 = vunpack.c.l.s8.bf16 %v21438_v13 }
 0x3af   : > { %v16085_v41 = vcombine.high %v8865_v5, %v8875_v58  ;;  %v16084_v39 = vcombine.low %v8865_v5, %v8875_v58  ;;  %v21495_v5 = vld [vmem:[%s17843_s16 + $0x878] sm:$0xff] }
 0x3b0   : > { %v16044_v44 = vcombine.low %v8825_v11, %v8835_v38  ;;  %v16105_v6 = vcombine.high %v8885_v37, %v8895_v32 }
 0x3b5   : > { %10060 = vmatpush1.bf16.xpose.msra.mxu1 %v21236_v16  ;;  %13171 = vmatpush1.bf16.xpose.msra.mxu0 %v21242_v63  ;;  %v23906_v16 = vld [vmem:[#allocation84_spill] sm:$0xff]  ;;  %v11936_v63 = vunpack.c.l.s8.bf16 %v21309_v45 }
 0x3b6   : > { %10061 = vmatprep.subr.bf16.mxu1 %v21246_v14  ;;  %13172 = vmatprep.subr.bf16.mxu0 %v21250_v12  ;;  %v8996_v29 = vcombine.high %v23906_v16, %v23906_v16  ;;  %v11946_v14 = vunpack.c.l.s8.bf16 %v21312_v51  ;;  %v16065_v51 = vcombine.high %v8845_v20, %v8855_v33  ;;  %v21479_v20 = vld [vmem:[%s17843_s16 + $0x738] sm:$0xff] }
 0x3b8   : > { %v16411_v45 = vcombine.low %v11936_v63, %v11946_v14 }
 0x3bd   : > { %10062 = vmatpush1.bf16.xpose.msra.mxu1 %v21248_v50  ;;  %13173 = vmatpush1.bf16.xpose.msra.mxu0 %v21252_v2  ;;  %v23907_v50 = vld [vmem:[#allocation85_spill] sm:$0xff]  ;;  %v16202_v2 = vcombine.low %v8984_v60, %v8984_v60  ;;  %v16472_v60 = vcombine.high %v11996_v30, %v12006_v19 }
 0x3be   : > { %10063 = vmatprep.subr.bf16.mxu1 %v21255_v0  ;;  %13174 = vmatprep.subr.bf16.mxu0 %v21259_v15  ;;  %v12107_v12 = vcombine.high %v23907_v50, %v23907_v50  ;;  %v16569_v0 = vcombine.low %v12095_v53, %v12095_v53  ;;  %v16412_v15 = vcombine.high %v11936_v63, %v11946_v14  ;;  %v21454_v53 = vld [vmem:[%s17843_s16 + $0x530] sm:$0xff] }
 0x3bf   : > { %v16104_v14 = vcombine.low %v8885_v37, %v8895_v32  ;;  %v16471_v50 = vcombine.low %v11996_v30, %v12006_v19  ;;  %v21502_v32 = vld [vmem:[%s17843_s16 + $0x8f0] sm:$0xff]  ;;  %v21508_v19 = vld [vmem:[%s17843_s16 + $0x918] sm:$0xff] }
 0x3c0   : > { %v21411_v28 = vrot.slane %v12107_v12, %v21141_v57  ;;  %v21505_v30 = vld [vmem:[%s17843_s16 + $0x990] sm:$0xff] }
 0x3c2   : > { %v12123_v56 = vcombine.high %v21411_v28, %v21411_v28 }
 0x3c4   : > { %v21429_v61 = vrot.slane %v12123_v56, %v21141_v57 }
 0x3c5   : > { %10064 = vmatpush1.bf16.xpose.msra.mxu1 %v21257_v43  ;;  %13175 = vmatpush1.bf16.xpose.msra.mxu0 %v21261_v23  ;;  %v16045_v43 = vcombine.high %v8825_v11, %v8835_v38  ;;  %v21408_v23 = vrot.slane %v8996_v29, %v21141_v57  ;;  %v21463_v11 = vld [vmem:[%s17843_s16 + $0x5f8] sm:$0xff]  ;;  %v8905_v38 = vunpack.c.l.s8.bf16 %v21454_v53 }
 0x3c6   : > { %10065 = vmatprep.subr.bf16.mxu1 %v16203_v9  ;;  %13176 = vmatprep.subr.bf16.mxu0 %v16570_v21  ;;  %v21457_v9 = vld [vmem:[%s17843_s16 + $0x5d0] sm:$0xff]  ;;  %v21460_v21 = vld [vmem:[%s17843_s16 + $0x558] sm:$0xff]  ;;  %v12026_v63 = vunpack.c.l.s8.bf16 %v21463_v11 }
 0x3c7   : > { %v9012_v25 = vcombine.high %v21408_v23, %v21408_v23  ;;  %v8915_v16 = vunpack.c.l.s8.bf16 %v21457_v9  ;;  %v12016_v29 = vunpack.c.l.s8.bf16 %v21460_v21 }
 0x3c9   : > { %v21426_v59 = vrot.slane %v9012_v25, %v21141_v57  ;;  %v16125_v12 = vcombine.high %v8905_v38, %v8915_v16  ;;  %v12046_v25 = vunpack.c.l.s8.bf16 %v21479_v20  ;;  %v16491_v56 = vcombine.low %v12016_v29, %v12026_v63 }
 0x3cd   : > { %10066 = vmatpush1.bf16.xpose.msra.mxu1 %v16202_v2  ;;  %13177 = vmatpush1.bf16.xpose.msra.mxu0 %v16569_v0  ;;  %v16492_v2 = vcombine.high %v12016_v29, %v12026_v63  ;;  %v21470_v0 = vld [vmem:[%s17843_s16 + $0x670] sm:$0xff] }
 0x3ce   : > { %10090 = vmatprep.subr.bf16.mxu1 %v16045_v43  ;;  %13201 = vmatprep.subr.bf16.mxu0 %v16412_v15  ;;  %v21473_v43 = vld [vmem:[%s17843_s16 + $0x710] sm:$0xff]  ;;  %v21476_v15 = vld [vmem:[%s17843_s16 + $0x698] sm:$0xff]  ;;  %v8925_v33 = vunpack.c.l.s8.bf16 %v21470_v0 }
 0x3cf   : > { %v8935_v40 = vunpack.c.l.s8.bf16 %v21473_v43  ;;  %v12036_v46 = vunpack.c.l.s8.bf16 %v21476_v15 }
 0x3d4   : > { %10082 = vmatmul.mubr.bf16.vlgmr.msra.gmra.mrb[0].mxu1 %v9041_v48  ;;  %13193 = vmatmul.mubr.bf16.vlgmr.msra.gmra.mrb[0].mxu0 %v12152_v62  ;;  %v16124_v48 = vcombine.low %v8905_v38, %v8915_v16  ;;  %v16145_v62 = vcombine.high %v8925_v33, %v8935_v40 }
 0x3d5   : > { %10091 = vmatpush1.bf16.xpose.msra.mxu1 %v16044_v44  ;;  %13202 = vmatpush1.bf16.xpose.msra.mxu0 %v16411_v45  ;;  %v16512_v44 = vcombine.high %v12036_v46, %v12046_v25  ;;  %v21486_v45 = vld [vmem:[%s17843_s16 + $0x7b0] sm:$0xff] }
 0x3d6   : > { %10092 = vmatprep.subr.bf16.mxu1 %v16065_v51  ;;  %13203 = vmatprep.subr.bf16.mxu0 %v16432_v31  ;;  %v21489_v51 = vld [vmem:[%s17843_s16 + $0x850] sm:$0xff]  ;;  %v21492_v31 = vld [vmem:[%s17843_s16 + $0x7d8] sm:$0xff]  ;;  %v8945_v58 = vunpack.c.l.s8.bf16 %v21486_v45 }
 0x3d7   : > { %10122 = vmatprep.mubr.bf16.mxu1 %v21426_v59  ;;  %13233 = vmatprep.mubr.bf16.mxu0 %v21429_v61  ;;  %v8955_v8 = vunpack.c.l.s8.bf16 %v21489_v51  ;;  %v12056_v24 = vunpack.c.l.s8.bf16 %v21492_v31 }
 0x3d9   : > { %v16164_v16 = vcombine.low %v8945_v58, %v8955_v8 }
 0x3dd   : > { %10093 = vmatpush1.bf16.xpose.msra.mxu1 %v16064_v35  ;;  %13204 = vmatpush1.bf16.xpose.msra.mxu0 %v16431_v55  ;;  %v12066_v35 = vunpack.c.l.s8.bf16 %v21495_v5  ;;  %v16144_v55 = vcombine.low %v8925_v33, %v8935_v40 }
 0x3de   : > { %10094 = vmatprep.subr.bf16.mxu1 %v16085_v41  ;;  %13205 = vmatprep.subr.bf16.mxu0 %v16452_v36  ;;  %v16511_v41 = vcombine.low %v12036_v46, %v12046_v25  ;;  %v16165_v36 = vcombine.high %v8945_v58, %v8955_v8  ;;  %v21533_v58 = vrot.slane %v21411_v28, %v21141_v57 }
 0x3df   : > { %v16532_v37 = vcombine.high %v12056_v24, %v12066_v35  ;;  %v16531_v29 = vcombine.low %v12056_v24, %v12066_v35  ;;  %v9044_v8 = vcombine.high %v21426_v59, %v21426_v59  ;;  %v12155_v24 = vcombine.high %v21429_v61, %v21429_v61 }
 0x3e5   : > { %10095 = vmatpush1.bf16.xpose.msra.mxu1 %v16084_v39  ;;  %13206 = vmatpush1.bf16.xpose.msra.mxu0 %v16451_v52  ;;  %v21511_v39 = vld [vmem:[%s17843_s16 + $0x9b8] sm:$0xff]  ;;  %v8965_v52 = vunpack.c.l.s8.bf16 %v21502_v32 }
 0x3e6   : > { %10096 = vmatprep.subr.bf16.mxu1 %v16105_v6  ;;  %13207 = vmatprep.subr.bf16.mxu0 %v16472_v60  ;;  %v8975_v6 = vunpack.c.l.s8.bf16 %v21505_v30  ;;  %v12076_v60 = vunpack.c.l.s8.bf16 %v21508_v19  ;;  %v12086_v38 = vunpack.c.l.s8.bf16 %v21511_v39 }
 0x3e8   : > { %v16185_v63 = vcombine.high %v8965_v52, %v8975_v6  ;;  %v16184_v40 = vcombine.low %v8965_v52, %v8975_v6  ;;  %v16551_v46 = vcombine.low %v12076_v60, %v12086_v38 }
 0x3ed   : > { %10097 = vmatpush1.bf16.xpose.msra.mxu1 %v16104_v14  ;;  %13208 = vmatpush1.bf16.xpose.msra.mxu0 %v16471_v50  ;;  %v16552_v14 = vcombine.high %v12076_v60, %v12086_v38  ;;  %v21518_v50 = vld [vmem:[%s17843_s16 + $0xa30] sm:$0x55]  ;;  %v21574_v38 = vld [vmem:[%s17843_s16 + $0x38] sm:$0xff] }
 0x3ee   : > { %10098 = vmatprep.subr.bf16.mxu1 %v16125_v12  ;;  %13209 = vmatprep.subr.bf16.mxu0 %v16492_v2  ;;  %v21521_v12 = vld [vmem:[%s17843_s16 + $0xa58] sm:$0x55]  ;;  %v8985_v2 = vunpack.c.l.s8.bf16 %v21518_v50 }
 0x3ef   : > { %v12096_v33 = vunpack.c.l.s8.bf16 %v21521_v12 }
 0x3f0   : > { %v16205_v25 = vcombine.high %v8985_v2, %v8985_v2 }
 0x3f5   : > { %10099 = vmatpush1.bf16.xpose.msra.mxu1 %v16124_v48  ;;  %13210 = vmatpush1.bf16.xpose.msra.mxu0 %v16491_v56  ;;  %v16572_v48 = vcombine.high %v12096_v33, %v12096_v33  ;;  %v16204_v56 = vcombine.low %v8985_v2, %v8985_v2 }
 0x3f6   : > { %10100 = vmatprep.subr.bf16.mxu1 %v16145_v62  ;;  %13211 = vmatprep.subr.bf16.mxu0 %v16512_v44  ;;  %v16571_v62 = vcombine.low %v12096_v33, %v12096_v33  ;;  %v21529_v44 = vrot.slane %v21408_v23, %v21141_v57  ;;  %v21590_v33 = vld [vmem:[%s21119_s11 + $0x1c] sm:$0xff] }
 0x3fd   : > { %10101 = vmatpush1.bf16.xpose.msra.mxu1 %v16144_v55  ;;  %13212 = vmatpush1.bf16.xpose.msra.mxu0 %v16511_v41  ;;  %v8966_v41 = vunpack.c.h.s8.bf16 %v21502_v32  ;;  %v8986_v32 = vunpack.c.h.s8.bf16 %v21518_v50 }
 0x3fe   : > { %10102 = vmatprep.subr.bf16.mxu1 %v16165_v36  ;;  %13213 = vmatprep.subr.bf16.mxu0 %v16532_v37  ;;  %v8976_v36 = vunpack.c.h.s8.bf16 %v21505_v30  ;;  %v12097_v30 = vunpack.c.h.s8.bf16 %v21521_v12 }
 0x3ff   : > { %v16207_v60 = vcombine.high %v8986_v32, %v8986_v32 }
 0x400   : > { %v16187_v37 = vcombine.high %v8966_v41, %v8976_v36  ;;  %v16186_v6 = vcombine.low %v8966_v41, %v8976_v36  ;;  %v21661_v41 = vld [vmem:[%s17843_s16 + $0x4c0] sm:$0xff] }
 0x405   : > { %10103 = vmatpush1.bf16.xpose.msra.mxu1 %v16164_v16  ;;  %13214 = vmatpush1.bf16.xpose.msra.mxu0 %v16531_v29  ;;  %v21577_v16 = vld [vmem:[%s17843_s16 + $0xd8] sm:$0xff]  ;;  %v21580_v29 = vld [vmem:[%s17843_s16 + $0x60] sm:$0xff] }
 0x406   : > { %10104 = vmatprep.subr.bf16.mxu1 %v16185_v63  ;;  %13215 = vmatprep.subr.bf16.mxu0 %v16552_v14  ;;  %v21583_v63 = vld [vmem:[%s17843_s16 + $0x100] sm:$0xff]  ;;  %v8827_v14 = vunpack.c.l.s8.bf16 %v21574_v38  ;;  %v8837_v50 = vunpack.c.l.s8.bf16 %v21577_v16  ;;  %v11938_v12 = vunpack.c.l.s8.bf16 %v21580_v29 }
 0x407   : > { %v11948_v2 = vunpack.c.l.s8.bf16 %v21583_v63 }
 0x40d   : > { %10105 = vmatpush1.bf16.xpose.msra.mxu1 %v16184_v40  ;;  %13216 = vmatpush1.bf16.xpose.msra.mxu0 %v16551_v46  ;;  %v16206_v40 = vcombine.low %v8986_v32, %v8986_v32  ;;  %v21593_v46 = vld [vmem:[%s21119_s11 + $0x30] sm:$0xff] }
 0x40e   : > { %10106 = vmatprep.subr.bf16.mxu1 %v16205_v25  ;;  %13217 = vmatprep.subr.bf16.mxu0 %v16572_v48  ;;  %v16573_v25 = vcombine.low %v12097_v30, %v12097_v30  ;;  %v16049_v48 = vcombine.high %v8827_v14, %v8837_v50 }
 0x415   : > { %10107 = vmatpush1.bf16.xpose.msra.mxu1 %v16204_v56  ;;  %13218 = vmatpush1.bf16.xpose.msra.mxu0 %v16571_v62  ;;  %v16416_v56 = vcombine.high %v11938_v12, %v11948_v2  ;;  %v21596_v62 = vld [vmem:[%s17843_s16 + $0x178] sm:$0xff] }
 0x416   : > { %10131 = vmatprep.subr.bf16.mxu1 %v21319_v10  ;;  %13242 = vmatprep.subr.bf16.mxu0 %v21321_v3  ;;  %v8886_v10 = vunpack.c.h.s8.bf16 %v21438_v13  ;;  %v8896_v3 = vunpack.c.h.s8.bf16 %v21441_v17  ;;  %v12037_v13 = vunpack.c.h.s8.bf16 %v21476_v15  ;;  %v12047_v17 = vunpack.c.h.s8.bf16 %v21479_v20 }
 0x418   : > { %v16106_v23 = vcombine.low %v8886_v10, %v8896_v3  ;;  %v16513_v15 = vcombine.low %v12037_v13, %v12047_v17 }
 0x41c   : > { %10123 = vmatmul.mubr.bf16.vlgmr.msra.gmra.mrb[0].mxu1 %v21529_v44  ;;  %13234 = vmatmul.mubr.bf16.vlgmr.msra.gmra.mrb[0].mxu0 %v21533_v58 }
 0x41d   : > { %10132 = vmatpush1.bf16.xpose.msra.mxu1 %v21326_v26  ;;  %13243 = vmatpush1.bf16.xpose.msra.mxu0 %v21328_v47  ;;  %v11997_v26 = vunpack.c.h.s8.bf16 %v21444_v4  ;;  %v12007_v47 = vunpack.c.h.s8.bf16 %v21447_v22 }
 0x41e   : > { %10133 = vmatprep.subr.bf16.mxu1 %v21347_v7  ;;  %13244 = vmatprep.subr.bf16.mxu0 %v21349_v42  ;;  %v16107_v7 = vcombine.high %v8886_v10, %v8896_v3  ;;  %v21606_v10 = vld [vmem:[%s17843_s16 + $0x1a0] sm:$0xff] }
 0x41f   : > { %10163 = vmatprep.mubr.bf16.mxu1 %v9044_v8  ;;  %13274 = vmatprep.mubr.bf16.mxu0 %v12155_v24  ;;  %v16474_v42 = vcombine.high %v11997_v26, %v12007_v47  ;;  %v16473_v28 = vcombine.low %v11997_v26, %v12007_v47  ;;  %v21599_v8 = vld [vmem:[%s17843_s16 + $0x218] sm:$0xff]  ;;  %v21603_v24 = vrot.slane %v21590_v33, %v21141_v57  ;;  %v21609_v3 = vld [vmem:[%s17843_s16 + $0x240] sm:$0xff]  ;;  %v8847_v47 = vunpack.c.l.s8.bf16 %v21596_v62 }
 0x420   : > { %v21613_v26 = vrot.slane %v21593_v46, %v21141_v57 }
 0x425   : > { %10134 = vmatpush1.bf16.xpose.msra.mxu1 %v21351_v49  ;;  %13245 = vmatpush1.bf16.xpose.msra.mxu0 %v21356_v1  ;;  %v8906_v49 = vunpack.c.h.s8.bf16 %v21454_v53  ;;  %v8916_v1 = vunpack.c.h.s8.bf16 %v21457_v9  ;;  %v16514_v9 = vcombine.high %v12037_v13, %v12047_v17  ;;  %v21631_v13 = vld [vmem:[%s17843_s16 + $0x358] sm:$0xff] }
 0x426   : > { %10135 = vmatprep.subr.bf16.mxu1 %v21375_v54  ;;  %13246 = vmatprep.subr.bf16.mxu0 %v21377_v34  ;;  %v12017_v54 = vunpack.c.h.s8.bf16 %v21460_v21  ;;  %v12027_v34 = vunpack.c.h.s8.bf16 %v21463_v11  ;;  %v8946_v21 = vunpack.c.h.s8.bf16 %v21486_v45  ;;  %v8956_v11 = vunpack.c.h.s8.bf16 %v21489_v51 }
 0x427   : > { %v16127_v59 = vcombine.high %v8906_v49, %v8916_v1  ;;  %v16126_v4 = vcombine.low %v8906_v49, %v8916_v1  ;;  %v12077_v45 = vunpack.c.h.s8.bf16 %v21508_v19  ;;  %v12087_v51 = vunpack.c.h.s8.bf16 %v21511_v39 }
 0x428   : > { %v16494_v61 = vcombine.high %v12017_v54, %v12027_v34  ;;  %v16493_v22 = vcombine.low %v12017_v54, %v12027_v34  ;;  %v16167_v55 = vcombine.high %v8946_v21, %v8956_v11  ;;  %v16574_v39 = vcombine.high %v12097_v30, %v12097_v30  ;;  %v21668_v30 = vld [vmem:[%s17843_s16 + $0x538] sm:$0xff] }
 0x429   : > { %v16554_v52 = vcombine.high %v12077_v45, %v12087_v51  ;;  %v16553_v19 = vcombine.low %v12077_v45, %v12087_v51  ;;  %v11968_v49 = vunpack.c.l.s8.bf16 %v21609_v3  ;;  %v9060_v1 = vcombine.high %v21603_v24, %v21603_v24 }
 0x42a   : > { %v9042_v54 = vcombine.high %v21529_v44, %v21529_v44  ;;  %v12171_v34 = vcombine.high %v21613_v26, %v21613_v26  ;;  %v21640_v44 = vld [vmem:[%s17843_s16 + $0x380] sm:$0xff] }
 0x42b   : > { %v21634_v17 = vrot.slane %v9060_v1, %v21141_v57 }
 0x42d   : > { %10136 = vmatpush1.bf16.xpose.msra.mxu1 %v21379_v27  ;;  %13247 = vmatpush1.bf16.xpose.msra.mxu0 %v21381_v18  ;;  %v8926_v27 = vunpack.c.h.s8.bf16 %v21470_v0  ;;  %v8936_v18 = vunpack.c.h.s8.bf16 %v21473_v43  ;;  %v12057_v0 = vunpack.c.h.s8.bf16 %v21492_v31  ;;  %v12067_v43 = vunpack.c.h.s8.bf16 %v21495_v5 }
 0x42e   : > { %10137 = vmatprep.subr.bf16.mxu1 %v16107_v7  ;;  %13248 = vmatprep.subr.bf16.mxu0 %v16474_v42  ;;  %v16166_v31 = vcombine.low %v8946_v21, %v8956_v11  ;;  %v8857_v7 = vunpack.c.l.s8.bf16 %v21599_v8  ;;  %v11958_v42 = vunpack.c.l.s8.bf16 %v21606_v10  ;;  %v11988_v21 = vunpack.c.l.s8.bf16 %v21640_v44 }
 0x42f   : > { %v16147_v53 = vcombine.high %v8926_v27, %v8936_v18  ;;  %v16146_v35 = vcombine.low %v8926_v27, %v8936_v18  ;;  %v16534_v20 = vcombine.high %v12057_v0, %v12067_v43  ;;  %v16533_v5 = vcombine.low %v12057_v0, %v12067_v43  ;;  %v21628_v18 = vld [vmem:[%s17843_s16 + $0x2b8] sm:$0xff] }
 0x430   : > { %v16436_v27 = vcombine.high %v11958_v42, %v11968_v49  ;;  %v16068_v11 = vcombine.low %v8847_v47, %v8857_v7  ;;  %v16435_v0 = vcombine.low %v11958_v42, %v11968_v49  ;;  %v21693_v42 = vld [vmem:[%s17843_s16 + $0x740] sm:$0xff] }
 0x435   : > { %10138 = vmatpush1.bf16.xpose.msra.mxu1 %v16106_v23  ;;  %13249 = vmatpush1.bf16.xpose.msra.mxu0 %v16473_v28  ;;  %v16048_v23 = vcombine.low %v8827_v14, %v8837_v50  ;;  %v12153_v28 = vcombine.high %v21533_v58, %v21533_v58  ;;  %v8867_v58 = vunpack.c.l.s8.bf16 %v21628_v18 }
 0x436   : > { %10139 = vmatprep.subr.bf16.mxu1 %v16127_v59  ;;  %13250 = vmatprep.subr.bf16.mxu0 %v16494_v61  ;;  %v16415_v59 = vcombine.low %v11938_v12, %v11948_v2  ;;  %v16069_v61 = vcombine.high %v8847_v47, %v8857_v7  ;;  %v21687_v47 = vld [vmem:[%s17843_s16 + $0x718] sm:$0xff]  ;;  %v21690_v7 = vld [vmem:[%s17843_s16 + $0x6a0] sm:$0xff] }
 0x437   : > { %v8937_v1 = vunpack.c.l.s8.bf16 %v21687_v47 }
 0x43d   : > { %10140 = vmatpush1.bf16.xpose.msra.mxu1 %v16126_v4  ;;  %13251 = vmatpush1.bf16.xpose.msra.mxu0 %v16493_v22  ;;  %v21637_v4 = vld [vmem:[%s17843_s16 + $0x2e0] sm:$0xff]  ;;  %v21643_v22 = vrot.slane %v12171_v34, %v21141_v57  ;;  %v12048_v34 = vunpack.c.l.s8.bf16 %v21693_v42 }
 0x43e   : > { %10141 = vmatprep.subr.bf16.mxu1 %v16147_v53  ;;  %13252 = vmatprep.subr.bf16.mxu0 %v16514_v9  ;;  %v8877_v53 = vunpack.c.l.s8.bf16 %v21631_v13  ;;  %v11978_v9 = vunpack.c.l.s8.bf16 %v21637_v4 }
 0x440   : > { %v16089_v43 = vcombine.high %v8867_v58, %v8877_v53 }
 0x445   : > { %10142 = vmatpush1.bf16.xpose.msra.mxu1 %v16146_v35  ;;  %13253 = vmatpush1.bf16.xpose.msra.mxu0 %v16513_v15  ;;  %v16456_v35 = vcombine.high %v11978_v9, %v11988_v21  ;;  %v21652_v15 = vld [vmem:[%s17843_s16 + $0x3f8] sm:$0xff] }
 0x446   : > { %10143 = vmatprep.subr.bf16.mxu1 %v16167_v55  ;;  %13254 = vmatprep.subr.bf16.mxu0 %v16534_v20  ;;  %v21655_v55 = vld [vmem:[%s17843_s16 + $0x498] sm:$0xff]  ;;  %v21658_v20 = vld [vmem:[%s17843_s16 + $0x420] sm:$0xff]  ;;  %v8887_v36 = vunpack.c.l.s8.bf16 %v21652_v15 }
 0x447   : > { %v8897_v45 = vunpack.c.l.s8.bf16 %v21655_v55  ;;  %v11998_v51 = vunpack.c.l.s8.bf16 %v21658_v20 }
 0x449   : > { %v16108_v2 = vcombine.low %v8887_v36, %v8897_v45 }
 0x44d   : > { %10144 = vmatpush1.bf16.xpose.msra.mxu1 %v16166_v31  ;;  %13255 = vmatpush1.bf16.xpose.msra.mxu0 %v16533_v5  ;;  %v12008_v31 = vunpack.c.l.s8.bf16 %v21661_v41  ;;  %v16088_v5 = vcombine.low %v8867_v58, %v8877_v53  ;;  %v21703_v58 = vld [vmem:[%s17843_s16 + $0x858] sm:$0xff]  ;;  %v21706_v53 = vld [vmem:[%s17843_s16 + $0x7e0] sm:$0xff] }
 0x44e   : > { %10145 = vmatprep.subr.bf16.mxu1 %v16187_v37  ;;  %13256 = vmatprep.subr.bf16.mxu0 %v16554_v52  ;;  %v16455_v37 = vcombine.low %v11978_v9, %v11988_v21  ;;  %v16109_v52 = vcombine.high %v8887_v36, %v8897_v45  ;;  %v21709_v9 = vld [vmem:[%s17843_s16 + $0x880] sm:$0xff] }
 0x44f   : > { %v16476_v32 = vcombine.high %v11998_v51, %v12008_v31 }
 0x455   : > { %10146 = vmatpush1.bf16.xpose.msra.mxu1 %v16186_v6  ;;  %13257 = vmatpush1.bf16.xpose.msra.mxu0 %v16553_v19  ;;  %v21671_v6 = vld [vmem:[%s17843_s16 + $0x5d8] sm:$0xff]  ;;  %v21674_v19 = vld [vmem:[%s17843_s16 + $0x560] sm:$0xff] }
 0x456   : > { %10147 = vmatprep.subr.bf16.mxu1 %v16207_v60  ;;  %13258 = vmatprep.subr.bf16.mxu0 %v16574_v39  ;;  %v21677_v60 = vld [vmem:[%s17843_s16 + $0x600] sm:$0xff]  ;;  %v8907_v39 = vunpack.c.l.s8.bf16 %v21668_v30  ;;  %v8917_v14 = vunpack.c.l.s8.bf16 %v21671_v6  ;;  %v12018_v50 = vunpack.c.l.s8.bf16 %v21674_v19 }
 0x457   : > { %v12028_v12 = vunpack.c.l.s8.bf16 %v21677_v60 }
 0x45d   : > { %10148 = vmatpush1.bf16.xpose.msra.mxu1 %v16206_v40  ;;  %13259 = vmatpush1.bf16.xpose.msra.mxu0 %v16573_v25  ;;  %v16475_v40 = vcombine.low %v11998_v51, %v12008_v31  ;;  %v16129_v25 = vcombine.high %v8907_v39, %v8917_v14  ;;  %v21716_v31 = vld [vmem:[%s17843_s16 + $0x8f8] sm:$0xff] }
 0x45e   : > { %10172 = vmatprep.subr.bf16.mxu1 %v16049_v48  ;;  %13283 = vmatprep.subr.bf16.mxu0 %v16416_v56  ;;  %v16496_v48 = vcombine.high %v12018_v50, %v12028_v12  ;;  %v21684_v56 = vld [vmem:[%s17843_s16 + $0x678] sm:$0xff] }
 0x45f   : > { %v8927_v49 = vunpack.c.l.s8.bf16 %v21684_v56 }
 0x464   : > { %10164 = vmatmul.mubr.bf16.vlgmr.msra.gmra.mrb[0].mxu1 %v9042_v54  ;;  %13275 = vmatmul.mubr.bf16.vlgmr.msra.gmra.mrb[0].mxu0 %v12153_v28  ;;  %v12038_v54 = vunpack.c.l.s8.bf16 %v21690_v7  ;;  %v16495_v28 = vcombine.low %v12018_v50, %v12028_v12 }
 0x465   : > { %10173 = vmatpush1.bf16.xpose.msra.mxu1 %v16048_v23  ;;  %13284 = vmatpush1.bf16.xpose.msra.mxu0 %v16415_v59  ;;  %v16128_v23 = vcombine.low %v8907_v39, %v8917_v14  ;;  %v16149_v59 = vcombine.high %v8927_v49, %v8937_v1 }
 0x466   : > { %10174 = vmatprep.subr.bf16.mxu1 %v16069_v61  ;;  %13285 = vmatprep.subr.bf16.mxu0 %v16436_v27  ;;  %v16516_v61 = vcombine.high %v12038_v54, %v12048_v34  ;;  %v21700_v27 = vld [vmem:[%s17843_s16 + $0x7b8] sm:$0xff]  ;;  %v16515_v36 = vcombine.low %v12038_v54, %v12048_v34 }
 0x467   : > { %10204 = vmatprep.mubr.bf16.mxu1 %v21634_v17  ;;  %13315 = vmatprep.mubr.bf16.mxu0 %v21643_v22  ;;  %v8947_v21 = vunpack.c.l.s8.bf16 %v21700_v27 }
 0x46d   : > { %10175 = vmatpush1.bf16.xpose.msra.mxu1 %v16068_v11  ;;  %13286 = vmatpush1.bf16.xpose.msra.mxu0 %v16435_v0  ;;  %v8957_v11 = vunpack.c.l.s8.bf16 %v21703_v58  ;;  %v12058_v0 = vunpack.c.l.s8.bf16 %v21706_v53 }
 0x46e   : > { %10176 = vmatprep.subr.bf16.mxu1 %v16089_v43  ;;  %13287 = vmatprep.subr.bf16.mxu0 %v16456_v35  ;;  %v12068_v43 = vunpack.c.l.s8.bf16 %v21709_v9  ;;  %v16148_v35 = vcombine.low %v8927_v49, %v8937_v1  ;;  %v21735_v49 = vld [vmem:[%s17843_s16 + $0xa60] sm:$0x55] }
 0x46f   : > { %v16169_v45 = vcombine.high %v8947_v21, %v8957_v11  ;;  %v16168_v12 = vcombine.low %v8947_v21, %v8957_v11  ;;  %v12098_v54 = vunpack.c.l.s8.bf16 %v21735_v49  ;;  %v8838_v21 = vunpack.c.h.s8.bf16 %v21577_v16 }
 0x470   : > { %v16536_v51 = vcombine.high %v12058_v0, %v12068_v43  ;;  %v11939_v11 = vunpack.c.h.s8.bf16 %v21580_v29  ;;  %v11969_v16 = vunpack.c.h.s8.bf16 %v21609_v3  ;;  %v21749_v29 = vrot.slane %v21603_v24, %v21141_v57 }
 0x471   : > { %v8868_v24 = vunpack.c.h.s8.bf16 %v21628_v18  ;;  %v11979_v3 = vunpack.c.h.s8.bf16 %v21637_v4  ;;  %v8898_v18 = vunpack.c.h.s8.bf16 %v21655_v55  ;;  %v12009_v4 = vunpack.c.h.s8.bf16 %v21661_v41 }
 0x472   : > { %v12029_v55 = vunpack.c.h.s8.bf16 %v21677_v60 }
 0x475   : > { %10177 = vmatpush1.bf16.xpose.msra.mxu1 %v16088_v5  ;;  %13288 = vmatpush1.bf16.xpose.msra.mxu0 %v16455_v37  ;;  %v21719_v5 = vld [vmem:[%s17843_s16 + $0x998] sm:$0xff]  ;;  %v21722_v37 = vld [vmem:[%s17843_s16 + $0x920] sm:$0xff] }
 0x476   : > { %10178 = vmatprep.subr.bf16.mxu1 %v16109_v52  ;;  %13289 = vmatprep.subr.bf16.mxu0 %v16476_v32  ;;  %v21725_v52 = vld [vmem:[%s17843_s16 + $0x9c0] sm:$0xff]  ;;  %v8967_v32 = vunpack.c.l.s8.bf16 %v21716_v31  ;;  %v8977_v39 = vunpack.c.l.s8.bf16 %v21719_v5  ;;  %v12078_v14 = vunpack.c.l.s8.bf16 %v21722_v37 }
 0x477   : > { %v12088_v50 = vunpack.c.l.s8.bf16 %v21725_v52 }
 0x478   : > { %v16188_v34 = vcombine.low %v8967_v32, %v8977_v39 }
 0x47d   : > { %10179 = vmatpush1.bf16.xpose.msra.mxu1 %v16108_v2  ;;  %13290 = vmatpush1.bf16.xpose.msra.mxu0 %v16475_v40  ;;  %v16535_v2 = vcombine.low %v12058_v0, %v12068_v43  ;;  %v16189_v40 = vcombine.high %v8967_v32, %v8977_v39  ;;  %v11949_v0 = vunpack.c.h.s8.bf16 %v21583_v63  ;;  %v8858_v32 = vunpack.c.h.s8.bf16 %v21599_v8 }
 0x47e   : > { %10180 = vmatprep.subr.bf16.mxu1 %v16129_v25  ;;  %13291 = vmatprep.subr.bf16.mxu0 %v16496_v48  ;;  %v16556_v25 = vcombine.high %v12078_v14, %v12088_v50  ;;  %v21732_v48 = vld [vmem:[%s17843_s16 + $0xa38] sm:$0x55]  ;;  %v21753_v39 = vrot.slane %v21613_v26, %v21141_v57  ;;  %v12203_v8 = vcombine.high %v21643_v22, %v21643_v22  ;;  %v11989_v26 = vunpack.c.h.s8.bf16 %v21640_v44 }
 0x47f   : > { %v8987_v1 = vunpack.c.l.s8.bf16 %v21732_v48 }
 0x480   : > { %v16458_v22 = vcombine.high %v11979_v3, %v11989_v26  ;;  %v16457_v44 = vcombine.low %v11979_v3, %v11989_v26  ;;  %v9045_v26 = vcombine.high %v21590_v33, %v21590_v33 }
 0x481   : > { %v16208_v43 = vcombine.low %v8987_v1, %v8987_v1 }
 0x485   : > { %10181 = vmatpush1.bf16.xpose.msra.mxu1 %v16128_v23  ;;  %13292 = vmatpush1.bf16.xpose.msra.mxu0 %v16495_v28  ;;  %v16555_v23 = vcombine.low %v12078_v14, %v12088_v50  ;;  %v16209_v28 = vcombine.high %v8987_v1, %v8987_v1  ;;  %v16417_v14 = vcombine.low %v11939_v11, %v11949_v0 }
 0x486   : > { %10182 = vmatprep.subr.bf16.mxu1 %v16149_v59  ;;  %13293 = vmatprep.subr.bf16.mxu0 %v16516_v61  ;;  %v16576_v59 = vcombine.high %v12098_v54, %v12098_v54  ;;  %v8828_v61 = vunpack.c.h.s8.bf16 %v21574_v38  ;;  %v11959_v38 = vunpack.c.h.s8.bf16 %v21606_v10  ;;  %v8878_v10 = vunpack.c.h.s8.bf16 %v21631_v13 }
 0x487   : > { %v11999_v13 = vunpack.c.h.s8.bf16 %v21658_v20 }
 0x488   : > { %v16050_v63 = vcombine.low %v8828_v61, %v8838_v21  ;;  %v16090_v1 = vcombine.low %v8868_v24, %v8878_v10 }
 0x489   : > { %v16477_v20 = vcombine.low %v11999_v13, %v12009_v4 }
 0x48d   : > { %10183 = vmatpush1.bf16.xpose.msra.mxu1 %v16148_v35  ;;  %13294 = vmatpush1.bf16.xpose.msra.mxu0 %v16515_v36  ;;  %v16575_v35 = vcombine.low %v12098_v54, %v12098_v54  ;;  %v16051_v36 = vcombine.high %v8828_v61, %v8838_v21  ;;  %v8928_v21 = vunpack.c.h.s8.bf16 %v21684_v56  ;;  %v12059_v56 = vunpack.c.h.s8.bf16 %v21706_v53 }
 0x48e   : > { %10184 = vmatprep.subr.bf16.mxu1 %v16169_v45  ;;  %13295 = vmatprep.subr.bf16.mxu0 %v16536_v51  ;;  %v16418_v45 = vcombine.high %v11939_v11, %v11949_v0  ;;  %v8848_v51 = vunpack.c.h.s8.bf16 %v21596_v62  ;;  %v9092_v62 = vcombine.high %v21634_v17, %v21634_v17  ;;  %v8938_v11 = vunpack.c.h.s8.bf16 %v21687_v47 }
 0x48f   : > { %v12069_v47 = vunpack.c.h.s8.bf16 %v21709_v9 }
 0x490   : > { %v16071_v50 = vcombine.high %v8848_v51, %v8858_v32  ;;  %v16070_v17 = vcombine.low %v8848_v51, %v8858_v32  ;;  %v8968_v32 = vunpack.c.h.s8.bf16 %v21716_v31  ;;  %v8988_v31 = vunpack.c.h.s8.bf16 %v21732_v48 }
 0x491   : > { %v16537_v9 = vcombine.low %v12059_v56, %v12069_v47 }
 0x495   : > { %10185 = vmatpush1.bf16.xpose.msra.mxu1 %v16168_v12  ;;  %13296 = vmatpush1.bf16.xpose.msra.mxu0 %v16535_v2  ;;  %v16438_v12 = vcombine.high %v11959_v38, %v11969_v16  ;;  %v16437_v2 = vcombine.low %v11959_v38, %v11969_v16  ;;  %v8978_v38 = vunpack.c.h.s8.bf16 %v21719_v5  ;;  %v12099_v5 = vunpack.c.h.s8.bf16 %v21735_v49 }
 0x496   : > { %10186 = vmatprep.subr.bf16.mxu1 %v16189_v40  ;;  %13297 = vmatprep.subr.bf16.mxu0 %v16556_v25  ;;  %v16091_v40 = vcombine.high %v8868_v24, %v8878_v10  ;;  %v8888_v25 = vunpack.c.h.s8.bf16 %v21652_v15  ;;  %v12019_v15 = vunpack.c.h.s8.bf16 %v21674_v19  ;;  %v21797_v24 = vld [vmem:[%s17843_s16 + $0x108] sm:$0xff] }
 0x497   : > { %v16191_v16 = vcombine.high %v8968_v32, %v8978_v38  ;;  %v11950_v3 = vunpack.c.l.s8.bf16 %v21797_v24 }
 0x498   : > { %v16111_v54 = vcombine.high %v8888_v25, %v8898_v18  ;;  %v16498_v41 = vcombine.high %v12019_v15, %v12029_v55  ;;  %v16497_v19 = vcombine.low %v12019_v15, %v12029_v55  ;;  %v9090_v15 = vcombine.high %v21749_v29, %v21749_v29 }
 0x49d   : > { %10187 = vmatpush1.bf16.xpose.msra.mxu1 %v16188_v34  ;;  %13298 = vmatpush1.bf16.xpose.msra.mxu0 %v16555_v23  ;;  %v16478_v34 = vcombine.high %v11999_v13, %v12009_v4  ;;  %v8908_v23 = vunpack.c.h.s8.bf16 %v21668_v30  ;;  %v12039_v30 = vunpack.c.h.s8.bf16 %v21690_v7  ;;  %v21811_v13 = vld [vmem:[%s17843_s16 + $0x220] sm:$0xff]  ;;  %v21814_v4 = vrot.slane %v9045_v26, %v21141_v57 }
 0x49e   : > { %10188 = vmatprep.subr.bf16.mxu1 %v16209_v28  ;;  %13299 = vmatprep.subr.bf16.mxu0 %v16576_v59  ;;  %v8918_v28 = vunpack.c.h.s8.bf16 %v21671_v6  ;;  %v16110_v59 = vcombine.low %v8888_v25, %v8898_v18  ;;  %v12049_v6 = vunpack.c.h.s8.bf16 %v21693_v42  ;;  %v16538_v42 = vcombine.high %v12059_v56, %v12069_v47  ;;  %v21808_v18 = vld [vmem:[%s17843_s16 + $0x180] sm:$0xff] }
 0x4a0   : > { %v16131_v61 = vcombine.high %v8908_v23, %v8918_v28  ;;  %v16130_v0 = vcombine.low %v8908_v23, %v8918_v28  ;;  %v16518_v60 = vcombine.high %v12039_v30, %v12049_v6  ;;  %v16517_v7 = vcombine.low %v12039_v30, %v12049_v6  ;;  %v21841_v30 = vld [vmem:[%s17843_s16 + $0x360] sm:$0xff] }
 0x4a1   : > { %v9061_v28 = vcombine.high %v21814_v4, %v21814_v4 }
 0x4a3   : > { %v21844_v6 = vrot.slane %v9061_v28, %v21141_v57 }
 0x4a5   : > { %10189 = vmatpush1.bf16.xpose.msra.mxu1 %v16208_v43  ;;  %13300 = vmatpush1.bf16.xpose.msra.mxu0 %v16575_v35  ;;  %v16151_v43 = vcombine.high %v8928_v21, %v8938_v11  ;;  %v8948_v35 = vunpack.c.h.s8.bf16 %v21700_v27  ;;  %v12079_v27 = vunpack.c.h.s8.bf16 %v21722_v37 }
 0x4a6   : > { %10213 = vmatprep.subr.bf16.mxu1 %v16051_v36  ;;  %13324 = vmatprep.subr.bf16.mxu0 %v16418_v45  ;;  %v8958_v36 = vunpack.c.h.s8.bf16 %v21703_v58  ;;  %v16150_v45 = vcombine.low %v8928_v21, %v8938_v11  ;;  %v12089_v58 = vunpack.c.h.s8.bf16 %v21725_v52  ;;  %v21788_v52 = vld [vmem:[%s17843_s16 + $0x40] sm:$0xff] }
 0x4a7   : > { %v8829_v48 = vunpack.c.l.s8.bf16 %v21788_v52  ;;  %v21838_v11 = vld [vmem:[%s17843_s16 + $0x2c0] sm:$0xff] }
 0x4a8   : > { %v16171_v51 = vcombine.high %v8948_v35, %v8958_v36  ;;  %v16170_v53 = vcombine.low %v8948_v35, %v8958_v36  ;;  %v16557_v37 = vcombine.low %v12079_v27, %v12089_v58 }
 0x4ac   : > { %10205 = vmatmul.mubr.bf16.vlgmr.msra.gmra.mrb[0].mxu1 %v21749_v29  ;;  %13316 = vmatmul.mubr.bf16.vlgmr.msra.gmra.mrb[0].mxu0 %v21753_v39  ;;  %v21850_v29 = vld [vmem:[%s17843_s16 + $0x388] sm:$0xff] }
 0x4ad   : > { %10214 = vmatpush1.bf16.xpose.msra.mxu1 %v16050_v63  ;;  %13325 = vmatpush1.bf16.xpose.msra.mxu0 %v16417_v14  ;;  %v16558_v63 = vcombine.high %v12079_v27, %v12089_v58  ;;  %v16190_v14 = vcombine.low %v8968_v32, %v8978_v38  ;;  %v11990_v35 = vunpack.c.l.s8.bf16 %v21850_v29  ;;  %v21871_v32 = vld [vmem:[%s17843_s16 + $0x4c8] sm:$0xff] }
 0x4ae   : > { %10215 = vmatprep.subr.bf16.mxu1 %v16071_v50  ;;  %13326 = vmatprep.subr.bf16.mxu0 %v16438_v12  ;;  %v16211_v50 = vcombine.high %v8988_v31, %v8988_v31  ;;  %v16578_v12 = vcombine.high %v12099_v5, %v12099_v5 }
 0x4af   : > { %10245 = vmatprep.mubr.bf16.mxu1 %v9092_v62  ;;  %13356 = vmatprep.mubr.bf16.mxu0 %v12203_v8  ;;  %v21791_v62 = vld [vmem:[%s17843_s16 + $0xe0] sm:$0xff]  ;;  %v21794_v8 = vld [vmem:[%s17843_s16 + $0x68] sm:$0xff] }
 0x4b0   : > { %v8839_v49 = vunpack.c.l.s8.bf16 %v21791_v62  ;;  %v11940_v10 = vunpack.c.l.s8.bf16 %v21794_v8 }
 0x4b2   : > { %v16420_v25 = vcombine.high %v11940_v10, %v11950_v3 }
 0x4b5   : > { %10216 = vmatpush1.bf16.xpose.msra.mxu1 %v16070_v17  ;;  %13327 = vmatpush1.bf16.xpose.msra.mxu0 %v16437_v2  ;;  %v12156_v17 = vcombine.high %v21593_v46, %v21593_v46  ;;  %v16210_v2 = vcombine.low %v8988_v31, %v8988_v31  ;;  %v8849_v46 = vunpack.c.l.s8.bf16 %v21808_v18 }
 0x4b6   : > { %10217 = vmatprep.subr.bf16.mxu1 %v16091_v40  ;;  %13328 = vmatprep.subr.bf16.mxu0 %v16458_v22  ;;  %v16577_v40 = vcombine.low %v12099_v5, %v12099_v5  ;;  %v16053_v22 = vcombine.high %v8829_v48, %v8839_v49  ;;  %v21878_v5 = vld [vmem:[%s17843_s16 + $0x540] sm:$0xff] }
 0x4b7   : > { %v21823_v33 = vrot.slane %v12156_v17, %v21141_v57 }
 0x4b9   : > { %v12172_v55 = vcombine.high %v21823_v33, %v21823_v33 }
 0x4bd   : > { %10218 = vmatpush1.bf16.xpose.msra.mxu1 %v16090_v1  ;;  %13329 = vmatpush1.bf16.xpose.msra.mxu0 %v16457_v44  ;;  %v21817_v1 = vld [vmem:[%s17843_s16 + $0x1a8] sm:$0xff] }
 0x4be   : > { %10219 = vmatprep.subr.bf16.mxu1 %v16111_v54  ;;  %13330 = vmatprep.subr.bf16.mxu0 %v16478_v34  ;;  %v21820_v44 = vld [vmem:[%s17843_s16 + $0x248] sm:$0xff]  ;;  %v8859_v54 = vunpack.c.l.s8.bf16 %v21811_v13  ;;  %v11960_v34 = vunpack.c.l.s8.bf16 %v21817_v1 }
 0x4bf   : > { %v11970_v23 = vunpack.c.l.s8.bf16 %v21820_v44 }
 0x4c0   : > { %v16072_v36 = vcombine.low %v8849_v46, %v8859_v54 }
 0x4c1   : > { %v16440_v21 = vcombine.high %v11960_v34, %v11970_v23  ;;  %v16439_v56 = vcombine.low %v11960_v34, %v11970_v23 }
 0x4c5   : > { %10220 = vmatpush1.bf16.xpose.msra.mxu1 %v16110_v59  ;;  %13331 = vmatpush1.bf16.xpose.msra.mxu0 %v16477_v20  ;;  %v16052_v59 = vcombine.low %v8829_v48, %v8839_v49  ;;  %v12201_v20 = vcombine.high %v21753_v39, %v21753_v39  ;;  %v8869_v39 = vunpack.c.l.s8.bf16 %v21838_v11 }
 0x4c6   : > { %10221 = vmatprep.subr.bf16.mxu1 %v16131_v61  ;;  %13332 = vmatprep.subr.bf16.mxu0 %v16498_v41  ;;  %v16419_v61 = vcombine.low %v11940_v10, %v11950_v3  ;;  %v16073_v41 = vcombine.high %v8849_v46, %v8859_v54  ;;  %v21903_v46 = vld [vmem:[%s17843_s16 + $0x748] sm:$0xff] }
 0x4c7   : > { %v12050_v28 = vunpack.c.l.s8.bf16 %v21903_v46 }
 0x4cd   : > { %10222 = vmatpush1.bf16.xpose.msra.mxu1 %v16130_v0  ;;  %13333 = vmatpush1.bf16.xpose.msra.mxu0 %v16497_v19  ;;  %v21847_v0 = vld [vmem:[%s17843_s16 + $0x2e8] sm:$0xff]  ;;  %v21853_v19 = vrot.slane %v12172_v55, %v21141_v57 }
 0x4ce   : > { %10223 = vmatprep.subr.bf16.mxu1 %v16151_v43  ;;  %13334 = vmatprep.subr.bf16.mxu0 %v16518_v60  ;;  %v8879_v43 = vunpack.c.l.s8.bf16 %v21841_v30  ;;  %v11980_v60 = vunpack.c.l.s8.bf16 %v21847_v0 }
 0x4d0   : > { %v16093_v47 = vcombine.high %v8869_v39, %v8879_v43 }
 0x4d5   : > { %10224 = vmatpush1.bf16.xpose.msra.mxu1 %v16150_v45  ;;  %13335 = vmatpush1.bf16.xpose.msra.mxu0 %v16517_v7  ;;  %v16460_v45 = vcombine.high %v11980_v60, %v11990_v35  ;;  %v21862_v7 = vld [vmem:[%s17843_s16 + $0x400] sm:$0xff] }
 0x4d6   : > { %10225 = vmatprep.subr.bf16.mxu1 %v16171_v51  ;;  %13336 = vmatprep.subr.bf16.mxu0 %v16538_v42  ;;  %v21865_v51 = vld [vmem:[%s17843_s16 + $0x4a0] sm:$0xff]  ;;  %v21868_v42 = vld [vmem:[%s17843_s16 + $0x428] sm:$0xff]  ;;  %v8889_v38 = vunpack.c.l.s8.bf16 %v21862_v7 }
 0x4d7   : > { %v8899_v27 = vunpack.c.l.s8.bf16 %v21865_v51  ;;  %v12000_v58 = vunpack.c.l.s8.bf16 %v21868_v42 }
 0x4d9   : > { %v16112_v3 = vcombine.low %v8889_v38, %v8899_v27 }
 0x4dd   : > { %10226 = vmatpush1.bf16.xpose.msra.mxu1 %v16170_v53  ;;  %13337 = vmatpush1.bf16.xpose.msra.mxu0 %v16537_v9  ;;  %v12010_v53 = vunpack.c.l.s8.bf16 %v21871_v32  ;;  %v16092_v9 = vcombine.low %v8869_v39, %v8879_v43  ;;  %v21919_v39 = vld [vmem:[%s17843_s16 + $0x888] sm:$0xff] }
 0x4de   : > { %10227 = vmatprep.subr.bf16.mxu1 %v16191_v16  ;;  %13338 = vmatprep.subr.bf16.mxu0 %v16558_v63  ;;  %v16459_v16 = vcombine.low %v11980_v60, %v11990_v35  ;;  %v16113_v63 = vcombine.high %v8889_v38, %v8899_v27  ;;  %v21926_v27 = vld [vmem:[%s17843_s16 + $0x900] sm:$0xff] }
 0x4df   : > { %v16480_v31 = vcombine.high %v12000_v58, %v12010_v53  ;;  %v16479_v26 = vcombine.low %v12000_v58, %v12010_v53  ;;  %v21929_v58 = vld [vmem:[%s17843_s16 + $0x9a0] sm:$0xff]  ;;  %v21932_v53 = vld [vmem:[%s17843_s16 + $0x928] sm:$0xff] }
 0x4e5   : > { %10228 = vmatpush1.bf16.xpose.msra.mxu1 %v16190_v14  ;;  %13339 = vmatpush1.bf16.xpose.msra.mxu0 %v16557_v37  ;;  %v21881_v14 = vld [vmem:[%s17843_s16 + $0x5e0] sm:$0xff]  ;;  %v21884_v37 = vld [vmem:[%s17843_s16 + $0x568] sm:$0xff] }
 0x4e6   : > { %10229 = vmatprep.subr.bf16.mxu1 %v16211_v50  ;;  %13340 = vmatprep.subr.bf16.mxu0 %v16578_v12  ;;  %v21887_v50 = vld [vmem:[%s17843_s16 + $0x608] sm:$0xff]  ;;  %v8909_v12 = vunpack.c.l.s8.bf16 %v21878_v5  ;;  %v8919_v48 = vunpack.c.l.s8.bf16 %v21881_v14  ;;  %v12020_v49 = vunpack.c.l.s8.bf16 %v21884_v37 }
 0x4e7   : > { %v12030_v10 = vunpack.c.l.s8.bf16 %v21887_v50 }
 0x4e8   : > { %v16133_v17 = vcombine.high %v8909_v12, %v8919_v48 }
 0x4e9   : > { %v16499_v55 = vcombine.low %v12020_v49, %v12030_v10 }
 0x4ed   : > { %10230 = vmatpush1.bf16.xpose.msra.mxu1 %v16210_v2  ;;  %13341 = vmatpush1.bf16.xpose.msra.mxu0 %v16577_v40  ;;  %v16500_v2 = vcombine.high %v12020_v49, %v12030_v10  ;;  %v21894_v40 = vld [vmem:[%s17843_s16 + $0x680] sm:$0xff] }
 0x4ee   : > { %10254 = vmatprep.subr.bf16.mxu1 %v16053_v22  ;;  %13365 = vmatprep.subr.bf16.mxu0 %v16420_v25  ;;  %v21897_v22 = vld [vmem:[%s17843_s16 + $0x720] sm:$0xff]  ;;  %v21900_v25 = vld [vmem:[%s17843_s16 + $0x6a8] sm:$0xff]  ;;  %v8929_v54 = vunpack.c.l.s8.bf16 %v21894_v40 }
 0x4ef   : > { %v8939_v34 = vunpack.c.l.s8.bf16 %v21897_v22  ;;  %v12040_v23 = vunpack.c.l.s8.bf16 %v21900_v25 }
 0x4f4   : > { %10246 = vmatmul.mubr.bf16.vlgmr.msra.gmra.mrb[0].mxu1 %v9090_v15  ;;  %13357 = vmatmul.mubr.bf16.vlgmr.msra.gmra.mrb[0].mxu0 %v12201_v20  ;;  %v16132_v15 = vcombine.low %v8909_v12, %v8919_v48  ;;  %v16520_v20 = vcombine.high %v12040_v23, %v12050_v28 }
 0x4f5   : > { %10255 = vmatpush1.bf16.xpose.msra.mxu1 %v16052_v59  ;;  %13366 = vmatpush1.bf16.xpose.msra.mxu0 %v16419_v61  ;;  %v16153_v59 = vcombine.high %v8929_v54, %v8939_v34  ;;  %v21910_v61 = vld [vmem:[%s17843_s16 + $0x7c0] sm:$0xff] }
 0x4f6   : > { %10256 = vmatprep.subr.bf16.mxu1 %v16073_v41  ;;  %13367 = vmatprep.subr.bf16.mxu0 %v16440_v21  ;;  %v21913_v41 = vld [vmem:[%s17843_s16 + $0x860] sm:$0xff]  ;;  %v21916_v21 = vld [vmem:[%s17843_s16 + $0x7e8] sm:$0xff]  ;;  %v8949_v43 = vunpack.c.l.s8.bf16 %v21910_v61 }
 0x4f7   : > { %10286 = vmatprep.mubr.bf16.mxu1 %v21844_v6  ;;  %13397 = vmatprep.mubr.bf16.mxu0 %v21853_v19  ;;  %v8959_v60 = vunpack.c.l.s8.bf16 %v21913_v41  ;;  %v12060_v35 = vunpack.c.l.s8.bf16 %v21916_v21 }
 0x4f9   : > { %v16172_v48 = vcombine.low %v8949_v43, %v8959_v60 }
 0x4fd   : > { %10257 = vmatpush1.bf16.xpose.msra.mxu1 %v16072_v36  ;;  %13368 = vmatpush1.bf16.xpose.msra.mxu0 %v16439_v56  ;;  %v12070_v36 = vunpack.c.l.s8.bf16 %v21919_v39  ;;  %v16152_v56 = vcombine.low %v8929_v54, %v8939_v34 }
 0x4fe   : > { %10258 = vmatprep.subr.bf16.mxu1 %v16093_v47  ;;  %13369 = vmatprep.subr.bf16.mxu0 %v16460_v45  ;;  %v16519_v47 = vcombine.low %v12040_v23, %v12050_v28  ;;  %v16173_v45 = vcombine.high %v8949_v43, %v8959_v60  ;;  %v11951_v43 = vunpack.c.h.s8.bf16 %v21797_v24 }
 0x4ff   : > { %v16540_v38 = vcombine.high %v12060_v35, %v12070_v36  ;;  %v16539_v49 = vcombine.low %v12060_v35, %v12070_v36 }
 0x505   : > { %10259 = vmatpush1.bf16.xpose.msra.mxu1 %v16092_v9  ;;  %13370 = vmatpush1.bf16.xpose.msra.mxu0 %v16459_v16  ;;  %v21935_v9 = vld [vmem:[%s17843_s16 + $0x9c8] sm:$0xff]  ;;  %v8969_v16 = vunpack.c.l.s8.bf16 %v21926_v27 }
 0x506   : > { %10260 = vmatprep.subr.bf16.mxu1 %v16113_v63  ;;  %13371 = vmatprep.subr.bf16.mxu0 %v16480_v31  ;;  %v8979_v63 = vunpack.c.l.s8.bf16 %v21929_v58  ;;  %v12080_v31 = vunpack.c.l.s8.bf16 %v21932_v53  ;;  %v12090_v12 = vunpack.c.l.s8.bf16 %v21935_v9 }
 0x508   : > { %v16193_v10 = vcombine.high %v8969_v16, %v8979_v63  ;;  %v16192_v34 = vcombine.low %v8969_v16, %v8979_v63  ;;  %v16559_v23 = vcombine.low %v12080_v31, %v12090_v12 }
 0x50d   : > { %10261 = vmatpush1.bf16.xpose.msra.mxu1 %v16112_v3  ;;  %13372 = vmatpush1.bf16.xpose.msra.mxu0 %v16479_v26  ;;  %v16560_v3 = vcombine.high %v12080_v31, %v12090_v12  ;;  %v21942_v26 = vld [vmem:[%s17843_s16 + $0xa40] sm:$0x55] }
 0x50e   : > { %10262 = vmatprep.subr.bf16.mxu1 %v16133_v17  ;;  %13373 = vmatprep.subr.bf16.mxu0 %v16500_v2  ;;  %v21945_v17 = vld [vmem:[%s17843_s16 + $0xa68] sm:$0x55]  ;;  %v8989_v2 = vunpack.c.l.s8.bf16 %v21942_v26 }
 0x50f   : > { %v12100_v54 = vunpack.c.l.s8.bf16 %v21945_v17 }
 0x510   : > { %v16213_v28 = vcombine.high %v8989_v2, %v8989_v2  ;;  %v16212_v60 = vcombine.low %v8989_v2, %v8989_v2 }
 0x511   : > { %v16579_v35 = vcombine.low %v12100_v54, %v12100_v54 }
 0x515   : > { %10263 = vmatpush1.bf16.xpose.msra.mxu1 %v16132_v15  ;;  %13374 = vmatpush1.bf16.xpose.msra.mxu0 %v16499_v55  ;;  %v16580_v15 = vcombine.high %v12100_v54, %v12100_v54  ;;  %v8830_v55 = vunpack.c.h.s8.bf16 %v21788_v52  ;;  %v11961_v52 = vunpack.c.h.s8.bf16 %v21817_v1  ;;  %v8880_v1 = vunpack.c.h.s8.bf16 %v21841_v30 }
 0x516   : > { %10264 = vmatprep.subr.bf16.mxu1 %v16153_v59  ;;  %13375 = vmatprep.subr.bf16.mxu0 %v16520_v20  ;;  %v8840_v59 = vunpack.c.h.s8.bf16 %v21791_v62  ;;  %v11941_v20 = vunpack.c.h.s8.bf16 %v21794_v8  ;;  %v11971_v62 = vunpack.c.h.s8.bf16 %v21820_v44  ;;  %v21959_v8 = vrot.slane %v21814_v4, %v21141_v57 }
 0x517   : > { %v8870_v4 = vunpack.c.h.s8.bf16 %v21838_v11  ;;  %v11981_v44 = vunpack.c.h.s8.bf16 %v21847_v0  ;;  %v8900_v11 = vunpack.c.h.s8.bf16 %v21865_v51  ;;  %v12001_v30 = vunpack.c.h.s8.bf16 %v21868_v42 }
 0x518   : > { %v16055_v36 = vcombine.high %v8830_v55, %v8840_v59  ;;  %v16054_v24 = vcombine.low %v8830_v55, %v8840_v59  ;;  %v16421_v16 = vcombine.low %v11941_v20, %v11951_v43  ;;  %v16442_v31 = vcombine.high %v11961_v52, %v11971_v62 }
 0x519   : > { %v16441_v12 = vcombine.low %v11961_v52, %v11971_v62  ;;  %v12011_v0 = vunpack.c.h.s8.bf16 %v21871_v32  ;;  %v8910_v54 = vunpack.c.h.s8.bf16 %v21878_v5  ;;  %v12031_v51 = vunpack.c.h.s8.bf16 %v21887_v50 }
 0x51a   : > { %v8940_v55 = vunpack.c.h.s8.bf16 %v21897_v22  ;;  %v12041_v5 = vunpack.c.h.s8.bf16 %v21900_v25  ;;  %v12071_v22 = vunpack.c.h.s8.bf16 %v21919_v39 }
 0x51b   : > { %v16482_v2 = vcombine.high %v12001_v30, %v12011_v0  ;;  %v16481_v42 = vcombine.low %v12001_v30, %v12011_v0  ;;  %v22029_v30 = vld.sshfl [vmem:[%s21119_s11 + $0x38] sm:$0x33 pattern:$0x75316420] }
 0x51d   : > { %10265 = vmatpush1.bf16.xpose.msra.mxu1 %v16152_v56  ;;  %13376 = vmatpush1.bf16.xpose.msra.mxu0 %v16519_v47  ;;  %v16422_v56 = vcombine.high %v11941_v20, %v11951_v43  ;;  %v8850_v47 = vunpack.c.h.s8.bf16 %v21808_v18  ;;  %v9093_v18 = vcombine.high %v21844_v6, %v21844_v6  ;;  %v8950_v43 = vunpack.c.h.s8.bf16 %v21910_v61 }
 0x51e   : > { %10266 = vmatprep.subr.bf16.mxu1 %v16173_v45  ;;  %13377 = vmatprep.subr.bf16.mxu0 %v16540_v38  ;;  %v8860_v45 = vunpack.c.h.s8.bf16 %v21811_v13  ;;  %v21963_v38 = vrot.slane %v21823_v33, %v21141_v57  ;;  %v12204_v13 = vcombine.high %v21853_v19, %v21853_v19  ;;  %v11991_v33 = vunpack.c.h.s8.bf16 %v21850_v29 }
 0x51f   : > { %v12081_v61 = vunpack.c.h.s8.bf16 %v21932_v53 }
 0x520   : > { %v16075_v63 = vcombine.high %v8850_v47, %v8860_v45  ;;  %v16074_v6 = vcombine.low %v8850_v47, %v8860_v45  ;;  %v16462_v19 = vcombine.high %v11981_v44, %v11991_v33  ;;  %v16461_v29 = vcombine.low %v11981_v44, %v11991_v33 }
 0x521   : > { %v8980_v47 = vunpack.c.h.s8.bf16 %v21929_v58  ;;  %v12101_v58 = vunpack.c.h.s8.bf16 %v21945_v17 }
 0x523   : > { %v16581_v44 = vcombine.low %v12101_v58, %v12101_v58 }
 0x525   : > { %10267 = vmatpush1.bf16.xpose.msra.mxu1 %v16172_v48  ;;  %13378 = vmatpush1.bf16.xpose.msra.mxu0 %v16539_v49  ;;  %v16095_v48 = vcombine.high %v8870_v4, %v8880_v1  ;;  %v8890_v49 = vunpack.c.h.s8.bf16 %v21862_v7  ;;  %v12021_v7 = vunpack.c.h.s8.bf16 %v21884_v37 }
 0x526   : > { %10268 = vmatprep.subr.bf16.mxu1 %v16193_v10  ;;  %13379 = vmatprep.subr.bf16.mxu0 %v16560_v3  ;;  %v16094_v10 = vcombine.low %v8870_v4, %v8880_v1 }
 0x527   : > { %v16115_v3 = vcombine.high %v8890_v49, %v8900_v11  ;;  %v16502_v32 = vcombine.high %v12021_v7, %v12031_v51  ;;  %v16501_v37 = vcombine.low %v12021_v7, %v12031_v51  ;;  %v12202_v51 = vcombine.high %v21963_v38, %v21963_v38 }
 0x52d   : > { %10269 = vmatpush1.bf16.xpose.msra.mxu1 %v16192_v34  ;;  %13380 = vmatpush1.bf16.xpose.msra.mxu0 %v16559_v23  ;;  %v8920_v34 = vunpack.c.h.s8.bf16 %v21881_v14  ;;  %v16114_v23 = vcombine.low %v8890_v49, %v8900_v11  ;;  %v12051_v14 = vunpack.c.h.s8.bf16 %v21903_v46  ;;  %v22023_v49 = vld [vmem:[%s17843_s16 + $0x250] sm:$0xff]  ;;  %v22026_v11 = vld.sshfl [vmem:[%s21119_s11 + $0x24] sm:$0x33 pattern:$0x75316420] }
 0x52e   : > { %10270 = vmatprep.subr.bf16.mxu1 %v16213_v28  ;;  %13381 = vmatprep.subr.bf16.mxu0 %v16580_v15  ;;  %v8930_v15 = vunpack.c.h.s8.bf16 %v21894_v40  ;;  %v12061_v40 = vunpack.c.h.s8.bf16 %v21916_v21 }
 0x52f   : > { %v16135_v28 = vcombine.high %v8910_v54, %v8920_v34  ;;  %v16134_v59 = vcombine.low %v8910_v54, %v8920_v34  ;;  %v16522_v50 = vcombine.high %v12041_v5, %v12051_v14  ;;  %v16521_v25 = vcombine.low %v12041_v5, %v12051_v14  ;;  %v22053_v5 = vld [vmem:[%s17843_s16 + $0x2f0] sm:$0xff] }
 0x530   : > { %v16155_v20 = vcombine.high %v8930_v15, %v8940_v55  ;;  %v16542_v46 = vcombine.high %v12061_v40, %v12071_v22  ;;  %v16541_v39 = vcombine.low %v12061_v40, %v12071_v22  ;;  %v9091_v54 = vcombine.high %v21959_v8, %v21959_v8  ;;  %v22068_v22 = vld [vmem:[%s17843_s16 + $0x408] sm:$0xff] }
 0x531   : > { %v12212_v34 = vcombine.high %v22029_v30, %v22029_v30 }
 0x533   : > { %v22059_v14 = vrot.slane %v12212_v34, %v21141_v57 }
 0x535   : > { %10271 = vmatpush1.bf16.xpose.msra.mxu1 %v16212_v60  ;;  %13382 = vmatpush1.bf16.xpose.msra.mxu0 %v16579_v35  ;;  %v8960_v60 = vunpack.c.h.s8.bf16 %v21913_v41  ;;  %v16154_v35 = vcombine.low %v8930_v15, %v8940_v55  ;;  %v12091_v41 = vunpack.c.h.s8.bf16 %v21935_v9  ;;  %v21998_v9 = vld [vmem:[%s17843_s16 + $0x48] sm:$0xff] }
 0x536   : > { %10295 = vmatprep.subr.bf16.mxu1 %v16055_v36  ;;  %13406 = vmatprep.subr.bf16.mxu0 %v16422_v56  ;;  %v8970_v56 = vunpack.c.h.s8.bf16 %v21926_v27  ;;  %v8990_v27 = vunpack.c.h.s8.bf16 %v21942_v26  ;;  %v8831_v26 = vunpack.c.l.s8.bf16 %v21998_v9  ;;  %v22047_v15 = vld [vmem:[%s17843_s16 + $0x368] sm:$0xff] }
 0x537   : > { %v16175_v36 = vcombine.high %v8950_v43, %v8960_v60  ;;  %v16174_v21 = vcombine.low %v8950_v43, %v8960_v60  ;;  %v16562_v52 = vcombine.high %v12081_v61, %v12091_v41  ;;  %v16561_v53 = vcombine.low %v12081_v61, %v12091_v41 }
 0x538   : > { %v16195_v45 = vcombine.high %v8970_v56, %v8980_v47  ;;  %v16194_v62 = vcombine.low %v8970_v56, %v8980_v47  ;;  %v16214_v1 = vcombine.low %v8990_v27, %v8990_v27 }
 0x53c   : > { %10287 = vmatmul.mubr.bf16.vlgmr.msra.gmra.mrb[0].mxu1 %v21959_v8  ;;  %13398 = vmatmul.mubr.bf16.vlgmr.msra.gmra.mrb[0].mxu0 %v21963_v38  ;;  %v22056_v8 = vld [vmem:[%s17843_s16 + $0x390] sm:$0xff] }
 0x53d   : > { %10296 = vmatpush1.bf16.xpose.msra.mxu1 %v16054_v24  ;;  %13407 = vmatpush1.bf16.xpose.msra.mxu0 %v16421_v16  ;;  %v16215_v24 = vcombine.high %v8990_v27, %v8990_v27  ;;  %v16582_v16 = vcombine.high %v12101_v58, %v12101_v58  ;;  %v22087_v27 = vld [vmem:[%s17843_s16 + $0x5e8] sm:$0xff]  ;;  %v22090_v58 = vld [vmem:[%s17843_s16 + $0x570] sm:$0xff] }
 0x53e   : > { %10297 = vmatprep.subr.bf16.mxu1 %v16075_v63  ;;  %13408 = vmatprep.subr.bf16.mxu0 %v16442_v31  ;;  %v22001_v63 = vld [vmem:[%s17843_s16 + $0xe8] sm:$0xff]  ;;  %v22004_v31 = vld [vmem:[%s17843_s16 + $0x70] sm:$0xff] }
 0x53f   : > { %10327 = vmatprep.mubr.bf16.mxu1 %v9093_v18  ;;  %13438 = vmatprep.mubr.bf16.mxu0 %v12204_v13  ;;  %v22007_v18 = vld [vmem:[%s17843_s16 + $0x110] sm:$0xff]  ;;  %v8841_v17 = vunpack.c.l.s8.bf16 %v22001_v63  ;;  %v11942_v13 = vunpack.c.l.s8.bf16 %v22004_v31 }
 0x540   : > { %v11952_v4 = vunpack.c.l.s8.bf16 %v22007_v18 }
 0x541   : > { %v16057_v33 = vcombine.high %v8831_v26, %v8841_v17  ;;  %v16056_v7 = vcombine.low %v8831_v26, %v8841_v17 }
 0x545   : > { %10298 = vmatpush1.bf16.xpose.msra.mxu1 %v16074_v6  ;;  %13409 = vmatpush1.bf16.xpose.msra.mxu0 %v16441_v12  ;;  %v16424_v6 = vcombine.high %v11942_v13, %v11952_v4  ;;  %v22014_v12 = vld [vmem:[%s17843_s16 + $0x188] sm:$0xff] }
 0x546   : > { %10299 = vmatprep.subr.bf16.mxu1 %v16095_v48  ;;  %13410 = vmatprep.subr.bf16.mxu0 %v16462_v19  ;;  %v22017_v48 = vld [vmem:[%s17843_s16 + $0x228] sm:$0xff]  ;;  %v22020_v19 = vld [vmem:[%s17843_s16 + $0x1b0] sm:$0xff]  ;;  %v8851_v0 = vunpack.c.l.s8.bf16 %v22014_v12 }
 0x54d   : > { %10300 = vmatpush1.bf16.xpose.msra.mxu1 %v16094_v10  ;;  %13411 = vmatpush1.bf16.xpose.msra.mxu0 %v16461_v29  ;;  %v8861_v10 = vunpack.c.l.s8.bf16 %v22017_v48  ;;  %v11962_v29 = vunpack.c.l.s8.bf16 %v22020_v19 }
 0x54e   : > { %10301 = vmatprep.subr.bf16.mxu1 %v16115_v3  ;;  %13412 = vmatprep.subr.bf16.mxu0 %v16482_v2  ;;  %v11972_v3 = vunpack.c.l.s8.bf16 %v22023_v49  ;;  %v9101_v2 = vcombine.high %v22026_v11, %v22026_v11 }
 0x550   : > { %v22050_v55 = vrot.slane %v9101_v2, %v21141_v57  ;;  %v16443_v43 = vcombine.low %v11962_v29, %v11972_v3 }
 0x555   : > { %10302 = vmatpush1.bf16.xpose.msra.mxu1 %v16114_v23  ;;  %13413 = vmatpush1.bf16.xpose.msra.mxu0 %v16481_v42  ;;  %v16423_v23 = vcombine.low %v11942_v13, %v11952_v4  ;;  %v16077_v42 = vcombine.high %v8851_v0, %v8861_v10 }
 0x556   : > { %10303 = vmatprep.subr.bf16.mxu1 %v16135_v28  ;;  %13414 = vmatprep.subr.bf16.mxu0 %v16502_v32  ;;  %v16444_v28 = vcombine.high %v11962_v29, %v11972_v3  ;;  %v22044_v32 = vld [vmem:[%s17843_s16 + $0x2c8] sm:$0xff] }
 0x557   : > { %v8871_v38 = vunpack.c.l.s8.bf16 %v22044_v32 }
 0x55d   : > { %10304 = vmatpush1.bf16.xpose.msra.mxu1 %v16134_v59  ;;  %13415 = vmatpush1.bf16.xpose.msra.mxu0 %v16501_v37  ;;  %v8881_v59 = vunpack.c.l.s8.bf16 %v22047_v15  ;;  %v11982_v37 = vunpack.c.l.s8.bf16 %v22053_v5 }
 0x55e   : > { %10305 = vmatprep.subr.bf16.mxu1 %v16155_v20  ;;  %13416 = vmatprep.subr.bf16.mxu0 %v16522_v50  ;;  %v11992_v20 = vunpack.c.l.s8.bf16 %v22056_v8  ;;  %v16076_v50 = vcombine.low %v8851_v0, %v8861_v10  ;;  %v22109_v0 = vld [vmem:[%s17843_s16 + $0x750] sm:$0xff] }
 0x55f   : > { %v16097_v60 = vcombine.high %v8871_v38, %v8881_v59  ;;  %v16096_v41 = vcombine.low %v8871_v38, %v8881_v59  ;;  %v12052_v2 = vunpack.c.l.s8.bf16 %v22109_v0  ;;  %v22125_v38 = vld [vmem:[%s17843_s16 + $0x890] sm:$0xff] }
 0x560   : > { %v16464_v40 = vcombine.high %v11982_v37, %v11992_v20 }
 0x565   : > { %10306 = vmatpush1.bf16.xpose.msra.mxu1 %v16154_v35  ;;  %13417 = vmatpush1.bf16.xpose.msra.mxu0 %v16521_v25  ;;  %v22071_v35 = vld [vmem:[%s17843_s16 + $0x4a8] sm:$0xff]  ;;  %v22074_v25 = vld [vmem:[%s17843_s16 + $0x430] sm:$0xff] }
 0x566   : > { %10307 = vmatprep.subr.bf16.mxu1 %v16175_v36  ;;  %13418 = vmatprep.subr.bf16.mxu0 %v16542_v46  ;;  %v22077_v36 = vld [vmem:[%s17843_s16 + $0x4d0] sm:$0xff]  ;;  %v8891_v46 = vunpack.c.l.s8.bf16 %v22068_v22  ;;  %v8901_v56 = vunpack.c.l.s8.bf16 %v22071_v35  ;;  %v12002_v47 = vunpack.c.l.s8.bf16 %v22074_v25 }
 0x567   : > { %v12012_v61 = vunpack.c.l.s8.bf16 %v22077_v36 }
 0x568   : > { %v16116_v17 = vcombine.low %v8891_v46, %v8901_v56 }
 0x569   : > { %v16483_v13 = vcombine.low %v12002_v47, %v12012_v61 }
 0x56d   : > { %10308 = vmatpush1.bf16.xpose.msra.mxu1 %v16174_v21  ;;  %13419 = vmatpush1.bf16.xpose.msra.mxu0 %v16541_v39  ;;  %v16463_v21 = vcombine.low %v11982_v37, %v11992_v20  ;;  %v16117_v39 = vcombine.high %v8891_v46, %v8901_v56  ;;  %v22132_v56 = vld [vmem:[%s17843_s16 + $0x908] sm:$0xff] }
 0x56e   : > { %10309 = vmatprep.subr.bf16.mxu1 %v16195_v45  ;;  %13420 = vmatprep.subr.bf16.mxu0 %v16562_v52  ;;  %v16484_v45 = vcombine.high %v12002_v47, %v12012_v61  ;;  %v22084_v52 = vld [vmem:[%s17843_s16 + $0x548] sm:$0xff]  ;;  %v22138_v61 = vld [vmem:[%s17843_s16 + $0x930] sm:$0xff] }
 0x56f   : > { %v22135_v47 = vld [vmem:[%s17843_s16 + $0x9a8] sm:$0xff] }
 0x575   : > { %10310 = vmatpush1.bf16.xpose.msra.mxu1 %v16194_v62  ;;  %13421 = vmatpush1.bf16.xpose.msra.mxu0 %v16561_v53  ;;  %v22093_v62 = vld [vmem:[%s17843_s16 + $0x610] sm:$0xff]  ;;  %v8911_v53 = vunpack.c.l.s8.bf16 %v22084_v52 }
 0x576   : > { %10311 = vmatprep.subr.bf16.mxu1 %v16215_v24  ;;  %13422 = vmatprep.subr.bf16.mxu0 %v16582_v16  ;;  %v8921_v24 = vunpack.c.l.s8.bf16 %v22087_v27  ;;  %v12022_v16 = vunpack.c.l.s8.bf16 %v22090_v58  ;;  %v12032_v26 = vunpack.c.l.s8.bf16 %v22093_v62 }
 0x578   : > { %v16137_v4 = vcombine.high %v8911_v53, %v8921_v24  ;;  %v16503_v34 = vcombine.low %v12022_v16, %v12032_v26 }
 0x57d   : > { %10312 = vmatpush1.bf16.xpose.msra.mxu1 %v16214_v1  ;;  %13423 = vmatpush1.bf16.xpose.msra.mxu0 %v16581_v44  ;;  %v16504_v1 = vcombine.high %v12022_v16, %v12032_v26  ;;  %v22100_v44 = vld [vmem:[%s17843_s16 + $0x688] sm:$0xff] }
 0x57e   : > { %10336 = vmatprep.subr.bf16.mxu1 %v16057_v33  ;;  %13447 = vmatprep.subr.bf16.mxu0 %v16424_v6  ;;  %v22103_v33 = vld [vmem:[%s17843_s16 + $0x728] sm:$0xff]  ;;  %v22106_v6 = vld [vmem:[%s17843_s16 + $0x6b0] sm:$0xff]  ;;  %v8931_v10 = vunpack.c.l.s8.bf16 %v22100_v44 }
 0x57f   : > { %v8941_v29 = vunpack.c.l.s8.bf16 %v22103_v33  ;;  %v12042_v3 = vunpack.c.l.s8.bf16 %v22106_v6 }
 0x584   : > { %10328 = vmatmul.mubr.bf16.vlgmr.msra.gmra.mrb[0].mxu1 %v9091_v54  ;;  %13439 = vmatmul.mubr.bf16.vlgmr.msra.gmra.mrb[0].mxu0 %v12202_v51  ;;  %v16136_v54 = vcombine.low %v8911_v53, %v8921_v24  ;;  %v16524_v51 = vcombine.high %v12042_v3, %v12052_v2 }
 0x585   : > { %10337 = vmatpush1.bf16.xpose.msra.mxu1 %v16056_v7  ;;  %13448 = vmatpush1.bf16.xpose.msra.mxu0 %v16423_v23  ;;  %v16157_v7 = vcombine.high %v8931_v10, %v8941_v29  ;;  %v22116_v23 = vld [vmem:[%s17843_s16 + $0x7c8] sm:$0xff] }
 0x586   : > { %10338 = vmatprep.subr.bf16.mxu1 %v16077_v42  ;;  %13449 = vmatprep.subr.bf16.mxu0 %v16444_v28  ;;  %v22119_v42 = vld [vmem:[%s17843_s16 + $0x868] sm:$0xff]  ;;  %v22122_v28 = vld [vmem:[%s17843_s16 + $0x7f0] sm:$0xff]  ;;  %v8951_v59 = vunpack.c.l.s8.bf16 %v22116_v23 }
 0x587   : > { %10368 = vmatprep.mubr.bf16.mxu1 %v22050_v55  ;;  %13479 = vmatprep.mubr.bf16.mxu0 %v22059_v14  ;;  %v8961_v37 = vunpack.c.l.s8.bf16 %v22119_v42  ;;  %v12062_v20 = vunpack.c.l.s8.bf16 %v22122_v28 }
 0x589   : > { %v16176_v24 = vcombine.low %v8951_v59, %v8961_v37 }
 0x58d   : > { %10339 = vmatpush1.bf16.xpose.msra.mxu1 %v16076_v50  ;;  %13450 = vmatpush1.bf16.xpose.msra.mxu0 %v16443_v43  ;;  %v12072_v50 = vunpack.c.l.s8.bf16 %v22125_v38  ;;  %v16156_v43 = vcombine.low %v8931_v10, %v8941_v29 }
 0x58e   : > { %10340 = vmatprep.subr.bf16.mxu1 %v16097_v60  ;;  %13451 = vmatprep.subr.bf16.mxu0 %v16464_v40  ;;  %v16523_v60 = vcombine.low %v12042_v3, %v12052_v2  ;;  %v16177_v40 = vcombine.high %v8951_v59, %v8961_v37  ;;  %v11953_v59 = vunpack.c.h.s8.bf16 %v22007_v18 }
 0x58f   : > { %v16544_v46 = vcombine.high %v12062_v20, %v12072_v50  ;;  %v16543_v16 = vcombine.low %v12062_v20, %v12072_v50 }
 0x595   : > { %10341 = vmatpush1.bf16.xpose.msra.mxu1 %v16096_v41  ;;  %13452 = vmatpush1.bf16.xpose.msra.mxu0 %v16463_v21  ;;  %v22141_v41 = vld [vmem:[%s17843_s16 + $0x9d0] sm:$0xff]  ;;  %v8971_v21 = vunpack.c.l.s8.bf16 %v22132_v56 }
 0x596   : > { %10342 = vmatprep.subr.bf16.mxu1 %v16117_v39  ;;  %13453 = vmatprep.subr.bf16.mxu0 %v16484_v45  ;;  %v8981_v39 = vunpack.c.l.s8.bf16 %v22135_v47  ;;  %v12082_v45 = vunpack.c.l.s8.bf16 %v22138_v61  ;;  %v12092_v53 = vunpack.c.l.s8.bf16 %v22141_v41 }
 0x598   : > { %v16197_v26 = vcombine.high %v8971_v21, %v8981_v39  ;;  %v16196_v29 = vcombine.low %v8971_v21, %v8981_v39  ;;  %v16563_v3 = vcombine.low %v12082_v45, %v12092_v53 }
 0x59d   : > { %10343 = vmatpush1.bf16.xpose.msra.mxu1 %v16116_v17  ;;  %13454 = vmatpush1.bf16.xpose.msra.mxu0 %v16483_v13  ;;  %v16564_v17 = vcombine.high %v12082_v45, %v12092_v53  ;;  %v22148_v13 = vld [vmem:[%s17843_s16 + $0xa48] sm:$0x55] }
 0x59e   : > { %10344 = vmatprep.subr.bf16.mxu1 %v16137_v4  ;;  %13455 = vmatprep.subr.bf16.mxu0 %v16504_v1  ;;  %v22151_v4 = vld [vmem:[%s17843_s16 + $0xa70] sm:$0x55]  ;;  %v8991_v1 = vunpack.c.l.s8.bf16 %v22148_v13 }
 0x59f   : > { %v12102_v10 = vunpack.c.l.s8.bf16 %v22151_v4 }
 0x5a0   : > { %v16217_v2 = vcombine.high %v8991_v1, %v8991_v1  ;;  %v16216_v37 = vcombine.low %v8991_v1, %v8991_v1 }
 0x5a1   : > { %v16583_v20 = vcombine.low %v12102_v10, %v12102_v10 }
 0x5a5   : > { %10345 = vmatpush1.bf16.xpose.msra.mxu1 %v16136_v54  ;;  %13456 = vmatpush1.bf16.xpose.msra.mxu0 %v16503_v34  ;;  %v16584_v54 = vcombine.high %v12102_v10, %v12102_v10  ;;  %v8832_v34 = vunpack.c.h.s8.bf16 %v21998_v9  ;;  %v11963_v9 = vunpack.c.h.s8.bf16 %v22020_v19  ;;  %v8872_v19 = vunpack.c.h.s8.bf16 %v22044_v32 }
 0x5a6   : > { %10346 = vmatprep.subr.bf16.mxu1 %v16157_v7  ;;  %13457 = vmatprep.subr.bf16.mxu0 %v16524_v51  ;;  %v8842_v7 = vunpack.c.h.s8.bf16 %v22001_v63  ;;  %v11943_v51 = vunpack.c.h.s8.bf16 %v22004_v31  ;;  %v11973_v63 = vunpack.c.h.s8.bf16 %v22023_v49  ;;  %v22165_v31 = vrot.slane %v22026_v11, %v21141_v57 }
 0x5a7   : > { %v8882_v49 = vunpack.c.h.s8.bf16 %v22047_v15  ;;  %v11983_v11 = vunpack.c.h.s8.bf16 %v22053_v5  ;;  %v8902_v32 = vunpack.c.h.s8.bf16 %v22071_v35  ;;  %v12003_v15 = vunpack.c.h.s8.bf16 %v22074_v25 }
 0x5a8   : > { %v16059_v50 = vcombine.high %v8832_v34, %v8842_v7  ;;  %v16058_v18 = vcombine.low %v8832_v34, %v8842_v7  ;;  %v16425_v21 = vcombine.low %v11943_v51, %v11953_v59  ;;  %v16446_v45 = vcombine.high %v11963_v9, %v11973_v63 }
 0x5a9   : > { %v16445_v53 = vcombine.low %v11963_v9, %v11973_v63  ;;  %v12013_v5 = vunpack.c.h.s8.bf16 %v22077_v36  ;;  %v8912_v10 = vunpack.c.h.s8.bf16 %v22084_v52  ;;  %v12033_v35 = vunpack.c.h.s8.bf16 %v22093_v62 }
 0x5aa   : > { %v8942_v34 = vunpack.c.h.s8.bf16 %v22103_v33  ;;  %v12043_v52 = vunpack.c.h.s8.bf16 %v22106_v6  ;;  %v12073_v33 = vunpack.c.h.s8.bf16 %v22125_v38 }
 0x5ab   : > { %v16486_v1 = vcombine.high %v12003_v15, %v12013_v5  ;;  %v16485_v25 = vcombine.low %v12003_v15, %v12013_v5  ;;  %v22236_v15 = vld [vmem:[%s17843_s16 + $0x1b8] sm:$0xff] }
 0x5ac   : > { %v22239_v5 = vld [vmem:[%s17843_s16 + $0x258] sm:$0xff] }
 0x5ad   : > { %10347 = vmatpush1.bf16.xpose.msra.mxu1 %v16156_v43  ;;  %13458 = vmatpush1.bf16.xpose.msra.mxu0 %v16523_v60  ;;  %v16426_v43 = vcombine.high %v11943_v51, %v11953_v59  ;;  %v8852_v60 = vunpack.c.h.s8.bf16 %v22014_v12  ;;  %v9117_v12 = vcombine.high %v22050_v55, %v22050_v55  ;;  %v8952_v59 = vunpack.c.h.s8.bf16 %v22116_v23 }
 0x5ae   : > { %10348 = vmatprep.subr.bf16.mxu1 %v16177_v40  ;;  %13459 = vmatprep.subr.bf16.mxu0 %v16544_v46  ;;  %v8862_v40 = vunpack.c.h.s8.bf16 %v22017_v48  ;;  %v22169_v46 = vrot.slane %v22029_v30, %v21141_v57  ;;  %v12228_v48 = vcombine.high %v22059_v14, %v22059_v14  ;;  %v11993_v30 = vunpack.c.h.s8.bf16 %v22056_v8 }
 0x5af   : > { %v12083_v23 = vunpack.c.h.s8.bf16 %v22138_v61 }
 0x5b0   : > { %v16079_v39 = vcombine.high %v8852_v60, %v8862_v40  ;;  %v16078_v55 = vcombine.low %v8852_v60, %v8862_v40  ;;  %v16466_v14 = vcombine.high %v11983_v11, %v11993_v30  ;;  %v16465_v8 = vcombine.low %v11983_v11, %v11993_v30  ;;  %v22223_v30 = vld [vmem:[%s21119_s11 + $0x3c] sm:$0xff] }
 0x5b1   : > { %v8982_v60 = vunpack.c.h.s8.bf16 %v22135_v47  ;;  %v12103_v47 = vunpack.c.h.s8.bf16 %v22151_v4 }
 0x5b5   : > { %10349 = vmatpush1.bf16.xpose.msra.mxu1 %v16176_v24  ;;  %13460 = vmatpush1.bf16.xpose.msra.mxu0 %v16543_v16  ;;  %v16099_v24 = vcombine.high %v8872_v19, %v8882_v49  ;;  %v8892_v16 = vunpack.c.h.s8.bf16 %v22068_v22  ;;  %v12023_v22 = vunpack.c.h.s8.bf16 %v22090_v58 }
 0x5b6   : > { %10350 = vmatprep.subr.bf16.mxu1 %v16197_v26  ;;  %13461 = vmatprep.subr.bf16.mxu0 %v16564_v17  ;;  %v16098_v26 = vcombine.low %v8872_v19, %v8882_v49  ;;  %v22220_v49 = vld [vmem:[%s21119_s11] sm:$0xff] }
 0x5b7   : > { %v16119_v17 = vcombine.high %v8892_v16, %v8902_v32  ;;  %v16506_v36 = vcombine.high %v12023_v22, %v12033_v35  ;;  %v16505_v58 = vcombine.low %v12023_v22, %v12033_v35  ;;  %v9116_v22 = vcombine.high %v22165_v31, %v22165_v31 }
 0x5bd   : > { %10351 = vmatpush1.bf16.xpose.msra.mxu1 %v16196_v29  ;;  %13462 = vmatpush1.bf16.xpose.msra.mxu0 %v16563_v3  ;;  %v8922_v29 = vunpack.c.h.s8.bf16 %v22087_v27  ;;  %v16118_v3 = vcombine.low %v8892_v16, %v8902_v32  ;;  %v12053_v27 = vunpack.c.h.s8.bf16 %v22109_v0  ;;  %v22229_v16 = vld [vmem:[%s17843_s16 + $0x1e0] sm:$0xff]  ;;  %v22233_v32 = vrot.slane %v22220_v49, %v21141_v57 }
 0x5be   : > { %10352 = vmatprep.subr.bf16.mxu1 %v16217_v2  ;;  %13463 = vmatprep.subr.bf16.mxu0 %v16584_v54  ;;  %v8932_v54 = vunpack.c.h.s8.bf16 %v22100_v44  ;;  %v12063_v44 = vunpack.c.h.s8.bf16 %v22122_v28 }
 0x5bf   : > { %v16139_v2 = vcombine.high %v8912_v10, %v8922_v29  ;;  %v16138_v7 = vcombine.low %v8912_v10, %v8922_v29  ;;  %v16526_v62 = vcombine.high %v12043_v52, %v12053_v27  ;;  %v16525_v6 = vcombine.low %v12043_v52, %v12053_v27  ;;  %v22261_v52 = vld [vmem:[%s17843_s16 + $0x320] sm:$0xff] }
 0x5c0   : > { %v16159_v51 = vcombine.high %v8932_v54, %v8942_v34  ;;  %v16546_v0 = vcombine.high %v12063_v44, %v12073_v33  ;;  %v16545_v38 = vcombine.low %v12063_v44, %v12073_v33  ;;  %v13652_v10 = vunpack.c.l.s8.bf16 %v22239_v5 }
 0x5c1   : > { %v10436_v29 = vcombine.high %v22233_v32, %v22233_v32 }
 0x5c3   : > { %v22264_v27 = vrot.slane %v10436_v29, %v21141_v57 }
 0x5c5   : > { %10353 = vmatpush1.bf16.xpose.msra.mxu1 %v16216_v37  ;;  %13464 = vmatpush1.bf16.xpose.msra.mxu0 %v16583_v20  ;;  %v8962_v37 = vunpack.c.h.s8.bf16 %v22119_v42  ;;  %v16158_v20 = vcombine.low %v8932_v54, %v8942_v34  ;;  %v12093_v42 = vunpack.c.h.s8.bf16 %v22141_v41  ;;  %v16586_v41 = vcombine.high %v12103_v47, %v12103_v47  ;;  %v22258_v34 = vld [vmem:[%s17843_s16 + $0x280] sm:$0xff] }
 0x5c6   : > { %10377 = vmatprep.subr.bf16.mxu1 %v16059_v50  ;;  %13488 = vmatprep.subr.bf16.mxu0 %v16426_v43  ;;  %v8972_v43 = vunpack.c.h.s8.bf16 %v22132_v56  ;;  %v8992_v56 = vunpack.c.h.s8.bf16 %v22148_v13 }
 0x5c7   : > { %v16179_v50 = vcombine.high %v8952_v59, %v8962_v37  ;;  %v16178_v28 = vcombine.low %v8952_v59, %v8962_v37  ;;  %v16566_v9 = vcombine.high %v12083_v23, %v12093_v42  ;;  %v16565_v61 = vcombine.low %v12083_v23, %v12093_v42 }
 0x5c8   : > { %v16199_v40 = vcombine.high %v8972_v43, %v8982_v60  ;;  %v16198_v63 = vcombine.low %v8972_v43, %v8982_v60  ;;  %v16218_v11 = vcombine.low %v8992_v56, %v8992_v56  ;;  %v22291_v43 = vld [vmem:[%s17843_s16 + $0x4d8] sm:$0xff] }
 0x5cc   : > { %10369 = vmatmul.mubr.bf16.vlgmr.msra.gmra.mrb[0].mxu1 %v22165_v31  ;;  %13480 = vmatmul.mubr.bf16.vlgmr.msra.gmra.mrb[0].mxu0 %v22169_v46  ;;  %v22270_v31 = vld [vmem:[%s17843_s16 + $0x398] sm:$0xff] }
 0x5cd   : > { %10378 = vmatpush1.bf16.xpose.msra.mxu1 %v16058_v18  ;;  %13489 = vmatpush1.bf16.xpose.msra.mxu0 %v16425_v21  ;;  %v16219_v18 = vcombine.high %v8992_v56, %v8992_v56  ;;  %v22204_v21 = vld [vmem:[%s17843_s16] sm:$0xff]  ;;  %v13672_v59 = vunpack.c.l.s8.bf16 %v22270_v31 }
 0x5ce   : > { %10379 = vmatprep.subr.bf16.mxu1 %v16079_v39  ;;  %13490 = vmatprep.subr.bf16.mxu0 %v16446_v45  ;;  %v22207_v39 = vld [vmem:[%s17843_s16 + $0xa0] sm:$0xff]  ;;  %v22210_v45 = vld [vmem:[%s17843_s16 + $0x78] sm:$0xff]  ;;  %v8562_v13 = vunpack.c.l.s8.bf16 %v22204_v21 }
 0x5cf   : > { %10409 = vmatprep.mubr.bf16.mxu1 %v9117_v12  ;;  %13520 = vmatprep.mubr.bf16.mxu0 %v12228_v48  ;;  %v22213_v12 = vld [vmem:[%s17843_s16 + $0x118] sm:$0xff]  ;;  %v8572_v4 = vunpack.c.l.s8.bf16 %v22207_v39  ;;  %v13622_v48 = vunpack.c.l.s8.bf16 %v22210_v45 }
 0x5d0   : > { %v13632_v19 = vunpack.c.l.s8.bf16 %v22213_v12 }
 0x5d5   : > { %10380 = vmatpush1.bf16.xpose.msra.mxu1 %v16078_v55  ;;  %13491 = vmatpush1.bf16.xpose.msra.mxu0 %v16445_v53  ;;  %v16585_v55 = vcombine.low %v12103_v47, %v12103_v47  ;;  %v16222_v53 = vcombine.high %v8562_v13, %v8572_v4  ;;  %v22298_v47 = vld [vmem:[%s17843_s16 + $0x500] sm:$0xff] }
 0x5d6   : > { %10381 = vmatprep.subr.bf16.mxu1 %v16099_v24  ;;  %13492 = vmatprep.subr.bf16.mxu0 %v16466_v14  ;;  %v16594_v24 = vcombine.high %v13622_v48, %v13632_v19  ;;  %v22226_v14 = vld [vmem:[%s17843_s16 + $0x140] sm:$0xff] }
 0x5dd   : > { %10382 = vmatpush1.bf16.xpose.msra.mxu1 %v16098_v26  ;;  %13493 = vmatpush1.bf16.xpose.msra.mxu0 %v16465_v8  ;;  %v22243_v26 = vrot.slane %v22223_v30, %v21141_v57  ;;  %v8582_v8 = vunpack.c.l.s8.bf16 %v22226_v14 }
 0x5de   : > { %10383 = vmatprep.subr.bf16.mxu1 %v16119_v17  ;;  %13494 = vmatprep.subr.bf16.mxu0 %v16486_v1  ;;  %v8592_v17 = vunpack.c.l.s8.bf16 %v22229_v16  ;;  %v13642_v1 = vunpack.c.l.s8.bf16 %v22236_v15 }
 0x5df   : > { %v13810_v35 = vcombine.high %v22243_v26, %v22243_v26 }
 0x5e0   : > { %v16614_v54 = vcombine.high %v13642_v1, %v13652_v10  ;;  %v16241_v37 = vcombine.low %v8582_v8, %v8592_v17  ;;  %v16613_v44 = vcombine.low %v13642_v1, %v13652_v10  ;;  %v22323_v1 = vld [vmem:[%s17843_s16 + $0x758] sm:$0xff] }
 0x5e5   : > { %10384 = vmatpush1.bf16.xpose.msra.mxu1 %v16118_v3  ;;  %13495 = vmatpush1.bf16.xpose.msra.mxu0 %v16485_v25  ;;  %v16221_v3 = vcombine.low %v8562_v13, %v8572_v4  ;;  %v12227_v25 = vcombine.high %v22169_v46, %v22169_v46  ;;  %v8602_v46 = vunpack.c.l.s8.bf16 %v22258_v34 }
 0x5e6   : > { %10385 = vmatprep.subr.bf16.mxu1 %v16139_v2  ;;  %13496 = vmatprep.subr.bf16.mxu0 %v16506_v36  ;;  %v16593_v2 = vcombine.low %v13622_v48, %v13632_v19  ;;  %v16242_v36 = vcombine.high %v8582_v8, %v8592_v17  ;;  %v22317_v8 = vld [vmem:[%s17843_s16 + $0x6e0] sm:$0xff]  ;;  %v22320_v17 = vld [vmem:[%s17843_s16 + $0x6b8] sm:$0xff] }
 0x5e7   : > { %v8672_v29 = vunpack.c.l.s8.bf16 %v22317_v8 }
 0x5ed   : > { %10386 = vmatpush1.bf16.xpose.msra.mxu1 %v16138_v7  ;;  %13497 = vmatpush1.bf16.xpose.msra.mxu0 %v16505_v58  ;;  %v22267_v7 = vld [vmem:[%s17843_s16 + $0x2f8] sm:$0xff]  ;;  %v22273_v58 = vrot.slane %v13810_v35, %v21141_v57  ;;  %v13732_v35 = vunpack.c.l.s8.bf16 %v22323_v1 }
 0x5ee   : > { %10387 = vmatprep.subr.bf16.mxu1 %v16159_v51  ;;  %13498 = vmatprep.subr.bf16.mxu0 %v16526_v62  ;;  %v8612_v51 = vunpack.c.l.s8.bf16 %v22261_v52  ;;  %v13662_v62 = vunpack.c.l.s8.bf16 %v22267_v7 }
 0x5f0   : > { %v16262_v33 = vcombine.high %v8602_v46, %v8612_v51 }
 0x5f5   : > { %10388 = vmatpush1.bf16.xpose.msra.mxu1 %v16158_v20  ;;  %13499 = vmatpush1.bf16.xpose.msra.mxu0 %v16525_v6  ;;  %v16634_v20 = vcombine.high %v13662_v62, %v13672_v59  ;;  %v22282_v6 = vld [vmem:[%s17843_s16 + $0x3c0] sm:$0xff] }
 0x5f6   : > { %10389 = vmatprep.subr.bf16.mxu1 %v16179_v50  ;;  %13500 = vmatprep.subr.bf16.mxu0 %v16546_v0  ;;  %v22285_v50 = vld [vmem:[%s17843_s16 + $0x460] sm:$0xff]  ;;  %v22288_v0 = vld [vmem:[%s17843_s16 + $0x438] sm:$0xff]  ;;  %v8622_v60 = vunpack.c.l.s8.bf16 %v22282_v6 }
 0x5f7   : > { %v8632_v23 = vunpack.c.l.s8.bf16 %v22285_v50  ;;  %v13682_v42 = vunpack.c.l.s8.bf16 %v22288_v0 }
 0x5f9   : > { %v16281_v19 = vcombine.low %v8622_v60, %v8632_v23 }
 0x5fd   : > { %10390 = vmatpush1.bf16.xpose.msra.mxu1 %v16178_v28  ;;  %13501 = vmatpush1.bf16.xpose.msra.mxu0 %v16545_v38  ;;  %v13692_v28 = vunpack.c.l.s8.bf16 %v22291_v43  ;;  %v16261_v38 = vcombine.low %v8602_v46, %v8612_v51  ;;  %v22333_v46 = vld [vmem:[%s17843_s16 + $0x820] sm:$0xff]  ;;  %v22336_v51 = vld [vmem:[%s17843_s16 + $0x7f8] sm:$0xff] }
 0x5fe   : > { %10391 = vmatprep.subr.bf16.mxu1 %v16199_v40  ;;  %13502 = vmatprep.subr.bf16.mxu0 %v16566_v9  ;;  %v16633_v40 = vcombine.low %v13662_v62, %v13672_v59  ;;  %v16282_v9 = vcombine.high %v8622_v60, %v8632_v23  ;;  %v22339_v62 = vld [vmem:[%s17843_s16 + $0x898] sm:$0xff] }
 0x5ff   : > { %v16654_v56 = vcombine.high %v13682_v42, %v13692_v28 }
 0x605   : > { %10392 = vmatpush1.bf16.xpose.msra.mxu1 %v16198_v63  ;;  %13503 = vmatpush1.bf16.xpose.msra.mxu0 %v16565_v61  ;;  %v22301_v63 = vld [vmem:[%s17843_s16 + $0x5a0] sm:$0xff]  ;;  %v22304_v61 = vld [vmem:[%s17843_s16 + $0x578] sm:$0xff] }
 0x606   : > { %10393 = vmatprep.subr.bf16.mxu1 %v16219_v18  ;;  %13504 = vmatprep.subr.bf16.mxu0 %v16586_v41  ;;  %v22307_v18 = vld [vmem:[%s17843_s16 + $0x618] sm:$0xff]  ;;  %v8642_v41 = vunpack.c.l.s8.bf16 %v22298_v47  ;;  %v8652_v13 = vunpack.c.l.s8.bf16 %v22301_v63  ;;  %v13702_v4 = vunpack.c.l.s8.bf16 %v22304_v61 }
 0x607   : > { %v13712_v48 = vunpack.c.l.s8.bf16 %v22307_v18 }
 0x60d   : > { %10394 = vmatpush1.bf16.xpose.msra.mxu1 %v16218_v11  ;;  %13505 = vmatpush1.bf16.xpose.msra.mxu0 %v16585_v55  ;;  %v16653_v11 = vcombine.low %v13682_v42, %v13692_v28  ;;  %v16302_v55 = vcombine.high %v8642_v41, %v8652_v13  ;;  %v22346_v28 = vld [vmem:[%s17843_s16 + $0x8c0] sm:$0xff] }
 0x60e   : > { %11433 = vmatprep.subr.bf16.mxu1 %v16222_v53  ;;  %14807 = vmatprep.subr.bf16.mxu0 %v16594_v24  ;;  %v16674_v53 = vcombine.high %v13702_v4, %v13712_v48  ;;  %v22314_v24 = vld [vmem:[%s17843_s16 + $0x640] sm:$0xff] }
 0x60f   : > { %v8662_v10 = vunpack.c.l.s8.bf16 %v22314_v24 }
 0x614   : > { %10410 = vmatmul.mubr.bf16.vlgmr.msra.gmra.mrb[0].mxu1 %v9116_v22  ;;  %13521 = vmatmul.mubr.bf16.vlgmr.msra.gmra.mrb[0].mxu0 %v12227_v25  ;;  %v13722_v22 = vunpack.c.l.s8.bf16 %v22320_v17  ;;  %v16673_v25 = vcombine.low %v13702_v4, %v13712_v48 }
 0x615   : > { %11434 = vmatpush1.bf16.xpose.msra.mxu1 %v16221_v3  ;;  %14808 = vmatpush1.bf16.xpose.msra.mxu0 %v16593_v2  ;;  %v16301_v3 = vcombine.low %v8642_v41, %v8652_v13  ;;  %v16322_v2 = vcombine.high %v8662_v10, %v8672_v29 }
 0x616   : > { %11435 = vmatprep.subr.bf16.mxu1 %v16242_v36  ;;  %14809 = vmatprep.subr.bf16.mxu0 %v16614_v54  ;;  %v16694_v36 = vcombine.high %v13722_v22, %v13732_v35  ;;  %v22330_v54 = vld [vmem:[%s17843_s16 + $0x780] sm:$0xff]  ;;  %v16693_v60 = vcombine.low %v13722_v22, %v13732_v35 }
 0x617   : > { %11465 = vmatprep.mubr.bf16.mxu1 %v22264_v27  ;;  %14839 = vmatprep.mubr.bf16.mxu0 %v22273_v58  ;;  %v8682_v59 = vunpack.c.l.s8.bf16 %v22330_v54 }
 0x61d   : > { %11436 = vmatpush1.bf16.xpose.msra.mxu1 %v16241_v37  ;;  %14810 = vmatpush1.bf16.xpose.msra.mxu0 %v16613_v44  ;;  %v8692_v37 = vunpack.c.l.s8.bf16 %v22333_v46  ;;  %v13742_v44 = vunpack.c.l.s8.bf16 %v22336_v51 }
 0x61e   : > { %11437 = vmatprep.subr.bf16.mxu1 %v16262_v33  ;;  %14811 = vmatprep.subr.bf16.mxu0 %v16634_v20  ;;  %v13752_v33 = vunpack.c.l.s8.bf16 %v22339_v62  ;;  %v16321_v20 = vcombine.low %v8662_v10, %v8672_v29  ;;  %v22365_v10 = vld [vmem:[%s17843_s16 + $0xa78] sm:$0x55] }
 0x61f   : > { %v16342_v23 = vcombine.high %v8682_v59, %v8692_v37  ;;  %v16341_v48 = vcombine.low %v8682_v59, %v8692_v37  ;;  %v13782_v22 = vunpack.c.l.s8.bf16 %v22365_v10  ;;  %v8573_v59 = vunpack.c.h.s8.bf16 %v22207_v39 }
 0x620   : > { %v16714_v42 = vcombine.high %v13742_v44, %v13752_v33  ;;  %v13623_v37 = vunpack.c.h.s8.bf16 %v22210_v45  ;;  %v13653_v39 = vunpack.c.h.s8.bf16 %v22239_v5  ;;  %v22379_v45 = vrot.slane %v22233_v32, %v21141_v57 }
 0x621   : > { %v8603_v32 = vunpack.c.h.s8.bf16 %v22258_v34  ;;  %v13663_v5 = vunpack.c.h.s8.bf16 %v22267_v7  ;;  %v8633_v34 = vunpack.c.h.s8.bf16 %v22285_v50  ;;  %v13693_v7 = vunpack.c.h.s8.bf16 %v22291_v43 }
 0x622   : > { %v13713_v50 = vunpack.c.h.s8.bf16 %v22307_v18 }
 0x625   : > { %11438 = vmatpush1.bf16.xpose.msra.mxu1 %v16261_v38  ;;  %14812 = vmatpush1.bf16.xpose.msra.mxu0 %v16633_v40  ;;  %v22349_v38 = vld [vmem:[%s17843_s16 + $0x960] sm:$0xff]  ;;  %v22352_v40 = vld [vmem:[%s17843_s16 + $0x938] sm:$0xff] }
 0x626   : > { %11439 = vmatprep.subr.bf16.mxu1 %v16282_v9  ;;  %14813 = vmatprep.subr.bf16.mxu0 %v16654_v56  ;;  %v22355_v9 = vld [vmem:[%s17843_s16 + $0x9d8] sm:$0xff]  ;;  %v8702_v56 = vunpack.c.l.s8.bf16 %v22346_v28  ;;  %v8712_v41 = vunpack.c.l.s8.bf16 %v22349_v38  ;;  %v13762_v13 = vunpack.c.l.s8.bf16 %v22352_v40 }
 0x627   : > { %v13772_v4 = vunpack.c.l.s8.bf16 %v22355_v9 }
 0x628   : > { %v16361_v35 = vcombine.low %v8702_v56, %v8712_v41 }
 0x62d   : > { %11440 = vmatpush1.bf16.xpose.msra.mxu1 %v16281_v19  ;;  %14814 = vmatpush1.bf16.xpose.msra.mxu0 %v16653_v11  ;;  %v16713_v19 = vcombine.low %v13742_v44, %v13752_v33  ;;  %v16362_v11 = vcombine.high %v8702_v56, %v8712_v41  ;;  %v13633_v44 = vunpack.c.h.s8.bf16 %v22213_v12  ;;  %v8593_v56 = vunpack.c.h.s8.bf16 %v22229_v16 }
 0x62e   : > { %11441 = vmatprep.subr.bf16.mxu1 %v16302_v55  ;;  %14815 = vmatprep.subr.bf16.mxu0 %v16674_v53  ;;  %v16734_v55 = vcombine.high %v13762_v13, %v13772_v4  ;;  %v22362_v53 = vld [vmem:[%s17843_s16 + $0xa00] sm:$0x55]  ;;  %v22383_v41 = vrot.slane %v22243_v26, %v21141_v57  ;;  %v13842_v16 = vcombine.high %v22273_v58, %v22273_v58  ;;  %v13673_v26 = vunpack.c.h.s8.bf16 %v22270_v31 }
 0x62f   : > { %v8722_v29 = vunpack.c.l.s8.bf16 %v22362_v53 }
 0x630   : > { %v16636_v58 = vcombine.high %v13663_v5, %v13673_v26  ;;  %v16635_v31 = vcombine.low %v13663_v5, %v13673_v26  ;;  %v10421_v26 = vcombine.high %v22220_v49, %v22220_v49 }
 0x631   : > { %v16381_v33 = vcombine.low %v8722_v29, %v8722_v29 }
 0x635   : > { %11442 = vmatpush1.bf16.xpose.msra.mxu1 %v16301_v3  ;;  %14816 = vmatpush1.bf16.xpose.msra.mxu0 %v16673_v25  ;;  %v16733_v3 = vcombine.low %v13762_v13, %v13772_v4  ;;  %v16382_v25 = vcombine.high %v8722_v29, %v8722_v29  ;;  %v16595_v13 = vcombine.low %v13623_v37, %v13633_v44 }
 0x636   : > { %11443 = vmatprep.subr.bf16.mxu1 %v16322_v2  ;;  %14817 = vmatprep.subr.bf16.mxu0 %v16694_v36  ;;  %v16754_v2 = vcombine.high %v13782_v22, %v13782_v22  ;;  %v8563_v36 = vunpack.c.h.s8.bf16 %v22204_v21  ;;  %v13643_v21 = vunpack.c.h.s8.bf16 %v22236_v15  ;;  %v8613_v15 = vunpack.c.h.s8.bf16 %v22261_v52 }
 0x637   : > { %v13683_v52 = vunpack.c.h.s8.bf16 %v22288_v0 }
 0x638   : > { %v16223_v12 = vcombine.low %v8563_v36, %v8573_v59  ;;  %v16263_v29 = vcombine.low %v8603_v32, %v8613_v15 }
 0x639   : > { %v16655_v0 = vcombine.low %v13683_v52, %v13693_v7 }
 0x63d   : > { %11444 = vmatpush1.bf16.xpose.msra.mxu1 %v16321_v20  ;;  %14818 = vmatpush1.bf16.xpose.msra.mxu0 %v16693_v60  ;;  %v16753_v20 = vcombine.low %v13782_v22, %v13782_v22  ;;  %v16224_v60 = vcombine.high %v8563_v36, %v8573_v59  ;;  %v8663_v59 = vunpack.c.h.s8.bf16 %v22314_v24  ;;  %v13743_v24 = vunpack.c.h.s8.bf16 %v22336_v51 }
 0x63e   : > { %11445 = vmatprep.subr.bf16.mxu1 %v16342_v23  ;;  %14819 = vmatprep.subr.bf16.mxu0 %v16714_v42  ;;  %v16596_v23 = vcombine.high %v13623_v37, %v13633_v44  ;;  %v8583_v42 = vunpack.c.h.s8.bf16 %v22226_v14  ;;  %v10468_v14 = vcombine.high %v22264_v27, %v22264_v27  ;;  %v8673_v37 = vunpack.c.h.s8.bf16 %v22317_v8 }
 0x63f   : > { %v13753_v8 = vunpack.c.h.s8.bf16 %v22339_v62 }
 0x640   : > { %v16244_v4 = vcombine.high %v8583_v42, %v8593_v56  ;;  %v16243_v27 = vcombine.low %v8583_v42, %v8593_v56  ;;  %v8703_v56 = vunpack.c.h.s8.bf16 %v22346_v28  ;;  %v8723_v28 = vunpack.c.h.s8.bf16 %v22362_v53 }
 0x641   : > { %v16715_v62 = vcombine.low %v13743_v24, %v13753_v8 }
 0x645   : > { %11446 = vmatpush1.bf16.xpose.msra.mxu1 %v16341_v48  ;;  %14820 = vmatpush1.bf16.xpose.msra.mxu0 %v16713_v19  ;;  %v16616_v48 = vcombine.high %v13643_v21, %v13653_v39  ;;  %v16615_v19 = vcombine.low %v13643_v21, %v13653_v39  ;;  %v8713_v21 = vunpack.c.h.s8.bf16 %v22349_v38  ;;  %v13783_v38 = vunpack.c.h.s8.bf16 %v22365_v10 }
 0x646   : > { %11447 = vmatprep.subr.bf16.mxu1 %v16362_v11  ;;  %14821 = vmatprep.subr.bf16.mxu0 %v16734_v55  ;;  %v16264_v11 = vcombine.high %v8603_v32, %v8613_v15  ;;  %v8623_v55 = vunpack.c.h.s8.bf16 %v22282_v6  ;;  %v13703_v6 = vunpack.c.h.s8.bf16 %v22304_v61  ;;  %v22427_v32 = vld [vmem:[%s17843_s16 + $0x120] sm:$0xff] }
 0x647   : > { %v16364_v39 = vcombine.high %v8703_v56, %v8713_v21  ;;  %v13634_v5 = vunpack.c.l.s8.bf16 %v22427_v32 }
 0x648   : > { %v16284_v22 = vcombine.high %v8623_v55, %v8633_v34  ;;  %v16676_v43 = vcombine.high %v13703_v6, %v13713_v50  ;;  %v16675_v61 = vcombine.low %v13703_v6, %v13713_v50  ;;  %v10466_v6 = vcombine.high %v22379_v45, %v22379_v45 }
 0x64d   : > { %11448 = vmatpush1.bf16.xpose.msra.mxu1 %v16361_v35  ;;  %14822 = vmatpush1.bf16.xpose.msra.mxu0 %v16733_v3  ;;  %v16656_v35 = vcombine.high %v13683_v52, %v13693_v7  ;;  %v8643_v3 = vunpack.c.h.s8.bf16 %v22298_v47  ;;  %v13723_v47 = vunpack.c.h.s8.bf16 %v22320_v17  ;;  %v22441_v52 = vld [vmem:[%s17843_s16 + $0x1e8] sm:$0xff]  ;;  %v22444_v7 = vrot.slane %v10421_v26, %v21141_v57 }
 0x64e   : > { %11449 = vmatprep.subr.bf16.mxu1 %v16382_v25  ;;  %14823 = vmatprep.subr.bf16.mxu0 %v16754_v2  ;;  %v8653_v25 = vunpack.c.h.s8.bf16 %v22301_v63  ;;  %v16283_v2 = vcombine.low %v8623_v55, %v8633_v34  ;;  %v13733_v63 = vunpack.c.h.s8.bf16 %v22323_v1  ;;  %v16716_v1 = vcombine.high %v13743_v24, %v13753_v8  ;;  %v22438_v34 = vld [vmem:[%s17843_s16 + $0x148] sm:$0xff] }
 0x650   : > { %v16304_v36 = vcombine.high %v8643_v3, %v8653_v25  ;;  %v16303_v44 = vcombine.low %v8643_v3, %v8653_v25  ;;  %v16696_v18 = vcombine.high %v13723_v47, %v13733_v63  ;;  %v16695_v17 = vcombine.low %v13723_v47, %v13733_v63  ;;  %v22471_v47 = vld [vmem:[%s17843_s16 + $0x328] sm:$0xff] }
 0x651   : > { %v10437_v25 = vcombine.high %v22444_v7, %v22444_v7 }
 0x653   : > { %v22474_v63 = vrot.slane %v10437_v25, %v21141_v57 }
 0x655   : > { %11450 = vmatpush1.bf16.xpose.msra.mxu1 %v16381_v33  ;;  %14824 = vmatpush1.bf16.xpose.msra.mxu0 %v16753_v20  ;;  %v16324_v33 = vcombine.high %v8663_v59, %v8673_v37  ;;  %v8683_v20 = vunpack.c.h.s8.bf16 %v22330_v54  ;;  %v13763_v54 = vunpack.c.h.s8.bf16 %v22352_v40 }
 0x656   : > { %11474 = vmatprep.subr.bf16.mxu1 %v16224_v60  ;;  %14848 = vmatprep.subr.bf16.mxu0 %v16596_v23  ;;  %v8693_v60 = vunpack.c.h.s8.bf16 %v22333_v46  ;;  %v16323_v23 = vcombine.low %v8663_v59, %v8673_v37  ;;  %v13773_v46 = vunpack.c.h.s8.bf16 %v22355_v9  ;;  %v22418_v9 = vld [vmem:[%s17843_s16 + $0x8] sm:$0xff] }
 0x657   : > { %v8564_v53 = vunpack.c.l.s8.bf16 %v22418_v9  ;;  %v22468_v37 = vld [vmem:[%s17843_s16 + $0x288] sm:$0xff] }
 0x658   : > { %v16344_v42 = vcombine.high %v8683_v20, %v8693_v60  ;;  %v16343_v51 = vcombine.low %v8683_v20, %v8693_v60  ;;  %v16735_v40 = vcombine.low %v13763_v54, %v13773_v46 }
 0x65c   : > { %11466 = vmatmul.mubr.bf16.vlgmr.msra.gmra.mrb[0].mxu1 %v22379_v45  ;;  %14840 = vmatmul.mubr.bf16.vlgmr.msra.gmra.mrb[0].mxu0 %v22383_v41  ;;  %v22480_v45 = vld [vmem:[%s17843_s16 + $0x3a0] sm:$0xff] }
 0x65d   : > { %11475 = vmatpush1.bf16.xpose.msra.mxu1 %v16223_v12  ;;  %14849 = vmatpush1.bf16.xpose.msra.mxu0 %v16595_v13  ;;  %v16736_v12 = vcombine.high %v13763_v54, %v13773_v46  ;;  %v16363_v13 = vcombine.low %v8703_v56, %v8713_v21  ;;  %v13674_v20 = vunpack.c.l.s8.bf16 %v22480_v45  ;;  %v22501_v56 = vld [vmem:[%s17843_s16 + $0x4e0] sm:$0xff] }
 0x65e   : > { %11476 = vmatprep.subr.bf16.mxu1 %v16244_v4  ;;  %14850 = vmatprep.subr.bf16.mxu0 %v16616_v48  ;;  %v16384_v4 = vcombine.high %v8723_v28, %v8723_v28  ;;  %v16756_v48 = vcombine.high %v13783_v38, %v13783_v38 }
 0x65f   : > { %11506 = vmatprep.mubr.bf16.mxu1 %v10468_v14  ;;  %14880 = vmatprep.mubr.bf16.mxu0 %v13842_v16  ;;  %v22421_v14 = vld [vmem:[%s17843_s16 + $0xa8] sm:$0xff]  ;;  %v22424_v16 = vld [vmem:[%s17843_s16 + $0x80] sm:$0xff] }
 0x660   : > { %v8574_v10 = vunpack.c.l.s8.bf16 %v22421_v14  ;;  %v13624_v15 = vunpack.c.l.s8.bf16 %v22424_v16 }
 0x662   : > { %v16598_v55 = vcombine.high %v13624_v15, %v13634_v5 }
 0x665   : > { %11477 = vmatpush1.bf16.xpose.msra.mxu1 %v16243_v27  ;;  %14851 = vmatpush1.bf16.xpose.msra.mxu0 %v16615_v19  ;;  %v13795_v27 = vcombine.high %v22223_v30, %v22223_v30  ;;  %v16383_v19 = vcombine.low %v8723_v28, %v8723_v28  ;;  %v8584_v30 = vunpack.c.l.s8.bf16 %v22438_v34 }
 0x666   : > { %11478 = vmatprep.subr.bf16.mxu1 %v16264_v11  ;;  %14852 = vmatprep.subr.bf16.mxu0 %v16636_v58  ;;  %v16755_v11 = vcombine.low %v13783_v38, %v13783_v38  ;;  %v16226_v58 = vcombine.high %v8564_v53, %v8574_v10  ;;  %v22508_v38 = vld [vmem:[%s17843_s16 + $0x508] sm:$0xff] }
 0x667   : > { %v22453_v49 = vrot.slane %v13795_v27, %v21141_v57 }
 0x669   : > { %v13811_v50 = vcombine.high %v22453_v49, %v22453_v49 }
 0x66d   : > { %11479 = vmatpush1.bf16.xpose.msra.mxu1 %v16263_v29  ;;  %14853 = vmatpush1.bf16.xpose.msra.mxu0 %v16635_v31  ;;  %v22447_v29 = vld [vmem:[%s17843_s16 + $0x1c0] sm:$0xff] }
 0x66e   : > { %11480 = vmatprep.subr.bf16.mxu1 %v16284_v22  ;;  %14854 = vmatprep.subr.bf16.mxu0 %v16656_v35  ;;  %v22450_v31 = vld [vmem:[%s17843_s16 + $0x260] sm:$0xff]  ;;  %v8594_v22 = vunpack.c.l.s8.bf16 %v22441_v52  ;;  %v13644_v35 = vunpack.c.l.s8.bf16 %v22447_v29 }
 0x66f   : > { %v13654_v3 = vunpack.c.l.s8.bf16 %v22450_v31 }
 0x670   : > { %v16245_v60 = vcombine.low %v8584_v30, %v8594_v22 }
 0x671   : > { %v16618_v59 = vcombine.high %v13644_v35, %v13654_v3  ;;  %v16617_v24 = vcombine.low %v13644_v35, %v13654_v3 }
 0x675   : > { %11481 = vmatpush1.bf16.xpose.msra.mxu1 %v16283_v2  ;;  %14855 = vmatpush1.bf16.xpose.msra.mxu0 %v16655_v0  ;;  %v16225_v2 = vcombine.low %v8564_v53, %v8574_v10  ;;  %v13840_v0 = vcombine.high %v22383_v41, %v22383_v41  ;;  %v8604_v41 = vunpack.c.l.s8.bf16 %v22468_v37 }
 0x676   : > { %11482 = vmatprep.subr.bf16.mxu1 %v16304_v36  ;;  %14856 = vmatprep.subr.bf16.mxu0 %v16676_v43  ;;  %v16597_v36 = vcombine.low %v13624_v15, %v13634_v5  ;;  %v16246_v43 = vcombine.high %v8584_v30, %v8594_v22  ;;  %v22533_v30 = vld [vmem:[%s17843_s16 + $0x760] sm:$0xff] }
 0x677   : > { %v13734_v25 = vunpack.c.l.s8.bf16 %v22533_v30 }
 0x67d   : > { %11483 = vmatpush1.bf16.xpose.msra.mxu1 %v16303_v44  ;;  %14857 = vmatpush1.bf16.xpose.msra.mxu0 %v16675_v61  ;;  %v22477_v44 = vld [vmem:[%s17843_s16 + $0x300] sm:$0xff]  ;;  %v22483_v61 = vrot.slane %v13811_v50, %v21141_v57 }
 0x67e   : > { %11484 = vmatprep.subr.bf16.mxu1 %v16324_v33  ;;  %14858 = vmatprep.subr.bf16.mxu0 %v16696_v18  ;;  %v8614_v33 = vunpack.c.l.s8.bf16 %v22471_v47  ;;  %v13664_v18 = vunpack.c.l.s8.bf16 %v22477_v44 }
 0x680   : > { %v16266_v8 = vcombine.high %v8604_v41, %v8614_v33 }
 0x685   : > { %11485 = vmatpush1.bf16.xpose.msra.mxu1 %v16323_v23  ;;  %14859 = vmatpush1.bf16.xpose.msra.mxu0 %v16695_v17  ;;  %v16638_v23 = vcombine.high %v13664_v18, %v13674_v20  ;;  %v22492_v17 = vld [vmem:[%s17843_s16 + $0x3c8] sm:$0xff] }
 0x686   : > { %11486 = vmatprep.subr.bf16.mxu1 %v16344_v42  ;;  %14860 = vmatprep.subr.bf16.mxu0 %v16716_v1  ;;  %v22495_v42 = vld [vmem:[%s17843_s16 + $0x468] sm:$0xff]  ;;  %v22498_v1 = vld [vmem:[%s17843_s16 + $0x440] sm:$0xff]  ;;  %v8624_v21 = vunpack.c.l.s8.bf16 %v22492_v17 }
 0x687   : > { %v8634_v54 = vunpack.c.l.s8.bf16 %v22495_v42  ;;  %v13684_v46 = vunpack.c.l.s8.bf16 %v22498_v1 }
 0x689   : > { %v16285_v5 = vcombine.low %v8624_v21, %v8634_v54 }
 0x68d   : > { %11487 = vmatpush1.bf16.xpose.msra.mxu1 %v16343_v51  ;;  %14861 = vmatpush1.bf16.xpose.msra.mxu0 %v16715_v62  ;;  %v13694_v51 = vunpack.c.l.s8.bf16 %v22501_v56  ;;  %v16265_v62 = vcombine.low %v8604_v41, %v8614_v33  ;;  %v22549_v41 = vld [vmem:[%s17843_s16 + $0x8a0] sm:$0xff] }
 0x68e   : > { %11488 = vmatprep.subr.bf16.mxu1 %v16364_v39  ;;  %14862 = vmatprep.subr.bf16.mxu0 %v16736_v12  ;;  %v16637_v39 = vcombine.low %v13664_v18, %v13674_v20  ;;  %v16286_v12 = vcombine.high %v8624_v21, %v8634_v54  ;;  %v22556_v54 = vld [vmem:[%s17843_s16 + $0x8c8] sm:$0xff] }
 0x68f   : > { %v16658_v28 = vcombine.high %v13684_v46, %v13694_v51  ;;  %v16657_v26 = vcombine.low %v13684_v46, %v13694_v51  ;;  %v22559_v46 = vld [vmem:[%s17843_s16 + $0x968] sm:$0xff]  ;;  %v22562_v51 = vld [vmem:[%s17843_s16 + $0x940] sm:$0xff] }
 0x695   : > { %11489 = vmatpush1.bf16.xpose.msra.mxu1 %v16363_v13  ;;  %14863 = vmatpush1.bf16.xpose.msra.mxu0 %v16735_v40  ;;  %v22511_v13 = vld [vmem:[%s17843_s16 + $0x5a8] sm:$0xff]  ;;  %v22514_v40 = vld [vmem:[%s17843_s16 + $0x580] sm:$0xff] }
 0x696   : > { %11490 = vmatprep.subr.bf16.mxu1 %v16384_v4  ;;  %14864 = vmatprep.subr.bf16.mxu0 %v16756_v48  ;;  %v22517_v4 = vld [vmem:[%s17843_s16 + $0x620] sm:$0xff]  ;;  %v8644_v48 = vunpack.c.l.s8.bf16 %v22508_v38  ;;  %v8654_v53 = vunpack.c.l.s8.bf16 %v22511_v13  ;;  %v13704_v10 = vunpack.c.l.s8.bf16 %v22514_v40 }
 0x697   : > { %v13714_v15 = vunpack.c.l.s8.bf16 %v22517_v4 }
 0x698   : > { %v16306_v27 = vcombine.high %v8644_v48, %v8654_v53 }
 0x699   : > { %v16677_v50 = vcombine.low %v13704_v10, %v13714_v15 }
 0x69d   : > { %11491 = vmatpush1.bf16.xpose.msra.mxu1 %v16383_v19  ;;  %14865 = vmatpush1.bf16.xpose.msra.mxu0 %v16755_v11  ;;  %v16678_v19 = vcombine.high %v13704_v10, %v13714_v15  ;;  %v22524_v11 = vld [vmem:[%s17843_s16 + $0x648] sm:$0xff] }
 0x69e   : > { %11515 = vmatprep.subr.bf16.mxu1 %v16226_v58  ;;  %14889 = vmatprep.subr.bf16.mxu0 %v16598_v55  ;;  %v22527_v58 = vld [vmem:[%s17843_s16 + $0x6e8] sm:$0xff]  ;;  %v22530_v55 = vld [vmem:[%s17843_s16 + $0x6c0] sm:$0xff]  ;;  %v8664_v22 = vunpack.c.l.s8.bf16 %v22524_v11 }
 0x69f   : > { %v8674_v35 = vunpack.c.l.s8.bf16 %v22527_v58  ;;  %v13724_v3 = vunpack.c.l.s8.bf16 %v22530_v55 }
 0x6a4   : > { %11507 = vmatmul.mubr.bf16.vlgmr.msra.gmra.mrb[0].mxu1 %v10466_v6  ;;  %14881 = vmatmul.mubr.bf16.vlgmr.msra.gmra.mrb[0].mxu0 %v13840_v0  ;;  %v16305_v6 = vcombine.low %v8644_v48, %v8654_v53  ;;  %v16698_v0 = vcombine.high %v13724_v3, %v13734_v25 }
 0x6a5   : > { %11516 = vmatpush1.bf16.xpose.msra.mxu1 %v16225_v2  ;;  %14890 = vmatpush1.bf16.xpose.msra.mxu0 %v16597_v36  ;;  %v16326_v2 = vcombine.high %v8664_v22, %v8674_v35  ;;  %v22540_v36 = vld [vmem:[%s17843_s16 + $0x788] sm:$0xff] }
 0x6a6   : > { %11517 = vmatprep.subr.bf16.mxu1 %v16246_v43  ;;  %14891 = vmatprep.subr.bf16.mxu0 %v16618_v59  ;;  %v22543_v43 = vld [vmem:[%s17843_s16 + $0x828] sm:$0xff]  ;;  %v22546_v59 = vld [vmem:[%s17843_s16 + $0x800] sm:$0xff]  ;;  %v8684_v33 = vunpack.c.l.s8.bf16 %v22540_v36 }
 0x6a7   : > { %11547 = vmatprep.mubr.bf16.mxu1 %v22474_v63  ;;  %14921 = vmatprep.mubr.bf16.mxu0 %v22483_v61  ;;  %v8694_v18 = vunpack.c.l.s8.bf16 %v22543_v43  ;;  %v13744_v20 = vunpack.c.l.s8.bf16 %v22546_v59 }
 0x6a9   : > { %v16345_v53 = vcombine.low %v8684_v33, %v8694_v18 }
 0x6ad   : > { %11518 = vmatpush1.bf16.xpose.msra.mxu1 %v16245_v60  ;;  %14892 = vmatpush1.bf16.xpose.msra.mxu0 %v16617_v24  ;;  %v13754_v60 = vunpack.c.l.s8.bf16 %v22549_v41  ;;  %v16325_v24 = vcombine.low %v8664_v22, %v8674_v35 }
 0x6ae   : > { %11519 = vmatprep.subr.bf16.mxu1 %v16266_v8  ;;  %14893 = vmatprep.subr.bf16.mxu0 %v16638_v23  ;;  %v16697_v8 = vcombine.low %v13724_v3, %v13734_v25  ;;  %v16346_v23 = vcombine.high %v8684_v33, %v8694_v18  ;;  %v13635_v33 = vunpack.c.h.s8.bf16 %v22427_v32 }
 0x6af   : > { %v16718_v21 = vcombine.high %v13744_v20, %v13754_v60  ;;  %v16717_v10 = vcombine.low %v13744_v20, %v13754_v60 }
 0x6b5   : > { %11520 = vmatpush1.bf16.xpose.msra.mxu1 %v16265_v62  ;;  %14894 = vmatpush1.bf16.xpose.msra.mxu0 %v16637_v39  ;;  %v22565_v62 = vld [vmem:[%s17843_s16 + $0x9e0] sm:$0xff]  ;;  %v8704_v39 = vunpack.c.l.s8.bf16 %v22556_v54 }
 0x6b6   : > { %11521 = vmatprep.subr.bf16.mxu1 %v16286_v12  ;;  %14895 = vmatprep.subr.bf16.mxu0 %v16658_v28  ;;  %v8714_v12 = vunpack.c.l.s8.bf16 %v22559_v46  ;;  %v13764_v28 = vunpack.c.l.s8.bf16 %v22562_v51  ;;  %v13774_v48 = vunpack.c.l.s8.bf16 %v22565_v62 }
 0x6b8   : > { %v16366_v15 = vcombine.high %v8704_v39, %v8714_v12  ;;  %v16365_v35 = vcombine.low %v8704_v39, %v8714_v12  ;;  %v16737_v3 = vcombine.low %v13764_v28, %v13774_v48 }
 0x6bd   : > { %11522 = vmatpush1.bf16.xpose.msra.mxu1 %v16285_v5  ;;  %14896 = vmatpush1.bf16.xpose.msra.mxu0 %v16657_v26  ;;  %v16738_v5 = vcombine.high %v13764_v28, %v13774_v48  ;;  %v22572_v26 = vld [vmem:[%s17843_s16 + $0xa08] sm:$0x55] }
 0x6be   : > { %11523 = vmatprep.subr.bf16.mxu1 %v16306_v27  ;;  %14897 = vmatprep.subr.bf16.mxu0 %v16678_v19  ;;  %v22575_v27 = vld [vmem:[%s17843_s16 + $0xa80] sm:$0x55]  ;;  %v8724_v19 = vunpack.c.l.s8.bf16 %v22572_v26 }
 0x6bf   : > { %v13784_v22 = vunpack.c.l.s8.bf16 %v22575_v27 }
 0x6c0   : > { %v16386_v25 = vcombine.high %v8724_v19, %v8724_v19  ;;  %v16385_v18 = vcombine.low %v8724_v19, %v8724_v19 }
 0x6c1   : > { %v16757_v20 = vcombine.low %v13784_v22, %v13784_v22 }
 0x6c5   : > { %11524 = vmatpush1.bf16.xpose.msra.mxu1 %v16305_v6  ;;  %14898 = vmatpush1.bf16.xpose.msra.mxu0 %v16677_v50  ;;  %v16758_v6 = vcombine.high %v13784_v22, %v13784_v22  ;;  %v8565_v50 = vunpack.c.h.s8.bf16 %v22418_v9  ;;  %v13645_v9 = vunpack.c.h.s8.bf16 %v22447_v29  ;;  %v8615_v29 = vunpack.c.h.s8.bf16 %v22471_v47 }
 0x6c6   : > { %11525 = vmatprep.subr.bf16.mxu1 %v16326_v2  ;;  %14899 = vmatprep.subr.bf16.mxu0 %v16698_v0  ;;  %v8575_v2 = vunpack.c.h.s8.bf16 %v22421_v14  ;;  %v13625_v0 = vunpack.c.h.s8.bf16 %v22424_v16  ;;  %v13655_v14 = vunpack.c.h.s8.bf16 %v22450_v31  ;;  %v22589_v16 = vrot.slane %v22444_v7, %v21141_v57 }
 0x6c7   : > { %v8605_v7 = vunpack.c.h.s8.bf16 %v22468_v37  ;;  %v13665_v31 = vunpack.c.h.s8.bf16 %v22477_v44  ;;  %v8635_v37 = vunpack.c.h.s8.bf16 %v22495_v42  ;;  %v13685_v47 = vunpack.c.h.s8.bf16 %v22498_v1 }
 0x6c8   : > { %v16228_v60 = vcombine.high %v8565_v50, %v8575_v2  ;;  %v16227_v32 = vcombine.low %v8565_v50, %v8575_v2  ;;  %v16599_v39 = vcombine.low %v13625_v0, %v13635_v33  ;;  %v16620_v28 = vcombine.high %v13645_v9, %v13655_v14 }
 0x6c9   : > { %v16619_v48 = vcombine.low %v13645_v9, %v13655_v14  ;;  %v13695_v44 = vunpack.c.h.s8.bf16 %v22501_v56  ;;  %v8645_v22 = vunpack.c.h.s8.bf16 %v22508_v38  ;;  %v13715_v42 = vunpack.c.h.s8.bf16 %v22517_v4 }
 0x6ca   : > { %v8675_v50 = vunpack.c.h.s8.bf16 %v22527_v58  ;;  %v13725_v38 = vunpack.c.h.s8.bf16 %v22530_v55  ;;  %v13755_v58 = vunpack.c.h.s8.bf16 %v22549_v41 }
 0x6cb   : > { %v16660_v19 = vcombine.high %v13685_v47, %v13695_v44  ;;  %v16659_v1 = vcombine.low %v13685_v47, %v13695_v44  ;;  %v22660_v47 = vld [vmem:[%s17843_s16 + $0x1c8] sm:$0xff] }
 0x6cc   : > { %v22663_v44 = vld [vmem:[%s17843_s16 + $0x268] sm:$0xff] }
 0x6cd   : > { %11526 = vmatpush1.bf16.xpose.msra.mxu1 %v16325_v24  ;;  %14900 = vmatpush1.bf16.xpose.msra.mxu0 %v16697_v8  ;;  %v16600_v24 = vcombine.high %v13625_v0, %v13635_v33  ;;  %v8585_v8 = vunpack.c.h.s8.bf16 %v22438_v34  ;;  %v10469_v34 = vcombine.high %v22474_v63, %v22474_v63  ;;  %v8685_v33 = vunpack.c.h.s8.bf16 %v22540_v36 }
 0x6ce   : > { %11527 = vmatprep.subr.bf16.mxu1 %v16346_v23  ;;  %14901 = vmatprep.subr.bf16.mxu0 %v16718_v21  ;;  %v8595_v23 = vunpack.c.h.s8.bf16 %v22441_v52  ;;  %v22593_v21 = vrot.slane %v22453_v49, %v21141_v57  ;;  %v13843_v52 = vcombine.high %v22483_v61, %v22483_v61  ;;  %v13675_v49 = vunpack.c.h.s8.bf16 %v22480_v45 }
 0x6cf   : > { %v13765_v36 = vunpack.c.h.s8.bf16 %v22562_v51 }
 0x6d0   : > { %v16248_v12 = vcombine.high %v8585_v8, %v8595_v23  ;;  %v16247_v63 = vcombine.low %v8585_v8, %v8595_v23  ;;  %v16640_v61 = vcombine.high %v13665_v31, %v13675_v49  ;;  %v16639_v45 = vcombine.low %v13665_v31, %v13675_v49  ;;  %v22647_v49 = vld [vmem:[%s21119_s11 + $0x44] sm:$0xff] }
 0x6d1   : > { %v8715_v8 = vunpack.c.h.s8.bf16 %v22559_v46  ;;  %v13785_v46 = vunpack.c.h.s8.bf16 %v22575_v27 }
 0x6d5   : > { %11528 = vmatpush1.bf16.xpose.msra.mxu1 %v16345_v53  ;;  %14902 = vmatpush1.bf16.xpose.msra.mxu0 %v16717_v10  ;;  %v16268_v53 = vcombine.high %v8605_v7, %v8615_v29  ;;  %v8625_v10 = vunpack.c.h.s8.bf16 %v22492_v17  ;;  %v13705_v17 = vunpack.c.h.s8.bf16 %v22514_v40 }
 0x6d6   : > { %11529 = vmatprep.subr.bf16.mxu1 %v16366_v15  ;;  %14903 = vmatprep.subr.bf16.mxu0 %v16738_v5  ;;  %v16267_v15 = vcombine.low %v8605_v7, %v8615_v29  ;;  %v22644_v29 = vld [vmem:[%s21119_s11 + $0x8] sm:$0xff] }
 0x6d7   : > { %v16288_v5 = vcombine.high %v8625_v10, %v8635_v37  ;;  %v16680_v56 = vcombine.high %v13705_v17, %v13715_v42  ;;  %v16679_v40 = vcombine.low %v13705_v17, %v13715_v42  ;;  %v10467_v17 = vcombine.high %v22589_v16, %v22589_v16 }
 0x6dd   : > { %11530 = vmatpush1.bf16.xpose.msra.mxu1 %v16365_v35  ;;  %14904 = vmatpush1.bf16.xpose.msra.mxu0 %v16737_v3  ;;  %v8655_v35 = vunpack.c.h.s8.bf16 %v22511_v13  ;;  %v16287_v3 = vcombine.low %v8625_v10, %v8635_v37  ;;  %v13735_v13 = vunpack.c.h.s8.bf16 %v22533_v30  ;;  %v22653_v10 = vld [vmem:[%s17843_s16 + $0x1f0] sm:$0xff]  ;;  %v22657_v37 = vrot.slane %v22644_v29, %v21141_v57 }
 0x6de   : > { %11531 = vmatprep.subr.bf16.mxu1 %v16386_v25  ;;  %14905 = vmatprep.subr.bf16.mxu0 %v16758_v6  ;;  %v8665_v6 = vunpack.c.h.s8.bf16 %v22524_v11  ;;  %v13745_v11 = vunpack.c.h.s8.bf16 %v22546_v59 }
 0x6df   : > { %v16308_v25 = vcombine.high %v8645_v22, %v8655_v35  ;;  %v16307_v2 = vcombine.low %v8645_v22, %v8655_v35  ;;  %v16700_v4 = vcombine.high %v13725_v38, %v13735_v13  ;;  %v16699_v55 = vcombine.low %v13725_v38, %v13735_v13  ;;  %v22685_v38 = vld [vmem:[%s17843_s16 + $0x330] sm:$0xff] }
 0x6e0   : > { %v16328_v0 = vcombine.high %v8665_v6, %v8675_v50  ;;  %v16720_v30 = vcombine.high %v13745_v11, %v13755_v58  ;;  %v16719_v41 = vcombine.low %v13745_v11, %v13755_v58  ;;  %v13656_v22 = vunpack.c.l.s8.bf16 %v22663_v44 }
 0x6e1   : > { %v10485_v35 = vcombine.high %v22657_v37, %v22657_v37 }
 0x6e3   : > { %v22688_v13 = vrot.slane %v10485_v35, %v21141_v57 }
 0x6e5   : > { %11532 = vmatpush1.bf16.xpose.msra.mxu1 %v16385_v18  ;;  %14906 = vmatpush1.bf16.xpose.msra.mxu0 %v16757_v20  ;;  %v8695_v18 = vunpack.c.h.s8.bf16 %v22543_v43  ;;  %v16327_v20 = vcombine.low %v8665_v6, %v8675_v50  ;;  %v13775_v43 = vunpack.c.h.s8.bf16 %v22565_v62  ;;  %v16760_v62 = vcombine.high %v13785_v46, %v13785_v46  ;;  %v22682_v50 = vld [vmem:[%s17843_s16 + $0x290] sm:$0xff] }
 0x6e6   : > { %11556 = vmatprep.subr.bf16.mxu1 %v16228_v60  ;;  %14930 = vmatprep.subr.bf16.mxu0 %v16600_v24  ;;  %v8705_v24 = vunpack.c.h.s8.bf16 %v22556_v54  ;;  %v8725_v54 = vunpack.c.h.s8.bf16 %v22572_v26 }
 0x6e7   : > { %v16348_v60 = vcombine.high %v8685_v33, %v8695_v18  ;;  %v16347_v59 = vcombine.low %v8685_v33, %v8695_v18  ;;  %v16740_v9 = vcombine.high %v13765_v36, %v13775_v43  ;;  %v16739_v51 = vcombine.low %v13765_v36, %v13775_v43 }
 0x6e8   : > { %v16368_v23 = vcombine.high %v8705_v24, %v8715_v8  ;;  %v16367_v14 = vcombine.low %v8705_v24, %v8715_v8  ;;  %v16387_v31 = vcombine.low %v8725_v54, %v8725_v54  ;;  %v22715_v24 = vld [vmem:[%s17843_s16 + $0x4e8] sm:$0xff] }
 0x6ec   : > { %11548 = vmatmul.mubr.bf16.vlgmr.msra.gmra.mrb[0].mxu1 %v22589_v16  ;;  %14922 = vmatmul.mubr.bf16.vlgmr.msra.gmra.mrb[0].mxu0 %v22593_v21  ;;  %v22694_v16 = vld [vmem:[%s17843_s16 + $0x3a8] sm:$0xff] }
 0x6ed   : > { %11557 = vmatpush1.bf16.xpose.msra.mxu1 %v16227_v32  ;;  %14931 = vmatpush1.bf16.xpose.msra.mxu0 %v16599_v39  ;;  %v16388_v32 = vcombine.high %v8725_v54, %v8725_v54  ;;  %v22628_v39 = vld [vmem:[%s17843_s16 + $0x10] sm:$0xff]  ;;  %v13676_v33 = vunpack.c.l.s8.bf16 %v22694_v16 }
 0x6ee   : > { %11558 = vmatprep.subr.bf16.mxu1 %v16248_v12  ;;  %14932 = vmatprep.subr.bf16.mxu0 %v16620_v28  ;;  %v22631_v12 = vld [vmem:[%s17843_s16 + $0xb0] sm:$0xff]  ;;  %v22634_v28 = vld [vmem:[%s17843_s16 + $0x88] sm:$0xff]  ;;  %v8566_v26 = vunpack.c.l.s8.bf16 %v22628_v39 }
 0x6ef   : > { %11588 = vmatprep.mubr.bf16.mxu1 %v10469_v34  ;;  %14962 = vmatprep.mubr.bf16.mxu0 %v13843_v52  ;;  %v22637_v34 = vld [vmem:[%s17843_s16 + $0x128] sm:$0xff]  ;;  %v8576_v27 = vunpack.c.l.s8.bf16 %v22631_v12  ;;  %v13626_v52 = vunpack.c.l.s8.bf16 %v22634_v28 }
 0x6f0   : > { %v13636_v7 = vunpack.c.l.s8.bf16 %v22637_v34 }
 0x6f5   : > { %11559 = vmatpush1.bf16.xpose.msra.mxu1 %v16247_v63  ;;  %14933 = vmatpush1.bf16.xpose.msra.mxu0 %v16619_v48  ;;  %v16759_v63 = vcombine.low %v13785_v46, %v13785_v46  ;;  %v16230_v48 = vcombine.high %v8566_v26, %v8576_v27  ;;  %v22722_v46 = vld [vmem:[%s17843_s16 + $0x510] sm:$0xff] }
 0x6f6   : > { %11560 = vmatprep.subr.bf16.mxu1 %v16268_v53  ;;  %14934 = vmatprep.subr.bf16.mxu0 %v16640_v61  ;;  %v16602_v53 = vcombine.high %v13626_v52, %v13636_v7  ;;  %v22650_v61 = vld [vmem:[%s17843_s16 + $0x150] sm:$0xff] }
 0x6fd   : > { %11561 = vmatpush1.bf16.xpose.msra.mxu1 %v16267_v15  ;;  %14935 = vmatpush1.bf16.xpose.msra.mxu0 %v16639_v45  ;;  %v22667_v15 = vrot.slane %v22647_v49, %v21141_v57  ;;  %v8586_v45 = vunpack.c.l.s8.bf16 %v22650_v61 }
 0x6fe   : > { %11562 = vmatprep.subr.bf16.mxu1 %v16288_v5  ;;  %14936 = vmatprep.subr.bf16.mxu0 %v16660_v19  ;;  %v8596_v5 = vunpack.c.l.s8.bf16 %v22653_v10  ;;  %v13646_v19 = vunpack.c.l.s8.bf16 %v22660_v47 }
 0x6ff   : > { %v13859_v42 = vcombine.high %v22667_v15, %v22667_v15 }
 0x700   : > { %v16622_v6 = vcombine.high %v13646_v19, %v13656_v22  ;;  %v16249_v18 = vcombine.low %v8586_v45, %v8596_v5  ;;  %v16621_v11 = vcombine.low %v13646_v19, %v13656_v22  ;;  %v22747_v19 = vld [vmem:[%s17843_s16 + $0x768] sm:$0xff] }
 0x705   : > { %11563 = vmatpush1.bf16.xpose.msra.mxu1 %v16287_v3  ;;  %14937 = vmatpush1.bf16.xpose.msra.mxu0 %v16659_v1  ;;  %v16229_v3 = vcombine.low %v8566_v26, %v8576_v27  ;;  %v13841_v1 = vcombine.high %v22593_v21, %v22593_v21  ;;  %v8606_v21 = vunpack.c.l.s8.bf16 %v22682_v50 }
 0x706   : > { %11564 = vmatprep.subr.bf16.mxu1 %v16308_v25  ;;  %14938 = vmatprep.subr.bf16.mxu0 %v16680_v56  ;;  %v16601_v25 = vcombine.low %v13626_v52, %v13636_v7  ;;  %v16250_v56 = vcombine.high %v8586_v45, %v8596_v5  ;;  %v22741_v45 = vld [vmem:[%s17843_s16 + $0x6f0] sm:$0xff]  ;;  %v22744_v5 = vld [vmem:[%s17843_s16 + $0x6c8] sm:$0xff] }
 0x707   : > { %v8676_v35 = vunpack.c.l.s8.bf16 %v22741_v45 }
 0x70d   : > { %11565 = vmatpush1.bf16.xpose.msra.mxu1 %v16307_v2  ;;  %14939 = vmatpush1.bf16.xpose.msra.mxu0 %v16679_v40  ;;  %v22691_v2 = vld [vmem:[%s17843_s16 + $0x308] sm:$0xff]  ;;  %v22697_v40 = vrot.slane %v13859_v42, %v21141_v57  ;;  %v13736_v42 = vunpack.c.l.s8.bf16 %v22747_v19 }
 0x70e   : > { %11566 = vmatprep.subr.bf16.mxu1 %v16328_v0  ;;  %14940 = vmatprep.subr.bf16.mxu0 %v16700_v4  ;;  %v8616_v0 = vunpack.c.l.s8.bf16 %v22685_v38  ;;  %v13666_v4 = vunpack.c.l.s8.bf16 %v22691_v2 }
 0x710   : > { %v16270_v58 = vcombine.high %v8606_v21, %v8616_v0 }
 0x715   : > { %11567 = vmatpush1.bf16.xpose.msra.mxu1 %v16327_v20  ;;  %14941 = vmatpush1.bf16.xpose.msra.mxu0 %v16699_v55  ;;  %v16642_v20 = vcombine.high %v13666_v4, %v13676_v33  ;;  %v22706_v55 = vld [vmem:[%s17843_s16 + $0x3d0] sm:$0xff] }
 0x716   : > { %11568 = vmatprep.subr.bf16.mxu1 %v16348_v60  ;;  %14942 = vmatprep.subr.bf16.mxu0 %v16720_v30  ;;  %v22709_v60 = vld [vmem:[%s17843_s16 + $0x470] sm:$0xff]  ;;  %v22712_v30 = vld [vmem:[%s17843_s16 + $0x448] sm:$0xff]  ;;  %v8626_v8 = vunpack.c.l.s8.bf16 %v22706_v55 }
 0x717   : > { %v8636_v36 = vunpack.c.l.s8.bf16 %v22709_v60  ;;  %v13686_v43 = vunpack.c.l.s8.bf16 %v22712_v30 }
 0x719   : > { %v16289_v7 = vcombine.low %v8626_v8, %v8636_v36 }
 0x71d   : > { %11569 = vmatpush1.bf16.xpose.msra.mxu1 %v16347_v59  ;;  %14943 = vmatpush1.bf16.xpose.msra.mxu0 %v16719_v41  ;;  %v13696_v59 = vunpack.c.l.s8.bf16 %v22715_v24  ;;  %v16269_v41 = vcombine.low %v8606_v21, %v8616_v0  ;;  %v22757_v21 = vld [vmem:[%s17843_s16 + $0x830] sm:$0xff]  ;;  %v22760_v0 = vld [vmem:[%s17843_s16 + $0x808] sm:$0xff] }
 0x71e   : > { %11570 = vmatprep.subr.bf16.mxu1 %v16368_v23  ;;  %14944 = vmatprep.subr.bf16.mxu0 %v16740_v9  ;;  %v16641_v23 = vcombine.low %v13666_v4, %v13676_v33  ;;  %v16290_v9 = vcombine.high %v8626_v8, %v8636_v36  ;;  %v22763_v4 = vld [vmem:[%s17843_s16 + $0x8a8] sm:$0xff] }
 0x71f   : > { %v16662_v54 = vcombine.high %v13686_v43, %v13696_v59 }
 0x725   : > { %11571 = vmatpush1.bf16.xpose.msra.mxu1 %v16367_v14  ;;  %14945 = vmatpush1.bf16.xpose.msra.mxu0 %v16739_v51  ;;  %v22725_v14 = vld [vmem:[%s17843_s16 + $0x5b0] sm:$0xff]  ;;  %v22728_v51 = vld [vmem:[%s17843_s16 + $0x588] sm:$0xff] }
 0x726   : > { %11572 = vmatprep.subr.bf16.mxu1 %v16388_v32  ;;  %14946 = vmatprep.subr.bf16.mxu0 %v16760_v62  ;;  %v22731_v32 = vld [vmem:[%s17843_s16 + $0x628] sm:$0xff]  ;;  %v8646_v62 = vunpack.c.l.s8.bf16 %v22722_v46  ;;  %v8656_v26 = vunpack.c.l.s8.bf16 %v22725_v14  ;;  %v13706_v27 = vunpack.c.l.s8.bf16 %v22728_v51 }
 0x727   : > { %v13716_v52 = vunpack.c.l.s8.bf16 %v22731_v32 }
 0x72d   : > { %11573 = vmatpush1.bf16.xpose.msra.mxu1 %v16387_v31  ;;  %14947 = vmatpush1.bf16.xpose.msra.mxu0 %v16759_v63  ;;  %v16661_v31 = vcombine.low %v13686_v43, %v13696_v59  ;;  %v16310_v63 = vcombine.high %v8646_v62, %v8656_v26  ;;  %v22770_v59 = vld [vmem:[%s17843_s16 + $0x8d0] sm:$0xff] }
 0x72e   : > { %11597 = vmatprep.subr.bf16.mxu1 %v16230_v48  ;;  %14971 = vmatprep.subr.bf16.mxu0 %v16602_v53  ;;  %v16682_v48 = vcombine.high %v13706_v27, %v13716_v52  ;;  %v22738_v53 = vld [vmem:[%s17843_s16 + $0x650] sm:$0xff] }
 0x72f   : > { %v8666_v22 = vunpack.c.l.s8.bf16 %v22738_v53 }
 0x734   : > { %11589 = vmatmul.mubr.bf16.vlgmr.msra.gmra.mrb[0].mxu1 %v10467_v17  ;;  %14963 = vmatmul.mubr.bf16.vlgmr.msra.gmra.mrb[0].mxu0 %v13841_v1  ;;  %v13726_v17 = vunpack.c.l.s8.bf16 %v22744_v5  ;;  %v16681_v1 = vcombine.low %v13706_v27, %v13716_v52 }
 0x735   : > { %11598 = vmatpush1.bf16.xpose.msra.mxu1 %v16229_v3  ;;  %14972 = vmatpush1.bf16.xpose.msra.mxu0 %v16601_v25  ;;  %v16309_v3 = vcombine.low %v8646_v62, %v8656_v26  ;;  %v16330_v25 = vcombine.high %v8666_v22, %v8676_v35 }
 0x736   : > { %11599 = vmatprep.subr.bf16.mxu1 %v16250_v56  ;;  %14973 = vmatprep.subr.bf16.mxu0 %v16622_v6  ;;  %v16702_v56 = vcombine.high %v13726_v17, %v13736_v42  ;;  %v22754_v6 = vld [vmem:[%s17843_s16 + $0x790] sm:$0xff]  ;;  %v16701_v8 = vcombine.low %v13726_v17, %v13736_v42 }
 0x737   : > { %11629 = vmatprep.mubr.bf16.mxu1 %v22688_v13  ;;  %15003 = vmatprep.mubr.bf16.mxu0 %v22697_v40  ;;  %v8686_v33 = vunpack.c.l.s8.bf16 %v22754_v6 }
 0x73d   : > { %11600 = vmatpush1.bf16.xpose.msra.mxu1 %v16249_v18  ;;  %14974 = vmatpush1.bf16.xpose.msra.mxu0 %v16621_v11  ;;  %v8696_v18 = vunpack.c.l.s8.bf16 %v22757_v21  ;;  %v13746_v11 = vunpack.c.l.s8.bf16 %v22760_v0 }
 0x73e   : > { %11601 = vmatprep.subr.bf16.mxu1 %v16270_v58  ;;  %14975 = vmatprep.subr.bf16.mxu0 %v16642_v20  ;;  %v13756_v58 = vunpack.c.l.s8.bf16 %v22763_v4  ;;  %v16329_v20 = vcombine.low %v8666_v22, %v8676_v35  ;;  %v22789_v22 = vld [vmem:[%s17843_s16 + $0xa88] sm:$0x55] }
 0x73f   : > { %v16350_v36 = vcombine.high %v8686_v33, %v8696_v18  ;;  %v16349_v52 = vcombine.low %v8686_v33, %v8696_v18  ;;  %v13786_v17 = vunpack.c.l.s8.bf16 %v22789_v22  ;;  %v8577_v33 = vunpack.c.h.s8.bf16 %v22631_v12 }
 0x740   : > { %v16722_v43 = vcombine.high %v13746_v11, %v13756_v58  ;;  %v13627_v18 = vunpack.c.h.s8.bf16 %v22634_v28  ;;  %v13657_v12 = vunpack.c.h.s8.bf16 %v22663_v44  ;;  %v22803_v28 = vrot.slane %v22657_v37, %v21141_v57 }
 0x741   : > { %v8607_v37 = vunpack.c.h.s8.bf16 %v22682_v50  ;;  %v13667_v44 = vunpack.c.h.s8.bf16 %v22691_v2  ;;  %v8637_v50 = vunpack.c.h.s8.bf16 %v22709_v60  ;;  %v13697_v2 = vunpack.c.h.s8.bf16 %v22715_v24 }
 0x742   : > { %v13717_v60 = vunpack.c.h.s8.bf16 %v22731_v32 }
 0x745   : > { %11602 = vmatpush1.bf16.xpose.msra.mxu1 %v16269_v41  ;;  %14976 = vmatpush1.bf16.xpose.msra.mxu0 %v16641_v23  ;;  %v22773_v41 = vld [vmem:[%s17843_s16 + $0x970] sm:$0xff]  ;;  %v22776_v23 = vld [vmem:[%s17843_s16 + $0x948] sm:$0xff] }
 0x746   : > { %11603 = vmatprep.subr.bf16.mxu1 %v16290_v9  ;;  %14977 = vmatprep.subr.bf16.mxu0 %v16662_v54  ;;  %v22779_v9 = vld [vmem:[%s17843_s16 + $0x9e8] sm:$0xff]  ;;  %v8706_v54 = vunpack.c.l.s8.bf16 %v22770_v59  ;;  %v8716_v62 = vunpack.c.l.s8.bf16 %v22773_v41  ;;  %v13766_v26 = vunpack.c.l.s8.bf16 %v22776_v23 }
 0x747   : > { %v13776_v27 = vunpack.c.l.s8.bf16 %v22779_v9 }
 0x748   : > { %v16369_v42 = vcombine.low %v8706_v54, %v8716_v62 }
 0x74d   : > { %11604 = vmatpush1.bf16.xpose.msra.mxu1 %v16289_v7  ;;  %14978 = vmatpush1.bf16.xpose.msra.mxu0 %v16661_v31  ;;  %v16721_v7 = vcombine.low %v13746_v11, %v13756_v58  ;;  %v16370_v31 = vcombine.high %v8706_v54, %v8716_v62  ;;  %v13637_v11 = vunpack.c.h.s8.bf16 %v22637_v34  ;;  %v8597_v54 = vunpack.c.h.s8.bf16 %v22653_v10 }
 0x74e   : > { %11605 = vmatprep.subr.bf16.mxu1 %v16310_v63  ;;  %14979 = vmatprep.subr.bf16.mxu0 %v16682_v48  ;;  %v16742_v63 = vcombine.high %v13766_v26, %v13776_v27  ;;  %v22786_v48 = vld [vmem:[%s17843_s16 + $0xa10] sm:$0x55]  ;;  %v22807_v62 = vrot.slane %v22667_v15, %v21141_v57  ;;  %v13891_v10 = vcombine.high %v22697_v40, %v22697_v40  ;;  %v13677_v15 = vunpack.c.h.s8.bf16 %v22694_v16 }
 0x74f   : > { %v8726_v35 = vunpack.c.l.s8.bf16 %v22786_v48 }
 0x750   : > { %v16644_v40 = vcombine.high %v13667_v44, %v13677_v15  ;;  %v16643_v16 = vcombine.low %v13667_v44, %v13677_v15  ;;  %v10470_v15 = vcombine.high %v22644_v29, %v22644_v29 }
 0x751   : > { %v16389_v58 = vcombine.low %v8726_v35, %v8726_v35 }
 0x755   : > { %11606 = vmatpush1.bf16.xpose.msra.mxu1 %v16309_v3  ;;  %14980 = vmatpush1.bf16.xpose.msra.mxu0 %v16681_v1  ;;  %v16741_v3 = vcombine.low %v13766_v26, %v13776_v27  ;;  %v16390_v1 = vcombine.high %v8726_v35, %v8726_v35  ;;  %v16603_v26 = vcombine.low %v13627_v18, %v13637_v11 }
 0x756   : > { %11607 = vmatprep.subr.bf16.mxu1 %v16330_v25  ;;  %14981 = vmatprep.subr.bf16.mxu0 %v16702_v56  ;;  %v16762_v25 = vcombine.high %v13786_v17, %v13786_v17  ;;  %v8567_v56 = vunpack.c.h.s8.bf16 %v22628_v39  ;;  %v13647_v39 = vunpack.c.h.s8.bf16 %v22660_v47  ;;  %v8617_v47 = vunpack.c.h.s8.bf16 %v22685_v38 }
 0x757   : > { %v13687_v38 = vunpack.c.h.s8.bf16 %v22712_v30 }
 0x758   : > { %v16231_v34 = vcombine.low %v8567_v56, %v8577_v33  ;;  %v16271_v35 = vcombine.low %v8607_v37, %v8617_v47 }
 0x759   : > { %v16663_v30 = vcombine.low %v13687_v38, %v13697_v2 }
 0x75d   : > { %11608 = vmatpush1.bf16.xpose.msra.mxu1 %v16329_v20  ;;  %14982 = vmatpush1.bf16.xpose.msra.mxu0 %v16701_v8  ;;  %v16761_v20 = vcombine.low %v13786_v17, %v13786_v17  ;;  %v16232_v8 = vcombine.high %v8567_v56, %v8577_v33  ;;  %v8667_v33 = vunpack.c.h.s8.bf16 %v22738_v53  ;;  %v13747_v53 = vunpack.c.h.s8.bf16 %v22760_v0 }
 0x75e   : > { %11609 = vmatprep.subr.bf16.mxu1 %v16350_v36  ;;  %14983 = vmatprep.subr.bf16.mxu0 %v16722_v43  ;;  %v16604_v36 = vcombine.high %v13627_v18, %v13637_v11  ;;  %v8587_v43 = vunpack.c.h.s8.bf16 %v22650_v61  ;;  %v10517_v61 = vcombine.high %v22688_v13, %v22688_v13  ;;  %v8677_v18 = vunpack.c.h.s8.bf16 %v22741_v45 }
 0x75f   : > { %v13757_v45 = vunpack.c.h.s8.bf16 %v22763_v4 }
 0x760   : > { %v16252_v27 = vcombine.high %v8587_v43, %v8597_v54  ;;  %v16251_v13 = vcombine.low %v8587_v43, %v8597_v54  ;;  %v8707_v54 = vunpack.c.h.s8.bf16 %v22770_v59  ;;  %v8727_v59 = vunpack.c.h.s8.bf16 %v22786_v48 }
 0x761   : > { %v16723_v4 = vcombine.low %v13747_v53, %v13757_v45 }
 0x765   : > { %11610 = vmatpush1.bf16.xpose.msra.mxu1 %v16349_v52  ;;  %14984 = vmatpush1.bf16.xpose.msra.mxu0 %v16721_v7  ;;  %v16624_v52 = vcombine.high %v13647_v39, %v13657_v12  ;;  %v16623_v7 = vcombine.low %v13647_v39, %v13657_v12  ;;  %v8717_v39 = vunpack.c.h.s8.bf16 %v22773_v41  ;;  %v13787_v41 = vunpack.c.h.s8.bf16 %v22789_v22 }
 0x766   : > { %11611 = vmatprep.subr.bf16.mxu1 %v16370_v31  ;;  %14985 = vmatprep.subr.bf16.mxu0 %v16742_v63  ;;  %v16272_v31 = vcombine.high %v8607_v37, %v8617_v47  ;;  %v8627_v63 = vunpack.c.h.s8.bf16 %v22706_v55  ;;  %v13707_v55 = vunpack.c.h.s8.bf16 %v22728_v51  ;;  %v22851_v37 = vld [vmem:[%s17843_s16 + $0x130] sm:$0xff] }
 0x767   : > { %v16372_v12 = vcombine.high %v8707_v54, %v8717_v39  ;;  %v13638_v44 = vunpack.c.l.s8.bf16 %v22851_v37 }
 0x768   : > { %v16292_v17 = vcombine.high %v8627_v63, %v8637_v50  ;;  %v16684_v24 = vcombine.high %v13707_v55, %v13717_v60  ;;  %v16683_v51 = vcombine.low %v13707_v55, %v13717_v60  ;;  %v10515_v55 = vcombine.high %v22803_v28, %v22803_v28 }
 0x76d   : > { %11612 = vmatpush1.bf16.xpose.msra.mxu1 %v16369_v42  ;;  %14986 = vmatpush1.bf16.xpose.msra.mxu0 %v16741_v3  ;;  %v16664_v42 = vcombine.high %v13687_v38, %v13697_v2  ;;  %v8647_v3 = vunpack.c.h.s8.bf16 %v22722_v46  ;;  %v13727_v46 = vunpack.c.h.s8.bf16 %v22744_v5  ;;  %v22865_v38 = vld [vmem:[%s17843_s16 + $0x1f8] sm:$0xff]  ;;  %v22868_v2 = vrot.slane %v10470_v15, %v21141_v57 }
 0x76e   : > { %11613 = vmatprep.subr.bf16.mxu1 %v16390_v1  ;;  %14987 = vmatprep.subr.bf16.mxu0 %v16762_v25  ;;  %v8657_v1 = vunpack.c.h.s8.bf16 %v22725_v14  ;;  %v16291_v25 = vcombine.low %v8627_v63, %v8637_v50  ;;  %v13737_v14 = vunpack.c.h.s8.bf16 %v22747_v19  ;;  %v16724_v19 = vcombine.high %v13747_v53, %v13757_v45  ;;  %v22862_v50 = vld [vmem:[%s17843_s16 + $0x158] sm:$0xff] }
 0x770   : > { %v16312_v56 = vcombine.high %v8647_v3, %v8657_v1  ;;  %v16311_v11 = vcombine.low %v8647_v3, %v8657_v1  ;;  %v16704_v32 = vcombine.high %v13727_v46, %v13737_v14  ;;  %v16703_v5 = vcombine.low %v13727_v46, %v13737_v14  ;;  %v22895_v46 = vld [vmem:[%s17843_s16 + $0x338] sm:$0xff] }
 0x771   : > { %v10486_v1 = vcombine.high %v22868_v2, %v22868_v2 }
 0x773   : > { %v22898_v14 = vrot.slane %v10486_v1, %v21141_v57 }
 0x775   : > { %11614 = vmatpush1.bf16.xpose.msra.mxu1 %v16389_v58  ;;  %14988 = vmatpush1.bf16.xpose.msra.mxu0 %v16761_v20  ;;  %v16332_v58 = vcombine.high %v8667_v33, %v8677_v18  ;;  %v8687_v20 = vunpack.c.h.s8.bf16 %v22754_v6  ;;  %v13767_v6 = vunpack.c.h.s8.bf16 %v22776_v23 }
 0x776   : > { %11638 = vmatprep.subr.bf16.mxu1 %v16232_v8  ;;  %15012 = vmatprep.subr.bf16.mxu0 %v16604_v36  ;;  %v8697_v8 = vunpack.c.h.s8.bf16 %v22757_v21  ;;  %v16331_v36 = vcombine.low %v8667_v33, %v8677_v18  ;;  %v13777_v21 = vunpack.c.h.s8.bf16 %v22779_v9  ;;  %v22842_v9 = vld [vmem:[%s17843_s16 + $0x18] sm:$0xff] }
 0x777   : > { %v8568_v48 = vunpack.c.l.s8.bf16 %v22842_v9  ;;  %v22892_v18 = vld [vmem:[%s17843_s16 + $0x298] sm:$0xff] }
 0x778   : > { %v16352_v43 = vcombine.high %v8687_v20, %v8697_v8  ;;  %v16351_v0 = vcombine.low %v8687_v20, %v8697_v8  ;;  %v16743_v23 = vcombine.low %v13767_v6, %v13777_v21 }
 0x77c   : > { %11630 = vmatmul.mubr.bf16.vlgmr.msra.gmra.mrb[0].mxu1 %v22803_v28  ;;  %15004 = vmatmul.mubr.bf16.vlgmr.msra.gmra.mrb[0].mxu0 %v22807_v62  ;;  %v22904_v28 = vld [vmem:[%s17843_s16 + $0x3b0] sm:$0xff] }
 0x77d   : > { %11639 = vmatpush1.bf16.xpose.msra.mxu1 %v16231_v34  ;;  %15013 = vmatpush1.bf16.xpose.msra.mxu0 %v16603_v26  ;;  %v16744_v34 = vcombine.high %v13767_v6, %v13777_v21  ;;  %v16371_v26 = vcombine.low %v8707_v54, %v8717_v39  ;;  %v13678_v20 = vunpack.c.l.s8.bf16 %v22904_v28  ;;  %v22925_v54 = vld [vmem:[%s17843_s16 + $0x4f0] sm:$0xff] }
 0x77e   : > { %11640 = vmatprep.subr.bf16.mxu1 %v16252_v27  ;;  %15014 = vmatprep.subr.bf16.mxu0 %v16624_v52  ;;  %v16392_v27 = vcombine.high %v8727_v59, %v8727_v59  ;;  %v16764_v52 = vcombine.high %v13787_v41, %v13787_v41 }
 0x77f   : > { %11670 = vmatprep.mubr.bf16.mxu1 %v10517_v61  ;;  %15044 = vmatprep.mubr.bf16.mxu0 %v13891_v10  ;;  %v22845_v61 = vld [vmem:[%s17843_s16 + $0xb8] sm:$0xff]  ;;  %v22848_v10 = vld [vmem:[%s17843_s16 + $0x90] sm:$0xff] }
 0x780   : > { %v8578_v22 = vunpack.c.l.s8.bf16 %v22845_v61  ;;  %v13628_v47 = vunpack.c.l.s8.bf16 %v22848_v10 }
 0x782   : > { %v16606_v63 = vcombine.high %v13628_v47, %v13638_v44 }
 0x785   : > { %11641 = vmatpush1.bf16.xpose.msra.mxu1 %v16251_v13  ;;  %15015 = vmatpush1.bf16.xpose.msra.mxu0 %v16623_v7  ;;  %v13844_v13 = vcombine.high %v22647_v49, %v22647_v49  ;;  %v16391_v7 = vcombine.low %v8727_v59, %v8727_v59  ;;  %v8588_v49 = vunpack.c.l.s8.bf16 %v22862_v50 }
 0x786   : > { %11642 = vmatprep.subr.bf16.mxu1 %v16272_v31  ;;  %15016 = vmatprep.subr.bf16.mxu0 %v16644_v40  ;;  %v16763_v31 = vcombine.low %v13787_v41, %v13787_v41  ;;  %v16234_v40 = vcombine.high %v8568_v48, %v8578_v22  ;;  %v22932_v41 = vld [vmem:[%s17843_s16 + $0x518] sm:$0xff] }
 0x787   : > { %v22877_v29 = vrot.slane %v13844_v13, %v21141_v57 }
 0x789   : > { %v13860_v60 = vcombine.high %v22877_v29, %v22877_v29 }
 0x78d   : > { %11643 = vmatpush1.bf16.xpose.msra.mxu1 %v16271_v35  ;;  %15017 = vmatpush1.bf16.xpose.msra.mxu0 %v16643_v16  ;;  %v22871_v35 = vld [vmem:[%s17843_s16 + $0x1d0] sm:$0xff] }
 0x78e   : > { %11644 = vmatprep.subr.bf16.mxu1 %v16292_v17  ;;  %15018 = vmatprep.subr.bf16.mxu0 %v16664_v42  ;;  %v22874_v16 = vld [vmem:[%s17843_s16 + $0x270] sm:$0xff]  ;;  %v8598_v17 = vunpack.c.l.s8.bf16 %v22865_v38  ;;  %v13648_v42 = vunpack.c.l.s8.bf16 %v22871_v35 }
 0x78f   : > { %v13658_v3 = vunpack.c.l.s8.bf16 %v22874_v16 }
 0x790   : > { %v16253_v8 = vcombine.low %v8588_v49, %v8598_v17 }
 0x791   : > { %v16626_v33 = vcombine.high %v13648_v42, %v13658_v3  ;;  %v16625_v53 = vcombine.low %v13648_v42, %v13658_v3 }
 0x795   : > { %11645 = vmatpush1.bf16.xpose.msra.mxu1 %v16291_v25  ;;  %15019 = vmatpush1.bf16.xpose.msra.mxu0 %v16663_v30  ;;  %v16233_v25 = vcombine.low %v8568_v48, %v8578_v22  ;;  %v13889_v30 = vcombine.high %v22807_v62, %v22807_v62  ;;  %v8608_v62 = vunpack.c.l.s8.bf16 %v22892_v18 }
 0x796   : > { %11646 = vmatprep.subr.bf16.mxu1 %v16312_v56  ;;  %15020 = vmatprep.subr.bf16.mxu0 %v16684_v24  ;;  %v16605_v56 = vcombine.low %v13628_v47, %v13638_v44  ;;  %v16254_v24 = vcombine.high %v8588_v49, %v8598_v17  ;;  %v22957_v49 = vld [vmem:[%s17843_s16 + $0x770] sm:$0xff] }
 0x797   : > { %v13738_v1 = vunpack.c.l.s8.bf16 %v22957_v49 }
 0x79d   : > { %11647 = vmatpush1.bf16.xpose.msra.mxu1 %v16311_v11  ;;  %15021 = vmatpush1.bf16.xpose.msra.mxu0 %v16683_v51  ;;  %v22901_v11 = vld [vmem:[%s17843_s16 + $0x310] sm:$0xff]  ;;  %v22907_v51 = vrot.slane %v13860_v60, %v21141_v57 }
 0x79e   : > { %11648 = vmatprep.subr.bf16.mxu1 %v16332_v58  ;;  %15022 = vmatprep.subr.bf16.mxu0 %v16704_v32  ;;  %v8618_v58 = vunpack.c.l.s8.bf16 %v22895_v46  ;;  %v13668_v32 = vunpack.c.l.s8.bf16 %v22901_v11 }
 0x7a0   : > { %v16274_v45 = vcombine.high %v8608_v62, %v8618_v58 }
 0x7a5   : > { %11649 = vmatpush1.bf16.xpose.msra.mxu1 %v16331_v36  ;;  %15023 = vmatpush1.bf16.xpose.msra.mxu0 %v16703_v5  ;;  %v16646_v36 = vcombine.high %v13668_v32, %v13678_v20  ;;  %v22916_v5 = vld [vmem:[%s17843_s16 + $0x3d8] sm:$0xff] }
 0x7a6   : > { %11650 = vmatprep.subr.bf16.mxu1 %v16352_v43  ;;  %15024 = vmatprep.subr.bf16.mxu0 %v16724_v19  ;;  %v22919_v43 = vld [vmem:[%s17843_s16 + $0x478] sm:$0xff]  ;;  %v22922_v19 = vld [vmem:[%s17843_s16 + $0x450] sm:$0xff]  ;;  %v8628_v39 = vunpack.c.l.s8.bf16 %v22916_v5 }
 0x7a7   : > { %v8638_v6 = vunpack.c.l.s8.bf16 %v22919_v43  ;;  %v13688_v21 = vunpack.c.l.s8.bf16 %v22922_v19 }
 0x7a9   : > { %v16293_v44 = vcombine.low %v8628_v39, %v8638_v6 }
 0x7ad   : > { %11651 = vmatpush1.bf16.xpose.msra.mxu1 %v16351_v0  ;;  %15025 = vmatpush1.bf16.xpose.msra.mxu0 %v16723_v4  ;;  %v13698_v0 = vunpack.c.l.s8.bf16 %v22925_v54  ;;  %v16273_v4 = vcombine.low %v8608_v62, %v8618_v58  ;;  %v22973_v62 = vld [vmem:[%s17843_s16 + $0x8b0] sm:$0xff] }
 0x7ae   : > { %11652 = vmatprep.subr.bf16.mxu1 %v16372_v12  ;;  %15026 = vmatprep.subr.bf16.mxu0 %v16744_v34  ;;  %v16645_v12 = vcombine.low %v13668_v32, %v13678_v20  ;;  %v16294_v34 = vcombine.high %v8628_v39, %v8638_v6  ;;  %v22980_v6 = vld [vmem:[%s17843_s16 + $0x8d8] sm:$0xff] }
 0x7af   : > { %v16666_v59 = vcombine.high %v13688_v21, %v13698_v0  ;;  %v16665_v15 = vcombine.low %v13688_v21, %v13698_v0  ;;  %v22983_v21 = vld [vmem:[%s17843_s16 + $0x978] sm:$0xff]  ;;  %v22986_v0 = vld [vmem:[%s17843_s16 + $0x950] sm:$0xff] }
 0x7b5   : > { %11653 = vmatpush1.bf16.xpose.msra.mxu1 %v16371_v26  ;;  %15027 = vmatpush1.bf16.xpose.msra.mxu0 %v16743_v23  ;;  %v22935_v26 = vld [vmem:[%s17843_s16 + $0x5b8] sm:$0xff]  ;;  %v22938_v23 = vld [vmem:[%s17843_s16 + $0x590] sm:$0xff] }
 0x7b6   : > { %11654 = vmatprep.subr.bf16.mxu1 %v16392_v27  ;;  %15028 = vmatprep.subr.bf16.mxu0 %v16764_v52  ;;  %v22941_v27 = vld [vmem:[%s17843_s16 + $0x630] sm:$0xff]  ;;  %v8648_v52 = vunpack.c.l.s8.bf16 %v22932_v41  ;;  %v8658_v48 = vunpack.c.l.s8.bf16 %v22935_v26  ;;  %v13708_v22 = vunpack.c.l.s8.bf16 %v22938_v23 }
 0x7b7   : > { %v13718_v47 = vunpack.c.l.s8.bf16 %v22941_v27 }
 0x7b8   : > { %v16314_v13 = vcombine.high %v8648_v52, %v8658_v48 }
 0x7b9   : > { %v16685_v60 = vcombine.low %v13708_v22, %v13718_v47 }
 0x7bd   : > { %11655 = vmatpush1.bf16.xpose.msra.mxu1 %v16391_v7  ;;  %15029 = vmatpush1.bf16.xpose.msra.mxu0 %v16763_v31  ;;  %v16686_v7 = vcombine.high %v13708_v22, %v13718_v47  ;;  %v22948_v31 = vld [vmem:[%s17843_s16 + $0x658] sm:$0xff] }
 0x7be   : > { %11679 = vmatprep.subr.bf16.mxu1 %v16234_v40  ;;  %15053 = vmatprep.subr.bf16.mxu0 %v16606_v63  ;;  %v22951_v40 = vld [vmem:[%s17843_s16 + $0x6f8] sm:$0xff]  ;;  %v22954_v63 = vld [vmem:[%s17843_s16 + $0x6d0] sm:$0xff]  ;;  %v8668_v17 = vunpack.c.l.s8.bf16 %v22948_v31 }
 0x7bf   : > { %v8678_v42 = vunpack.c.l.s8.bf16 %v22951_v40  ;;  %v13728_v3 = vunpack.c.l.s8.bf16 %v22954_v63 }
 0x7c4   : > { %11671 = vmatmul.mubr.bf16.vlgmr.msra.gmra.mrb[0].mxu1 %v10515_v55  ;;  %15045 = vmatmul.mubr.bf16.vlgmr.msra.gmra.mrb[0].mxu0 %v13889_v30  ;;  %v16313_v55 = vcombine.low %v8648_v52, %v8658_v48  ;;  %v16706_v30 = vcombine.high %v13728_v3, %v13738_v1 }
 0x7c5   : > { %11680 = vmatpush1.bf16.xpose.msra.mxu1 %v16233_v25  ;;  %15054 = vmatpush1.bf16.xpose.msra.mxu0 %v16605_v56  ;;  %v16334_v25 = vcombine.high %v8668_v17, %v8678_v42  ;;  %v22964_v56 = vld [vmem:[%s17843_s16 + $0x798] sm:$0xff] }
 0x7c6   : > { %11681 = vmatprep.subr.bf16.mxu1 %v16254_v24  ;;  %15055 = vmatprep.subr.bf16.mxu0 %v16626_v33  ;;  %v22967_v24 = vld [vmem:[%s17843_s16 + $0x838] sm:$0xff]  ;;  %v22970_v33 = vld [vmem:[%s17843_s16 + $0x810] sm:$0xff]  ;;  %v8688_v58 = vunpack.c.l.s8.bf16 %v22964_v56 }
 0x7c7   : > { %11711 = vmatprep.mubr.bf16.mxu1 %v22898_v14  ;;  %15085 = vmatprep.mubr.bf16.mxu0 %v22907_v51  ;;  %v8698_v32 = vunpack.c.l.s8.bf16 %v22967_v24  ;;  %v13748_v20 = vunpack.c.l.s8.bf16 %v22970_v33 }
 0x7c9   : > { %v16353_v48 = vcombine.low %v8688_v58, %v8698_v32 }
 0x7cd   : > { %11682 = vmatpush1.bf16.xpose.msra.mxu1 %v16253_v8  ;;  %15056 = vmatpush1.bf16.xpose.msra.mxu0 %v16625_v53  ;;  %v13758_v8 = vunpack.c.l.s8.bf16 %v22973_v62  ;;  %v16333_v53 = vcombine.low %v8668_v17, %v8678_v42 }
 0x7ce   : > { %11683 = vmatprep.subr.bf16.mxu1 %v16274_v45  ;;  %15057 = vmatprep.subr.bf16.mxu0 %v16646_v36  ;;  %v16705_v45 = vcombine.low %v13728_v3, %v13738_v1  ;;  %v16354_v36 = vcombine.high %v8688_v58, %v8698_v32  ;;  %v13639_v58 = vunpack.c.h.s8.bf16 %v22851_v37 }
 0x7cf   : > { %v16726_v39 = vcombine.high %v13748_v20, %v13758_v8  ;;  %v16725_v22 = vcombine.low %v13748_v20, %v13758_v8 }
 0x7d5   : > { %11684 = vmatpush1.bf16.xpose.msra.mxu1 %v16273_v4  ;;  %15058 = vmatpush1.bf16.xpose.msra.mxu0 %v16645_v12  ;;  %v22989_v4 = vld [vmem:[%s17843_s16 + $0x9f0] sm:$0xff]  ;;  %v8708_v12 = vunpack.c.l.s8.bf16 %v22980_v6 }
 0x7d6   : > { %11685 = vmatprep.subr.bf16.mxu1 %v16294_v34  ;;  %15059 = vmatprep.subr.bf16.mxu0 %v16666_v59  ;;  %v8718_v34 = vunpack.c.l.s8.bf16 %v22983_v21  ;;  %v13768_v59 = vunpack.c.l.s8.bf16 %v22986_v0  ;;  %v13778_v52 = vunpack.c.l.s8.bf16 %v22989_v4 }
 0x7d8   : > { %v16374_v47 = vcombine.high %v8708_v12, %v8718_v34  ;;  %v16373_v42 = vcombine.low %v8708_v12, %v8718_v34  ;;  %v16745_v3 = vcombine.low %v13768_v59, %v13778_v52 }
 0x7dd   : > { %11686 = vmatpush1.bf16.xpose.msra.mxu1 %v16293_v44  ;;  %15060 = vmatpush1.bf16.xpose.msra.mxu0 %v16665_v15  ;;  %v16746_v44 = vcombine.high %v13768_v59, %v13778_v52  ;;  %v22996_v15 = vld [vmem:[%s17843_s16 + $0xa18] sm:$0x55] }
 0x7de   : > { %11687 = vmatprep.subr.bf16.mxu1 %v16314_v13  ;;  %15061 = vmatprep.subr.bf16.mxu0 %v16686_v7  ;;  %v22999_v13 = vld [vmem:[%s17843_s16 + $0xa90] sm:$0x55]  ;;  %v8728_v7 = vunpack.c.l.s8.bf16 %v22996_v15 }
 0x7df   : > { %v13788_v17 = vunpack.c.l.s8.bf16 %v22999_v13 }
 0x7e0   : > { %v16394_v1 = vcombine.high %v8728_v7, %v8728_v7  ;;  %v16393_v32 = vcombine.low %v8728_v7, %v8728_v7 }
 0x7e1   : > { %v16765_v20 = vcombine.low %v13788_v17, %v13788_v17 }
 0x7e5   : > { %11688 = vmatpush1.bf16.xpose.msra.mxu1 %v16313_v55  ;;  %15062 = vmatpush1.bf16.xpose.msra.mxu0 %v16685_v60  ;;  %v16766_v55 = vcombine.high %v13788_v17, %v13788_v17  ;;  %v8569_v60 = vunpack.c.h.s8.bf16 %v22842_v9  ;;  %v13649_v9 = vunpack.c.h.s8.bf16 %v22871_v35  ;;  %v8619_v35 = vunpack.c.h.s8.bf16 %v22895_v46 }
 0x7e6   : > { %11689 = vmatprep.subr.bf16.mxu1 %v16334_v25  ;;  %15063 = vmatprep.subr.bf16.mxu0 %v16706_v30  ;;  %v8579_v25 = vunpack.c.h.s8.bf16 %v22845_v61  ;;  %v13629_v30 = vunpack.c.h.s8.bf16 %v22848_v10  ;;  %v13659_v61 = vunpack.c.h.s8.bf16 %v22874_v16  ;;  %v23013_v10 = vrot.slane %v22868_v2, %v21141_v57 }
 0x7e7   : > { %v8609_v2 = vunpack.c.h.s8.bf16 %v22892_v18  ;;  %v13669_v16 = vunpack.c.h.s8.bf16 %v22901_v11  ;;  %v8639_v18 = vunpack.c.h.s8.bf16 %v22919_v43  ;;  %v13689_v46 = vunpack.c.h.s8.bf16 %v22922_v19 }
 0x7e8   : > { %v16236_v8 = vcombine.high %v8569_v60, %v8579_v25  ;;  %v16235_v37 = vcombine.low %v8569_v60, %v8579_v25  ;;  %v16607_v12 = vcombine.low %v13629_v30, %v13639_v58  ;;  %v16628_v59 = vcombine.high %v13649_v9, %v13659_v61 }
 0x7e9   : > { %v16627_v52 = vcombine.low %v13649_v9, %v13659_v61  ;;  %v13699_v11 = vunpack.c.h.s8.bf16 %v22925_v54  ;;  %v8649_v17 = vunpack.c.h.s8.bf16 %v22932_v41  ;;  %v13719_v43 = vunpack.c.h.s8.bf16 %v22941_v27 }
 0x7ea   : > { %v8679_v60 = vunpack.c.h.s8.bf16 %v22951_v40  ;;  %v13729_v41 = vunpack.c.h.s8.bf16 %v22954_v63  ;;  %v13759_v40 = vunpack.c.h.s8.bf16 %v22973_v62 }
 0x7eb   : > { %v16668_v7 = vcombine.high %v13689_v46, %v13699_v11  ;;  %v16667_v19 = vcombine.low %v13689_v46, %v13699_v11  ;;  %v23083_v46 = vld.sshfl [vmem:[%s21119_s11 + $0x4c] sm:$0x33 pattern:$0x75316420] }
 0x7ed   : > { %11690 = vmatpush1.bf16.xpose.msra.mxu1 %v16333_v53  ;;  %15064 = vmatpush1.bf16.xpose.msra.mxu0 %v16705_v45  ;;  %v16608_v53 = vcombine.high %v13629_v30, %v13639_v58  ;;  %v8589_v45 = vunpack.c.h.s8.bf16 %v22862_v50  ;;  %v10518_v50 = vcombine.high %v22898_v14, %v22898_v14  ;;  %v8689_v58 = vunpack.c.h.s8.bf16 %v22964_v56 }
 0x7ee   : > { %11691 = vmatprep.subr.bf16.mxu1 %v16354_v36  ;;  %15065 = vmatprep.subr.bf16.mxu0 %v16726_v39  ;;  %v8599_v36 = vunpack.c.h.s8.bf16 %v22865_v38  ;;  %v23017_v39 = vrot.slane %v22877_v29, %v21141_v57  ;;  %v13892_v38 = vcombine.high %v22907_v51, %v22907_v51  ;;  %v13679_v29 = vunpack.c.h.s8.bf16 %v22904_v28 }
 0x7ef   : > { %v13769_v56 = vunpack.c.h.s8.bf16 %v22986_v0 }
 0x7f0   : > { %v16256_v34 = vcombine.high %v8589_v45, %v8599_v36  ;;  %v16255_v14 = vcombine.low %v8589_v45, %v8599_v36  ;;  %v16648_v51 = vcombine.high %v13669_v16, %v13679_v29  ;;  %v16647_v28 = vcombine.low %v13669_v16, %v13679_v29 }
 0x7f1   : > { %v8719_v45 = vunpack.c.h.s8.bf16 %v22983_v21  ;;  %v13789_v21 = vunpack.c.h.s8.bf16 %v22999_v13 }
 0x7f3   : > { %v16767_v16 = vcombine.low %v13789_v21, %v13789_v21 }
 0x7f5   : > { %11692 = vmatpush1.bf16.xpose.msra.mxu1 %v16353_v48  ;;  %15066 = vmatpush1.bf16.xpose.msra.mxu0 %v16725_v22  ;;  %v16276_v48 = vcombine.high %v8609_v2, %v8619_v35  ;;  %v8629_v22 = vunpack.c.h.s8.bf16 %v22916_v5  ;;  %v13709_v5 = vunpack.c.h.s8.bf16 %v22938_v23 }
 0x7f6   : > { %11693 = vmatprep.subr.bf16.mxu1 %v16374_v47  ;;  %15067 = vmatprep.subr.bf16.mxu0 %v16746_v44  ;;  %v16275_v47 = vcombine.low %v8609_v2, %v8619_v35 }
 0x7f7   : > { %v16296_v44 = vcombine.high %v8629_v22, %v8639_v18  ;;  %v16688_v54 = vcombine.high %v13709_v5, %v13719_v43  ;;  %v16687_v23 = vcombine.low %v13709_v5, %v13719_v43  ;;  %v13890_v43 = vcombine.high %v23017_v39, %v23017_v39 }
 0x7fd   : > { %11694 = vmatpush1.bf16.xpose.msra.mxu1 %v16373_v42  ;;  %15068 = vmatpush1.bf16.xpose.msra.mxu0 %v16745_v3  ;;  %v8659_v42 = vunpack.c.h.s8.bf16 %v22935_v26  ;;  %v16295_v3 = vcombine.low %v8629_v22, %v8639_v18  ;;  %v13739_v26 = vunpack.c.h.s8.bf16 %v22957_v49  ;;  %v23077_v22 = vld [vmem:[%s17843_s16 + $0x278] sm:$0xff]  ;;  %v23080_v18 = vld.sshfl [vmem:[%s21119_s11 + $0x10] sm:$0x33 pattern:$0x75316420] }
 0x7fe   : > { %11695 = vmatprep.subr.bf16.mxu1 %v16394_v1  ;;  %15069 = vmatprep.subr.bf16.mxu0 %v16766_v55  ;;  %v8669_v55 = vunpack.c.h.s8.bf16 %v22948_v31  ;;  %v13749_v31 = vunpack.c.h.s8.bf16 %v22970_v33 }
 0x7ff   : > { %v16316_v1 = vcombine.high %v8649_v17, %v8659_v42  ;;  %v16315_v25 = vcombine.low %v8649_v17, %v8659_v42  ;;  %v16708_v27 = vcombine.high %v13729_v41, %v13739_v26  ;;  %v16707_v63 = vcombine.low %v13729_v41, %v13739_v26  ;;  %v23107_v41 = vld [vmem:[%s17843_s16 + $0x318] sm:$0xff] }
 0x800   : > { %v16336_v30 = vcombine.high %v8669_v55, %v8679_v60  ;;  %v16728_v49 = vcombine.high %v13749_v31, %v13759_v40  ;;  %v16727_v62 = vcombine.low %v13749_v31, %v13759_v40  ;;  %v10516_v17 = vcombine.high %v23013_v10, %v23013_v10  ;;  %v23122_v40 = vld [vmem:[%s17843_s16 + $0x3e0] sm:$0xff] }
 0x801   : > { %v13900_v42 = vcombine.high %v23083_v46, %v23083_v46 }
 0x803   : > { %v23113_v26 = vrot.slane %v13900_v42, %v21141_v57 }
 0x805   : > { %11696 = vmatpush1.bf16.xpose.msra.mxu1 %v16393_v32  ;;  %15070 = vmatpush1.bf16.xpose.msra.mxu0 %v16765_v20  ;;  %v8699_v32 = vunpack.c.h.s8.bf16 %v22967_v24  ;;  %v16335_v20 = vcombine.low %v8669_v55, %v8679_v60  ;;  %v13779_v24 = vunpack.c.h.s8.bf16 %v22989_v4  ;;  %v23052_v4 = vld [vmem:[%s17843_s16 + $0x20] sm:$0xff] }
 0x806   : > { %11720 = vmatprep.subr.bf16.mxu1 %v16236_v8  ;;  %15094 = vmatprep.subr.bf16.mxu0 %v16608_v53  ;;  %v8709_v53 = vunpack.c.h.s8.bf16 %v22980_v6  ;;  %v8729_v6 = vunpack.c.h.s8.bf16 %v22996_v15  ;;  %v8570_v15 = vunpack.c.l.s8.bf16 %v23052_v4  ;;  %v23101_v55 = vld [vmem:[%s17843_s16 + $0x340] sm:$0xff] }
 0x807   : > { %v16356_v8 = vcombine.high %v8689_v58, %v8699_v32  ;;  %v16355_v33 = vcombine.low %v8689_v58, %v8699_v32  ;;  %v16748_v9 = vcombine.high %v13769_v56, %v13779_v24  ;;  %v16747_v0 = vcombine.low %v13769_v56, %v13779_v24 }
 0x808   : > { %v16376_v36 = vcombine.high %v8709_v53, %v8719_v45  ;;  %v16375_v61 = vcombine.low %v8709_v53, %v8719_v45  ;;  %v16395_v35 = vcombine.low %v8729_v6, %v8729_v6 }
 0x80c   : > { %11712 = vmatmul.mubr.bf16.vlgmr.msra.gmra.mrb[0].mxu1 %v23013_v10  ;;  %15086 = vmatmul.mubr.bf16.vlgmr.msra.gmra.mrb[0].mxu0 %v23017_v39  ;;  %v23110_v10 = vld [vmem:[%s17843_s16 + $0x3b8] sm:$0xff] }
 0x80d   : > { %11721 = vmatpush1.bf16.xpose.msra.mxu1 %v16235_v37  ;;  %15095 = vmatpush1.bf16.xpose.msra.mxu0 %v16607_v12  ;;  %v16396_v37 = vcombine.high %v8729_v6, %v8729_v6  ;;  %v16768_v12 = vcombine.high %v13789_v21, %v13789_v21  ;;  %v23141_v6 = vld [vmem:[%s17843_s16 + $0x5c0] sm:$0xff]  ;;  %v23144_v21 = vld [vmem:[%s17843_s16 + $0x598] sm:$0xff] }
 0x80e   : > { %11722 = vmatprep.subr.bf16.mxu1 %v16256_v34  ;;  %15096 = vmatprep.subr.bf16.mxu0 %v16628_v59  ;;  %v23055_v34 = vld [vmem:[%s17843_s16 + $0xc0] sm:$0xff]  ;;  %v23058_v59 = vld [vmem:[%s17843_s16 + $0x98] sm:$0xff] }
 0x80f   : > { %11752 = vmatprep.mubr.bf16.mxu1 %v10518_v50  ;;  %15126 = vmatprep.mubr.bf16.mxu0 %v13892_v38  ;;  %v23061_v50 = vld [vmem:[%s17843_s16 + $0x138] sm:$0xff]  ;;  %v8580_v13 = vunpack.c.l.s8.bf16 %v23055_v34  ;;  %v13630_v38 = vunpack.c.l.s8.bf16 %v23058_v59 }
 0x810   : > { %v13640_v2 = vunpack.c.l.s8.bf16 %v23061_v50 }
 0x811   : > { %v16238_v29 = vcombine.high %v8570_v15, %v8580_v13  ;;  %v16237_v5 = vcombine.low %v8570_v15, %v8580_v13 }
 0x815   : > { %11723 = vmatpush1.bf16.xpose.msra.mxu1 %v16255_v14  ;;  %15097 = vmatpush1.bf16.xpose.msra.mxu0 %v16627_v52  ;;  %v16610_v14 = vcombine.high %v13630_v38, %v13640_v2  ;;  %v23068_v52 = vld [vmem:[%s17843_s16 + $0x160] sm:$0xff] }
 0x816   : > { %11724 = vmatprep.subr.bf16.mxu1 %v16276_v48  ;;  %15098 = vmatprep.subr.bf16.mxu0 %v16648_v51  ;;  %v23071_v48 = vld [vmem:[%s17843_s16 + $0x200] sm:$0xff]  ;;  %v23074_v51 = vld [vmem:[%s17843_s16 + $0x1d8] sm:$0xff]  ;;  %v8590_v11 = vunpack.c.l.s8.bf16 %v23068_v52 }
 0x81d   : > { %11725 = vmatpush1.bf16.xpose.msra.mxu1 %v16275_v47  ;;  %15099 = vmatpush1.bf16.xpose.msra.mxu0 %v16647_v28  ;;  %v8600_v47 = vunpack.c.l.s8.bf16 %v23071_v48  ;;  %v13650_v28 = vunpack.c.l.s8.bf16 %v23074_v51 }
 0x81e   : > { %11726 = vmatprep.subr.bf16.mxu1 %v16296_v44  ;;  %15100 = vmatprep.subr.bf16.mxu0 %v16668_v7  ;;  %v13660_v44 = vunpack.c.l.s8.bf16 %v23077_v22  ;;  %v10526_v7 = vcombine.high %v23080_v18, %v23080_v18 }
 0x820   : > { %v23104_v60 = vrot.slane %v10526_v7, %v21141_v57  ;;  %v16629_v58 = vcombine.low %v13650_v28, %v13660_v44 }
 0x825   : > { %11727 = vmatpush1.bf16.xpose.msra.mxu1 %v16295_v3  ;;  %15101 = vmatpush1.bf16.xpose.msra.mxu0 %v16667_v19  ;;  %v16609_v3 = vcombine.low %v13630_v38, %v13640_v2  ;;  %v16258_v19 = vcombine.high %v8590_v11, %v8600_v47 }
 0x826   : > { %11728 = vmatprep.subr.bf16.mxu1 %v16316_v1  ;;  %15102 = vmatprep.subr.bf16.mxu0 %v16688_v54  ;;  %v16630_v1 = vcombine.high %v13650_v28, %v13660_v44  ;;  %v23098_v54 = vld [vmem:[%s17843_s16 + $0x2a0] sm:$0xff] }
 0x827   : > { %v8610_v39 = vunpack.c.l.s8.bf16 %v23098_v54 }
 0x82d   : > { %11729 = vmatpush1.bf16.xpose.msra.mxu1 %v16315_v25  ;;  %15103 = vmatpush1.bf16.xpose.msra.mxu0 %v16687_v23  ;;  %v8620_v25 = vunpack.c.l.s8.bf16 %v23101_v55  ;;  %v13670_v23 = vunpack.c.l.s8.bf16 %v23107_v41 }
 0x82e   : > { %11730 = vmatprep.subr.bf16.mxu1 %v16336_v30  ;;  %15104 = vmatprep.subr.bf16.mxu0 %v16708_v27  ;;  %v13680_v30 = vunpack.c.l.s8.bf16 %v23110_v10  ;;  %v16257_v27 = vcombine.low %v8590_v11, %v8600_v47  ;;  %v23163_v11 = vld [vmem:[%s17843_s16 + $0x778] sm:$0xff] }
 0x82f   : > { %v16278_v32 = vcombine.high %v8610_v39, %v8620_v25  ;;  %v16277_v24 = vcombine.low %v8610_v39, %v8620_v25  ;;  %v13740_v7 = vunpack.c.l.s8.bf16 %v23163_v11  ;;  %v23179_v39 = vld [vmem:[%s17843_s16 + $0x8b8] sm:$0xff] }
 0x830   : > { %v16650_v31 = vcombine.high %v13670_v23, %v13680_v30 }
 0x835   : > { %11731 = vmatpush1.bf16.xpose.msra.mxu1 %v16335_v20  ;;  %15105 = vmatpush1.bf16.xpose.msra.mxu0 %v16707_v63  ;;  %v23125_v20 = vld [vmem:[%s17843_s16 + $0x480] sm:$0xff]  ;;  %v23128_v63 = vld [vmem:[%s17843_s16 + $0x458] sm:$0xff] }
 0x836   : > { %11732 = vmatprep.subr.bf16.mxu1 %v16356_v8  ;;  %15106 = vmatprep.subr.bf16.mxu0 %v16728_v49  ;;  %v23131_v8 = vld [vmem:[%s17843_s16 + $0x4f8] sm:$0xff]  ;;  %v8630_v49 = vunpack.c.l.s8.bf16 %v23122_v40  ;;  %v8640_v53 = vunpack.c.l.s8.bf16 %v23125_v20  ;;  %v13690_v45 = vunpack.c.l.s8.bf16 %v23128_v63 }
 0x837   : > { %v13700_v56 = vunpack.c.l.s8.bf16 %v23131_v8 }
 0x838   : > { %v16297_v13 = vcombine.low %v8630_v49, %v8640_v53 }
 0x839   : > { %v16669_v38 = vcombine.low %v13690_v45, %v13700_v56 }
 0x83d   : > { %11733 = vmatpush1.bf16.xpose.msra.mxu1 %v16355_v33  ;;  %15107 = vmatpush1.bf16.xpose.msra.mxu0 %v16727_v62  ;;  %v16649_v33 = vcombine.low %v13670_v23, %v13680_v30  ;;  %v16298_v62 = vcombine.high %v8630_v49, %v8640_v53  ;;  %v23186_v53 = vld [vmem:[%s17843_s16 + $0x8e0] sm:$0xff] }
 0x83e   : > { %11734 = vmatprep.subr.bf16.mxu1 %v16376_v36  ;;  %15108 = vmatprep.subr.bf16.mxu0 %v16748_v9  ;;  %v16670_v36 = vcombine.high %v13690_v45, %v13700_v56  ;;  %v23138_v9 = vld [vmem:[%s17843_s16 + $0x520] sm:$0xff]  ;;  %v23192_v56 = vld [vmem:[%s17843_s16 + $0x958] sm:$0xff] }
 0x83f   : > { %v23189_v45 = vld [vmem:[%s17843_s16 + $0x980] sm:$0xff] }
 0x845   : > { %11735 = vmatpush1.bf16.xpose.msra.mxu1 %v16375_v61  ;;  %15109 = vmatpush1.bf16.xpose.msra.mxu0 %v16747_v0  ;;  %v23147_v61 = vld [vmem:[%s17843_s16 + $0x638] sm:$0xff]  ;;  %v8650_v0 = vunpack.c.l.s8.bf16 %v23138_v9 }
 0x846   : > { %11736 = vmatprep.subr.bf16.mxu1 %v16396_v37  ;;  %15110 = vmatprep.subr.bf16.mxu0 %v16768_v12  ;;  %v8660_v37 = vunpack.c.l.s8.bf16 %v23141_v6  ;;  %v13710_v12 = vunpack.c.l.s8.bf16 %v23144_v21  ;;  %v13720_v15 = vunpack.c.l.s8.bf16 %v23147_v61 }
 0x848   : > { %v16318_v2 = vcombine.high %v8650_v0, %v8660_v37  ;;  %v16689_v42 = vcombine.low %v13710_v12, %v13720_v15 }
 0x84d   : > { %11737 = vmatpush1.bf16.xpose.msra.mxu1 %v16395_v35  ;;  %15111 = vmatpush1.bf16.xpose.msra.mxu0 %v16767_v16  ;;  %v16690_v35 = vcombine.high %v13710_v12, %v13720_v15  ;;  %v23154_v16 = vld [vmem:[%s17843_s16 + $0x660] sm:$0xff] }
 0x84e   : > { %11761 = vmatprep.subr.bf16.mxu1 %v16238_v29  ;;  %15135 = vmatprep.subr.bf16.mxu0 %v16610_v14  ;;  %v23157_v29 = vld [vmem:[%s17843_s16 + $0x700] sm:$0xff]  ;;  %v23160_v14 = vld [vmem:[%s17843_s16 + $0x6d8] sm:$0xff]  ;;  %v8670_v47 = vunpack.c.l.s8.bf16 %v23154_v16 }
 0x84f   : > { %v8680_v28 = vunpack.c.l.s8.bf16 %v23157_v29  ;;  %v13730_v44 = vunpack.c.l.s8.bf16 %v23160_v14 }
 0x854   : > { %11753 = vmatmul.mubr.bf16.vlgmr.msra.gmra.mrb[0].mxu1 %v10516_v17  ;;  %15127 = vmatmul.mubr.bf16.vlgmr.msra.gmra.mrb[0].mxu0 %v13890_v43  ;;  %v16317_v17 = vcombine.low %v8650_v0, %v8660_v37  ;;  %v16710_v43 = vcombine.high %v13730_v44, %v13740_v7 }
 0x855   : > { %11762 = vmatpush1.bf16.xpose.msra.mxu1 %v16237_v5  ;;  %15136 = vmatpush1.bf16.xpose.msra.mxu0 %v16609_v3  ;;  %v16338_v5 = vcombine.high %v8670_v47, %v8680_v28  ;;  %v23170_v3 = vld [vmem:[%s17843_s16 + $0x7a0] sm:$0xff] }
 0x856   : > { %11763 = vmatprep.subr.bf16.mxu1 %v16258_v19  ;;  %15137 = vmatprep.subr.bf16.mxu0 %v16630_v1  ;;  %v23173_v19 = vld [vmem:[%s17843_s16 + $0x840] sm:$0xff]  ;;  %v23176_v1 = vld [vmem:[%s17843_s16 + $0x818] sm:$0xff]  ;;  %v8690_v25 = vunpack.c.l.s8.bf16 %v23170_v3 }
 0x857   : > { %11793 = vmatprep.mubr.bf16.mxu1 %v23104_v60  ;;  %15167 = vmatprep.mubr.bf16.mxu0 %v23113_v26  ;;  %v8700_v23 = vunpack.c.l.s8.bf16 %v23173_v19  ;;  %v13750_v30 = vunpack.c.l.s8.bf16 %v23176_v1 }
 0x859   : > { %v16357_v37 = vcombine.low %v8690_v25, %v8700_v23 }
 0x85d   : > { %11764 = vmatpush1.bf16.xpose.msra.mxu1 %v16257_v27  ;;  %15138 = vmatpush1.bf16.xpose.msra.mxu0 %v16629_v58  ;;  %v13760_v27 = vunpack.c.l.s8.bf16 %v23179_v39  ;;  %v16337_v58 = vcombine.low %v8670_v47, %v8680_v28 }
 0x85e   : > { %11765 = vmatprep.subr.bf16.mxu1 %v16278_v32  ;;  %15139 = vmatprep.subr.bf16.mxu0 %v16650_v31  ;;  %v16709_v32 = vcombine.low %v13730_v44, %v13740_v7  ;;  %v16358_v31 = vcombine.high %v8690_v25, %v8700_v23  ;;  %v13641_v25 = vunpack.c.h.s8.bf16 %v23061_v50 }
 0x85f   : > { %v16730_v49 = vcombine.high %v13750_v30, %v13760_v27  ;;  %v16729_v12 = vcombine.low %v13750_v30, %v13760_v27 }
 0x865   : > { %11766 = vmatpush1.bf16.xpose.msra.mxu1 %v16277_v24  ;;  %15140 = vmatpush1.bf16.xpose.msra.mxu0 %v16649_v33  ;;  %v23195_v24 = vld [vmem:[%s17843_s16 + $0x9f8] sm:$0xff]  ;;  %v8710_v33 = vunpack.c.l.s8.bf16 %v23186_v53 }
 0x866   : > { %11767 = vmatprep.subr.bf16.mxu1 %v16298_v62  ;;  %15141 = vmatprep.subr.bf16.mxu0 %v16670_v36  ;;  %v8720_v62 = vunpack.c.l.s8.bf16 %v23189_v45  ;;  %v13770_v36 = vunpack.c.l.s8.bf16 %v23192_v56  ;;  %v13780_v0 = vunpack.c.l.s8.bf16 %v23195_v24 }
 0x868   : > { %v16378_v15 = vcombine.high %v8710_v33, %v8720_v62  ;;  %v16377_v28 = vcombine.low %v8710_v33, %v8720_v62  ;;  %v16749_v44 = vcombine.low %v13770_v36, %v13780_v0 }
 0x86d   : > { %11768 = vmatpush1.bf16.xpose.msra.mxu1 %v16297_v13  ;;  %15142 = vmatpush1.bf16.xpose.msra.mxu0 %v16669_v38  ;;  %v16750_v13 = vcombine.high %v13770_v36, %v13780_v0  ;;  %v23202_v38 = vld [vmem:[%s17843_s16 + $0xa20] sm:$0x55] }
 0x86e   : > { %11769 = vmatprep.subr.bf16.mxu1 %v16318_v2  ;;  %15143 = vmatprep.subr.bf16.mxu0 %v16690_v35  ;;  %v23205_v2 = vld [vmem:[%s17843_s16 + $0xa98] sm:$0x55]  ;;  %v8730_v35 = vunpack.c.l.s8.bf16 %v23202_v38 }
 0x86f   : > { %v13790_v47 = vunpack.c.l.s8.bf16 %v23205_v2 }
 0x870   : > { %v16398_v7 = vcombine.high %v8730_v35, %v8730_v35  ;;  %v16397_v23 = vcombine.low %v8730_v35, %v8730_v35  ;;  %v8651_v35 = vunpack.c.h.s8.bf16 %v23138_v9  ;;  %v13731_v9 = vunpack.c.h.s8.bf16 %v23160_v14 }
 0x871   : > { %v16769_v30 = vcombine.low %v13790_v47, %v13790_v47 }
 0x875   : > { %11770 = vmatpush1.bf16.xpose.msra.mxu1 %v16317_v17  ;;  %15144 = vmatpush1.bf16.xpose.msra.mxu0 %v16689_v42  ;;  %v16770_v17 = vcombine.high %v13790_v47, %v13790_v47  ;;  %v8571_v42 = vunpack.c.h.s8.bf16 %v23052_v4  ;;  %v13651_v4 = vunpack.c.h.s8.bf16 %v23074_v51  ;;  %v8611_v51 = vunpack.c.h.s8.bf16 %v23098_v54 }
 0x876   : > { %11771 = vmatprep.subr.bf16.mxu1 %v16338_v5  ;;  %15145 = vmatprep.subr.bf16.mxu0 %v16710_v43  ;;  %v8581_v5 = vunpack.c.h.s8.bf16 %v23055_v34  ;;  %v13631_v43 = vunpack.c.h.s8.bf16 %v23058_v59  ;;  %v13661_v34 = vunpack.c.h.s8.bf16 %v23077_v22  ;;  %v23219_v59 = vrot.slane %v23080_v18, %v21141_v57 }
 0x877   : > { %v13671_v22 = vunpack.c.h.s8.bf16 %v23107_v41  ;;  %v13681_v18 = vunpack.c.h.s8.bf16 %v23110_v10  ;;  %v8641_v54 = vunpack.c.h.s8.bf16 %v23125_v20  ;;  %v13701_v41 = vunpack.c.h.s8.bf16 %v23131_v8 }
 0x878   : > { %v16240_v27 = vcombine.high %v8571_v42, %v8581_v5  ;;  %v16239_v50 = vcombine.low %v8571_v42, %v8581_v5  ;;  %v16611_v33 = vcombine.low %v13631_v43, %v13641_v25  ;;  %v16632_v36 = vcombine.high %v13651_v4, %v13661_v34 }
 0x879   : > { %v16651_v10 = vcombine.low %v13671_v22, %v13681_v18  ;;  %v8661_v47 = vunpack.c.h.s8.bf16 %v23141_v6  ;;  %v13721_v20 = vunpack.c.h.s8.bf16 %v23147_v61  ;;  %v13741_v6 = vunpack.c.h.s8.bf16 %v23163_v11 }
 0x87b   : > { %v16319_v42 = vcombine.low %v8651_v35, %v8661_v47  ;;  %v16712_v61 = vcombine.high %v13731_v9, %v13741_v6  ;;  %v16711_v14 = vcombine.low %v13731_v9, %v13741_v6 }
 0x87d   : > { %11772 = vmatpush1.bf16.xpose.msra.mxu1 %v16337_v58  ;;  %15146 = vmatpush1.bf16.xpose.msra.mxu0 %v16709_v32  ;;  %v16612_v58 = vcombine.high %v13631_v43, %v13641_v25  ;;  %v8591_v32 = vunpack.c.h.s8.bf16 %v23068_v52  ;;  %v10542_v52 = vcombine.high %v23104_v60, %v23104_v60  ;;  %v16631_v60 = vcombine.low %v13651_v4, %v13661_v34 }
 0x87e   : > { %11773 = vmatprep.subr.bf16.mxu1 %v16358_v31  ;;  %15147 = vmatprep.subr.bf16.mxu0 %v16730_v49  ;;  %v8601_v31 = vunpack.c.h.s8.bf16 %v23071_v48  ;;  %v23223_v49 = vrot.slane %v23083_v46, %v21141_v57  ;;  %v13916_v48 = vcombine.high %v23113_v26, %v23113_v26  ;;  %v8621_v57 = vunpack.c.h.s8.bf16 %v23101_v55 }
 0x87f   : > { %v16652_v26 = vcombine.high %v13671_v22, %v13681_v18  ;;  %v13691_v55 = vunpack.c.h.s8.bf16 %v23128_v63  ;;  %v8691_v43 = vunpack.c.h.s8.bf16 %v23170_v3  ;;  %v8701_v25 = vunpack.c.h.s8.bf16 %v23173_v19 }
 0x880   : > { %v16260_v62 = vcombine.high %v8591_v32, %v8601_v31  ;;  %v16259_v46 = vcombine.low %v8591_v32, %v8601_v31  ;;  %v16280_v0 = vcombine.high %v8611_v51, %v8621_v57  ;;  %v13771_v3 = vunpack.c.h.s8.bf16 %v23192_v56 }
 0x881   : > { %v16671_v63 = vcombine.low %v13691_v55, %v13701_v41  ;;  %v13781_v19 = vunpack.c.h.s8.bf16 %v23195_v24  ;;  %v16359_v32 = vcombine.low %v8691_v43, %v8701_v25  ;;  %v8731_v4 = vunpack.c.h.s8.bf16 %v23202_v38 }
 0x882   : > { %v13791_v34 = vunpack.c.h.s8.bf16 %v23205_v2  ;;  %v13915_v38 = vcombine.high %v23223_v49, %v23223_v49  ;;  %v17075_v2 = vmov 1983009808  }
 0x883   : > { %v16399_v56 = vcombine.low %v8731_v4, %v8731_v4 }
 0x884   : > { %v16771_v24 = vcombine.low %v13791_v34, %v13791_v34 }
 0x885   : > { %11774 = vmatpush1.bf16.xpose.msra.mxu1 %v16357_v37  ;;  %15148 = vmatpush1.bf16.xpose.msra.mxu0 %v16729_v12  ;;  %v8631_v37 = vunpack.c.h.s8.bf16 %v23122_v40  ;;  %v16279_v12 = vcombine.low %v8611_v51, %v8621_v57  ;;  %v13711_v40 = vunpack.c.h.s8.bf16 %v23144_v21 }
 0x886   : > { %11775 = vmatprep.subr.bf16.mxu1 %v16378_v15  ;;  %15149 = vmatprep.subr.bf16.mxu0 %v16750_v13  ;;  %v16672_v13 = vcombine.high %v13691_v55, %v13701_v41 }
 0x887   : > { %v16300_v15 = vcombine.high %v8631_v37, %v8641_v54  ;;  %v16692_v8 = vcombine.high %v13711_v40, %v13721_v20  ;;  %v16691_v21 = vcombine.low %v13711_v40, %v13721_v20 }
 0x88d   : > { %11776 = vmatpush1.bf16.xpose.msra.mxu1 %v16377_v28  ;;  %15150 = vmatpush1.bf16.xpose.msra.mxu0 %v16749_v44  ;;  %v16299_v28 = vcombine.low %v8631_v37, %v8641_v54  ;;  %v16320_v44 = vcombine.high %v8651_v35, %v8661_v47  ;;  %v23911_v35 = vld [vmem:[#allocation83_spill] sm:$0xff] (!%p16773_p10) }
 0x88e   : > { %11777 = vmatprep.subr.bf16.mxu1 %v16398_v7  ;;  %15151 = vmatprep.subr.bf16.mxu0 %v16770_v17  ;;  %v8671_v7 = vunpack.c.h.s8.bf16 %v23154_v16  ;;  %v8681_v17 = vunpack.c.h.s8.bf16 %v23157_v29  ;;  %v13751_v16 = vunpack.c.h.s8.bf16 %v23176_v1  ;;  %v13761_v29 = vunpack.c.h.s8.bf16 %v23179_v39 }
 0x88f   : > { %v16752_v39 = vcombine.high %v13771_v3, %v13781_v19  ;;  %v15251_v47 = vsub.s32 (!%p16773_p10), 0, %v23911_v35  ;;  %v15255_v40 = vsub.s32 (!%p16773_p10), 1, %v23911_v35 }
 0x890   : > { %v16340_v5 = vcombine.high %v8671_v7, %v8681_v17  ;;  %v16732_v11 = vcombine.high %v13751_v16, %v13761_v29  ;;  %v16731_v1 = vcombine.low %v13751_v16, %v13761_v29 }
 0x895   : > { %11778 = vmatpush1.bf16.xpose.msra.mxu1 %v16397_v23  ;;  %15152 = vmatpush1.bf16.xpose.msra.mxu0 %v16769_v30  ;;  %v16339_v23 = vcombine.low %v8671_v7, %v8681_v17  ;;  %v16360_v30 = vcombine.high %v8691_v43, %v8701_v25 }
 0x896   : > { %11802 = vmatprep.subr.bf16.mxu1 %v16240_v27  ;;  %15176 = vmatprep.subr.bf16.mxu0 %v16612_v58  ;;  %v8711_v27 = vunpack.c.h.s8.bf16 %v23186_v53  ;;  %v8721_v58 = vunpack.c.h.s8.bf16 %v23189_v45  ;;  %v16400_v45 = vcombine.high %v8731_v4, %v8731_v4 }
 0x898   : > { %v16380_v31 = vcombine.high %v8711_v27, %v8721_v58  ;;  %v16379_v53 = vcombine.low %v8711_v27, %v8721_v58 }
 0x89c   : > { %11794 = vmatmul.mubr.bf16.vlgmr.msra.gmra.mrb[0].mxu1 %v23219_v59  ;;  %15168 = vmatmul.mubr.bf16.vlgmr.msra.gmra.mrb[0].mxu0 %v23223_v49  ;;  %v15219_v49 = vld [vmem:[#allocation4] sm:$0xf] }
 0x89d   : > { %11803 = vmatpush1.bf16.xpose.msra.mxu1 %v16239_v50  ;;  %15177 = vmatpush1.bf16.xpose.msra.mxu0 %v16611_v33  ;;  %v16751_v50 = vcombine.low %v13771_v3, %v13781_v19  ;;  %v16772_v33 = vcombine.high %v13791_v34, %v13791_v34 }
 0x89e   : > { %11804 = vmatprep.subr.bf16.mxu1 %v16260_v62  ;;  %15178 = vmatprep.subr.bf16.mxu0 %v16632_v36  ;;  %v10541_v62 = vcombine.high %v23219_v59, %v23219_v59  ;;  %v15224_v36 = vunpack.c.l.s4 %v17075_v2 }
 0x89f   : > { %11834 = vmatprep.mubr.bf16.mxu1 %v10542_v52  ;;  %15208 = vmatprep.mubr.bf16.mxu0 %v13916_v48 }
 0x8a0   : > { %v15225_v52 = vunpack.c.0.s8 %v15224_v36 }
 0x8a5   : > { %11805 = vmatpush1.bf16.xpose.msra.mxu1 %v16259_v46  ;;  %15179 = vmatpush1.bf16.xpose.msra.mxu0 %v16631_v60 }
 0x8a6   : > { %11806 = vmatprep.subr.bf16.mxu1 %v16280_v0  ;;  %15180 = vmatprep.subr.bf16.mxu0 %v16652_v26  ;;  %v23908_v0 = vld [vmem:[#allocation83_spill] sm:$0xff] }
 0x8a7   : > { %v15228_v26 = vsub.s32 %v15225_v52, %v23908_v0 }
 0x8ad   : > { %11807 = vmatpush1.bf16.xpose.msra.mxu1 %v16279_v12  ;;  %15181 = vmatpush1.bf16.xpose.msra.mxu0 %v16651_v10 }
 0x8ae   : > { %11808 = vmatprep.subr.bf16.mxu1 %v16300_v15  ;;  %15182 = vmatprep.subr.bf16.mxu0 %v16672_v13  ;;  %v15241_v15 = vld [vmem:[%s23327_s5] sm:$0x3] (!%p16773_p10) }
 0x8af   : > { %v15247_v13 = vld [vmem:[%s23326_s4] sm:$0x3] (!%p16773_p10) }
 0x8b0   : > { %v15252_v20 = vrot.slane (!%p16773_p10), %v15247_v13, %v15251_v47 }
 0x8b5   : > { %11809 = vmatpush1.bf16.xpose.msra.mxu1 %v16299_v28  ;;  %15183 = vmatpush1.bf16.xpose.msra.mxu0 %v16671_v63  ;;  %v15256_v28 = vrot.slane (!%p16773_p10), %v15247_v13, %v15255_v40  ;;  %v15271_v63 = vrot.slane (!%p16773_p10), %v15241_v15, %v15251_v47 }
 0x8b6   : > { %11810 = vmatprep.subr.bf16.mxu1 %v16320_v44  ;;  %15184 = vmatprep.subr.bf16.mxu0 %v16692_v8  ;;  %v15275_v44 = vrot.slane (!%p16773_p10), %v15241_v15, %v15255_v40 }
 0x8b7   : > { %v15257_v8 = vcombine.low (!%p16773_p10), %v15252_v20, %v15256_v28 }
 0x8b8   : > { %v15276_v7 = vcombine.low (!%p16773_p10), %v15271_v63, %v15275_v44 }
 0x8b9   : > { %v15264_v9 = vrot.slane (!%p16773_p10), %v15257_v8, %v15228_v26 }
 0x8ba   : > { %v15283_v6 = vrot.slane (!%p16773_p10), %v15276_v7, %v15228_v26 }
 0x8bd   : > { %11811 = vmatpush1.bf16.xpose.msra.mxu1 %v16319_v42  ;;  %15185 = vmatpush1.bf16.xpose.msra.mxu0 %v16691_v21 }
 0x8be   : > { %11812 = vmatprep.subr.bf16.mxu1 %v16340_v5  ;;  %15186 = vmatprep.subr.bf16.mxu0 %v16712_v61 }
 0x8c5   : > { %11813 = vmatpush1.bf16.xpose.msra.mxu1 %v16339_v23  ;;  %15187 = vmatpush1.bf16.xpose.msra.mxu0 %v16711_v14 }
 0x8c6   : > { %11814 = vmatprep.subr.bf16.mxu1 %v16360_v30  ;;  %15188 = vmatprep.subr.bf16.mxu0 %v16732_v11 }
 0x8cd   : > { %11815 = vmatpush1.bf16.xpose.msra.mxu1 %v16359_v32  ;;  %15189 = vmatpush1.bf16.xpose.msra.mxu0 %v16731_v1 }
 0x8ce   : > { %11816 = vmatprep.subr.bf16.mxu1 %v16380_v31  ;;  %15190 = vmatprep.subr.bf16.mxu0 %v16752_v39 }
 0x8d5   : > { %11817 = vmatpush1.bf16.xpose.msra.mxu1 %v16379_v53  ;;  %15191 = vmatpush1.bf16.xpose.msra.mxu0 %v16751_v50 }
 0x8d6   : > { %11818 = vmatprep.subr.bf16.mxu1 %v16400_v45  ;;  %15192 = vmatprep.subr.bf16.mxu0 %v16772_v33 }
 0x8dd   : > { %11819 = vmatpush1.bf16.xpose.msra.mxu1 %v16399_v56  ;;  %15193 = vmatpush1.bf16.xpose.msra.mxu0 %v16771_v24 }
 0x8e4   : > { %11835 = vmatmul.mubr.bf16.vlgmr.msra.gmra.mrb[0].mxu1 %v10541_v62  ;;  %15209 = vmatmul.mubr.bf16.vlgmr.msra.gmra.mrb[0].mxu0 %v13915_v38 }
 0x9b7   : > { %v11836_v48 = vpop.f32.mrb[0].mxu1  ;;  %v15210_v51 = vpop.f32.mrb[0].mxu0 }
 0x9b8   : > { %v11838_v57 = vpop.f32.mrb[1].mxu1  ;;  %v16779_v22 = vadd.f32 %v15210_v51, %v11836_v48  ;;  %v15212_v18 = vpop.f32.mrb[1].mxu0 }
 0x9b9   : > { %v11840_v46 = vpop.f32.mrb[2].mxu1  ;;  %v16780_v60 = vadd.f32 %v15212_v18, %v11838_v57  ;;  %v15214_v37 = vpop.f32.mrb[2].mxu0 }
 0x9ba   : > { %v11841_v54 = vpop.f32.mrb[3].mxu1  ;;  %v15215_v59 = vpop.f32.mrb[3].mxu0 }
 0x9bb   : > { %v15222_v55 = vcombine.low %v16779_v22, %v16780_v60  ;;  %15239 = sbr.rel (%p16773_p10) target bundleno = 2510 (0x9ce), region = 75 }
 0x9bd   : > { %v15229_v41 = vrot.slane %v15222_v55, %v15228_v26 }
 0x9bf   : > { %v15231_v10 = vadd.f32 %v15229_v41, %v15219_v49 }
 0x9c1   : > { %15235 = vst.msk [vmem:[#allocation4] sm:$0xf] %vm23262_vm3, %v15231_v10 }
 0x9c8   : > { %v15246_v17 = vld [vmem:[#allocation4] sm:$0xf] }
 0x9c9   : > { %v15266_v42 = vmul.f32 %v15264_v9, %v15246_v17 }
 0x9cb   : > { %v15285_v21 = vadd.f32 %v15283_v6, %v15266_v42 }
 0x9cd   : > { %15286 = vst.msk [vmem:[#allocation4] sm:$0xf] %vm23262_vm3, %v15285_v21 }
 0x9ce PF: > { %p23281_p11 = scmp.eq.s32.totalorder %s15377_s26, 3  ;;  %s17076_s15 = smov [#allocation4]  }
 0x9cf   : > { %s15297_s17 = sshll.u32 %s17076_s15, 4  ;;  %s15298_s17 = int_to_ptr.vmem [resolvable:$true] %s15297_s17 }
 0x9d0   : > { %s17000_s18 = scalar_lea.vmem %s15298_s17, 64  ;;  %p17007_p1 = scmp.lt.s32.totalorder %s15298_s17, %s15298_s17 }
 0x9d1   : > { %p17001_p12 = scmp.ne.s32.totalorder %s15298_s17, %s17000_s18  ;;  %p17008_p2 = scmp.lt.s32.totalorder %s17000_s18, %s17000_s18 }
 0x9d3   : > { %p17002_p13 = pnand %p17001_p12, %p23281_p11  ;;  %p17009_p3 = por %p17008_p2, %p17007_p1 }
 0x9d5   : > { %p17003_p0 = pneg %p17002_p13 }
 0x9d7   : > { %p17010_p4 = pnand %p17009_p3, %p17003_p0 }
 0x9d9   : > { %17013 = shalt.err (!%p17010_p4)
}
 0x9da   : > { %s17014_s26 = scalar_lea.hbm %s23328_s6, 64 }
 0x9db   : > { %p17015_p5 = scmp.ne.s32.totalorder %s23328_s6, %s17014_s26  ;;  %p17020_p8 = scmp.lt.u32.totalorder %s17014_s26, %s23328_s6 }
 0x9dd   : > { %p17016_p6 = pnand %p17015_p5, %p23281_p11 }
 0x9df   : > { %p17017_p7 = pneg %p17016_p6 }
 0x9e1   : > { %p17022_p9 = pnand %p17020_p8, %p17017_p7 }
 0x9e3   : > { %17025 = shalt.err (!%p17022_p9)
}
 0x9e4   : > { %16936 = dma.vmem_to_hbm [thread:$0]  (%p23281_p11), %s15298_s17, 64, %s23328_s6, [#allocation5]  }
 0x9e5   : > { %17047 = dma.done.wait (%p23281_p11), [#allocation5], 64  }
 0x9e6   : > { %17049 = vsyncadd (%p23281_p11), [#allocation5], 4294967232 }
 0x9e7 PF: > { %s17_s25 = sadd.s32 1, %s17068_s25   ;;  %s23913_s21 = smov %s17056_s22 }
 0x9e8   : > { %p14_p10 = scmp.ge.s32.totalorder %s17_s25, 6   ;;  %s23914_s22 = smov %s17148_s30 }
 0x9e9   : > { %s23915_s23 = smov %s17064_s24  ;;  %s23916_s24 = smov %s23918_s27 }
 0x9ea   :  { %16 = sbr.rel (!%p14_p10) target bundleno = 3 (0x3), region = 113 }
 0x9f1   :  { %15310 = vsyncpa [#allocation5], 1 }
 0x9f2   :  { %15312 = vsyncpa [#allocation5 + $0x1], 1 }

</bundles_post_ra>
